<compile_context>
chip_gen: v7x
topology: tpu7x:2x2x1
jax: 0.10.0
libtpu: 0.0.40
codegen_flags: <defaults>
</compile_context>

<pallas_src>
import functools
import numpy as np
import jax
import jax.numpy as jnp
from jax.experimental import pallas as pl
from jax.experimental.pallas import tpu as pltpu


def _round_up(x, m):
    return ((x + m - 1) // m) * m


# ----------------------------------------------------------------------------
# Pallas kernel: grid = (batch_tile, time_chunk).  h/c state lives in the
# constant-index (per batch tile) output blocks hT_ref / cT_ref, VMEM-resident
# across the sequential "arbitrary" time-chunk axis.
# ----------------------------------------------------------------------------
def lstm_chunk_kernel(len_sm, lenv_ref, gx_ref, whh_ref,
                      out_ref, hT_ref, cT_ref,
                      *, hidden_size, batch_tile, time_chunk, unroll):
    H, Bt, Tc = hidden_size, batch_tile, time_chunk
    b = pl.program_id(0)          # batch tile ("parallel": 2 TCs on v7x)
    chunk = pl.program_id(1)      # time chunk ("arbitrary": sequential)

    @pl.when(chunk == 0)
    def _():
        hT_ref[...] = jnp.zeros_like(hT_ref)
        cT_ref[...] = jnp.zeros_like(cT_ref)

    # lengths are sorted descending inside each batch tile -> first element is
    # that tile's max length.  Scalar SMEM read is nearly free.
    tile_max_len = len_sm[b * Bt]
    base_t = chunk * Tc

    # If this chunk reaches past the tile's longest sequence, pre-zero the
    # output block so skipped (dead) steps still yield the zero padding that
    # pad_packed_sequence would emit.
    @pl.when(base_t + Tc > tile_max_len)
    def _():
        out_ref[...] = jnp.zeros_like(out_ref)

    # hoisted per-chunk broadcast (JAX does not CSE broadcast_in_dim).
    len_bh = jnp.broadcast_to(lenv_ref[...], (Bt, H))      # (Bt, H) int32

    def step(t):
        t_global = base_t + t

        @pl.when(t_global < tile_max_len)      # skip dead tail steps entirely
        def _():
            if isinstance(t, int):             # fully unrolled: static slice
                row = t * Bt
            else:
                row = pl.multiple_of(t * Bt, Bt)
            h = hT_ref[...]                    # (Bt, H) f32 carried state
            c = cT_ref[...]
            # single recurrent MXU dot on the serial critical path; the
            # non-recurrent x @ W_ih part was precomputed outside the kernel.
            gates = gx_ref[pl.ds(row, Bt), :] + jnp.dot(
                h.astype(whh_ref.dtype), whh_ref[...],
                preferred_element_type=jnp.float32)        # (Bt, 4H) f32

            # PyTorch LSTM gate order: i, f, g, o (H=128 keeps slices
            # 128-lane aligned; gate math is f32 on every chip generation).
            i_g = jax.nn.sigmoid(gates[:, 0 * H:1 * H])
            f_g = jax.nn.sigmoid(gates[:, 1 * H:2 * H])
            g_g = jnp.tanh(gates[:, 2 * H:3 * H])
            o_g = jax.nn.sigmoid(gates[:, 3 * H:4 * H])
            c_new = f_g * c + i_g * g_g
            h_new = o_g * jnp.tanh(c_new)

            # packing semantics: state only advances while t < length; padded
            # output positions are zero-filled.  One mask, reused three times.
            valid = t_global < len_bh
            hT_ref[...] = jnp.where(valid, h_new, h)
            cT_ref[...] = jnp.where(valid, c_new, c)
            out_ref[pl.ds(row, Bt), :] = jnp.where(valid, h_new, 0.0)

    if unroll >= Tc:                           # full unroll (Tc <= 32)
        for t in range(Tc):
            step(t)
    else:                                      # partial unroll for large Tc
        @pl.loop(0, Tc // unroll)
        def _(tb):
            for u in range(unroll):
                step(tb * unroll + u)


def run_lstm_pallas(len_smem, len_tiles, gx, whh_t, *,
                    T_pad, Tc, nb, B_tile, H, unroll, vmem_limit):
    kernel = functools.partial(lstm_chunk_kernel, hidden_size=H,
                               batch_tile=B_tile, time_chunk=Tc, unroll=unroll)
    return pl.pallas_call(
        kernel,
        out_shape=(
            jax.ShapeDtypeStruct((nb, T_pad * B_tile, H), jnp.float32),
            jax.ShapeDtypeStruct((nb, B_tile, H), jnp.float32),
            jax.ShapeDtypeStruct((nb, B_tile, H), jnp.float32),
        ),
        grid_spec=pltpu.PrefetchScalarGridSpec(
            num_scalar_prefetch=1,                      # lengths -> SMEM
            grid=(nb, T_pad // Tc),
            in_specs=[
                pl.BlockSpec((None, B_tile, 1),
                             lambda b, i, lens: (b, 0, 0)),         # lengths (VMEM)
                pl.BlockSpec((None, Tc * B_tile, 4 * H),
                             lambda b, i, lens: (b, i, 0)),         # gx chunk
                pl.BlockSpec((H, 4 * H),
                             lambda b, i, lens: (0, 0)),            # W_hh^T
            ],
            out_specs=[
                pl.BlockSpec((None, Tc * B_tile, H),
                             lambda b, i, lens: (b, i, 0)),         # outputs
                pl.BlockSpec((None, B_tile, H),
                             lambda b, i, lens: (b, 0, 0)),         # h_T (resident)
                pl.BlockSpec((None, B_tile, H),
                             lambda b, i, lens: (b, 0, 0)),         # c_T (resident)
            ],
        ),
        compiler_params=pltpu.CompilerParams(
            dimension_semantics=("parallel", "arbitrary"),
            vmem_limit_bytes=int(vmem_limit),
        ),
    )(len_smem, len_tiles, gx, whh_t)


# ----------------------------------------------------------------------------
# Device-side forward (flat->padded scatter, sort, big gx GEMM, LSTM, unsort).
# ----------------------------------------------------------------------------
@functools.partial(jax.jit, static_argnames=(
    "T", "T_pad", "Tc", "nb", "B_tile", "B", "H", "I", "unroll", "vmem_limit"))
def _encoder_forward(h_flat, len_sorted, offs_sorted, idx_unsort,
                     wih_t, whh_t, bias, *,
                     T, T_pad, Tc, nb, B_tile, B, H, I, unroll, vmem_limit):
    B_pad = nb * B_tile
    # flat token stream -> zero-padded, length-sorted (B_pad, T_pad, I), on device.
    # TODO(synk): `helper.pad_sequence` is undefined in the source module; this
    # is the standard flat->padded interpretation.
    t_idx = jnp.arange(T_pad, dtype=jnp.int32)
    gidx = offs_sorted[:, None] + t_idx[None, :]
    valid = t_idx[None, :] < len_sorted[:, None]
    gidx = jnp.where(valid, gidx, 0)
    x_sorted = jnp.where(valid[..., None], h_flat[gidx], 0.0)   # (B_pad,T_pad,I)

    # time-major within each batch tile, then the whole non-recurrent
    # projection as one well-shaped XLA GEMM; the kernel streams gx so the
    # chunk i+1 DMA overlaps chunk i's recurrence.
    x_tiles = x_sorted.reshape(nb, B_tile, T_pad, I).transpose(0, 2, 1, 3)
    x_tiles = x_tiles.reshape(nb, T_pad * B_tile, I).astype(wih_t.dtype)
    gx = jnp.einsum("nri,ig->nrg", x_tiles, wih_t,
                    preferred_element_type=jnp.float32) + bias  # (nb, R, 4H) f32

    len_tiles = len_sorted.reshape(nb, B_tile, 1)

    out_flat, hT, cT = run_lstm_pallas(
        len_sorted, len_tiles, gx, whh_t,
        T_pad=T_pad, Tc=Tc, nb=nb, B_tile=B_tile, H=H,
        unroll=unroll, vmem_limit=vmem_limit)

    out = out_flat.reshape(nb, T_pad, B_tile, H).transpose(0, 2, 1, 3)
    out = out.reshape(B_pad, T_pad, H)[:, :T]
    sent_output = out[idx_unsort]                               # original order
    hT = hT.reshape(B_pad, H)[:B]
    cT = cT.reshape(B_pad, H)[:B]
    return sent_output, hT, cT


# ----------------------------------------------------------------------------
# Encoder wrapper
# ----------------------------------------------------------------------------
class PallasEncoder:
    """Pallas TPU port of the seq2seq Encoder.  `hidden` is returned in
    length-sorted batch order while `sent_output` is unsorted — mirrors the
    original PyTorch forward."""

    def __init__(self, input_size, hidden_size, key, mxu_dtype=jnp.bfloat16):
        self.input_size = int(input_size)
        self.hidden_size = int(hidden_size)
        k = 1.0 / np.sqrt(hidden_size)        # PyTorch LSTM default init range
        k1, k2, k3, k4 = jax.random.split(key, 4)
        w_ih = jax.random.uniform(k1, (4 * hidden_size, input_size),
                                  jnp.float32, -k, k)
        w_hh = jax.random.uniform(k2, (4 * hidden_size, hidden_size),
                                  jnp.float32, -k, k)
        b_ih = jax.random.uniform(k3, (4 * hidden_size,), jnp.float32, -k, k)
        b_hh = jax.random.uniform(k4, (4 * hidden_size,), jnp.float32, -k, k)
        # pre-transposed for x @ W.  bf16 MXU operands are safe on v5e/v6e/v7x
        # (bf16-native MXUs); gate math / c,h state / accumulation stay f32.
        # Note: with bf16, h is rounded to bf16 before each W_hh dot; error
        # compounds with sequence length (validated loosely in the demo).
        self.mxu_dtype = mxu_dtype
        self.wih_t = jnp.transpose(w_ih).astype(mxu_dtype)           # (I, 4H)
        self.whh_t = jnp.transpose(w_hh).astype(mxu_dtype)           # (H, 4H)
        self.bias = (b_ih + b_hh).reshape(1, 4 * hidden_size)        # (1, 4H) f32

    def forward(self, h_n, batch_sequences_length, time_chunk=256, batch_tiles=1):
        lengths_np = np.asarray(batch_sequences_length).astype(np.int64)
        B = int(lengths_np.shape[0])
        T = int(lengths_np.max())
        I, H = self.input_size, self.hidden_size

        # TODO(synk): on v7x set batch_tiles=2 when the padded batch is >= 16
        # so each TensorCore runs half the batch; on single-TC chips keep 1
        # (a split there only serializes the recurrence).
        nb = max(1, int(batch_tiles))
        B_pad = _round_up(B, 8 * nb)          # 8-sublane tiles -> unmasked stores
        B_tile = B_pad // nb

        # Time-chunk: as large as a conservative VMEM budget allows (the budget
        # is sized so the same Tc fits v7x's 64 MiB VMEM as well as v5e/v6e's
        # 128 MiB).  Per-grid-step overhead (~0.35us) amortized over Tc steps.
        T8 = _round_up(T, 8)
        per_step_bytes = B_tile * 4 * (4 * H + H) * 2   # gx + out, double-buffered
        tc_cap = max(8, ((24 << 20) // per_step_bytes) // 8 * 8)
        Tc = int(min(_round_up(int(time_chunk), 8), T8, tc_cap))
        T_pad = _round_up(T, Tc)
        unroll = Tc if Tc <= 32 else 8                  # full / partial unroll

        dsz = np.dtype(self.mxu_dtype).itemsize
        vmem_bytes = (2 * Tc * B_tile * 4 * H * 4       # gx chunks (f32, 2 bufs)
                      + 2 * Tc * B_tile * H * 4         # out chunks (2 bufs)
                      + 2 * H * 4 * H * dsz             # W_hh
                      + 4 * B_tile * H * 4 + (1 << 16)) # h/c, lengths, slack
        vmem_limit = int(min(max(2 * vmem_bytes, 16 << 20), 48 << 20))

        # host side: scalar index/offset bookkeeping only (mirrors the numpy
        # argsort in the torch code; stable sort => deterministic tie order).
        idx_sort = np.argsort(-lengths_np, kind="stable")
        idx_unsort = np.argsort(idx_sort, kind="stable")
        offsets = np.concatenate([[0], np.cumsum(lengths_np)[:-1]]).astype(np.int32)
        len_sorted = np.zeros(B_pad, np.int32)
        len_sorted[:B] = lengths_np[idx_sort]
        offs_sorted = np.zeros(B_pad, np.int32)
        offs_sorted[:B] = offsets[idx_sort]

        h_flat = jnp.squeeze(jnp.asarray(h_n, jnp.float32), 0)       # (total, I)
        sent_output, hT, cT = _encoder_forward(
            h_flat,
            jnp.asarray(len_sorted), jnp.asarray(offs_sorted),
            jnp.asarray(idx_unsort.astype(np.int32)),
            self.wih_t, self.whh_t, self.bias,
            T=T, T_pad=T_pad, Tc=Tc, nb=nb, B_tile=B_tile, B=B, H=H, I=I,
            unroll=unroll, vmem_limit=vmem_limit)
        hidden = (hT[None], cT[None])   # sorted order (as in the torch code)
        return sent_output, hidden


# ----------------------------------------------------------------------------
# pure-numpy reference for correctness check
# ----------------------------------------------------------------------------
def ref_lstm(x_bt, lengths, wih_t, whh_t, bias):
    def sigmoid(z):
        return 1.0 / (1.0 + np.exp(-z))
    x = np.asarray(x_bt, np.float64)
    wih = np.asarray(wih_t, np.float64)
    whh = np.asarray(whh_t, np.float64)
    b = np.asarray(bias, np.float64)
    B, T, _ = x.shape
    H = whh.shape[0]
    h = np.zeros((B, H)); c = np.zeros((B, H)); outs = np.zeros((B, T, H))
    for t in range(T):
        g = x[:, t] @ wih + h @ whh + b
        i = sigmoid(g[:, 0 * H:1 * H]); f = sigmoid(g[:, 1 * H:2 * H])
        gg = np.tanh(g[:, 2 * H:3 * H]); o = sigmoid(g[:, 3 * H:4 * H])
        c_new = f * c + i * gg
        h_new = o * np.tanh(c_new)
        valid = (t < lengths)[:, None]
        h = np.where(valid, h_new, h)
        c = np.where(valid, c_new, c)
        outs[:, t] = np.where(valid, h_new, 0.0)
    return outs, h, c


def _numpy_ref(h_n, lengths, enc, input_size):
    idx_sort = np.argsort(-lengths, kind="stable")
    idx_unsort = np.argsort(idx_sort, kind="stable")
    h_flat = np.asarray(jnp.squeeze(h_n, 0))
    offs = np.concatenate([[0], np.cumsum(lengths)])
    T = int(lengths.max())
    padded = np.zeros((len(lengths), T, input_size), np.float32)
    for b in range(len(lengths)):
        padded[b, :lengths[b]] = h_flat[offs[b]:offs[b + 1]]
    wih = np.asarray(jnp.asarray(enc.wih_t, jnp.float32))
    whh = np.asarray(jnp.asarray(enc.whh_t, jnp.float32))
    bias = np.asarray(enc.bias)
    out_s, r_h, r_c = ref_lstm(padded[idx_sort], lengths[idx_sort], wih, whh, bias)
    return out_s[idx_unsort], r_h, r_c, T


if __name__ == "__main__":
    input_size, hidden_size = 16, 128
    key = jax.random.PRNGKey(0)
    k_in, k_enc, k_in2 = jax.random.split(key, 3)

    # ---- Test A: f32 MXU operands, B=4, single chunk (Tc=T), full unroll ----
    lengths = np.array([19, 24, 11, 16], dtype=np.int64)
    total_tokens = int(lengths.sum())
    h_n = jax.random.normal(k_in, (1, total_tokens, input_size), jnp.float32)

    enc_f32 = PallasEncoder(input_size, hidden_size, k_enc, mxu_dtype=jnp.float32)
    sent_output, (h_final, c_final) = enc_f32.forward(h_n, lengths)
    jax.block_until_ready(sent_output)
    jax.block_until_ready(h_final)

    ref_out, ref_h, ref_c, T = _numpy_ref(h_n, lengths, enc_f32, input_size)
    assert sent_output.shape == (4, T, hidden_size)
    assert h_final.shape == (1, 4, hidden_size)
    assert np.allclose(np.asarray(sent_output), ref_out, atol=1e-3, rtol=1e-3)
    assert np.allclose(np.asarray(h_final[0]), ref_h, atol=1e-3, rtol=1e-3)
    assert np.allclose(np.asarray(c_final[0]), ref_c, atol=1e-3, rtol=1e-3)

    # ---- Test B: default bf16 MXU operands, Tc=8 -> multi-chunk state carry ----
    enc_bf16 = PallasEncoder(input_size, hidden_size, k_enc)     # bf16 default
    out_bf16, _ = enc_bf16.forward(h_n, lengths, time_chunk=8)
    jax.block_until_ready(out_bf16)
    assert out_bf16.shape == (4, T, hidden_size)
    assert np.all(np.isfinite(np.asarray(out_bf16)))
    assert np.allclose(np.asarray(out_bf16), ref_out, atol=1e-1, rtol=1e-1)

    # ---- Test C: B=12 (padded to 16), 2 batch tiles (v7x 2-TC layout),
    #      Tc=40 -> partial unroll + per-tile dead-tail skipping/pre-zero ----
    lengths2 = np.array([40, 33, 25, 17, 9, 38, 21, 13, 7, 29, 11, 5], np.int64)
    total2 = int(lengths2.sum())
    h_n2 = jax.random.normal(k_in2, (1, total2, input_size), jnp.float32)
    out2, (h2, c2) = enc_f32.forward(h_n2, lengths2, time_chunk=48, batch_tiles=2)
    jax.block_until_ready(out2)

    ref_out2, ref_h2, ref_c2, T2 = _numpy_ref(h_n2, lengths2, enc_f32, input_size)
    assert out2.shape == (12, T2, hidden_size)
    assert np.allclose(np.asarray(out2), ref_out2, atol=1e-3, rtol=1e-3)
    assert np.allclose(np.asarray(h2[0]), ref_h2, atol=1e-3, rtol=1e-3)
    assert np.allclose(np.asarray(c2[0]), ref_c2, atol=1e-3, rtol=1e-3)

    print("KERNEL_OK")
</pallas_src>

<mosaic_0001>
module attributes {stable_mosaic.version = 11 : i64} {
  func.func @lstm_chunk_kernel(%arg0: i32, %arg1: i32, %arg2: memref<8xi32, #tpu.memory_space<smem>>, %arg3: memref<1x8x1xi32, #tpu.memory_space<vmem>>, %arg4: memref<1x192x512xf32, #tpu.memory_space<vmem>>, %arg5: memref<128x512xf32, #tpu.memory_space<vmem>>, %arg6: memref<1x192x128xf32, #tpu.memory_space<vmem>>, %arg7: memref<1x8x128xf32, #tpu.memory_space<vmem>>, %arg8: memref<1x8x128xf32, #tpu.memory_space<vmem>>) attributes {dimension_semantics = [#tpu.dimension_semantics<parallel>, #tpu.dimension_semantics<arbitrary>], iteration_bounds = array<i64: 1, 1>, scalar_prefetch = 1 : i64, scratch_operands = 0 : i64, tpu.core_type = #tpu.core_type<tc>, window_params = [{transform_indices = @transform_0, window_bounds = array<i64: 1, 8, 1>}, {transform_indices = @transform_1, window_bounds = array<i64: 1, 192, 512>}, {pipeline_mode = #tpu.pipeline_mode<synchronous>, transform_indices = @transform_2, window_bounds = array<i64: 128, 512>}, {transform_indices = @transform_3, window_bounds = array<i64: 1, 192, 128>}, {transform_indices = @transform_4, window_bounds = array<i64: 1, 8, 128>}, {transform_indices = @transform_5, window_bounds = array<i64: 1, 8, 128>}]} {
    %c0_i32 = arith.constant 0 : i32
    %0 = arith.cmpi eq, %arg1, %c0_i32 : i32
    %1 = arith.extui %0 : i1 to i32
    %c0_i32_0 = arith.constant 0 : i32
    %2 = arith.cmpi ne, %1, %c0_i32_0 : i32
    scf.if %2 {
      %cst = arith.constant 0.000000e+00 : f32
      %111 = vector.broadcast %cst : f32 to vector<8x128xf32>
      %c0_31 = arith.constant 0 : index
      %c0_32 = arith.constant 0 : index
      %c0_33 = arith.constant 0 : index
      %112 = vector.load %arg7[%c0_31, %c0_32, %c0_33] : memref<1x8x128xf32, #tpu.memory_space<vmem>>, vector<1x8x128xf32>
      %113 = vector.shape_cast %112 : vector<1x8x128xf32> to vector<8x128xf32>
      %114 = vector.shape_cast %111 : vector<8x128xf32> to vector<1x8x128xf32>
      tpu.vector_store %arg7[%c0_31, %c0_32, %c0_33], %114 {strides = array<i32>} : memref<1x8x128xf32, #tpu.memory_space<vmem>>, vector<1x8x128xf32>,
      %cst_34 = arith.constant 0.000000e+00 : f32
      %115 = vector.broadcast %cst_34 : f32 to vector<8x128xf32>
      %c0_35 = arith.constant 0 : index
      %c0_36 = arith.constant 0 : index
      %c0_37 = arith.constant 0 : index
      %116 = vector.load %arg8[%c0_35, %c0_36, %c0_37] : memref<1x8x128xf32, #tpu.memory_space<vmem>>, vector<1x8x128xf32>
      %117 = vector.shape_cast %116 : vector<1x8x128xf32> to vector<8x128xf32>
      %118 = vector.shape_cast %115 : vector<8x128xf32> to vector<1x8x128xf32>
      tpu.vector_store %arg8[%c0_35, %c0_36, %c0_37], %118 {strides = array<i32>} : memref<1x8x128xf32, #tpu.memory_space<vmem>>, vector<1x8x128xf32>,
    } else {
    }
    %c8_i32 = arith.constant 8 : i32
    %3 = arith.muli %arg0, %c8_i32 : i32
    %4 = arith.index_cast %3 : i32 to index
    %5 = memref.load %arg2[%4] : memref<8xi32, #tpu.memory_space<smem>>
    %c24_i32 = arith.constant 24 : i32
    %6 = arith.muli %arg1, %c24_i32 : i32
    %c24_i32_1 = arith.constant 24 : i32
    %7 = arith.addi %6, %c24_i32_1 : i32
    %8 = arith.cmpi sgt, %7, %5 : i32
    %9 = arith.extui %8 : i1 to i32
    %c0_i32_2 = arith.constant 0 : i32
    %10 = arith.cmpi ne, %9, %c0_i32_2 : i32
    scf.if %10 {
      %cst = arith.constant 0.000000e+00 : f32
      %111 = vector.broadcast %cst : f32 to vector<192x128xf32>
      %c0_31 = arith.constant 0 : index
      %c0_32 = arith.constant 0 : index
      %c0_33 = arith.constant 0 : index
      %112 = vector.load %arg6[%c0_31, %c0_32, %c0_33] : memref<1x192x128xf32, #tpu.memory_space<vmem>>, vector<1x192x128xf32>
      %113 = vector.shape_cast %112 : vector<1x192x128xf32> to vector<192x128xf32>
      %114 = vector.shape_cast %111 : vector<192x128xf32> to vector<1x192x128xf32>
      tpu.vector_store %arg6[%c0_31, %c0_32, %c0_33], %114 {strides = array<i32>} : memref<1x192x128xf32, #tpu.memory_space<vmem>>, vector<1x192x128xf32>,
    } else {
    }
    %c0 = arith.constant 0 : index
    %c0_3 = arith.constant 0 : index
    %c0_4 = arith.constant 0 : index
    %11 = vector.load %arg3[%c0, %c0_3, %c0_4] : memref<1x8x1xi32, #tpu.memory_space<vmem>>, vector<1x8x1xi32>
    %12 = vector.shape_cast %11 : vector<1x8x1xi32> to vector<8x1xi32>
    %13 = vector.shape_cast %12 : vector<8x1xi32> to vector<8x1xi32>
    %14 = vector.broadcast %13 : vector<8x1xi32> to vector<8x128xi32>
    %c0_i32_5 = arith.constant 0 : i32
    %15 = arith.addi %6, %c0_i32_5 : i32
    %16 = arith.cmpi slt, %15, %5 : i32
    %17 = arith.extui %16 : i1 to i32
    %c0_i32_6 = arith.constant 0 : i32
    %18 = arith.cmpi ne, %17, %c0_i32_6 : i32
    scf.if %18 {
      %c0_31 = arith.constant 0 : index
      %c0_32 = arith.constant 0 : index
      %c0_33 = arith.constant 0 : index
      %111 = vector.load %arg7[%c0_31, %c0_32, %c0_33] : memref<1x8x128xf32, #tpu.memory_space<vmem>>, vector<1x8x128xf32>
      %112 = vector.shape_cast %111 : vector<1x8x128xf32> to vector<8x128xf32>
      %c0_34 = arith.constant 0 : index
      %c0_35 = arith.constant 0 : index
      %c0_36 = arith.constant 0 : index
      %113 = vector.load %arg8[%c0_34, %c0_35, %c0_36] : memref<1x8x128xf32, #tpu.memory_space<vmem>>, vector<1x8x128xf32>
      %114 = vector.shape_cast %113 : vector<1x8x128xf32> to vector<8x128xf32>
      %c0_37 = arith.constant 0 : index
      %c0_38 = arith.constant 0 : index
      %c0_39 = arith.constant 0 : index
      %115 = vector.load %arg4[%c0_37, %c0_38, %c0_39] : memref<1x192x512xf32, #tpu.memory_space<vmem>>, vector<1x8x512xf32>
      %116 = vector.shape_cast %115 : vector<1x8x512xf32> to vector<8x512xf32>
      %c0_40 = arith.constant 0 : index
      %c0_41 = arith.constant 0 : index
      %117 = vector.load %arg5[%c0_40, %c0_41] : memref<128x512xf32, #tpu.memory_space<vmem>>, vector<128x512xf32>
      %cst = arith.constant dense<0.000000e+00> : vector<8x512xf32>
      %118 = tpu.matmul %112, %117, %cst {dimension_numbers = #tpu.dot_dimension_numbers<[1], [0], [0], [1], [0, 0, 1, 1], [], []>} : vector<8x128xf32>, vector<128x512xf32>, vector<8x512xf32> -> vector<8x512xf32>
      %119 = arith.addf %116, %118 : vector<8x512xf32>
      %120 = vector.extract_strided_slice %119 {offsets = [0, 0], sizes = [8, 128], strides = [1, 1]} : vector<8x512xf32> to vector<8x128xf32>
      %121 = arith.negf %120 : vector<8x128xf32>
      %122 = math.exp %121 : vector<8x128xf32>
      %cst_42 = arith.constant 1.000000e+00 : f32
      %123 = vector.broadcast %cst_42 : f32 to vector<8x128xf32>
      %124 = arith.addf %123, %122 : vector<8x128xf32>
      %125 = arith.divf %123, %124 : vector<8x128xf32>
      %126 = vector.extract_strided_slice %119 {offsets = [0, 128], sizes = [8, 128], strides = [1, 1]} : vector<8x512xf32> to vector<8x128xf32>
      %127 = arith.negf %126 : vector<8x128xf32>
      %128 = math.exp %127 : vector<8x128xf32>
      %cst_43 = arith.constant 1.000000e+00 : f32
      %129 = vector.broadcast %cst_43 : f32 to vector<8x128xf32>
      %130 = arith.addf %129, %128 : vector<8x128xf32>
      %131 = arith.divf %129, %130 : vector<8x128xf32>
      %132 = vector.extract_strided_slice %119 {offsets = [0, 256], sizes = [8, 128], strides = [1, 1]} : vector<8x512xf32> to vector<8x128xf32>
      %133 = math.tanh %132 : vector<8x128xf32>
      %134 = vector.extract_strided_slice %119 {offsets = [0, 384], sizes = [8, 128], strides = [1, 1]} : vector<8x512xf32> to vector<8x128xf32>
      %135 = arith.negf %134 : vector<8x128xf32>
      %136 = math.exp %135 : vector<8x128xf32>
      %cst_44 = arith.constant 1.000000e+00 : f32
      %137 = vector.broadcast %cst_44 : f32 to vector<8x128xf32>
      %138 = arith.addf %137, %136 : vector<8x128xf32>
      %139 = arith.divf %137, %138 : vector<8x128xf32>
      %140 = arith.mulf %131, %114 : vector<8x128xf32>
      %141 = arith.mulf %125, %133 : vector<8x128xf32>
      %142 = arith.addf %140, %141 : vector<8x128xf32>
      %143 = math.tanh %142 : vector<8x128xf32>
      %144 = arith.mulf %139, %143 : vector<8x128xf32>
      %145 = vector.broadcast %15 : i32 to vector<8x128xi32>
      %146 = arith.cmpi slt, %145, %14 : vector<8x128xi32>
      %147 = arith.select %146, %144, %112 : vector<8x128xi1>, vector<8x128xf32>
      %c0_45 = arith.constant 0 : index
      %c0_46 = arith.constant 0 : index
      %c0_47 = arith.constant 0 : index
      %148 = vector.load %arg7[%c0_45, %c0_46, %c0_47] : memref<1x8x128xf32, #tpu.memory_space<vmem>>, vector<1x8x128xf32>
      %149 = vector.shape_cast %148 : vector<1x8x128xf32> to vector<8x128xf32>
      %150 = vector.shape_cast %147 : vector<8x128xf32> to vector<1x8x128xf32>
      tpu.vector_store %arg7[%c0_45, %c0_46, %c0_47], %150 {strides = array<i32>} : memref<1x8x128xf32, #tpu.memory_space<vmem>>, vector<1x8x128xf32>,
      %151 = arith.select %146, %142, %114 : vector<8x128xi1>, vector<8x128xf32>
      %c0_48 = arith.constant 0 : index
      %c0_49 = arith.constant 0 : index
      %c0_50 = arith.constant 0 : index
      %152 = vector.load %arg8[%c0_48, %c0_49, %c0_50] : memref<1x8x128xf32, #tpu.memory_space<vmem>>, vector<1x8x128xf32>
      %153 = vector.shape_cast %152 : vector<1x8x128xf32> to vector<8x128xf32>
      %154 = vector.shape_cast %151 : vector<8x128xf32> to vector<1x8x128xf32>
      tpu.vector_store %arg8[%c0_48, %c0_49, %c0_50], %154 {strides = array<i32>} : memref<1x8x128xf32, #tpu.memory_space<vmem>>, vector<1x8x128xf32>,
      %cst_51 = arith.constant 0.000000e+00 : f32
      %155 = vector.broadcast %cst_51 : f32 to vector<8x128xf32>
      %156 = arith.select %146, %144, %155 : vector<8x128xi1>, vector<8x128xf32>
      %c0_52 = arith.constant 0 : index
      %c0_53 = arith.constant 0 : index
      %c0_54 = arith.constant 0 : index
      %157 = vector.load %arg6[%c0_52, %c0_53, %c0_54] : memref<1x192x128xf32, #tpu.memory_space<vmem>>, vector<1x8x128xf32>
      %158 = vector.shape_cast %157 : vector<1x8x128xf32> to vector<8x128xf32>
      %159 = vector.shape_cast %156 : vector<8x128xf32> to vector<1x8x128xf32>
      tpu.vector_store %arg6[%c0_52, %c0_53, %c0_54], %159 {strides = array<i32>} : memref<1x192x128xf32, #tpu.memory_space<vmem>>, vector<1x8x128xf32>,
    } else {
    }
    %c1_i32 = arith.constant 1 : i32
    %19 = arith.addi %6, %c1_i32 : i32
    %20 = arith.cmpi slt, %19, %5 : i32
    %21 = arith.extui %20 : i1 to i32
    %c0_i32_7 = arith.constant 0 : i32
    %22 = arith.cmpi ne, %21, %c0_i32_7 : i32
    scf.if %22 {
      %c0_31 = arith.constant 0 : index
      %c0_32 = arith.constant 0 : index
      %c0_33 = arith.constant 0 : index
      %111 = vector.load %arg7[%c0_31, %c0_32, %c0_33] : memref<1x8x128xf32, #tpu.memory_space<vmem>>, vector<1x8x128xf32>
      %112 = vector.shape_cast %111 : vector<1x8x128xf32> to vector<8x128xf32>
      %c0_34 = arith.constant 0 : index
      %c0_35 = arith.constant 0 : index
      %c0_36 = arith.constant 0 : index
      %113 = vector.load %arg8[%c0_34, %c0_35, %c0_36] : memref<1x8x128xf32, #tpu.memory_space<vmem>>, vector<1x8x128xf32>
      %114 = vector.shape_cast %113 : vector<1x8x128xf32> to vector<8x128xf32>
      %c0_37 = arith.constant 0 : index
      %c8 = arith.constant 8 : index
      %c0_38 = arith.constant 0 : index
      %115 = vector.load %arg4[%c0_37, %c8, %c0_38] : memref<1x192x512xf32, #tpu.memory_space<vmem>>, vector<1x8x512xf32>
      %116 = vector.shape_cast %115 : vector<1x8x512xf32> to vector<8x512xf32>
      %c0_39 = arith.constant 0 : index
      %c0_40 = arith.constant 0 : index
      %117 = vector.load %arg5[%c0_39, %c0_40] : memref<128x512xf32, #tpu.memory_space<vmem>>, vector<128x512xf32>
      %cst = arith.constant dense<0.000000e+00> : vector<8x512xf32>
      %118 = tpu.matmul %112, %117, %cst {dimension_numbers = #tpu.dot_dimension_numbers<[1], [0], [0], [1], [0, 0, 1, 1], [], []>} : vector<8x128xf32>, vector<128x512xf32>, vector<8x512xf32> -> vector<8x512xf32>
      %119 = arith.addf %116, %118 : vector<8x512xf32>
      %120 = vector.extract_strided_slice %119 {offsets = [0, 0], sizes = [8, 128], strides = [1, 1]} : vector<8x512xf32> to vector<8x128xf32>
      %121 = arith.negf %120 : vector<8x128xf32>
      %122 = math.exp %121 : vector<8x128xf32>
      %cst_41 = arith.constant 1.000000e+00 : f32
      %123 = vector.broadcast %cst_41 : f32 to vector<8x128xf32>
      %124 = arith.addf %123, %122 : vector<8x128xf32>
      %125 = arith.divf %123, %124 : vector<8x128xf32>
      %126 = vector.extract_strided_slice %119 {offsets = [0, 128], sizes = [8, 128], strides = [1, 1]} : vector<8x512xf32> to vector<8x128xf32>
      %127 = arith.negf %126 : vector<8x128xf32>
      %128 = math.exp %127 : vector<8x128xf32>
      %cst_42 = arith.constant 1.000000e+00 : f32
      %129 = vector.broadcast %cst_42 : f32 to vector<8x128xf32>
      %130 = arith.addf %129, %128 : vector<8x128xf32>
      %131 = arith.divf %129, %130 : vector<8x128xf32>
      %132 = vector.extract_strided_slice %119 {offsets = [0, 256], sizes = [8, 128], strides = [1, 1]} : vector<8x512xf32> to vector<8x128xf32>
      %133 = math.tanh %132 : vector<8x128xf32>
      %134 = vector.extract_strided_slice %119 {offsets = [0, 384], sizes = [8, 128], strides = [1, 1]} : vector<8x512xf32> to vector<8x128xf32>
      %135 = arith.negf %134 : vector<8x128xf32>
      %136 = math.exp %135 : vector<8x128xf32>
      %cst_43 = arith.constant 1.000000e+00 : f32
      %137 = vector.broadcast %cst_43 : f32 to vector<8x128xf32>
      %138 = arith.addf %137, %136 : vector<8x128xf32>
      %139 = arith.divf %137, %138 : vector<8x128xf32>
      %140 = arith.mulf %131, %114 : vector<8x128xf32>
      %141 = arith.mulf %125, %133 : vector<8x128xf32>
      %142 = arith.addf %140, %141 : vector<8x128xf32>
      %143 = math.tanh %142 : vector<8x128xf32>
      %144 = arith.mulf %139, %143 : vector<8x128xf32>
      %145 = vector.broadcast %19 : i32 to vector<8x128xi32>
      %146 = arith.cmpi slt, %145, %14 : vector<8x128xi32>
      %147 = arith.select %146, %144, %112 : vector<8x128xi1>, vector<8x128xf32>
      %c0_44 = arith.constant 0 : index
      %c0_45 = arith.constant 0 : index
      %c0_46 = arith.constant 0 : index
      %148 = vector.load %arg7[%c0_44, %c0_45, %c0_46] : memref<1x8x128xf32, #tpu.memory_space<vmem>>, vector<1x8x128xf32>
      %149 = vector.shape_cast %148 : vector<1x8x128xf32> to vector<8x128xf32>
      %150 = vector.shape_cast %147 : vector<8x128xf32> to vector<1x8x128xf32>
      tpu.vector_store %arg7[%c0_44, %c0_45, %c0_46], %150 {strides = array<i32>} : memref<1x8x128xf32, #tpu.memory_space<vmem>>, vector<1x8x128xf32>,
      %151 = arith.select %146, %142, %114 : vector<8x128xi1>, vector<8x128xf32>
      %c0_47 = arith.constant 0 : index
      %c0_48 = arith.constant 0 : index
      %c0_49 = arith.constant 0 : index
      %152 = vector.load %arg8[%c0_47, %c0_48, %c0_49] : memref<1x8x128xf32, #tpu.memory_space<vmem>>, vector<1x8x128xf32>
      %153 = vector.shape_cast %152 : vector<1x8x128xf32> to vector<8x128xf32>
      %154 = vector.shape_cast %151 : vector<8x128xf32> to vector<1x8x128xf32>
      tpu.vector_store %arg8[%c0_47, %c0_48, %c0_49], %154 {strides = array<i32>} : memref<1x8x128xf32, #tpu.memory_space<vmem>>, vector<1x8x128xf32>,
      %cst_50 = arith.constant 0.000000e+00 : f32
      %155 = vector.broadcast %cst_50 : f32 to vector<8x128xf32>
      %156 = arith.select %146, %144, %155 : vector<8x128xi1>, vector<8x128xf32>
      %c0_51 = arith.constant 0 : index
      %c8_52 = arith.constant 8 : index
      %c0_53 = arith.constant 0 : index
      %157 = vector.load %arg6[%c0_51, %c8_52, %c0_53] : memref<1x192x128xf32, #tpu.memory_space<vmem>>, vector<1x8x128xf32>
      %158 = vector.shape_cast %157 : vector<1x8x128xf32> to vector<8x128xf32>
      %159 = vector.shape_cast %156 : vector<8x128xf32> to vector<1x8x128xf32>
      tpu.vector_store %arg6[%c0_51, %c8_52, %c0_53], %159 {strides = array<i32>} : memref<1x192x128xf32, #tpu.memory_space<vmem>>, vector<1x8x128xf32>,
    } else {
    }
    %c2_i32 = arith.constant 2 : i32
    %23 = arith.addi %6, %c2_i32 : i32
    %24 = arith.cmpi slt, %23, %5 : i32
    %25 = arith.extui %24 : i1 to i32
    %c0_i32_8 = arith.constant 0 : i32
    %26 = arith.cmpi ne, %25, %c0_i32_8 : i32
    scf.if %26 {
      %c0_31 = arith.constant 0 : index
      %c0_32 = arith.constant 0 : index
      %c0_33 = arith.constant 0 : index
      %111 = vector.load %arg7[%c0_31, %c0_32, %c0_33] : memref<1x8x128xf32, #tpu.memory_space<vmem>>, vector<1x8x128xf32>
      %112 = vector.shape_cast %111 : vector<1x8x128xf32> to vector<8x128xf32>
      %c0_34 = arith.constant 0 : index
      %c0_35 = arith.constant 0 : index
      %c0_36 = arith.constant 0 : index
      %113 = vector.load %arg8[%c0_34, %c0_35, %c0_36] : memref<1x8x128xf32, #tpu.memory_space<vmem>>, vector<1x8x128xf32>
      %114 = vector.shape_cast %113 : vector<1x8x128xf32> to vector<8x128xf32>
      %c0_37 = arith.constant 0 : index
      %c16 = arith.constant 16 : index
      %c0_38 = arith.constant 0 : index
      %115 = vector.load %arg4[%c0_37, %c16, %c0_38] : memref<1x192x512xf32, #tpu.memory_space<vmem>>, vector<1x8x512xf32>
      %116 = vector.shape_cast %115 : vector<1x8x512xf32> to vector<8x512xf32>
      %c0_39 = arith.constant 0 : index
      %c0_40 = arith.constant 0 : index
      %117 = vector.load %arg5[%c0_39, %c0_40] : memref<128x512xf32, #tpu.memory_space<vmem>>, vector<128x512xf32>
      %cst = arith.constant dense<0.000000e+00> : vector<8x512xf32>
      %118 = tpu.matmul %112, %117, %cst {dimension_numbers = #tpu.dot_dimension_numbers<[1], [0], [0], [1], [0, 0, 1, 1], [], []>} : vector<8x128xf32>, vector<128x512xf32>, vector<8x512xf32> -> vector<8x512xf32>
      %119 = arith.addf %116, %118 : vector<8x512xf32>
      %120 = vector.extract_strided_slice %119 {offsets = [0, 0], sizes = [8, 128], strides = [1, 1]} : vector<8x512xf32> to vector<8x128xf32>
      %121 = arith.negf %120 : vector<8x128xf32>
      %122 = math.exp %121 : vector<8x128xf32>
      %cst_41 = arith.constant 1.000000e+00 : f32
      %123 = vector.broadcast %cst_41 : f32 to vector<8x128xf32>
      %124 = arith.addf %123, %122 : vector<8x128xf32>
      %125 = arith.divf %123, %124 : vector<8x128xf32>
      %126 = vector.extract_strided_slice %119 {offsets = [0, 128], sizes = [8, 128], strides = [1, 1]} : vector<8x512xf32> to vector<8x128xf32>
      %127 = arith.negf %126 : vector<8x128xf32>
      %128 = math.exp %127 : vector<8x128xf32>
      %cst_42 = arith.constant 1.000000e+00 : f32
      %129 = vector.broadcast %cst_42 : f32 to vector<8x128xf32>
      %130 = arith.addf %129, %128 : vector<8x128xf32>
      %131 = arith.divf %129, %130 : vector<8x128xf32>
      %132 = vector.extract_strided_slice %119 {offsets = [0, 256], sizes = [8, 128], strides = [1, 1]} : vector<8x512xf32> to vector<8x128xf32>
      %133 = math.tanh %132 : vector<8x128xf32>
      %134 = vector.extract_strided_slice %119 {offsets = [0, 384], sizes = [8, 128], strides = [1, 1]} : vector<8x512xf32> to vector<8x128xf32>
      %135 = arith.negf %134 : vector<8x128xf32>
      %136 = math.exp %135 : vector<8x128xf32>
      %cst_43 = arith.constant 1.000000e+00 : f32
      %137 = vector.broadcast %cst_43 : f32 to vector<8x128xf32>
      %138 = arith.addf %137, %136 : vector<8x128xf32>
      %139 = arith.divf %137, %138 : vector<8x128xf32>
      %140 = arith.mulf %131, %114 : vector<8x128xf32>
      %141 = arith.mulf %125, %133 : vector<8x128xf32>
      %142 = arith.addf %140, %141 : vector<8x128xf32>
      %143 = math.tanh %142 : vector<8x128xf32>
      %144 = arith.mulf %139, %143 : vector<8x128xf32>
      %145 = vector.broadcast %23 : i32 to vector<8x128xi32>
      %146 = arith.cmpi slt, %145, %14 : vector<8x128xi32>
      %147 = arith.select %146, %144, %112 : vector<8x128xi1>, vector<8x128xf32>
      %c0_44 = arith.constant 0 : index
      %c0_45 = arith.constant 0 : index
      %c0_46 = arith.constant 0 : index
      %148 = vector.load %arg7[%c0_44, %c0_45, %c0_46] : memref<1x8x128xf32, #tpu.memory_space<vmem>>, vector<1x8x128xf32>
      %149 = vector.shape_cast %148 : vector<1x8x128xf32> to vector<8x128xf32>
      %150 = vector.shape_cast %147 : vector<8x128xf32> to vector<1x8x128xf32>
      tpu.vector_store %arg7[%c0_44, %c0_45, %c0_46], %150 {strides = array<i32>} : memref<1x8x128xf32, #tpu.memory_space<vmem>>, vector<1x8x128xf32>,
      %151 = arith.select %146, %142, %114 : vector<8x128xi1>, vector<8x128xf32>
      %c0_47 = arith.constant 0 : index
      %c0_48 = arith.constant 0 : index
      %c0_49 = arith.constant 0 : index
      %152 = vector.load %arg8[%c0_47, %c0_48, %c0_49] : memref<1x8x128xf32, #tpu.memory_space<vmem>>, vector<1x8x128xf32>
      %153 = vector.shape_cast %152 : vector<1x8x128xf32> to vector<8x128xf32>
      %154 = vector.shape_cast %151 : vector<8x128xf32> to vector<1x8x128xf32>
      tpu.vector_store %arg8[%c0_47, %c0_48, %c0_49], %154 {strides = array<i32>} : memref<1x8x128xf32, #tpu.memory_space<vmem>>, vector<1x8x128xf32>,
      %cst_50 = arith.constant 0.000000e+00 : f32
      %155 = vector.broadcast %cst_50 : f32 to vector<8x128xf32>
      %156 = arith.select %146, %144, %155 : vector<8x128xi1>, vector<8x128xf32>
      %c0_51 = arith.constant 0 : index
      %c16_52 = arith.constant 16 : index
      %c0_53 = arith.constant 0 : index
      %157 = vector.load %arg6[%c0_51, %c16_52, %c0_53] : memref<1x192x128xf32, #tpu.memory_space<vmem>>, vector<1x8x128xf32>
      %158 = vector.shape_cast %157 : vector<1x8x128xf32> to vector<8x128xf32>
      %159 = vector.shape_cast %156 : vector<8x128xf32> to vector<1x8x128xf32>
      tpu.vector_store %arg6[%c0_51, %c16_52, %c0_53], %159 {strides = array<i32>} : memref<1x192x128xf32, #tpu.memory_space<vmem>>, vector<1x8x128xf32>,
    } else {
    }
    %c3_i32 = arith.constant 3 : i32
    %27 = arith.addi %6, %c3_i32 : i32
    %28 = arith.cmpi slt, %27, %5 : i32
    %29 = arith.extui %28 : i1 to i32
    %c0_i32_9 = arith.constant 0 : i32
    %30 = arith.cmpi ne, %29, %c0_i32_9 : i32
    scf.if %30 {
      %c0_31 = arith.constant 0 : index
      %c0_32 = arith.constant 0 : index
      %c0_33 = arith.constant 0 : index
      %111 = vector.load %arg7[%c0_31, %c0_32, %c0_33] : memref<1x8x128xf32, #tpu.memory_space<vmem>>, vector<1x8x128xf32>
      %112 = vector.shape_cast %111 : vector<1x8x128xf32> to vector<8x128xf32>
      %c0_34 = arith.constant 0 : index
      %c0_35 = arith.constant 0 : index
      %c0_36 = arith.constant 0 : index
      %113 = vector.load %arg8[%c0_34, %c0_35, %c0_36] : memref<1x8x128xf32, #tpu.memory_space<vmem>>, vector<1x8x128xf32>
      %114 = vector.shape_cast %113 : vector<1x8x128xf32> to vector<8x128xf32>
      %c0_37 = arith.constant 0 : index
      %c24 = arith.constant 24 : index
      %c0_38 = arith.constant 0 : index
      %115 = vector.load %arg4[%c0_37, %c24, %c0_38] : memref<1x192x512xf32, #tpu.memory_space<vmem>>, vector<1x8x512xf32>
      %116 = vector.shape_cast %115 : vector<1x8x512xf32> to vector<8x512xf32>
      %c0_39 = arith.constant 0 : index
      %c0_40 = arith.constant 0 : index
      %117 = vector.load %arg5[%c0_39, %c0_40] : memref<128x512xf32, #tpu.memory_space<vmem>>, vector<128x512xf32>
      %cst = arith.constant dense<0.000000e+00> : vector<8x512xf32>
      %118 = tpu.matmul %112, %117, %cst {dimension_numbers = #tpu.dot_dimension_numbers<[1], [0], [0], [1], [0, 0, 1, 1], [], []>} : vector<8x128xf32>, vector<128x512xf32>, vector<8x512xf32> -> vector<8x512xf32>
      %119 = arith.addf %116, %118 : vector<8x512xf32>
      %120 = vector.extract_strided_slice %119 {offsets = [0, 0], sizes = [8, 128], strides = [1, 1]} : vector<8x512xf32> to vector<8x128xf32>
      %121 = arith.negf %120 : vector<8x128xf32>
      %122 = math.exp %121 : vector<8x128xf32>
      %cst_41 = arith.constant 1.000000e+00 : f32
      %123 = vector.broadcast %cst_41 : f32 to vector<8x128xf32>
      %124 = arith.addf %123, %122 : vector<8x128xf32>
      %125 = arith.divf %123, %124 : vector<8x128xf32>
      %126 = vector.extract_strided_slice %119 {offsets = [0, 128], sizes = [8, 128], strides = [1, 1]} : vector<8x512xf32> to vector<8x128xf32>
      %127 = arith.negf %126 : vector<8x128xf32>
      %128 = math.exp %127 : vector<8x128xf32>
      %cst_42 = arith.constant 1.000000e+00 : f32
      %129 = vector.broadcast %cst_42 : f32 to vector<8x128xf32>
      %130 = arith.addf %129, %128 : vector<8x128xf32>
      %131 = arith.divf %129, %130 : vector<8x128xf32>
      %132 = vector.extract_strided_slice %119 {offsets = [0, 256], sizes = [8, 128], strides = [1, 1]} : vector<8x512xf32> to vector<8x128xf32>
      %133 = math.tanh %132 : vector<8x128xf32>
      %134 = vector.extract_strided_slice %119 {offsets = [0, 384], sizes = [8, 128], strides = [1, 1]} : vector<8x512xf32> to vector<8x128xf32>
      %135 = arith.negf %134 : vector<8x128xf32>
      %136 = math.exp %135 : vector<8x128xf32>
      %cst_43 = arith.constant 1.000000e+00 : f32
      %137 = vector.broadcast %cst_43 : f32 to vector<8x128xf32>
      %138 = arith.addf %137, %136 : vector<8x128xf32>
      %139 = arith.divf %137, %138 : vector<8x128xf32>
      %140 = arith.mulf %131, %114 : vector<8x128xf32>
      %141 = arith.mulf %125, %133 : vector<8x128xf32>
      %142 = arith.addf %140, %141 : vector<8x128xf32>
      %143 = math.tanh %142 : vector<8x128xf32>
      %144 = arith.mulf %139, %143 : vector<8x128xf32>
      %145 = vector.broadcast %27 : i32 to vector<8x128xi32>
      %146 = arith.cmpi slt, %145, %14 : vector<8x128xi32>
      %147 = arith.select %146, %144, %112 : vector<8x128xi1>, vector<8x128xf32>
      %c0_44 = arith.constant 0 : index
      %c0_45 = arith.constant 0 : index
      %c0_46 = arith.constant 0 : index
      %148 = vector.load %arg7[%c0_44, %c0_45, %c0_46] : memref<1x8x128xf32, #tpu.memory_space<vmem>>, vector<1x8x128xf32>
      %149 = vector.shape_cast %148 : vector<1x8x128xf32> to vector<8x128xf32>
      %150 = vector.shape_cast %147 : vector<8x128xf32> to vector<1x8x128xf32>
      tpu.vector_store %arg7[%c0_44, %c0_45, %c0_46], %150 {strides = array<i32>} : memref<1x8x128xf32, #tpu.memory_space<vmem>>, vector<1x8x128xf32>,
      %151 = arith.select %146, %142, %114 : vector<8x128xi1>, vector<8x128xf32>
      %c0_47 = arith.constant 0 : index
      %c0_48 = arith.constant 0 : index
      %c0_49 = arith.constant 0 : index
      %152 = vector.load %arg8[%c0_47, %c0_48, %c0_49] : memref<1x8x128xf32, #tpu.memory_space<vmem>>, vector<1x8x128xf32>
      %153 = vector.shape_cast %152 : vector<1x8x128xf32> to vector<8x128xf32>
      %154 = vector.shape_cast %151 : vector<8x128xf32> to vector<1x8x128xf32>
      tpu.vector_store %arg8[%c0_47, %c0_48, %c0_49], %154 {strides = array<i32>} : memref<1x8x128xf32, #tpu.memory_space<vmem>>, vector<1x8x128xf32>,
      %cst_50 = arith.constant 0.000000e+00 : f32
      %155 = vector.broadcast %cst_50 : f32 to vector<8x128xf32>
      %156 = arith.select %146, %144, %155 : vector<8x128xi1>, vector<8x128xf32>
      %c0_51 = arith.constant 0 : index
      %c24_52 = arith.constant 24 : index
      %c0_53 = arith.constant 0 : index
      %157 = vector.load %arg6[%c0_51, %c24_52, %c0_53] : memref<1x192x128xf32, #tpu.memory_space<vmem>>, vector<1x8x128xf32>
      %158 = vector.shape_cast %157 : vector<1x8x128xf32> to vector<8x128xf32>
      %159 = vector.shape_cast %156 : vector<8x128xf32> to vector<1x8x128xf32>
      tpu.vector_store %arg6[%c0_51, %c24_52, %c0_53], %159 {strides = array<i32>} : memref<1x192x128xf32, #tpu.memory_space<vmem>>, vector<1x8x128xf32>,
    } else {
    }
    %c4_i32 = arith.constant 4 : i32
    %31 = arith.addi %6, %c4_i32 : i32
    %32 = arith.cmpi slt, %31, %5 : i32
    %33 = arith.extui %32 : i1 to i32
    %c0_i32_10 = arith.constant 0 : i32
    %34 = arith.cmpi ne, %33, %c0_i32_10 : i32
    scf.if %34 {
      %c0_31 = arith.constant 0 : index
      %c0_32 = arith.constant 0 : index
      %c0_33 = arith.constant 0 : index
      %111 = vector.load %arg7[%c0_31, %c0_32, %c0_33] : memref<1x8x128xf32, #tpu.memory_space<vmem>>, vector<1x8x128xf32>
      %112 = vector.shape_cast %111 : vector<1x8x128xf32> to vector<8x128xf32>
      %c0_34 = arith.constant 0 : index
      %c0_35 = arith.constant 0 : index
      %c0_36 = arith.constant 0 : index
      %113 = vector.load %arg8[%c0_34, %c0_35, %c0_36] : memref<1x8x128xf32, #tpu.memory_space<vmem>>, vector<1x8x128xf32>
      %114 = vector.shape_cast %113 : vector<1x8x128xf32> to vector<8x128xf32>
      %c0_37 = arith.constant 0 : index
      %c32 = arith.constant 32 : index
      %c0_38 = arith.constant 0 : index
      %115 = vector.load %arg4[%c0_37, %c32, %c0_38] : memref<1x192x512xf32, #tpu.memory_space<vmem>>, vector<1x8x512xf32>
      %116 = vector.shape_cast %115 : vector<1x8x512xf32> to vector<8x512xf32>
      %c0_39 = arith.constant 0 : index
      %c0_40 = arith.constant 0 : index
      %117 = vector.load %arg5[%c0_39, %c0_40] : memref<128x512xf32, #tpu.memory_space<vmem>>, vector<128x512xf32>
      %cst = arith.constant dense<0.000000e+00> : vector<8x512xf32>
      %118 = tpu.matmul %112, %117, %cst {dimension_numbers = #tpu.dot_dimension_numbers<[1], [0], [0], [1], [0, 0, 1, 1], [], []>} : vector<8x128xf32>, vector<128x512xf32>, vector<8x512xf32> -> vector<8x512xf32>
      %119 = arith.addf %116, %118 : vector<8x512xf32>
      %120 = vector.extract_strided_slice %119 {offsets = [0, 0], sizes = [8, 128], strides = [1, 1]} : vector<8x512xf32> to vector<8x128xf32>
      %121 = arith.negf %120 : vector<8x128xf32>
      %122 = math.exp %121 : vector<8x128xf32>
      %cst_41 = arith.constant 1.000000e+00 : f32
      %123 = vector.broadcast %cst_41 : f32 to vector<8x128xf32>
      %124 = arith.addf %123, %122 : vector<8x128xf32>
      %125 = arith.divf %123, %124 : vector<8x128xf32>
      %126 = vector.extract_strided_slice %119 {offsets = [0, 128], sizes = [8, 128], strides = [1, 1]} : vector<8x512xf32> to vector<8x128xf32>
      %127 = arith.negf %126 : vector<8x128xf32>
      %128 = math.exp %127 : vector<8x128xf32>
      %cst_42 = arith.constant 1.000000e+00 : f32
      %129 = vector.broadcast %cst_42 : f32 to vector<8x128xf32>
      %130 = arith.addf %129, %128 : vector<8x128xf32>
      %131 = arith.divf %129, %130 : vector<8x128xf32>
      %132 = vector.extract_strided_slice %119 {offsets = [0, 256], sizes = [8, 128], strides = [1, 1]} : vector<8x512xf32> to vector<8x128xf32>
      %133 = math.tanh %132 : vector<8x128xf32>
      %134 = vector.extract_strided_slice %119 {offsets = [0, 384], sizes = [8, 128], strides = [1, 1]} : vector<8x512xf32> to vector<8x128xf32>
      %135 = arith.negf %134 : vector<8x128xf32>
      %136 = math.exp %135 : vector<8x128xf32>
      %cst_43 = arith.constant 1.000000e+00 : f32
      %137 = vector.broadcast %cst_43 : f32 to vector<8x128xf32>
      %138 = arith.addf %137, %136 : vector<8x128xf32>
      %139 = arith.divf %137, %138 : vector<8x128xf32>
      %140 = arith.mulf %131, %114 : vector<8x128xf32>
      %141 = arith.mulf %125, %133 : vector<8x128xf32>
      %142 = arith.addf %140, %141 : vector<8x128xf32>
      %143 = math.tanh %142 : vector<8x128xf32>
      %144 = arith.mulf %139, %143 : vector<8x128xf32>
      %145 = vector.broadcast %31 : i32 to vector<8x128xi32>
      %146 = arith.cmpi slt, %145, %14 : vector<8x128xi32>
      %147 = arith.select %146, %144, %112 : vector<8x128xi1>, vector<8x128xf32>
      %c0_44 = arith.constant 0 : index
      %c0_45 = arith.constant 0 : index
      %c0_46 = arith.constant 0 : index
      %148 = vector.load %arg7[%c0_44, %c0_45, %c0_46] : memref<1x8x128xf32, #tpu.memory_space<vmem>>, vector<1x8x128xf32>
      %149 = vector.shape_cast %148 : vector<1x8x128xf32> to vector<8x128xf32>
      %150 = vector.shape_cast %147 : vector<8x128xf32> to vector<1x8x128xf32>
      tpu.vector_store %arg7[%c0_44, %c0_45, %c0_46], %150 {strides = array<i32>} : memref<1x8x128xf32, #tpu.memory_space<vmem>>, vector<1x8x128xf32>,
      %151 = arith.select %146, %142, %114 : vector<8x128xi1>, vector<8x128xf32>
      %c0_47 = arith.constant 0 : index
      %c0_48 = arith.constant 0 : index
      %c0_49 = arith.constant 0 : index
      %152 = vector.load %arg8[%c0_47, %c0_48, %c0_49] : memref<1x8x128xf32, #tpu.memory_space<vmem>>, vector<1x8x128xf32>
      %153 = vector.shape_cast %152 : vector<1x8x128xf32> to vector<8x128xf32>
      %154 = vector.shape_cast %151 : vector<8x128xf32> to vector<1x8x128xf32>
      tpu.vector_store %arg8[%c0_47, %c0_48, %c0_49], %154 {strides = array<i32>} : memref<1x8x128xf32, #tpu.memory_space<vmem>>, vector<1x8x128xf32>,
      %cst_50 = arith.constant 0.000000e+00 : f32
      %155 = vector.broadcast %cst_50 : f32 to vector<8x128xf32>
      %156 = arith.select %146, %144, %155 : vector<8x128xi1>, vector<8x128xf32>
      %c0_51 = arith.constant 0 : index
      %c32_52 = arith.constant 32 : index
      %c0_53 = arith.constant 0 : index
      %157 = vector.load %arg6[%c0_51, %c32_52, %c0_53] : memref<1x192x128xf32, #tpu.memory_space<vmem>>, vector<1x8x128xf32>
      %158 = vector.shape_cast %157 : vector<1x8x128xf32> to vector<8x128xf32>
      %159 = vector.shape_cast %156 : vector<8x128xf32> to vector<1x8x128xf32>
      tpu.vector_store %arg6[%c0_51, %c32_52, %c0_53], %159 {strides = array<i32>} : memref<1x192x128xf32, #tpu.memory_space<vmem>>, vector<1x8x128xf32>,
    } else {
    }
    %c5_i32 = arith.constant 5 : i32
    %35 = arith.addi %6, %c5_i32 : i32
    %36 = arith.cmpi slt, %35, %5 : i32
    %37 = arith.extui %36 : i1 to i32
    %c0_i32_11 = arith.constant 0 : i32
    %38 = arith.cmpi ne, %37, %c0_i32_11 : i32
    scf.if %38 {
      %c0_31 = arith.constant 0 : index
      %c0_32 = arith.constant 0 : index
      %c0_33 = arith.constant 0 : index
      %111 = vector.load %arg7[%c0_31, %c0_32, %c0_33] : memref<1x8x128xf32, #tpu.memory_space<vmem>>, vector<1x8x128xf32>
      %112 = vector.shape_cast %111 : vector<1x8x128xf32> to vector<8x128xf32>
      %c0_34 = arith.constant 0 : index
      %c0_35 = arith.constant 0 : index
      %c0_36 = arith.constant 0 : index
      %113 = vector.load %arg8[%c0_34, %c0_35, %c0_36] : memref<1x8x128xf32, #tpu.memory_space<vmem>>, vector<1x8x128xf32>
      %114 = vector.shape_cast %113 : vector<1x8x128xf32> to vector<8x128xf32>
      %c0_37 = arith.constant 0 : index
      %c40 = arith.constant 40 : index
      %c0_38 = arith.constant 0 : index
      %115 = vector.load %arg4[%c0_37, %c40, %c0_38] : memref<1x192x512xf32, #tpu.memory_space<vmem>>, vector<1x8x512xf32>
      %116 = vector.shape_cast %115 : vector<1x8x512xf32> to vector<8x512xf32>
      %c0_39 = arith.constant 0 : index
      %c0_40 = arith.constant 0 : index
      %117 = vector.load %arg5[%c0_39, %c0_40] : memref<128x512xf32, #tpu.memory_space<vmem>>, vector<128x512xf32>
      %cst = arith.constant dense<0.000000e+00> : vector<8x512xf32>
      %118 = tpu.matmul %112, %117, %cst {dimension_numbers = #tpu.dot_dimension_numbers<[1], [0], [0], [1], [0, 0, 1, 1], [], []>} : vector<8x128xf32>, vector<128x512xf32>, vector<8x512xf32> -> vector<8x512xf32>
      %119 = arith.addf %116, %118 : vector<8x512xf32>
      %120 = vector.extract_strided_slice %119 {offsets = [0, 0], sizes = [8, 128], strides = [1, 1]} : vector<8x512xf32> to vector<8x128xf32>
      %121 = arith.negf %120 : vector<8x128xf32>
      %122 = math.exp %121 : vector<8x128xf32>
      %cst_41 = arith.constant 1.000000e+00 : f32
      %123 = vector.broadcast %cst_41 : f32 to vector<8x128xf32>
      %124 = arith.addf %123, %122 : vector<8x128xf32>
      %125 = arith.divf %123, %124 : vector<8x128xf32>
      %126 = vector.extract_strided_slice %119 {offsets = [0, 128], sizes = [8, 128], strides = [1, 1]} : vector<8x512xf32> to vector<8x128xf32>
      %127 = arith.negf %126 : vector<8x128xf32>
      %128 = math.exp %127 : vector<8x128xf32>
      %cst_42 = arith.constant 1.000000e+00 : f32
      %129 = vector.broadcast %cst_42 : f32 to vector<8x128xf32>
      %130 = arith.addf %129, %128 : vector<8x128xf32>
      %131 = arith.divf %129, %130 : vector<8x128xf32>
      %132 = vector.extract_strided_slice %119 {offsets = [0, 256], sizes = [8, 128], strides = [1, 1]} : vector<8x512xf32> to vector<8x128xf32>
      %133 = math.tanh %132 : vector<8x128xf32>
      %134 = vector.extract_strided_slice %119 {offsets = [0, 384], sizes = [8, 128], strides = [1, 1]} : vector<8x512xf32> to vector<8x128xf32>
      %135 = arith.negf %134 : vector<8x128xf32>
      %136 = math.exp %135 : vector<8x128xf32>
      %cst_43 = arith.constant 1.000000e+00 : f32
      %137 = vector.broadcast %cst_43 : f32 to vector<8x128xf32>
      %138 = arith.addf %137, %136 : vector<8x128xf32>
      %139 = arith.divf %137, %138 : vector<8x128xf32>
      %140 = arith.mulf %131, %114 : vector<8x128xf32>
      %141 = arith.mulf %125, %133 : vector<8x128xf32>
      %142 = arith.addf %140, %141 : vector<8x128xf32>
      %143 = math.tanh %142 : vector<8x128xf32>
      %144 = arith.mulf %139, %143 : vector<8x128xf32>
      %145 = vector.broadcast %35 : i32 to vector<8x128xi32>
      %146 = arith.cmpi slt, %145, %14 : vector<8x128xi32>
      %147 = arith.select %146, %144, %112 : vector<8x128xi1>, vector<8x128xf32>
      %c0_44 = arith.constant 0 : index
      %c0_45 = arith.constant 0 : index
      %c0_46 = arith.constant 0 : index
      %148 = vector.load %arg7[%c0_44, %c0_45, %c0_46] : memref<1x8x128xf32, #tpu.memory_space<vmem>>, vector<1x8x128xf32>
      %149 = vector.shape_cast %148 : vector<1x8x128xf32> to vector<8x128xf32>
      %150 = vector.shape_cast %147 : vector<8x128xf32> to vector<1x8x128xf32>
      tpu.vector_store %arg7[%c0_44, %c0_45, %c0_46], %150 {strides = array<i32>} : memref<1x8x128xf32, #tpu.memory_space<vmem>>, vector<1x8x128xf32>,
      %151 = arith.select %146, %142, %114 : vector<8x128xi1>, vector<8x128xf32>
      %c0_47 = arith.constant 0 : index
      %c0_48 = arith.constant 0 : index
      %c0_49 = arith.constant 0 : index
      %152 = vector.load %arg8[%c0_47, %c0_48, %c0_49] : memref<1x8x128xf32, #tpu.memory_space<vmem>>, vector<1x8x128xf32>
      %153 = vector.shape_cast %152 : vector<1x8x128xf32> to vector<8x128xf32>
      %154 = vector.shape_cast %151 : vector<8x128xf32> to vector<1x8x128xf32>
      tpu.vector_store %arg8[%c0_47, %c0_48, %c0_49], %154 {strides = array<i32>} : memref<1x8x128xf32, #tpu.memory_space<vmem>>, vector<1x8x128xf32>,
      %cst_50 = arith.constant 0.000000e+00 : f32
      %155 = vector.broadcast %cst_50 : f32 to vector<8x128xf32>
      %156 = arith.select %146, %144, %155 : vector<8x128xi1>, vector<8x128xf32>
      %c0_51 = arith.constant 0 : index
      %c40_52 = arith.constant 40 : index
      %c0_53 = arith.constant 0 : index
      %157 = vector.load %arg6[%c0_51, %c40_52, %c0_53] : memref<1x192x128xf32, #tpu.memory_space<vmem>>, vector<1x8x128xf32>
      %158 = vector.shape_cast %157 : vector<1x8x128xf32> to vector<8x128xf32>
      %159 = vector.shape_cast %156 : vector<8x128xf32> to vector<1x8x128xf32>
      tpu.vector_store %arg6[%c0_51, %c40_52, %c0_53], %159 {strides = array<i32>} : memref<1x192x128xf32, #tpu.memory_space<vmem>>, vector<1x8x128xf32>,
    } else {
    }
    %c6_i32 = arith.constant 6 : i32
    %39 = arith.addi %6, %c6_i32 : i32
    %40 = arith.cmpi slt, %39, %5 : i32
    %41 = arith.extui %40 : i1 to i32
    %c0_i32_12 = arith.constant 0 : i32
    %42 = arith.cmpi ne, %41, %c0_i32_12 : i32
    scf.if %42 {
      %c0_31 = arith.constant 0 : index
      %c0_32 = arith.constant 0 : index
      %c0_33 = arith.constant 0 : index
      %111 = vector.load %arg7[%c0_31, %c0_32, %c0_33] : memref<1x8x128xf32, #tpu.memory_space<vmem>>, vector<1x8x128xf32>
      %112 = vector.shape_cast %111 : vector<1x8x128xf32> to vector<8x128xf32>
      %c0_34 = arith.constant 0 : index
      %c0_35 = arith.constant 0 : index
      %c0_36 = arith.constant 0 : index
      %113 = vector.load %arg8[%c0_34, %c0_35, %c0_36] : memref<1x8x128xf32, #tpu.memory_space<vmem>>, vector<1x8x128xf32>
      %114 = vector.shape_cast %113 : vector<1x8x128xf32> to vector<8x128xf32>
      %c0_37 = arith.constant 0 : index
      %c48 = arith.constant 48 : index
      %c0_38 = arith.constant 0 : index
      %115 = vector.load %arg4[%c0_37, %c48, %c0_38] : memref<1x192x512xf32, #tpu.memory_space<vmem>>, vector<1x8x512xf32>
      %116 = vector.shape_cast %115 : vector<1x8x512xf32> to vector<8x512xf32>
      %c0_39 = arith.constant 0 : index
      %c0_40 = arith.constant 0 : index
      %117 = vector.load %arg5[%c0_39, %c0_40] : memref<128x512xf32, #tpu.memory_space<vmem>>, vector<128x512xf32>
      %cst = arith.constant dense<0.000000e+00> : vector<8x512xf32>
      %118 = tpu.matmul %112, %117, %cst {dimension_numbers = #tpu.dot_dimension_numbers<[1], [0], [0], [1], [0, 0, 1, 1], [], []>} : vector<8x128xf32>, vector<128x512xf32>, vector<8x512xf32> -> vector<8x512xf32>
      %119 = arith.addf %116, %118 : vector<8x512xf32>
      %120 = vector.extract_strided_slice %119 {offsets = [0, 0], sizes = [8, 128], strides = [1, 1]} : vector<8x512xf32> to vector<8x128xf32>
      %121 = arith.negf %120 : vector<8x128xf32>
      %122 = math.exp %121 : vector<8x128xf32>
      %cst_41 = arith.constant 1.000000e+00 : f32
      %123 = vector.broadcast %cst_41 : f32 to vector<8x128xf32>
      %124 = arith.addf %123, %122 : vector<8x128xf32>
      %125 = arith.divf %123, %124 : vector<8x128xf32>
      %126 = vector.extract_strided_slice %119 {offsets = [0, 128], sizes = [8, 128], strides = [1, 1]} : vector<8x512xf32> to vector<8x128xf32>
      %127 = arith.negf %126 : vector<8x128xf32>
      %128 = math.exp %127 : vector<8x128xf32>
      %cst_42 = arith.constant 1.000000e+00 : f32
      %129 = vector.broadcast %cst_42 : f32 to vector<8x128xf32>
      %130 = arith.addf %129, %128 : vector<8x128xf32>
      %131 = arith.divf %129, %130 : vector<8x128xf32>
      %132 = vector.extract_strided_slice %119 {offsets = [0, 256], sizes = [8, 128], strides = [1, 1]} : vector<8x512xf32> to vector<8x128xf32>
      %133 = math.tanh %132 : vector<8x128xf32>
      %134 = vector.extract_strided_slice %119 {offsets = [0, 384], sizes = [8, 128], strides = [1, 1]} : vector<8x512xf32> to vector<8x128xf32>
      %135 = arith.negf %134 : vector<8x128xf32>
      %136 = math.exp %135 : vector<8x128xf32>
      %cst_43 = arith.constant 1.000000e+00 : f32
      %137 = vector.broadcast %cst_43 : f32 to vector<8x128xf32>
      %138 = arith.addf %137, %136 : vector<8x128xf32>
      %139 = arith.divf %137, %138 : vector<8x128xf32>
      %140 = arith.mulf %131, %114 : vector<8x128xf32>
      %141 = arith.mulf %125, %133 : vector<8x128xf32>
      %142 = arith.addf %140, %141 : vector<8x128xf32>
      %143 = math.tanh %142 : vector<8x128xf32>
      %144 = arith.mulf %139, %143 : vector<8x128xf32>
      %145 = vector.broadcast %39 : i32 to vector<8x128xi32>
      %146 = arith.cmpi slt, %145, %14 : vector<8x128xi32>
      %147 = arith.select %146, %144, %112 : vector<8x128xi1>, vector<8x128xf32>
      %c0_44 = arith.constant 0 : index
      %c0_45 = arith.constant 0 : index
      %c0_46 = arith.constant 0 : index
      %148 = vector.load %arg7[%c0_44, %c0_45, %c0_46] : memref<1x8x128xf32, #tpu.memory_space<vmem>>, vector<1x8x128xf32>
      %149 = vector.shape_cast %148 : vector<1x8x128xf32> to vector<8x128xf32>
      %150 = vector.shape_cast %147 : vector<8x128xf32> to vector<1x8x128xf32>
      tpu.vector_store %arg7[%c0_44, %c0_45, %c0_46], %150 {strides = array<i32>} : memref<1x8x128xf32, #tpu.memory_space<vmem>>, vector<1x8x128xf32>,
      %151 = arith.select %146, %142, %114 : vector<8x128xi1>, vector<8x128xf32>
      %c0_47 = arith.constant 0 : index
      %c0_48 = arith.constant 0 : index
      %c0_49 = arith.constant 0 : index
      %152 = vector.load %arg8[%c0_47, %c0_48, %c0_49] : memref<1x8x128xf32, #tpu.memory_space<vmem>>, vector<1x8x128xf32>
      %153 = vector.shape_cast %152 : vector<1x8x128xf32> to vector<8x128xf32>
      %154 = vector.shape_cast %151 : vector<8x128xf32> to vector<1x8x128xf32>
      tpu.vector_store %arg8[%c0_47, %c0_48, %c0_49], %154 {strides = array<i32>} : memref<1x8x128xf32, #tpu.memory_space<vmem>>, vector<1x8x128xf32>,
      %cst_50 = arith.constant 0.000000e+00 : f32
      %155 = vector.broadcast %cst_50 : f32 to vector<8x128xf32>
      %156 = arith.select %146, %144, %155 : vector<8x128xi1>, vector<8x128xf32>
      %c0_51 = arith.constant 0 : index
      %c48_52 = arith.constant 48 : index
      %c0_53 = arith.constant 0 : index
      %157 = vector.load %arg6[%c0_51, %c48_52, %c0_53] : memref<1x192x128xf32, #tpu.memory_space<vmem>>, vector<1x8x128xf32>
      %158 = vector.shape_cast %157 : vector<1x8x128xf32> to vector<8x128xf32>
      %159 = vector.shape_cast %156 : vector<8x128xf32> to vector<1x8x128xf32>
      tpu.vector_store %arg6[%c0_51, %c48_52, %c0_53], %159 {strides = array<i32>} : memref<1x192x128xf32, #tpu.memory_space<vmem>>, vector<1x8x128xf32>,
    } else {
    }
    %c7_i32 = arith.constant 7 : i32
    %43 = arith.addi %6, %c7_i32 : i32
    %44 = arith.cmpi slt, %43, %5 : i32
    %45 = arith.extui %44 : i1 to i32
    %c0_i32_13 = arith.constant 0 : i32
    %46 = arith.cmpi ne, %45, %c0_i32_13 : i32
    scf.if %46 {
      %c0_31 = arith.constant 0 : index
      %c0_32 = arith.constant 0 : index
      %c0_33 = arith.constant 0 : index
      %111 = vector.load %arg7[%c0_31, %c0_32, %c0_33] : memref<1x8x128xf32, #tpu.memory_space<vmem>>, vector<1x8x128xf32>
      %112 = vector.shape_cast %111 : vector<1x8x128xf32> to vector<8x128xf32>
      %c0_34 = arith.constant 0 : index
      %c0_35 = arith.constant 0 : index
      %c0_36 = arith.constant 0 : index
      %113 = vector.load %arg8[%c0_34, %c0_35, %c0_36] : memref<1x8x128xf32, #tpu.memory_space<vmem>>, vector<1x8x128xf32>
      %114 = vector.shape_cast %113 : vector<1x8x128xf32> to vector<8x128xf32>
      %c0_37 = arith.constant 0 : index
      %c56 = arith.constant 56 : index
      %c0_38 = arith.constant 0 : index
      %115 = vector.load %arg4[%c0_37, %c56, %c0_38] : memref<1x192x512xf32, #tpu.memory_space<vmem>>, vector<1x8x512xf32>
      %116 = vector.shape_cast %115 : vector<1x8x512xf32> to vector<8x512xf32>
      %c0_39 = arith.constant 0 : index
      %c0_40 = arith.constant 0 : index
      %117 = vector.load %arg5[%c0_39, %c0_40] : memref<128x512xf32, #tpu.memory_space<vmem>>, vector<128x512xf32>
      %cst = arith.constant dense<0.000000e+00> : vector<8x512xf32>
      %118 = tpu.matmul %112, %117, %cst {dimension_numbers = #tpu.dot_dimension_numbers<[1], [0], [0], [1], [0, 0, 1, 1], [], []>} : vector<8x128xf32>, vector<128x512xf32>, vector<8x512xf32> -> vector<8x512xf32>
      %119 = arith.addf %116, %118 : vector<8x512xf32>
      %120 = vector.extract_strided_slice %119 {offsets = [0, 0], sizes = [8, 128], strides = [1, 1]} : vector<8x512xf32> to vector<8x128xf32>
      %121 = arith.negf %120 : vector<8x128xf32>
      %122 = math.exp %121 : vector<8x128xf32>
      %cst_41 = arith.constant 1.000000e+00 : f32
      %123 = vector.broadcast %cst_41 : f32 to vector<8x128xf32>
      %124 = arith.addf %123, %122 : vector<8x128xf32>
      %125 = arith.divf %123, %124 : vector<8x128xf32>
      %126 = vector.extract_strided_slice %119 {offsets = [0, 128], sizes = [8, 128], strides = [1, 1]} : vector<8x512xf32> to vector<8x128xf32>
      %127 = arith.negf %126 : vector<8x128xf32>
      %128 = math.exp %127 : vector<8x128xf32>
      %cst_42 = arith.constant 1.000000e+00 : f32
      %129 = vector.broadcast %cst_42 : f32 to vector<8x128xf32>
      %130 = arith.addf %129, %128 : vector<8x128xf32>
      %131 = arith.divf %129, %130 : vector<8x128xf32>
      %132 = vector.extract_strided_slice %119 {offsets = [0, 256], sizes = [8, 128], strides = [1, 1]} : vector<8x512xf32> to vector<8x128xf32>
      %133 = math.tanh %132 : vector<8x128xf32>
      %134 = vector.extract_strided_slice %119 {offsets = [0, 384], sizes = [8, 128], strides = [1, 1]} : vector<8x512xf32> to vector<8x128xf32>
      %135 = arith.negf %134 : vector<8x128xf32>
      %136 = math.exp %135 : vector<8x128xf32>
      %cst_43 = arith.constant 1.000000e+00 : f32
      %137 = vector.broadcast %cst_43 : f32 to vector<8x128xf32>
      %138 = arith.addf %137, %136 : vector<8x128xf32>
      %139 = arith.divf %137, %138 : vector<8x128xf32>
      %140 = arith.mulf %131, %114 : vector<8x128xf32>
      %141 = arith.mulf %125, %133 : vector<8x128xf32>
      %142 = arith.addf %140, %141 : vector<8x128xf32>
      %143 = math.tanh %142 : vector<8x128xf32>
      %144 = arith.mulf %139, %143 : vector<8x128xf32>
      %145 = vector.broadcast %43 : i32 to vector<8x128xi32>
      %146 = arith.cmpi slt, %145, %14 : vector<8x128xi32>
      %147 = arith.select %146, %144, %112 : vector<8x128xi1>, vector<8x128xf32>
      %c0_44 = arith.constant 0 : index
      %c0_45 = arith.constant 0 : index
      %c0_46 = arith.constant 0 : index
      %148 = vector.load %arg7[%c0_44, %c0_45, %c0_46] : memref<1x8x128xf32, #tpu.memory_space<vmem>>, vector<1x8x128xf32>
      %149 = vector.shape_cast %148 : vector<1x8x128xf32> to vector<8x128xf32>
      %150 = vector.shape_cast %147 : vector<8x128xf32> to vector<1x8x128xf32>
      tpu.vector_store %arg7[%c0_44, %c0_45, %c0_46], %150 {strides = array<i32>} : memref<1x8x128xf32, #tpu.memory_space<vmem>>, vector<1x8x128xf32>,
      %151 = arith.select %146, %142, %114 : vector<8x128xi1>, vector<8x128xf32>
      %c0_47 = arith.constant 0 : index
      %c0_48 = arith.constant 0 : index
      %c0_49 = arith.constant 0 : index
      %152 = vector.load %arg8[%c0_47, %c0_48, %c0_49] : memref<1x8x128xf32, #tpu.memory_space<vmem>>, vector<1x8x128xf32>
      %153 = vector.shape_cast %152 : vector<1x8x128xf32> to vector<8x128xf32>
      %154 = vector.shape_cast %151 : vector<8x128xf32> to vector<1x8x128xf32>
      tpu.vector_store %arg8[%c0_47, %c0_48, %c0_49], %154 {strides = array<i32>} : memref<1x8x128xf32, #tpu.memory_space<vmem>>, vector<1x8x128xf32>,
      %cst_50 = arith.constant 0.000000e+00 : f32
      %155 = vector.broadcast %cst_50 : f32 to vector<8x128xf32>
      %156 = arith.select %146, %144, %155 : vector<8x128xi1>, vector<8x128xf32>
      %c0_51 = arith.constant 0 : index
      %c56_52 = arith.constant 56 : index
      %c0_53 = arith.constant 0 : index
      %157 = vector.load %arg6[%c0_51, %c56_52, %c0_53] : memref<1x192x128xf32, #tpu.memory_space<vmem>>, vector<1x8x128xf32>
      %158 = vector.shape_cast %157 : vector<1x8x128xf32> to vector<8x128xf32>
      %159 = vector.shape_cast %156 : vector<8x128xf32> to vector<1x8x128xf32>
      tpu.vector_store %arg6[%c0_51, %c56_52, %c0_53], %159 {strides = array<i32>} : memref<1x192x128xf32, #tpu.memory_space<vmem>>, vector<1x8x128xf32>,
    } else {
    }
    %c8_i32_14 = arith.constant 8 : i32
    %47 = arith.addi %6, %c8_i32_14 : i32
    %48 = arith.cmpi slt, %47, %5 : i32
    %49 = arith.extui %48 : i1 to i32
    %c0_i32_15 = arith.constant 0 : i32
    %50 = arith.cmpi ne, %49, %c0_i32_15 : i32
    scf.if %50 {
      %c0_31 = arith.constant 0 : index
      %c0_32 = arith.constant 0 : index
      %c0_33 = arith.constant 0 : index
      %111 = vector.load %arg7[%c0_31, %c0_32, %c0_33] : memref<1x8x128xf32, #tpu.memory_space<vmem>>, vector<1x8x128xf32>
      %112 = vector.shape_cast %111 : vector<1x8x128xf32> to vector<8x128xf32>
      %c0_34 = arith.constant 0 : index
      %c0_35 = arith.constant 0 : index
      %c0_36 = arith.constant 0 : index
      %113 = vector.load %arg8[%c0_34, %c0_35, %c0_36] : memref<1x8x128xf32, #tpu.memory_space<vmem>>, vector<1x8x128xf32>
      %114 = vector.shape_cast %113 : vector<1x8x128xf32> to vector<8x128xf32>
      %c0_37 = arith.constant 0 : index
      %c64 = arith.constant 64 : index
      %c0_38 = arith.constant 0 : index
      %115 = vector.load %arg4[%c0_37, %c64, %c0_38] : memref<1x192x512xf32, #tpu.memory_space<vmem>>, vector<1x8x512xf32>
      %116 = vector.shape_cast %115 : vector<1x8x512xf32> to vector<8x512xf32>
      %c0_39 = arith.constant 0 : index
      %c0_40 = arith.constant 0 : index
      %117 = vector.load %arg5[%c0_39, %c0_40] : memref<128x512xf32, #tpu.memory_space<vmem>>, vector<128x512xf32>
      %cst = arith.constant dense<0.000000e+00> : vector<8x512xf32>
      %118 = tpu.matmul %112, %117, %cst {dimension_numbers = #tpu.dot_dimension_numbers<[1], [0], [0], [1], [0, 0, 1, 1], [], []>} : vector<8x128xf32>, vector<128x512xf32>, vector<8x512xf32> -> vector<8x512xf32>
      %119 = arith.addf %116, %118 : vector<8x512xf32>
      %120 = vector.extract_strided_slice %119 {offsets = [0, 0], sizes = [8, 128], strides = [1, 1]} : vector<8x512xf32> to vector<8x128xf32>
      %121 = arith.negf %120 : vector<8x128xf32>
      %122 = math.exp %121 : vector<8x128xf32>
      %cst_41 = arith.constant 1.000000e+00 : f32
      %123 = vector.broadcast %cst_41 : f32 to vector<8x128xf32>
      %124 = arith.addf %123, %122 : vector<8x128xf32>
      %125 = arith.divf %123, %124 : vector<8x128xf32>
      %126 = vector.extract_strided_slice %119 {offsets = [0, 128], sizes = [8, 128], strides = [1, 1]} : vector<8x512xf32> to vector<8x128xf32>
      %127 = arith.negf %126 : vector<8x128xf32>
      %128 = math.exp %127 : vector<8x128xf32>
      %cst_42 = arith.constant 1.000000e+00 : f32
      %129 = vector.broadcast %cst_42 : f32 to vector<8x128xf32>
      %130 = arith.addf %129, %128 : vector<8x128xf32>
      %131 = arith.divf %129, %130 : vector<8x128xf32>
      %132 = vector.extract_strided_slice %119 {offsets = [0, 256], sizes = [8, 128], strides = [1, 1]} : vector<8x512xf32> to vector<8x128xf32>
      %133 = math.tanh %132 : vector<8x128xf32>
      %134 = vector.extract_strided_slice %119 {offsets = [0, 384], sizes = [8, 128], strides = [1, 1]} : vector<8x512xf32> to vector<8x128xf32>
      %135 = arith.negf %134 : vector<8x128xf32>
      %136 = math.exp %135 : vector<8x128xf32>
      %cst_43 = arith.constant 1.000000e+00 : f32
      %137 = vector.broadcast %cst_43 : f32 to vector<8x128xf32>
      %138 = arith.addf %137, %136 : vector<8x128xf32>
      %139 = arith.divf %137, %138 : vector<8x128xf32>
      %140 = arith.mulf %131, %114 : vector<8x128xf32>
      %141 = arith.mulf %125, %133 : vector<8x128xf32>
      %142 = arith.addf %140, %141 : vector<8x128xf32>
      %143 = math.tanh %142 : vector<8x128xf32>
      %144 = arith.mulf %139, %143 : vector<8x128xf32>
      %145 = vector.broadcast %47 : i32 to vector<8x128xi32>
      %146 = arith.cmpi slt, %145, %14 : vector<8x128xi32>
      %147 = arith.select %146, %144, %112 : vector<8x128xi1>, vector<8x128xf32>
      %c0_44 = arith.constant 0 : index
      %c0_45 = arith.constant 0 : index
      %c0_46 = arith.constant 0 : index
      %148 = vector.load %arg7[%c0_44, %c0_45, %c0_46] : memref<1x8x128xf32, #tpu.memory_space<vmem>>, vector<1x8x128xf32>
      %149 = vector.shape_cast %148 : vector<1x8x128xf32> to vector<8x128xf32>
      %150 = vector.shape_cast %147 : vector<8x128xf32> to vector<1x8x128xf32>
      tpu.vector_store %arg7[%c0_44, %c0_45, %c0_46], %150 {strides = array<i32>} : memref<1x8x128xf32, #tpu.memory_space<vmem>>, vector<1x8x128xf32>,
      %151 = arith.select %146, %142, %114 : vector<8x128xi1>, vector<8x128xf32>
      %c0_47 = arith.constant 0 : index
      %c0_48 = arith.constant 0 : index
      %c0_49 = arith.constant 0 : index
      %152 = vector.load %arg8[%c0_47, %c0_48, %c0_49] : memref<1x8x128xf32, #tpu.memory_space<vmem>>, vector<1x8x128xf32>
      %153 = vector.shape_cast %152 : vector<1x8x128xf32> to vector<8x128xf32>
      %154 = vector.shape_cast %151 : vector<8x128xf32> to vector<1x8x128xf32>
      tpu.vector_store %arg8[%c0_47, %c0_48, %c0_49], %154 {strides = array<i32>} : memref<1x8x128xf32, #tpu.memory_space<vmem>>, vector<1x8x128xf32>,
      %cst_50 = arith.constant 0.000000e+00 : f32
      %155 = vector.broadcast %cst_50 : f32 to vector<8x128xf32>
      %156 = arith.select %146, %144, %155 : vector<8x128xi1>, vector<8x128xf32>
      %c0_51 = arith.constant 0 : index
      %c64_52 = arith.constant 64 : index
      %c0_53 = arith.constant 0 : index
      %157 = vector.load %arg6[%c0_51, %c64_52, %c0_53] : memref<1x192x128xf32, #tpu.memory_space<vmem>>, vector<1x8x128xf32>
      %158 = vector.shape_cast %157 : vector<1x8x128xf32> to vector<8x128xf32>
      %159 = vector.shape_cast %156 : vector<8x128xf32> to vector<1x8x128xf32>
      tpu.vector_store %arg6[%c0_51, %c64_52, %c0_53], %159 {strides = array<i32>} : memref<1x192x128xf32, #tpu.memory_space<vmem>>, vector<1x8x128xf32>,
    } else {
    }
    %c9_i32 = arith.constant 9 : i32
    %51 = arith.addi %6, %c9_i32 : i32
    %52 = arith.cmpi slt, %51, %5 : i32
    %53 = arith.extui %52 : i1 to i32
    %c0_i32_16 = arith.constant 0 : i32
    %54 = arith.cmpi ne, %53, %c0_i32_16 : i32
    scf.if %54 {
      %c0_31 = arith.constant 0 : index
      %c0_32 = arith.constant 0 : index
      %c0_33 = arith.constant 0 : index
      %111 = vector.load %arg7[%c0_31, %c0_32, %c0_33] : memref<1x8x128xf32, #tpu.memory_space<vmem>>, vector<1x8x128xf32>
      %112 = vector.shape_cast %111 : vector<1x8x128xf32> to vector<8x128xf32>
      %c0_34 = arith.constant 0 : index
      %c0_35 = arith.constant 0 : index
      %c0_36 = arith.constant 0 : index
      %113 = vector.load %arg8[%c0_34, %c0_35, %c0_36] : memref<1x8x128xf32, #tpu.memory_space<vmem>>, vector<1x8x128xf32>
      %114 = vector.shape_cast %113 : vector<1x8x128xf32> to vector<8x128xf32>
      %c0_37 = arith.constant 0 : index
      %c72 = arith.constant 72 : index
      %c0_38 = arith.constant 0 : index
      %115 = vector.load %arg4[%c0_37, %c72, %c0_38] : memref<1x192x512xf32, #tpu.memory_space<vmem>>, vector<1x8x512xf32>
      %116 = vector.shape_cast %115 : vector<1x8x512xf32> to vector<8x512xf32>
      %c0_39 = arith.constant 0 : index
      %c0_40 = arith.constant 0 : index
      %117 = vector.load %arg5[%c0_39, %c0_40] : memref<128x512xf32, #tpu.memory_space<vmem>>, vector<128x512xf32>
      %cst = arith.constant dense<0.000000e+00> : vector<8x512xf32>
      %118 = tpu.matmul %112, %117, %cst {dimension_numbers = #tpu.dot_dimension_numbers<[1], [0], [0], [1], [0, 0, 1, 1], [], []>} : vector<8x128xf32>, vector<128x512xf32>, vector<8x512xf32> -> vector<8x512xf32>
      %119 = arith.addf %116, %118 : vector<8x512xf32>
      %120 = vector.extract_strided_slice %119 {offsets = [0, 0], sizes = [8, 128], strides = [1, 1]} : vector<8x512xf32> to vector<8x128xf32>
      %121 = arith.negf %120 : vector<8x128xf32>
      %122 = math.exp %121 : vector<8x128xf32>
      %cst_41 = arith.constant 1.000000e+00 : f32
      %123 = vector.broadcast %cst_41 : f32 to vector<8x128xf32>
      %124 = arith.addf %123, %122 : vector<8x128xf32>
      %125 = arith.divf %123, %124 : vector<8x128xf32>
      %126 = vector.extract_strided_slice %119 {offsets = [0, 128], sizes = [8, 128], strides = [1, 1]} : vector<8x512xf32> to vector<8x128xf32>
      %127 = arith.negf %126 : vector<8x128xf32>
      %128 = math.exp %127 : vector<8x128xf32>
      %cst_42 = arith.constant 1.000000e+00 : f32
      %129 = vector.broadcast %cst_42 : f32 to vector<8x128xf32>
      %130 = arith.addf %129, %128 : vector<8x128xf32>
      %131 = arith.divf %129, %130 : vector<8x128xf32>
      %132 = vector.extract_strided_slice %119 {offsets = [0, 256], sizes = [8, 128], strides = [1, 1]} : vector<8x512xf32> to vector<8x128xf32>
      %133 = math.tanh %132 : vector<8x128xf32>
      %134 = vector.extract_strided_slice %119 {offsets = [0, 384], sizes = [8, 128], strides = [1, 1]} : vector<8x512xf32> to vector<8x128xf32>
      %135 = arith.negf %134 : vector<8x128xf32>
      %136 = math.exp %135 : vector<8x128xf32>
      %cst_43 = arith.constant 1.000000e+00 : f32
      %137 = vector.broadcast %cst_43 : f32 to vector<8x128xf32>
      %138 = arith.addf %137, %136 : vector<8x128xf32>
      %139 = arith.divf %137, %138 : vector<8x128xf32>
      %140 = arith.mulf %131, %114 : vector<8x128xf32>
      %141 = arith.mulf %125, %133 : vector<8x128xf32>
      %142 = arith.addf %140, %141 : vector<8x128xf32>
      %143 = math.tanh %142 : vector<8x128xf32>
      %144 = arith.mulf %139, %143 : vector<8x128xf32>
      %145 = vector.broadcast %51 : i32 to vector<8x128xi32>
      %146 = arith.cmpi slt, %145, %14 : vector<8x128xi32>
      %147 = arith.select %146, %144, %112 : vector<8x128xi1>, vector<8x128xf32>
      %c0_44 = arith.constant 0 : index
      %c0_45 = arith.constant 0 : index
      %c0_46 = arith.constant 0 : index
      %148 = vector.load %arg7[%c0_44, %c0_45, %c0_46] : memref<1x8x128xf32, #tpu.memory_space<vmem>>, vector<1x8x128xf32>
      %149 = vector.shape_cast %148 : vector<1x8x128xf32> to vector<8x128xf32>
      %150 = vector.shape_cast %147 : vector<8x128xf32> to vector<1x8x128xf32>
      tpu.vector_store %arg7[%c0_44, %c0_45, %c0_46], %150 {strides = array<i32>} : memref<1x8x128xf32, #tpu.memory_space<vmem>>, vector<1x8x128xf32>,
      %151 = arith.select %146, %142, %114 : vector<8x128xi1>, vector<8x128xf32>
      %c0_47 = arith.constant 0 : index
      %c0_48 = arith.constant 0 : index
      %c0_49 = arith.constant 0 : index
      %152 = vector.load %arg8[%c0_47, %c0_48, %c0_49] : memref<1x8x128xf32, #tpu.memory_space<vmem>>, vector<1x8x128xf32>
      %153 = vector.shape_cast %152 : vector<1x8x128xf32> to vector<8x128xf32>
      %154 = vector.shape_cast %151 : vector<8x128xf32> to vector<1x8x128xf32>
      tpu.vector_store %arg8[%c0_47, %c0_48, %c0_49], %154 {strides = array<i32>} : memref<1x8x128xf32, #tpu.memory_space<vmem>>, vector<1x8x128xf32>,
      %cst_50 = arith.constant 0.000000e+00 : f32
      %155 = vector.broadcast %cst_50 : f32 to vector<8x128xf32>
      %156 = arith.select %146, %144, %155 : vector<8x128xi1>, vector<8x128xf32>
      %c0_51 = arith.constant 0 : index
      %c72_52 = arith.constant 72 : index
      %c0_53 = arith.constant 0 : index
      %157 = vector.load %arg6[%c0_51, %c72_52, %c0_53] : memref<1x192x128xf32, #tpu.memory_space<vmem>>, vector<1x8x128xf32>
      %158 = vector.shape_cast %157 : vector<1x8x128xf32> to vector<8x128xf32>
      %159 = vector.shape_cast %156 : vector<8x128xf32> to vector<1x8x128xf32>
      tpu.vector_store %arg6[%c0_51, %c72_52, %c0_53], %159 {strides = array<i32>} : memref<1x192x128xf32, #tpu.memory_space<vmem>>, vector<1x8x128xf32>,
    } else {
    }
    %c10_i32 = arith.constant 10 : i32
    %55 = arith.addi %6, %c10_i32 : i32
    %56 = arith.cmpi slt, %55, %5 : i32
    %57 = arith.extui %56 : i1 to i32
    %c0_i32_17 = arith.constant 0 : i32
    %58 = arith.cmpi ne, %57, %c0_i32_17 : i32
    scf.if %58 {
      %c0_31 = arith.constant 0 : index
      %c0_32 = arith.constant 0 : index
      %c0_33 = arith.constant 0 : index
      %111 = vector.load %arg7[%c0_31, %c0_32, %c0_33] : memref<1x8x128xf32, #tpu.memory_space<vmem>>, vector<1x8x128xf32>
      %112 = vector.shape_cast %111 : vector<1x8x128xf32> to vector<8x128xf32>
      %c0_34 = arith.constant 0 : index
      %c0_35 = arith.constant 0 : index
      %c0_36 = arith.constant 0 : index
      %113 = vector.load %arg8[%c0_34, %c0_35, %c0_36] : memref<1x8x128xf32, #tpu.memory_space<vmem>>, vector<1x8x128xf32>
      %114 = vector.shape_cast %113 : vector<1x8x128xf32> to vector<8x128xf32>
      %c0_37 = arith.constant 0 : index
      %c80 = arith.constant 80 : index
      %c0_38 = arith.constant 0 : index
      %115 = vector.load %arg4[%c0_37, %c80, %c0_38] : memref<1x192x512xf32, #tpu.memory_space<vmem>>, vector<1x8x512xf32>
      %116 = vector.shape_cast %115 : vector<1x8x512xf32> to vector<8x512xf32>
      %c0_39 = arith.constant 0 : index
      %c0_40 = arith.constant 0 : index
      %117 = vector.load %arg5[%c0_39, %c0_40] : memref<128x512xf32, #tpu.memory_space<vmem>>, vector<128x512xf32>
      %cst = arith.constant dense<0.000000e+00> : vector<8x512xf32>
      %118 = tpu.matmul %112, %117, %cst {dimension_numbers = #tpu.dot_dimension_numbers<[1], [0], [0], [1], [0, 0, 1, 1], [], []>} : vector<8x128xf32>, vector<128x512xf32>, vector<8x512xf32> -> vector<8x512xf32>
      %119 = arith.addf %116, %118 : vector<8x512xf32>
      %120 = vector.extract_strided_slice %119 {offsets = [0, 0], sizes = [8, 128], strides = [1, 1]} : vector<8x512xf32> to vector<8x128xf32>
      %121 = arith.negf %120 : vector<8x128xf32>
      %122 = math.exp %121 : vector<8x128xf32>
      %cst_41 = arith.constant 1.000000e+00 : f32
      %123 = vector.broadcast %cst_41 : f32 to vector<8x128xf32>
      %124 = arith.addf %123, %122 : vector<8x128xf32>
      %125 = arith.divf %123, %124 : vector<8x128xf32>
      %126 = vector.extract_strided_slice %119 {offsets = [0, 128], sizes = [8, 128], strides = [1, 1]} : vector<8x512xf32> to vector<8x128xf32>
      %127 = arith.negf %126 : vector<8x128xf32>
      %128 = math.exp %127 : vector<8x128xf32>
      %cst_42 = arith.constant 1.000000e+00 : f32
      %129 = vector.broadcast %cst_42 : f32 to vector<8x128xf32>
      %130 = arith.addf %129, %128 : vector<8x128xf32>
      %131 = arith.divf %129, %130 : vector<8x128xf32>
      %132 = vector.extract_strided_slice %119 {offsets = [0, 256], sizes = [8, 128], strides = [1, 1]} : vector<8x512xf32> to vector<8x128xf32>
      %133 = math.tanh %132 : vector<8x128xf32>
      %134 = vector.extract_strided_slice %119 {offsets = [0, 384], sizes = [8, 128], strides = [1, 1]} : vector<8x512xf32> to vector<8x128xf32>
      %135 = arith.negf %134 : vector<8x128xf32>
      %136 = math.exp %135 : vector<8x128xf32>
      %cst_43 = arith.constant 1.000000e+00 : f32
      %137 = vector.broadcast %cst_43 : f32 to vector<8x128xf32>
      %138 = arith.addf %137, %136 : vector<8x128xf32>
      %139 = arith.divf %137, %138 : vector<8x128xf32>
      %140 = arith.mulf %131, %114 : vector<8x128xf32>
      %141 = arith.mulf %125, %133 : vector<8x128xf32>
      %142 = arith.addf %140, %141 : vector<8x128xf32>
      %143 = math.tanh %142 : vector<8x128xf32>
      %144 = arith.mulf %139, %143 : vector<8x128xf32>
      %145 = vector.broadcast %55 : i32 to vector<8x128xi32>
      %146 = arith.cmpi slt, %145, %14 : vector<8x128xi32>
      %147 = arith.select %146, %144, %112 : vector<8x128xi1>, vector<8x128xf32>
      %c0_44 = arith.constant 0 : index
      %c0_45 = arith.constant 0 : index
      %c0_46 = arith.constant 0 : index
      %148 = vector.load %arg7[%c0_44, %c0_45, %c0_46] : memref<1x8x128xf32, #tpu.memory_space<vmem>>, vector<1x8x128xf32>
      %149 = vector.shape_cast %148 : vector<1x8x128xf32> to vector<8x128xf32>
      %150 = vector.shape_cast %147 : vector<8x128xf32> to vector<1x8x128xf32>
      tpu.vector_store %arg7[%c0_44, %c0_45, %c0_46], %150 {strides = array<i32>} : memref<1x8x128xf32, #tpu.memory_space<vmem>>, vector<1x8x128xf32>,
      %151 = arith.select %146, %142, %114 : vector<8x128xi1>, vector<8x128xf32>
      %c0_47 = arith.constant 0 : index
      %c0_48 = arith.constant 0 : index
      %c0_49 = arith.constant 0 : index
      %152 = vector.load %arg8[%c0_47, %c0_48, %c0_49] : memref<1x8x128xf32, #tpu.memory_space<vmem>>, vector<1x8x128xf32>
      %153 = vector.shape_cast %152 : vector<1x8x128xf32> to vector<8x128xf32>
      %154 = vector.shape_cast %151 : vector<8x128xf32> to vector<1x8x128xf32>
      tpu.vector_store %arg8[%c0_47, %c0_48, %c0_49], %154 {strides = array<i32>} : memref<1x8x128xf32, #tpu.memory_space<vmem>>, vector<1x8x128xf32>,
      %cst_50 = arith.constant 0.000000e+00 : f32
      %155 = vector.broadcast %cst_50 : f32 to vector<8x128xf32>
      %156 = arith.select %146, %144, %155 : vector<8x128xi1>, vector<8x128xf32>
      %c0_51 = arith.constant 0 : index
      %c80_52 = arith.constant 80 : index
      %c0_53 = arith.constant 0 : index
      %157 = vector.load %arg6[%c0_51, %c80_52, %c0_53] : memref<1x192x128xf32, #tpu.memory_space<vmem>>, vector<1x8x128xf32>
      %158 = vector.shape_cast %157 : vector<1x8x128xf32> to vector<8x128xf32>
      %159 = vector.shape_cast %156 : vector<8x128xf32> to vector<1x8x128xf32>
      tpu.vector_store %arg6[%c0_51, %c80_52, %c0_53], %159 {strides = array<i32>} : memref<1x192x128xf32, #tpu.memory_space<vmem>>, vector<1x8x128xf32>,
    } else {
    }
    %c11_i32 = arith.constant 11 : i32
    %59 = arith.addi %6, %c11_i32 : i32
    %60 = arith.cmpi slt, %59, %5 : i32
    %61 = arith.extui %60 : i1 to i32
    %c0_i32_18 = arith.constant 0 : i32
    %62 = arith.cmpi ne, %61, %c0_i32_18 : i32
    scf.if %62 {
      %c0_31 = arith.constant 0 : index
      %c0_32 = arith.constant 0 : index
      %c0_33 = arith.constant 0 : index
      %111 = vector.load %arg7[%c0_31, %c0_32, %c0_33] : memref<1x8x128xf32, #tpu.memory_space<vmem>>, vector<1x8x128xf32>
      %112 = vector.shape_cast %111 : vector<1x8x128xf32> to vector<8x128xf32>
      %c0_34 = arith.constant 0 : index
      %c0_35 = arith.constant 0 : index
      %c0_36 = arith.constant 0 : index
      %113 = vector.load %arg8[%c0_34, %c0_35, %c0_36] : memref<1x8x128xf32, #tpu.memory_space<vmem>>, vector<1x8x128xf32>
      %114 = vector.shape_cast %113 : vector<1x8x128xf32> to vector<8x128xf32>
      %c0_37 = arith.constant 0 : index
      %c88 = arith.constant 88 : index
      %c0_38 = arith.constant 0 : index
      %115 = vector.load %arg4[%c0_37, %c88, %c0_38] : memref<1x192x512xf32, #tpu.memory_space<vmem>>, vector<1x8x512xf32>
      %116 = vector.shape_cast %115 : vector<1x8x512xf32> to vector<8x512xf32>
      %c0_39 = arith.constant 0 : index
      %c0_40 = arith.constant 0 : index
      %117 = vector.load %arg5[%c0_39, %c0_40] : memref<128x512xf32, #tpu.memory_space<vmem>>, vector<128x512xf32>
      %cst = arith.constant dense<0.000000e+00> : vector<8x512xf32>
      %118 = tpu.matmul %112, %117, %cst {dimension_numbers = #tpu.dot_dimension_numbers<[1], [0], [0], [1], [0, 0, 1, 1], [], []>} : vector<8x128xf32>, vector<128x512xf32>, vector<8x512xf32> -> vector<8x512xf32>
      %119 = arith.addf %116, %118 : vector<8x512xf32>
      %120 = vector.extract_strided_slice %119 {offsets = [0, 0], sizes = [8, 128], strides = [1, 1]} : vector<8x512xf32> to vector<8x128xf32>
      %121 = arith.negf %120 : vector<8x128xf32>
      %122 = math.exp %121 : vector<8x128xf32>
      %cst_41 = arith.constant 1.000000e+00 : f32
      %123 = vector.broadcast %cst_41 : f32 to vector<8x128xf32>
      %124 = arith.addf %123, %122 : vector<8x128xf32>
      %125 = arith.divf %123, %124 : vector<8x128xf32>
      %126 = vector.extract_strided_slice %119 {offsets = [0, 128], sizes = [8, 128], strides = [1, 1]} : vector<8x512xf32> to vector<8x128xf32>
      %127 = arith.negf %126 : vector<8x128xf32>
      %128 = math.exp %127 : vector<8x128xf32>
      %cst_42 = arith.constant 1.000000e+00 : f32
      %129 = vector.broadcast %cst_42 : f32 to vector<8x128xf32>
      %130 = arith.addf %129, %128 : vector<8x128xf32>
      %131 = arith.divf %129, %130 : vector<8x128xf32>
      %132 = vector.extract_strided_slice %119 {offsets = [0, 256], sizes = [8, 128], strides = [1, 1]} : vector<8x512xf32> to vector<8x128xf32>
      %133 = math.tanh %132 : vector<8x128xf32>
      %134 = vector.extract_strided_slice %119 {offsets = [0, 384], sizes = [8, 128], strides = [1, 1]} : vector<8x512xf32> to vector<8x128xf32>
      %135 = arith.negf %134 : vector<8x128xf32>
      %136 = math.exp %135 : vector<8x128xf32>
      %cst_43 = arith.constant 1.000000e+00 : f32
      %137 = vector.broadcast %cst_43 : f32 to vector<8x128xf32>
      %138 = arith.addf %137, %136 : vector<8x128xf32>
      %139 = arith.divf %137, %138 : vector<8x128xf32>
      %140 = arith.mulf %131, %114 : vector<8x128xf32>
      %141 = arith.mulf %125, %133 : vector<8x128xf32>
      %142 = arith.addf %140, %141 : vector<8x128xf32>
      %143 = math.tanh %142 : vector<8x128xf32>
      %144 = arith.mulf %139, %143 : vector<8x128xf32>
      %145 = vector.broadcast %59 : i32 to vector<8x128xi32>
      %146 = arith.cmpi slt, %145, %14 : vector<8x128xi32>
      %147 = arith.select %146, %144, %112 : vector<8x128xi1>, vector<8x128xf32>
      %c0_44 = arith.constant 0 : index
      %c0_45 = arith.constant 0 : index
      %c0_46 = arith.constant 0 : index
      %148 = vector.load %arg7[%c0_44, %c0_45, %c0_46] : memref<1x8x128xf32, #tpu.memory_space<vmem>>, vector<1x8x128xf32>
      %149 = vector.shape_cast %148 : vector<1x8x128xf32> to vector<8x128xf32>
      %150 = vector.shape_cast %147 : vector<8x128xf32> to vector<1x8x128xf32>
      tpu.vector_store %arg7[%c0_44, %c0_45, %c0_46], %150 {strides = array<i32>} : memref<1x8x128xf32, #tpu.memory_space<vmem>>, vector<1x8x128xf32>,
      %151 = arith.select %146, %142, %114 : vector<8x128xi1>, vector<8x128xf32>
      %c0_47 = arith.constant 0 : index
      %c0_48 = arith.constant 0 : index
      %c0_49 = arith.constant 0 : index
      %152 = vector.load %arg8[%c0_47, %c0_48, %c0_49] : memref<1x8x128xf32, #tpu.memory_space<vmem>>, vector<1x8x128xf32>
      %153 = vector.shape_cast %152 : vector<1x8x128xf32> to vector<8x128xf32>
      %154 = vector.shape_cast %151 : vector<8x128xf32> to vector<1x8x128xf32>
      tpu.vector_store %arg8[%c0_47, %c0_48, %c0_49], %154 {strides = array<i32>} : memref<1x8x128xf32, #tpu.memory_space<vmem>>, vector<1x8x128xf32>,
      %cst_50 = arith.constant 0.000000e+00 : f32
      %155 = vector.broadcast %cst_50 : f32 to vector<8x128xf32>
      %156 = arith.select %146, %144, %155 : vector<8x128xi1>, vector<8x128xf32>
      %c0_51 = arith.constant 0 : index
      %c88_52 = arith.constant 88 : index
      %c0_53 = arith.constant 0 : index
      %157 = vector.load %arg6[%c0_51, %c88_52, %c0_53] : memref<1x192x128xf32, #tpu.memory_space<vmem>>, vector<1x8x128xf32>
      %158 = vector.shape_cast %157 : vector<1x8x128xf32> to vector<8x128xf32>
      %159 = vector.shape_cast %156 : vector<8x128xf32> to vector<1x8x128xf32>
      tpu.vector_store %arg6[%c0_51, %c88_52, %c0_53], %159 {strides = array<i32>} : memref<1x192x128xf32, #tpu.memory_space<vmem>>, vector<1x8x128xf32>,
    } else {
    }
    %c12_i32 = arith.constant 12 : i32
    %63 = arith.addi %6, %c12_i32 : i32
    %64 = arith.cmpi slt, %63, %5 : i32
    %65 = arith.extui %64 : i1 to i32
    %c0_i32_19 = arith.constant 0 : i32
    %66 = arith.cmpi ne, %65, %c0_i32_19 : i32
    scf.if %66 {
      %c0_31 = arith.constant 0 : index
      %c0_32 = arith.constant 0 : index
      %c0_33 = arith.constant 0 : index
      %111 = vector.load %arg7[%c0_31, %c0_32, %c0_33] : memref<1x8x128xf32, #tpu.memory_space<vmem>>, vector<1x8x128xf32>
      %112 = vector.shape_cast %111 : vector<1x8x128xf32> to vector<8x128xf32>
      %c0_34 = arith.constant 0 : index
      %c0_35 = arith.constant 0 : index
      %c0_36 = arith.constant 0 : index
      %113 = vector.load %arg8[%c0_34, %c0_35, %c0_36] : memref<1x8x128xf32, #tpu.memory_space<vmem>>, vector<1x8x128xf32>
      %114 = vector.shape_cast %113 : vector<1x8x128xf32> to vector<8x128xf32>
      %c0_37 = arith.constant 0 : index
      %c96 = arith.constant 96 : index
      %c0_38 = arith.constant 0 : index
      %115 = vector.load %arg4[%c0_37, %c96, %c0_38] : memref<1x192x512xf32, #tpu.memory_space<vmem>>, vector<1x8x512xf32>
      %116 = vector.shape_cast %115 : vector<1x8x512xf32> to vector<8x512xf32>
      %c0_39 = arith.constant 0 : index
      %c0_40 = arith.constant 0 : index
      %117 = vector.load %arg5[%c0_39, %c0_40] : memref<128x512xf32, #tpu.memory_space<vmem>>, vector<128x512xf32>
      %cst = arith.constant dense<0.000000e+00> : vector<8x512xf32>
      %118 = tpu.matmul %112, %117, %cst {dimension_numbers = #tpu.dot_dimension_numbers<[1], [0], [0], [1], [0, 0, 1, 1], [], []>} : vector<8x128xf32>, vector<128x512xf32>, vector<8x512xf32> -> vector<8x512xf32>
      %119 = arith.addf %116, %118 : vector<8x512xf32>
      %120 = vector.extract_strided_slice %119 {offsets = [0, 0], sizes = [8, 128], strides = [1, 1]} : vector<8x512xf32> to vector<8x128xf32>
      %121 = arith.negf %120 : vector<8x128xf32>
      %122 = math.exp %121 : vector<8x128xf32>
      %cst_41 = arith.constant 1.000000e+00 : f32
      %123 = vector.broadcast %cst_41 : f32 to vector<8x128xf32>
      %124 = arith.addf %123, %122 : vector<8x128xf32>
      %125 = arith.divf %123, %124 : vector<8x128xf32>
      %126 = vector.extract_strided_slice %119 {offsets = [0, 128], sizes = [8, 128], strides = [1, 1]} : vector<8x512xf32> to vector<8x128xf32>
      %127 = arith.negf %126 : vector<8x128xf32>
      %128 = math.exp %127 : vector<8x128xf32>
      %cst_42 = arith.constant 1.000000e+00 : f32
      %129 = vector.broadcast %cst_42 : f32 to vector<8x128xf32>
      %130 = arith.addf %129, %128 : vector<8x128xf32>
      %131 = arith.divf %129, %130 : vector<8x128xf32>
      %132 = vector.extract_strided_slice %119 {offsets = [0, 256], sizes = [8, 128], strides = [1, 1]} : vector<8x512xf32> to vector<8x128xf32>
      %133 = math.tanh %132 : vector<8x128xf32>
      %134 = vector.extract_strided_slice %119 {offsets = [0, 384], sizes = [8, 128], strides = [1, 1]} : vector<8x512xf32> to vector<8x128xf32>
      %135 = arith.negf %134 : vector<8x128xf32>
      %136 = math.exp %135 : vector<8x128xf32>
      %cst_43 = arith.constant 1.000000e+00 : f32
      %137 = vector.broadcast %cst_43 : f32 to vector<8x128xf32>
      %138 = arith.addf %137, %136 : vector<8x128xf32>
      %139 = arith.divf %137, %138 : vector<8x128xf32>
      %140 = arith.mulf %131, %114 : vector<8x128xf32>
      %141 = arith.mulf %125, %133 : vector<8x128xf32>
      %142 = arith.addf %140, %141 : vector<8x128xf32>
      %143 = math.tanh %142 : vector<8x128xf32>
      %144 = arith.mulf %139, %143 : vector<8x128xf32>
      %145 = vector.broadcast %63 : i32 to vector<8x128xi32>
      %146 = arith.cmpi slt, %145, %14 : vector<8x128xi32>
      %147 = arith.select %146, %144, %112 : vector<8x128xi1>, vector<8x128xf32>
      %c0_44 = arith.constant 0 : index
      %c0_45 = arith.constant 0 : index
      %c0_46 = arith.constant 0 : index
      %148 = vector.load %arg7[%c0_44, %c0_45, %c0_46] : memref<1x8x128xf32, #tpu.memory_space<vmem>>, vector<1x8x128xf32>
      %149 = vector.shape_cast %148 : vector<1x8x128xf32> to vector<8x128xf32>
      %150 = vector.shape_cast %147 : vector<8x128xf32> to vector<1x8x128xf32>
      tpu.vector_store %arg7[%c0_44, %c0_45, %c0_46], %150 {strides = array<i32>} : memref<1x8x128xf32, #tpu.memory_space<vmem>>, vector<1x8x128xf32>,
      %151 = arith.select %146, %142, %114 : vector<8x128xi1>, vector<8x128xf32>
      %c0_47 = arith.constant 0 : index
      %c0_48 = arith.constant 0 : index
      %c0_49 = arith.constant 0 : index
      %152 = vector.load %arg8[%c0_47, %c0_48, %c0_49] : memref<1x8x128xf32, #tpu.memory_space<vmem>>, vector<1x8x128xf32>
      %153 = vector.shape_cast %152 : vector<1x8x128xf32> to vector<8x128xf32>
      %154 = vector.shape_cast %151 : vector<8x128xf32> to vector<1x8x128xf32>
      tpu.vector_store %arg8[%c0_47, %c0_48, %c0_49], %154 {strides = array<i32>} : memref<1x8x128xf32, #tpu.memory_space<vmem>>, vector<1x8x128xf32>,
      %cst_50 = arith.constant 0.000000e+00 : f32
      %155 = vector.broadcast %cst_50 : f32 to vector<8x128xf32>
      %156 = arith.select %146, %144, %155 : vector<8x128xi1>, vector<8x128xf32>
      %c0_51 = arith.constant 0 : index
      %c96_52 = arith.constant 96 : index
      %c0_53 = arith.constant 0 : index
      %157 = vector.load %arg6[%c0_51, %c96_52, %c0_53] : memref<1x192x128xf32, #tpu.memory_space<vmem>>, vector<1x8x128xf32>
      %158 = vector.shape_cast %157 : vector<1x8x128xf32> to vector<8x128xf32>
      %159 = vector.shape_cast %156 : vector<8x128xf32> to vector<1x8x128xf32>
      tpu.vector_store %arg6[%c0_51, %c96_52, %c0_53], %159 {strides = array<i32>} : memref<1x192x128xf32, #tpu.memory_space<vmem>>, vector<1x8x128xf32>,
    } else {
    }
    %c13_i32 = arith.constant 13 : i32
    %67 = arith.addi %6, %c13_i32 : i32
    %68 = arith.cmpi slt, %67, %5 : i32
    %69 = arith.extui %68 : i1 to i32
    %c0_i32_20 = arith.constant 0 : i32
    %70 = arith.cmpi ne, %69, %c0_i32_20 : i32
    scf.if %70 {
      %c0_31 = arith.constant 0 : index
      %c0_32 = arith.constant 0 : index
      %c0_33 = arith.constant 0 : index
      %111 = vector.load %arg7[%c0_31, %c0_32, %c0_33] : memref<1x8x128xf32, #tpu.memory_space<vmem>>, vector<1x8x128xf32>
      %112 = vector.shape_cast %111 : vector<1x8x128xf32> to vector<8x128xf32>
      %c0_34 = arith.constant 0 : index
      %c0_35 = arith.constant 0 : index
      %c0_36 = arith.constant 0 : index
      %113 = vector.load %arg8[%c0_34, %c0_35, %c0_36] : memref<1x8x128xf32, #tpu.memory_space<vmem>>, vector<1x8x128xf32>
      %114 = vector.shape_cast %113 : vector<1x8x128xf32> to vector<8x128xf32>
      %c0_37 = arith.constant 0 : index
      %c104 = arith.constant 104 : index
      %c0_38 = arith.constant 0 : index
      %115 = vector.load %arg4[%c0_37, %c104, %c0_38] : memref<1x192x512xf32, #tpu.memory_space<vmem>>, vector<1x8x512xf32>
      %116 = vector.shape_cast %115 : vector<1x8x512xf32> to vector<8x512xf32>
      %c0_39 = arith.constant 0 : index
      %c0_40 = arith.constant 0 : index
      %117 = vector.load %arg5[%c0_39, %c0_40] : memref<128x512xf32, #tpu.memory_space<vmem>>, vector<128x512xf32>
      %cst = arith.constant dense<0.000000e+00> : vector<8x512xf32>
      %118 = tpu.matmul %112, %117, %cst {dimension_numbers = #tpu.dot_dimension_numbers<[1], [0], [0], [1], [0, 0, 1, 1], [], []>} : vector<8x128xf32>, vector<128x512xf32>, vector<8x512xf32> -> vector<8x512xf32>
      %119 = arith.addf %116, %118 : vector<8x512xf32>
      %120 = vector.extract_strided_slice %119 {offsets = [0, 0], sizes = [8, 128], strides = [1, 1]} : vector<8x512xf32> to vector<8x128xf32>
      %121 = arith.negf %120 : vector<8x128xf32>
      %122 = math.exp %121 : vector<8x128xf32>
      %cst_41 = arith.constant 1.000000e+00 : f32
      %123 = vector.broadcast %cst_41 : f32 to vector<8x128xf32>
      %124 = arith.addf %123, %122 : vector<8x128xf32>
      %125 = arith.divf %123, %124 : vector<8x128xf32>
      %126 = vector.extract_strided_slice %119 {offsets = [0, 128], sizes = [8, 128], strides = [1, 1]} : vector<8x512xf32> to vector<8x128xf32>
      %127 = arith.negf %126 : vector<8x128xf32>
      %128 = math.exp %127 : vector<8x128xf32>
      %cst_42 = arith.constant 1.000000e+00 : f32
      %129 = vector.broadcast %cst_42 : f32 to vector<8x128xf32>
      %130 = arith.addf %129, %128 : vector<8x128xf32>
      %131 = arith.divf %129, %130 : vector<8x128xf32>
      %132 = vector.extract_strided_slice %119 {offsets = [0, 256], sizes = [8, 128], strides = [1, 1]} : vector<8x512xf32> to vector<8x128xf32>
      %133 = math.tanh %132 : vector<8x128xf32>
      %134 = vector.extract_strided_slice %119 {offsets = [0, 384], sizes = [8, 128], strides = [1, 1]} : vector<8x512xf32> to vector<8x128xf32>
      %135 = arith.negf %134 : vector<8x128xf32>
      %136 = math.exp %135 : vector<8x128xf32>
      %cst_43 = arith.constant 1.000000e+00 : f32
      %137 = vector.broadcast %cst_43 : f32 to vector<8x128xf32>
      %138 = arith.addf %137, %136 : vector<8x128xf32>
      %139 = arith.divf %137, %138 : vector<8x128xf32>
      %140 = arith.mulf %131, %114 : vector<8x128xf32>
      %141 = arith.mulf %125, %133 : vector<8x128xf32>
      %142 = arith.addf %140, %141 : vector<8x128xf32>
      %143 = math.tanh %142 : vector<8x128xf32>
      %144 = arith.mulf %139, %143 : vector<8x128xf32>
      %145 = vector.broadcast %67 : i32 to vector<8x128xi32>
      %146 = arith.cmpi slt, %145, %14 : vector<8x128xi32>
      %147 = arith.select %146, %144, %112 : vector<8x128xi1>, vector<8x128xf32>
      %c0_44 = arith.constant 0 : index
      %c0_45 = arith.constant 0 : index
      %c0_46 = arith.constant 0 : index
      %148 = vector.load %arg7[%c0_44, %c0_45, %c0_46] : memref<1x8x128xf32, #tpu.memory_space<vmem>>, vector<1x8x128xf32>
      %149 = vector.shape_cast %148 : vector<1x8x128xf32> to vector<8x128xf32>
      %150 = vector.shape_cast %147 : vector<8x128xf32> to vector<1x8x128xf32>
      tpu.vector_store %arg7[%c0_44, %c0_45, %c0_46], %150 {strides = array<i32>} : memref<1x8x128xf32, #tpu.memory_space<vmem>>, vector<1x8x128xf32>,
      %151 = arith.select %146, %142, %114 : vector<8x128xi1>, vector<8x128xf32>
      %c0_47 = arith.constant 0 : index
      %c0_48 = arith.constant 0 : index
      %c0_49 = arith.constant 0 : index
      %152 = vector.load %arg8[%c0_47, %c0_48, %c0_49] : memref<1x8x128xf32, #tpu.memory_space<vmem>>, vector<1x8x128xf32>
      %153 = vector.shape_cast %152 : vector<1x8x128xf32> to vector<8x128xf32>
      %154 = vector.shape_cast %151 : vector<8x128xf32> to vector<1x8x128xf32>
      tpu.vector_store %arg8[%c0_47, %c0_48, %c0_49], %154 {strides = array<i32>} : memref<1x8x128xf32, #tpu.memory_space<vmem>>, vector<1x8x128xf32>,
      %cst_50 = arith.constant 0.000000e+00 : f32
      %155 = vector.broadcast %cst_50 : f32 to vector<8x128xf32>
      %156 = arith.select %146, %144, %155 : vector<8x128xi1>, vector<8x128xf32>
      %c0_51 = arith.constant 0 : index
      %c104_52 = arith.constant 104 : index
      %c0_53 = arith.constant 0 : index
      %157 = vector.load %arg6[%c0_51, %c104_52, %c0_53] : memref<1x192x128xf32, #tpu.memory_space<vmem>>, vector<1x8x128xf32>
      %158 = vector.shape_cast %157 : vector<1x8x128xf32> to vector<8x128xf32>
      %159 = vector.shape_cast %156 : vector<8x128xf32> to vector<1x8x128xf32>
      tpu.vector_store %arg6[%c0_51, %c104_52, %c0_53], %159 {strides = array<i32>} : memref<1x192x128xf32, #tpu.memory_space<vmem>>, vector<1x8x128xf32>,
    } else {
    }
    %c14_i32 = arith.constant 14 : i32
    %71 = arith.addi %6, %c14_i32 : i32
    %72 = arith.cmpi slt, %71, %5 : i32
    %73 = arith.extui %72 : i1 to i32
    %c0_i32_21 = arith.constant 0 : i32
    %74 = arith.cmpi ne, %73, %c0_i32_21 : i32
    scf.if %74 {
      %c0_31 = arith.constant 0 : index
      %c0_32 = arith.constant 0 : index
      %c0_33 = arith.constant 0 : index
      %111 = vector.load %arg7[%c0_31, %c0_32, %c0_33] : memref<1x8x128xf32, #tpu.memory_space<vmem>>, vector<1x8x128xf32>
      %112 = vector.shape_cast %111 : vector<1x8x128xf32> to vector<8x128xf32>
      %c0_34 = arith.constant 0 : index
      %c0_35 = arith.constant 0 : index
      %c0_36 = arith.constant 0 : index
      %113 = vector.load %arg8[%c0_34, %c0_35, %c0_36] : memref<1x8x128xf32, #tpu.memory_space<vmem>>, vector<1x8x128xf32>
      %114 = vector.shape_cast %113 : vector<1x8x128xf32> to vector<8x128xf32>
      %c0_37 = arith.constant 0 : index
      %c112 = arith.constant 112 : index
      %c0_38 = arith.constant 0 : index
      %115 = vector.load %arg4[%c0_37, %c112, %c0_38] : memref<1x192x512xf32, #tpu.memory_space<vmem>>, vector<1x8x512xf32>
      %116 = vector.shape_cast %115 : vector<1x8x512xf32> to vector<8x512xf32>
      %c0_39 = arith.constant 0 : index
      %c0_40 = arith.constant 0 : index
      %117 = vector.load %arg5[%c0_39, %c0_40] : memref<128x512xf32, #tpu.memory_space<vmem>>, vector<128x512xf32>
      %cst = arith.constant dense<0.000000e+00> : vector<8x512xf32>
      %118 = tpu.matmul %112, %117, %cst {dimension_numbers = #tpu.dot_dimension_numbers<[1], [0], [0], [1], [0, 0, 1, 1], [], []>} : vector<8x128xf32>, vector<128x512xf32>, vector<8x512xf32> -> vector<8x512xf32>
      %119 = arith.addf %116, %118 : vector<8x512xf32>
      %120 = vector.extract_strided_slice %119 {offsets = [0, 0], sizes = [8, 128], strides = [1, 1]} : vector<8x512xf32> to vector<8x128xf32>
      %121 = arith.negf %120 : vector<8x128xf32>
      %122 = math.exp %121 : vector<8x128xf32>
      %cst_41 = arith.constant 1.000000e+00 : f32
      %123 = vector.broadcast %cst_41 : f32 to vector<8x128xf32>
      %124 = arith.addf %123, %122 : vector<8x128xf32>
      %125 = arith.divf %123, %124 : vector<8x128xf32>
      %126 = vector.extract_strided_slice %119 {offsets = [0, 128], sizes = [8, 128], strides = [1, 1]} : vector<8x512xf32> to vector<8x128xf32>
      %127 = arith.negf %126 : vector<8x128xf32>
      %128 = math.exp %127 : vector<8x128xf32>
      %cst_42 = arith.constant 1.000000e+00 : f32
      %129 = vector.broadcast %cst_42 : f32 to vector<8x128xf32>
      %130 = arith.addf %129, %128 : vector<8x128xf32>
      %131 = arith.divf %129, %130 : vector<8x128xf32>
      %132 = vector.extract_strided_slice %119 {offsets = [0, 256], sizes = [8, 128], strides = [1, 1]} : vector<8x512xf32> to vector<8x128xf32>
      %133 = math.tanh %132 : vector<8x128xf32>
      %134 = vector.extract_strided_slice %119 {offsets = [0, 384], sizes = [8, 128], strides = [1, 1]} : vector<8x512xf32> to vector<8x128xf32>
      %135 = arith.negf %134 : vector<8x128xf32>
      %136 = math.exp %135 : vector<8x128xf32>
      %cst_43 = arith.constant 1.000000e+00 : f32
      %137 = vector.broadcast %cst_43 : f32 to vector<8x128xf32>
      %138 = arith.addf %137, %136 : vector<8x128xf32>
      %139 = arith.divf %137, %138 : vector<8x128xf32>
      %140 = arith.mulf %131, %114 : vector<8x128xf32>
      %141 = arith.mulf %125, %133 : vector<8x128xf32>
      %142 = arith.addf %140, %141 : vector<8x128xf32>
      %143 = math.tanh %142 : vector<8x128xf32>
      %144 = arith.mulf %139, %143 : vector<8x128xf32>
      %145 = vector.broadcast %71 : i32 to vector<8x128xi32>
      %146 = arith.cmpi slt, %145, %14 : vector<8x128xi32>
      %147 = arith.select %146, %144, %112 : vector<8x128xi1>, vector<8x128xf32>
      %c0_44 = arith.constant 0 : index
      %c0_45 = arith.constant 0 : index
      %c0_46 = arith.constant 0 : index
      %148 = vector.load %arg7[%c0_44, %c0_45, %c0_46] : memref<1x8x128xf32, #tpu.memory_space<vmem>>, vector<1x8x128xf32>
      %149 = vector.shape_cast %148 : vector<1x8x128xf32> to vector<8x128xf32>
      %150 = vector.shape_cast %147 : vector<8x128xf32> to vector<1x8x128xf32>
      tpu.vector_store %arg7[%c0_44, %c0_45, %c0_46], %150 {strides = array<i32>} : memref<1x8x128xf32, #tpu.memory_space<vmem>>, vector<1x8x128xf32>,
      %151 = arith.select %146, %142, %114 : vector<8x128xi1>, vector<8x128xf32>
      %c0_47 = arith.constant 0 : index
      %c0_48 = arith.constant 0 : index
      %c0_49 = arith.constant 0 : index
      %152 = vector.load %arg8[%c0_47, %c0_48, %c0_49] : memref<1x8x128xf32, #tpu.memory_space<vmem>>, vector<1x8x128xf32>
      %153 = vector.shape_cast %152 : vector<1x8x128xf32> to vector<8x128xf32>
      %154 = vector.shape_cast %151 : vector<8x128xf32> to vector<1x8x128xf32>
      tpu.vector_store %arg8[%c0_47, %c0_48, %c0_49], %154 {strides = array<i32>} : memref<1x8x128xf32, #tpu.memory_space<vmem>>, vector<1x8x128xf32>,
      %cst_50 = arith.constant 0.000000e+00 : f32
      %155 = vector.broadcast %cst_50 : f32 to vector<8x128xf32>
      %156 = arith.select %146, %144, %155 : vector<8x128xi1>, vector<8x128xf32>
      %c0_51 = arith.constant 0 : index
      %c112_52 = arith.constant 112 : index
      %c0_53 = arith.constant 0 : index
      %157 = vector.load %arg6[%c0_51, %c112_52, %c0_53] : memref<1x192x128xf32, #tpu.memory_space<vmem>>, vector<1x8x128xf32>
      %158 = vector.shape_cast %157 : vector<1x8x128xf32> to vector<8x128xf32>
      %159 = vector.shape_cast %156 : vector<8x128xf32> to vector<1x8x128xf32>
      tpu.vector_store %arg6[%c0_51, %c112_52, %c0_53], %159 {strides = array<i32>} : memref<1x192x128xf32, #tpu.memory_space<vmem>>, vector<1x8x128xf32>,
    } else {
    }
    %c15_i32 = arith.constant 15 : i32
    %75 = arith.addi %6, %c15_i32 : i32
    %76 = arith.cmpi slt, %75, %5 : i32
    %77 = arith.extui %76 : i1 to i32
    %c0_i32_22 = arith.constant 0 : i32
    %78 = arith.cmpi ne, %77, %c0_i32_22 : i32
    scf.if %78 {
      %c0_31 = arith.constant 0 : index
      %c0_32 = arith.constant 0 : index
      %c0_33 = arith.constant 0 : index
      %111 = vector.load %arg7[%c0_31, %c0_32, %c0_33] : memref<1x8x128xf32, #tpu.memory_space<vmem>>, vector<1x8x128xf32>
      %112 = vector.shape_cast %111 : vector<1x8x128xf32> to vector<8x128xf32>
      %c0_34 = arith.constant 0 : index
      %c0_35 = arith.constant 0 : index
      %c0_36 = arith.constant 0 : index
      %113 = vector.load %arg8[%c0_34, %c0_35, %c0_36] : memref<1x8x128xf32, #tpu.memory_space<vmem>>, vector<1x8x128xf32>
      %114 = vector.shape_cast %113 : vector<1x8x128xf32> to vector<8x128xf32>
      %c0_37 = arith.constant 0 : index
      %c120 = arith.constant 120 : index
      %c0_38 = arith.constant 0 : index
      %115 = vector.load %arg4[%c0_37, %c120, %c0_38] : memref<1x192x512xf32, #tpu.memory_space<vmem>>, vector<1x8x512xf32>
      %116 = vector.shape_cast %115 : vector<1x8x512xf32> to vector<8x512xf32>
      %c0_39 = arith.constant 0 : index
      %c0_40 = arith.constant 0 : index
      %117 = vector.load %arg5[%c0_39, %c0_40] : memref<128x512xf32, #tpu.memory_space<vmem>>, vector<128x512xf32>
      %cst = arith.constant dense<0.000000e+00> : vector<8x512xf32>
      %118 = tpu.matmul %112, %117, %cst {dimension_numbers = #tpu.dot_dimension_numbers<[1], [0], [0], [1], [0, 0, 1, 1], [], []>} : vector<8x128xf32>, vector<128x512xf32>, vector<8x512xf32> -> vector<8x512xf32>
      %119 = arith.addf %116, %118 : vector<8x512xf32>
      %120 = vector.extract_strided_slice %119 {offsets = [0, 0], sizes = [8, 128], strides = [1, 1]} : vector<8x512xf32> to vector<8x128xf32>
      %121 = arith.negf %120 : vector<8x128xf32>
      %122 = math.exp %121 : vector<8x128xf32>
      %cst_41 = arith.constant 1.000000e+00 : f32
      %123 = vector.broadcast %cst_41 : f32 to vector<8x128xf32>
      %124 = arith.addf %123, %122 : vector<8x128xf32>
      %125 = arith.divf %123, %124 : vector<8x128xf32>
      %126 = vector.extract_strided_slice %119 {offsets = [0, 128], sizes = [8, 128], strides = [1, 1]} : vector<8x512xf32> to vector<8x128xf32>
      %127 = arith.negf %126 : vector<8x128xf32>
      %128 = math.exp %127 : vector<8x128xf32>
      %cst_42 = arith.constant 1.000000e+00 : f32
      %129 = vector.broadcast %cst_42 : f32 to vector<8x128xf32>
      %130 = arith.addf %129, %128 : vector<8x128xf32>
      %131 = arith.divf %129, %130 : vector<8x128xf32>
      %132 = vector.extract_strided_slice %119 {offsets = [0, 256], sizes = [8, 128], strides = [1, 1]} : vector<8x512xf32> to vector<8x128xf32>
      %133 = math.tanh %132 : vector<8x128xf32>
      %134 = vector.extract_strided_slice %119 {offsets = [0, 384], sizes = [8, 128], strides = [1, 1]} : vector<8x512xf32> to vector<8x128xf32>
      %135 = arith.negf %134 : vector<8x128xf32>
      %136 = math.exp %135 : vector<8x128xf32>
      %cst_43 = arith.constant 1.000000e+00 : f32
      %137 = vector.broadcast %cst_43 : f32 to vector<8x128xf32>
      %138 = arith.addf %137, %136 : vector<8x128xf32>
      %139 = arith.divf %137, %138 : vector<8x128xf32>
      %140 = arith.mulf %131, %114 : vector<8x128xf32>
      %141 = arith.mulf %125, %133 : vector<8x128xf32>
      %142 = arith.addf %140, %141 : vector<8x128xf32>
      %143 = math.tanh %142 : vector<8x128xf32>
      %144 = arith.mulf %139, %143 : vector<8x128xf32>
      %145 = vector.broadcast %75 : i32 to vector<8x128xi32>
      %146 = arith.cmpi slt, %145, %14 : vector<8x128xi32>
      %147 = arith.select %146, %144, %112 : vector<8x128xi1>, vector<8x128xf32>
      %c0_44 = arith.constant 0 : index
      %c0_45 = arith.constant 0 : index
      %c0_46 = arith.constant 0 : index
      %148 = vector.load %arg7[%c0_44, %c0_45, %c0_46] : memref<1x8x128xf32, #tpu.memory_space<vmem>>, vector<1x8x128xf32>
      %149 = vector.shape_cast %148 : vector<1x8x128xf32> to vector<8x128xf32>
      %150 = vector.shape_cast %147 : vector<8x128xf32> to vector<1x8x128xf32>
      tpu.vector_store %arg7[%c0_44, %c0_45, %c0_46], %150 {strides = array<i32>} : memref<1x8x128xf32, #tpu.memory_space<vmem>>, vector<1x8x128xf32>,
      %151 = arith.select %146, %142, %114 : vector<8x128xi1>, vector<8x128xf32>
      %c0_47 = arith.constant 0 : index
      %c0_48 = arith.constant 0 : index
      %c0_49 = arith.constant 0 : index
      %152 = vector.load %arg8[%c0_47, %c0_48, %c0_49] : memref<1x8x128xf32, #tpu.memory_space<vmem>>, vector<1x8x128xf32>
      %153 = vector.shape_cast %152 : vector<1x8x128xf32> to vector<8x128xf32>
      %154 = vector.shape_cast %151 : vector<8x128xf32> to vector<1x8x128xf32>
      tpu.vector_store %arg8[%c0_47, %c0_48, %c0_49], %154 {strides = array<i32>} : memref<1x8x128xf32, #tpu.memory_space<vmem>>, vector<1x8x128xf32>,
      %cst_50 = arith.constant 0.000000e+00 : f32
      %155 = vector.broadcast %cst_50 : f32 to vector<8x128xf32>
      %156 = arith.select %146, %144, %155 : vector<8x128xi1>, vector<8x128xf32>
      %c0_51 = arith.constant 0 : index
      %c120_52 = arith.constant 120 : index
      %c0_53 = arith.constant 0 : index
      %157 = vector.load %arg6[%c0_51, %c120_52, %c0_53] : memref<1x192x128xf32, #tpu.memory_space<vmem>>, vector<1x8x128xf32>
      %158 = vector.shape_cast %157 : vector<1x8x128xf32> to vector<8x128xf32>
      %159 = vector.shape_cast %156 : vector<8x128xf32> to vector<1x8x128xf32>
      tpu.vector_store %arg6[%c0_51, %c120_52, %c0_53], %159 {strides = array<i32>} : memref<1x192x128xf32, #tpu.memory_space<vmem>>, vector<1x8x128xf32>,
    } else {
    }
    %c16_i32 = arith.constant 16 : i32
    %79 = arith.addi %6, %c16_i32 : i32
    %80 = arith.cmpi slt, %79, %5 : i32
    %81 = arith.extui %80 : i1 to i32
    %c0_i32_23 = arith.constant 0 : i32
    %82 = arith.cmpi ne, %81, %c0_i32_23 : i32
    scf.if %82 {
      %c0_31 = arith.constant 0 : index
      %c0_32 = arith.constant 0 : index
      %c0_33 = arith.constant 0 : index
      %111 = vector.load %arg7[%c0_31, %c0_32, %c0_33] : memref<1x8x128xf32, #tpu.memory_space<vmem>>, vector<1x8x128xf32>
      %112 = vector.shape_cast %111 : vector<1x8x128xf32> to vector<8x128xf32>
      %c0_34 = arith.constant 0 : index
      %c0_35 = arith.constant 0 : index
      %c0_36 = arith.constant 0 : index
      %113 = vector.load %arg8[%c0_34, %c0_35, %c0_36] : memref<1x8x128xf32, #tpu.memory_space<vmem>>, vector<1x8x128xf32>
      %114 = vector.shape_cast %113 : vector<1x8x128xf32> to vector<8x128xf32>
      %c0_37 = arith.constant 0 : index
      %c128 = arith.constant 128 : index
      %c0_38 = arith.constant 0 : index
      %115 = vector.load %arg4[%c0_37, %c128, %c0_38] : memref<1x192x512xf32, #tpu.memory_space<vmem>>, vector<1x8x512xf32>
      %116 = vector.shape_cast %115 : vector<1x8x512xf32> to vector<8x512xf32>
      %c0_39 = arith.constant 0 : index
      %c0_40 = arith.constant 0 : index
      %117 = vector.load %arg5[%c0_39, %c0_40] : memref<128x512xf32, #tpu.memory_space<vmem>>, vector<128x512xf32>
      %cst = arith.constant dense<0.000000e+00> : vector<8x512xf32>
      %118 = tpu.matmul %112, %117, %cst {dimension_numbers = #tpu.dot_dimension_numbers<[1], [0], [0], [1], [0, 0, 1, 1], [], []>} : vector<8x128xf32>, vector<128x512xf32>, vector<8x512xf32> -> vector<8x512xf32>
      %119 = arith.addf %116, %118 : vector<8x512xf32>
      %120 = vector.extract_strided_slice %119 {offsets = [0, 0], sizes = [8, 128], strides = [1, 1]} : vector<8x512xf32> to vector<8x128xf32>
      %121 = arith.negf %120 : vector<8x128xf32>
      %122 = math.exp %121 : vector<8x128xf32>
      %cst_41 = arith.constant 1.000000e+00 : f32
      %123 = vector.broadcast %cst_41 : f32 to vector<8x128xf32>
      %124 = arith.addf %123, %122 : vector<8x128xf32>
      %125 = arith.divf %123, %124 : vector<8x128xf32>
      %126 = vector.extract_strided_slice %119 {offsets = [0, 128], sizes = [8, 128], strides = [1, 1]} : vector<8x512xf32> to vector<8x128xf32>
      %127 = arith.negf %126 : vector<8x128xf32>
      %128 = math.exp %127 : vector<8x128xf32>
      %cst_42 = arith.constant 1.000000e+00 : f32
      %129 = vector.broadcast %cst_42 : f32 to vector<8x128xf32>
      %130 = arith.addf %129, %128 : vector<8x128xf32>
      %131 = arith.divf %129, %130 : vector<8x128xf32>
      %132 = vector.extract_strided_slice %119 {offsets = [0, 256], sizes = [8, 128], strides = [1, 1]} : vector<8x512xf32> to vector<8x128xf32>
      %133 = math.tanh %132 : vector<8x128xf32>
      %134 = vector.extract_strided_slice %119 {offsets = [0, 384], sizes = [8, 128], strides = [1, 1]} : vector<8x512xf32> to vector<8x128xf32>
      %135 = arith.negf %134 : vector<8x128xf32>
      %136 = math.exp %135 : vector<8x128xf32>
      %cst_43 = arith.constant 1.000000e+00 : f32
      %137 = vector.broadcast %cst_43 : f32 to vector<8x128xf32>
      %138 = arith.addf %137, %136 : vector<8x128xf32>
      %139 = arith.divf %137, %138 : vector<8x128xf32>
      %140 = arith.mulf %131, %114 : vector<8x128xf32>
      %141 = arith.mulf %125, %133 : vector<8x128xf32>
      %142 = arith.addf %140, %141 : vector<8x128xf32>
      %143 = math.tanh %142 : vector<8x128xf32>
      %144 = arith.mulf %139, %143 : vector<8x128xf32>
      %145 = vector.broadcast %79 : i32 to vector<8x128xi32>
      %146 = arith.cmpi slt, %145, %14 : vector<8x128xi32>
      %147 = arith.select %146, %144, %112 : vector<8x128xi1>, vector<8x128xf32>
      %c0_44 = arith.constant 0 : index
      %c0_45 = arith.constant 0 : index
      %c0_46 = arith.constant 0 : index
      %148 = vector.load %arg7[%c0_44, %c0_45, %c0_46] : memref<1x8x128xf32, #tpu.memory_space<vmem>>, vector<1x8x128xf32>
      %149 = vector.shape_cast %148 : vector<1x8x128xf32> to vector<8x128xf32>
      %150 = vector.shape_cast %147 : vector<8x128xf32> to vector<1x8x128xf32>
      tpu.vector_store %arg7[%c0_44, %c0_45, %c0_46], %150 {strides = array<i32>} : memref<1x8x128xf32, #tpu.memory_space<vmem>>, vector<1x8x128xf32>,
      %151 = arith.select %146, %142, %114 : vector<8x128xi1>, vector<8x128xf32>
      %c0_47 = arith.constant 0 : index
      %c0_48 = arith.constant 0 : index
      %c0_49 = arith.constant 0 : index
      %152 = vector.load %arg8[%c0_47, %c0_48, %c0_49] : memref<1x8x128xf32, #tpu.memory_space<vmem>>, vector<1x8x128xf32>
      %153 = vector.shape_cast %152 : vector<1x8x128xf32> to vector<8x128xf32>
      %154 = vector.shape_cast %151 : vector<8x128xf32> to vector<1x8x128xf32>
      tpu.vector_store %arg8[%c0_47, %c0_48, %c0_49], %154 {strides = array<i32>} : memref<1x8x128xf32, #tpu.memory_space<vmem>>, vector<1x8x128xf32>,
      %cst_50 = arith.constant 0.000000e+00 : f32
      %155 = vector.broadcast %cst_50 : f32 to vector<8x128xf32>
      %156 = arith.select %146, %144, %155 : vector<8x128xi1>, vector<8x128xf32>
      %c0_51 = arith.constant 0 : index
      %c128_52 = arith.constant 128 : index
      %c0_53 = arith.constant 0 : index
      %157 = vector.load %arg6[%c0_51, %c128_52, %c0_53] : memref<1x192x128xf32, #tpu.memory_space<vmem>>, vector<1x8x128xf32>
      %158 = vector.shape_cast %157 : vector<1x8x128xf32> to vector<8x128xf32>
      %159 = vector.shape_cast %156 : vector<8x128xf32> to vector<1x8x128xf32>
      tpu.vector_store %arg6[%c0_51, %c128_52, %c0_53], %159 {strides = array<i32>} : memref<1x192x128xf32, #tpu.memory_space<vmem>>, vector<1x8x128xf32>,
    } else {
    }
    %c17_i32 = arith.constant 17 : i32
    %83 = arith.addi %6, %c17_i32 : i32
    %84 = arith.cmpi slt, %83, %5 : i32
    %85 = arith.extui %84 : i1 to i32
    %c0_i32_24 = arith.constant 0 : i32
    %86 = arith.cmpi ne, %85, %c0_i32_24 : i32
    scf.if %86 {
      %c0_31 = arith.constant 0 : index
      %c0_32 = arith.constant 0 : index
      %c0_33 = arith.constant 0 : index
      %111 = vector.load %arg7[%c0_31, %c0_32, %c0_33] : memref<1x8x128xf32, #tpu.memory_space<vmem>>, vector<1x8x128xf32>
      %112 = vector.shape_cast %111 : vector<1x8x128xf32> to vector<8x128xf32>
      %c0_34 = arith.constant 0 : index
      %c0_35 = arith.constant 0 : index
      %c0_36 = arith.constant 0 : index
      %113 = vector.load %arg8[%c0_34, %c0_35, %c0_36] : memref<1x8x128xf32, #tpu.memory_space<vmem>>, vector<1x8x128xf32>
      %114 = vector.shape_cast %113 : vector<1x8x128xf32> to vector<8x128xf32>
      %c0_37 = arith.constant 0 : index
      %c136 = arith.constant 136 : index
      %c0_38 = arith.constant 0 : index
      %115 = vector.load %arg4[%c0_37, %c136, %c0_38] : memref<1x192x512xf32, #tpu.memory_space<vmem>>, vector<1x8x512xf32>
      %116 = vector.shape_cast %115 : vector<1x8x512xf32> to vector<8x512xf32>
      %c0_39 = arith.constant 0 : index
      %c0_40 = arith.constant 0 : index
      %117 = vector.load %arg5[%c0_39, %c0_40] : memref<128x512xf32, #tpu.memory_space<vmem>>, vector<128x512xf32>
      %cst = arith.constant dense<0.000000e+00> : vector<8x512xf32>
      %118 = tpu.matmul %112, %117, %cst {dimension_numbers = #tpu.dot_dimension_numbers<[1], [0], [0], [1], [0, 0, 1, 1], [], []>} : vector<8x128xf32>, vector<128x512xf32>, vector<8x512xf32> -> vector<8x512xf32>
      %119 = arith.addf %116, %118 : vector<8x512xf32>
      %120 = vector.extract_strided_slice %119 {offsets = [0, 0], sizes = [8, 128], strides = [1, 1]} : vector<8x512xf32> to vector<8x128xf32>
      %121 = arith.negf %120 : vector<8x128xf32>
      %122 = math.exp %121 : vector<8x128xf32>
      %cst_41 = arith.constant 1.000000e+00 : f32
      %123 = vector.broadcast %cst_41 : f32 to vector<8x128xf32>
      %124 = arith.addf %123, %122 : vector<8x128xf32>
      %125 = arith.divf %123, %124 : vector<8x128xf32>
      %126 = vector.extract_strided_slice %119 {offsets = [0, 128], sizes = [8, 128], strides = [1, 1]} : vector<8x512xf32> to vector<8x128xf32>
      %127 = arith.negf %126 : vector<8x128xf32>
      %128 = math.exp %127 : vector<8x128xf32>
      %cst_42 = arith.constant 1.000000e+00 : f32
      %129 = vector.broadcast %cst_42 : f32 to vector<8x128xf32>
      %130 = arith.addf %129, %128 : vector<8x128xf32>
      %131 = arith.divf %129, %130 : vector<8x128xf32>
      %132 = vector.extract_strided_slice %119 {offsets = [0, 256], sizes = [8, 128], strides = [1, 1]} : vector<8x512xf32> to vector<8x128xf32>
      %133 = math.tanh %132 : vector<8x128xf32>
      %134 = vector.extract_strided_slice %119 {offsets = [0, 384], sizes = [8, 128], strides = [1, 1]} : vector<8x512xf32> to vector<8x128xf32>
      %135 = arith.negf %134 : vector<8x128xf32>
      %136 = math.exp %135 : vector<8x128xf32>
      %cst_43 = arith.constant 1.000000e+00 : f32
      %137 = vector.broadcast %cst_43 : f32 to vector<8x128xf32>
      %138 = arith.addf %137, %136 : vector<8x128xf32>
      %139 = arith.divf %137, %138 : vector<8x128xf32>
      %140 = arith.mulf %131, %114 : vector<8x128xf32>
      %141 = arith.mulf %125, %133 : vector<8x128xf32>
      %142 = arith.addf %140, %141 : vector<8x128xf32>
      %143 = math.tanh %142 : vector<8x128xf32>
      %144 = arith.mulf %139, %143 : vector<8x128xf32>
      %145 = vector.broadcast %83 : i32 to vector<8x128xi32>
      %146 = arith.cmpi slt, %145, %14 : vector<8x128xi32>
      %147 = arith.select %146, %144, %112 : vector<8x128xi1>, vector<8x128xf32>
      %c0_44 = arith.constant 0 : index
      %c0_45 = arith.constant 0 : index
      %c0_46 = arith.constant 0 : index
      %148 = vector.load %arg7[%c0_44, %c0_45, %c0_46] : memref<1x8x128xf32, #tpu.memory_space<vmem>>, vector<1x8x128xf32>
      %149 = vector.shape_cast %148 : vector<1x8x128xf32> to vector<8x128xf32>
      %150 = vector.shape_cast %147 : vector<8x128xf32> to vector<1x8x128xf32>
      tpu.vector_store %arg7[%c0_44, %c0_45, %c0_46], %150 {strides = array<i32>} : memref<1x8x128xf32, #tpu.memory_space<vmem>>, vector<1x8x128xf32>,
      %151 = arith.select %146, %142, %114 : vector<8x128xi1>, vector<8x128xf32>
      %c0_47 = arith.constant 0 : index
      %c0_48 = arith.constant 0 : index
      %c0_49 = arith.constant 0 : index
      %152 = vector.load %arg8[%c0_47, %c0_48, %c0_49] : memref<1x8x128xf32, #tpu.memory_space<vmem>>, vector<1x8x128xf32>
      %153 = vector.shape_cast %152 : vector<1x8x128xf32> to vector<8x128xf32>
      %154 = vector.shape_cast %151 : vector<8x128xf32> to vector<1x8x128xf32>
      tpu.vector_store %arg8[%c0_47, %c0_48, %c0_49], %154 {strides = array<i32>} : memref<1x8x128xf32, #tpu.memory_space<vmem>>, vector<1x8x128xf32>,
      %cst_50 = arith.constant 0.000000e+00 : f32
      %155 = vector.broadcast %cst_50 : f32 to vector<8x128xf32>
      %156 = arith.select %146, %144, %155 : vector<8x128xi1>, vector<8x128xf32>
      %c0_51 = arith.constant 0 : index
      %c136_52 = arith.constant 136 : index
      %c0_53 = arith.constant 0 : index
      %157 = vector.load %arg6[%c0_51, %c136_52, %c0_53] : memref<1x192x128xf32, #tpu.memory_space<vmem>>, vector<1x8x128xf32>
      %158 = vector.shape_cast %157 : vector<1x8x128xf32> to vector<8x128xf32>
      %159 = vector.shape_cast %156 : vector<8x128xf32> to vector<1x8x128xf32>
      tpu.vector_store %arg6[%c0_51, %c136_52, %c0_53], %159 {strides = array<i32>} : memref<1x192x128xf32, #tpu.memory_space<vmem>>, vector<1x8x128xf32>,
    } else {
    }
    %c18_i32 = arith.constant 18 : i32
    %87 = arith.addi %6, %c18_i32 : i32
    %88 = arith.cmpi slt, %87, %5 : i32
    %89 = arith.extui %88 : i1 to i32
    %c0_i32_25 = arith.constant 0 : i32
    %90 = arith.cmpi ne, %89, %c0_i32_25 : i32
    scf.if %90 {
      %c0_31 = arith.constant 0 : index
      %c0_32 = arith.constant 0 : index
      %c0_33 = arith.constant 0 : index
      %111 = vector.load %arg7[%c0_31, %c0_32, %c0_33] : memref<1x8x128xf32, #tpu.memory_space<vmem>>, vector<1x8x128xf32>
      %112 = vector.shape_cast %111 : vector<1x8x128xf32> to vector<8x128xf32>
      %c0_34 = arith.constant 0 : index
      %c0_35 = arith.constant 0 : index
      %c0_36 = arith.constant 0 : index
      %113 = vector.load %arg8[%c0_34, %c0_35, %c0_36] : memref<1x8x128xf32, #tpu.memory_space<vmem>>, vector<1x8x128xf32>
      %114 = vector.shape_cast %113 : vector<1x8x128xf32> to vector<8x128xf32>
      %c0_37 = arith.constant 0 : index
      %c144 = arith.constant 144 : index
      %c0_38 = arith.constant 0 : index
      %115 = vector.load %arg4[%c0_37, %c144, %c0_38] : memref<1x192x512xf32, #tpu.memory_space<vmem>>, vector<1x8x512xf32>
      %116 = vector.shape_cast %115 : vector<1x8x512xf32> to vector<8x512xf32>
      %c0_39 = arith.constant 0 : index
      %c0_40 = arith.constant 0 : index
      %117 = vector.load %arg5[%c0_39, %c0_40] : memref<128x512xf32, #tpu.memory_space<vmem>>, vector<128x512xf32>
      %cst = arith.constant dense<0.000000e+00> : vector<8x512xf32>
      %118 = tpu.matmul %112, %117, %cst {dimension_numbers = #tpu.dot_dimension_numbers<[1], [0], [0], [1], [0, 0, 1, 1], [], []>} : vector<8x128xf32>, vector<128x512xf32>, vector<8x512xf32> -> vector<8x512xf32>
      %119 = arith.addf %116, %118 : vector<8x512xf32>
      %120 = vector.extract_strided_slice %119 {offsets = [0, 0], sizes = [8, 128], strides = [1, 1]} : vector<8x512xf32> to vector<8x128xf32>
      %121 = arith.negf %120 : vector<8x128xf32>
      %122 = math.exp %121 : vector<8x128xf32>
      %cst_41 = arith.constant 1.000000e+00 : f32
      %123 = vector.broadcast %cst_41 : f32 to vector<8x128xf32>
      %124 = arith.addf %123, %122 : vector<8x128xf32>
      %125 = arith.divf %123, %124 : vector<8x128xf32>
      %126 = vector.extract_strided_slice %119 {offsets = [0, 128], sizes = [8, 128], strides = [1, 1]} : vector<8x512xf32> to vector<8x128xf32>
      %127 = arith.negf %126 : vector<8x128xf32>
      %128 = math.exp %127 : vector<8x128xf32>
      %cst_42 = arith.constant 1.000000e+00 : f32
      %129 = vector.broadcast %cst_42 : f32 to vector<8x128xf32>
      %130 = arith.addf %129, %128 : vector<8x128xf32>
      %131 = arith.divf %129, %130 : vector<8x128xf32>
      %132 = vector.extract_strided_slice %119 {offsets = [0, 256], sizes = [8, 128], strides = [1, 1]} : vector<8x512xf32> to vector<8x128xf32>
      %133 = math.tanh %132 : vector<8x128xf32>
      %134 = vector.extract_strided_slice %119 {offsets = [0, 384], sizes = [8, 128], strides = [1, 1]} : vector<8x512xf32> to vector<8x128xf32>
      %135 = arith.negf %134 : vector<8x128xf32>
      %136 = math.exp %135 : vector<8x128xf32>
      %cst_43 = arith.constant 1.000000e+00 : f32
      %137 = vector.broadcast %cst_43 : f32 to vector<8x128xf32>
      %138 = arith.addf %137, %136 : vector<8x128xf32>
      %139 = arith.divf %137, %138 : vector<8x128xf32>
      %140 = arith.mulf %131, %114 : vector<8x128xf32>
      %141 = arith.mulf %125, %133 : vector<8x128xf32>
      %142 = arith.addf %140, %141 : vector<8x128xf32>
      %143 = math.tanh %142 : vector<8x128xf32>
      %144 = arith.mulf %139, %143 : vector<8x128xf32>
      %145 = vector.broadcast %87 : i32 to vector<8x128xi32>
      %146 = arith.cmpi slt, %145, %14 : vector<8x128xi32>
      %147 = arith.select %146, %144, %112 : vector<8x128xi1>, vector<8x128xf32>
      %c0_44 = arith.constant 0 : index
      %c0_45 = arith.constant 0 : index
      %c0_46 = arith.constant 0 : index
      %148 = vector.load %arg7[%c0_44, %c0_45, %c0_46] : memref<1x8x128xf32, #tpu.memory_space<vmem>>, vector<1x8x128xf32>
      %149 = vector.shape_cast %148 : vector<1x8x128xf32> to vector<8x128xf32>
      %150 = vector.shape_cast %147 : vector<8x128xf32> to vector<1x8x128xf32>
      tpu.vector_store %arg7[%c0_44, %c0_45, %c0_46], %150 {strides = array<i32>} : memref<1x8x128xf32, #tpu.memory_space<vmem>>, vector<1x8x128xf32>,
      %151 = arith.select %146, %142, %114 : vector<8x128xi1>, vector<8x128xf32>
      %c0_47 = arith.constant 0 : index
      %c0_48 = arith.constant 0 : index
      %c0_49 = arith.constant 0 : index
      %152 = vector.load %arg8[%c0_47, %c0_48, %c0_49] : memref<1x8x128xf32, #tpu.memory_space<vmem>>, vector<1x8x128xf32>
      %153 = vector.shape_cast %152 : vector<1x8x128xf32> to vector<8x128xf32>
      %154 = vector.shape_cast %151 : vector<8x128xf32> to vector<1x8x128xf32>
      tpu.vector_store %arg8[%c0_47, %c0_48, %c0_49], %154 {strides = array<i32>} : memref<1x8x128xf32, #tpu.memory_space<vmem>>, vector<1x8x128xf32>,
      %cst_50 = arith.constant 0.000000e+00 : f32
      %155 = vector.broadcast %cst_50 : f32 to vector<8x128xf32>
      %156 = arith.select %146, %144, %155 : vector<8x128xi1>, vector<8x128xf32>
      %c0_51 = arith.constant 0 : index
      %c144_52 = arith.constant 144 : index
      %c0_53 = arith.constant 0 : index
      %157 = vector.load %arg6[%c0_51, %c144_52, %c0_53] : memref<1x192x128xf32, #tpu.memory_space<vmem>>, vector<1x8x128xf32>
      %158 = vector.shape_cast %157 : vector<1x8x128xf32> to vector<8x128xf32>
      %159 = vector.shape_cast %156 : vector<8x128xf32> to vector<1x8x128xf32>
      tpu.vector_store %arg6[%c0_51, %c144_52, %c0_53], %159 {strides = array<i32>} : memref<1x192x128xf32, #tpu.memory_space<vmem>>, vector<1x8x128xf32>,
    } else {
    }
    %c19_i32 = arith.constant 19 : i32
    %91 = arith.addi %6, %c19_i32 : i32
    %92 = arith.cmpi slt, %91, %5 : i32
    %93 = arith.extui %92 : i1 to i32
    %c0_i32_26 = arith.constant 0 : i32
    %94 = arith.cmpi ne, %93, %c0_i32_26 : i32
    scf.if %94 {
      %c0_31 = arith.constant 0 : index
      %c0_32 = arith.constant 0 : index
      %c0_33 = arith.constant 0 : index
      %111 = vector.load %arg7[%c0_31, %c0_32, %c0_33] : memref<1x8x128xf32, #tpu.memory_space<vmem>>, vector<1x8x128xf32>
      %112 = vector.shape_cast %111 : vector<1x8x128xf32> to vector<8x128xf32>
      %c0_34 = arith.constant 0 : index
      %c0_35 = arith.constant 0 : index
      %c0_36 = arith.constant 0 : index
      %113 = vector.load %arg8[%c0_34, %c0_35, %c0_36] : memref<1x8x128xf32, #tpu.memory_space<vmem>>, vector<1x8x128xf32>
      %114 = vector.shape_cast %113 : vector<1x8x128xf32> to vector<8x128xf32>
      %c0_37 = arith.constant 0 : index
      %c152 = arith.constant 152 : index
      %c0_38 = arith.constant 0 : index
      %115 = vector.load %arg4[%c0_37, %c152, %c0_38] : memref<1x192x512xf32, #tpu.memory_space<vmem>>, vector<1x8x512xf32>
      %116 = vector.shape_cast %115 : vector<1x8x512xf32> to vector<8x512xf32>
      %c0_39 = arith.constant 0 : index
      %c0_40 = arith.constant 0 : index
      %117 = vector.load %arg5[%c0_39, %c0_40] : memref<128x512xf32, #tpu.memory_space<vmem>>, vector<128x512xf32>
      %cst = arith.constant dense<0.000000e+00> : vector<8x512xf32>
      %118 = tpu.matmul %112, %117, %cst {dimension_numbers = #tpu.dot_dimension_numbers<[1], [0], [0], [1], [0, 0, 1, 1], [], []>} : vector<8x128xf32>, vector<128x512xf32>, vector<8x512xf32> -> vector<8x512xf32>
      %119 = arith.addf %116, %118 : vector<8x512xf32>
      %120 = vector.extract_strided_slice %119 {offsets = [0, 0], sizes = [8, 128], strides = [1, 1]} : vector<8x512xf32> to vector<8x128xf32>
      %121 = arith.negf %120 : vector<8x128xf32>
      %122 = math.exp %121 : vector<8x128xf32>
      %cst_41 = arith.constant 1.000000e+00 : f32
      %123 = vector.broadcast %cst_41 : f32 to vector<8x128xf32>
      %124 = arith.addf %123, %122 : vector<8x128xf32>
      %125 = arith.divf %123, %124 : vector<8x128xf32>
      %126 = vector.extract_strided_slice %119 {offsets = [0, 128], sizes = [8, 128], strides = [1, 1]} : vector<8x512xf32> to vector<8x128xf32>
      %127 = arith.negf %126 : vector<8x128xf32>
      %128 = math.exp %127 : vector<8x128xf32>
      %cst_42 = arith.constant 1.000000e+00 : f32
      %129 = vector.broadcast %cst_42 : f32 to vector<8x128xf32>
      %130 = arith.addf %129, %128 : vector<8x128xf32>
      %131 = arith.divf %129, %130 : vector<8x128xf32>
      %132 = vector.extract_strided_slice %119 {offsets = [0, 256], sizes = [8, 128], strides = [1, 1]} : vector<8x512xf32> to vector<8x128xf32>
      %133 = math.tanh %132 : vector<8x128xf32>
      %134 = vector.extract_strided_slice %119 {offsets = [0, 384], sizes = [8, 128], strides = [1, 1]} : vector<8x512xf32> to vector<8x128xf32>
      %135 = arith.negf %134 : vector<8x128xf32>
      %136 = math.exp %135 : vector<8x128xf32>
      %cst_43 = arith.constant 1.000000e+00 : f32
      %137 = vector.broadcast %cst_43 : f32 to vector<8x128xf32>
      %138 = arith.addf %137, %136 : vector<8x128xf32>
      %139 = arith.divf %137, %138 : vector<8x128xf32>
      %140 = arith.mulf %131, %114 : vector<8x128xf32>
      %141 = arith.mulf %125, %133 : vector<8x128xf32>
      %142 = arith.addf %140, %141 : vector<8x128xf32>
      %143 = math.tanh %142 : vector<8x128xf32>
      %144 = arith.mulf %139, %143 : vector<8x128xf32>
      %145 = vector.broadcast %91 : i32 to vector<8x128xi32>
      %146 = arith.cmpi slt, %145, %14 : vector<8x128xi32>
      %147 = arith.select %146, %144, %112 : vector<8x128xi1>, vector<8x128xf32>
      %c0_44 = arith.constant 0 : index
      %c0_45 = arith.constant 0 : index
      %c0_46 = arith.constant 0 : index
      %148 = vector.load %arg7[%c0_44, %c0_45, %c0_46] : memref<1x8x128xf32, #tpu.memory_space<vmem>>, vector<1x8x128xf32>
      %149 = vector.shape_cast %148 : vector<1x8x128xf32> to vector<8x128xf32>
      %150 = vector.shape_cast %147 : vector<8x128xf32> to vector<1x8x128xf32>
      tpu.vector_store %arg7[%c0_44, %c0_45, %c0_46], %150 {strides = array<i32>} : memref<1x8x128xf32, #tpu.memory_space<vmem>>, vector<1x8x128xf32>,
      %151 = arith.select %146, %142, %114 : vector<8x128xi1>, vector<8x128xf32>
      %c0_47 = arith.constant 0 : index
      %c0_48 = arith.constant 0 : index
      %c0_49 = arith.constant 0 : index
      %152 = vector.load %arg8[%c0_47, %c0_48, %c0_49] : memref<1x8x128xf32, #tpu.memory_space<vmem>>, vector<1x8x128xf32>
      %153 = vector.shape_cast %152 : vector<1x8x128xf32> to vector<8x128xf32>
      %154 = vector.shape_cast %151 : vector<8x128xf32> to vector<1x8x128xf32>
      tpu.vector_store %arg8[%c0_47, %c0_48, %c0_49], %154 {strides = array<i32>} : memref<1x8x128xf32, #tpu.memory_space<vmem>>, vector<1x8x128xf32>,
      %cst_50 = arith.constant 0.000000e+00 : f32
      %155 = vector.broadcast %cst_50 : f32 to vector<8x128xf32>
      %156 = arith.select %146, %144, %155 : vector<8x128xi1>, vector<8x128xf32>
      %c0_51 = arith.constant 0 : index
      %c152_52 = arith.constant 152 : index
      %c0_53 = arith.constant 0 : index
      %157 = vector.load %arg6[%c0_51, %c152_52, %c0_53] : memref<1x192x128xf32, #tpu.memory_space<vmem>>, vector<1x8x128xf32>
      %158 = vector.shape_cast %157 : vector<1x8x128xf32> to vector<8x128xf32>
      %159 = vector.shape_cast %156 : vector<8x128xf32> to vector<1x8x128xf32>
      tpu.vector_store %arg6[%c0_51, %c152_52, %c0_53], %159 {strides = array<i32>} : memref<1x192x128xf32, #tpu.memory_space<vmem>>, vector<1x8x128xf32>,
    } else {
    }
    %c20_i32 = arith.constant 20 : i32
    %95 = arith.addi %6, %c20_i32 : i32
    %96 = arith.cmpi slt, %95, %5 : i32
    %97 = arith.extui %96 : i1 to i32
    %c0_i32_27 = arith.constant 0 : i32
    %98 = arith.cmpi ne, %97, %c0_i32_27 : i32
    scf.if %98 {
      %c0_31 = arith.constant 0 : index
      %c0_32 = arith.constant 0 : index
      %c0_33 = arith.constant 0 : index
      %111 = vector.load %arg7[%c0_31, %c0_32, %c0_33] : memref<1x8x128xf32, #tpu.memory_space<vmem>>, vector<1x8x128xf32>
      %112 = vector.shape_cast %111 : vector<1x8x128xf32> to vector<8x128xf32>
      %c0_34 = arith.constant 0 : index
      %c0_35 = arith.constant 0 : index
      %c0_36 = arith.constant 0 : index
      %113 = vector.load %arg8[%c0_34, %c0_35, %c0_36] : memref<1x8x128xf32, #tpu.memory_space<vmem>>, vector<1x8x128xf32>
      %114 = vector.shape_cast %113 : vector<1x8x128xf32> to vector<8x128xf32>
      %c0_37 = arith.constant 0 : index
      %c160 = arith.constant 160 : index
      %c0_38 = arith.constant 0 : index
      %115 = vector.load %arg4[%c0_37, %c160, %c0_38] : memref<1x192x512xf32, #tpu.memory_space<vmem>>, vector<1x8x512xf32>
      %116 = vector.shape_cast %115 : vector<1x8x512xf32> to vector<8x512xf32>
      %c0_39 = arith.constant 0 : index
      %c0_40 = arith.constant 0 : index
      %117 = vector.load %arg5[%c0_39, %c0_40] : memref<128x512xf32, #tpu.memory_space<vmem>>, vector<128x512xf32>
      %cst = arith.constant dense<0.000000e+00> : vector<8x512xf32>
      %118 = tpu.matmul %112, %117, %cst {dimension_numbers = #tpu.dot_dimension_numbers<[1], [0], [0], [1], [0, 0, 1, 1], [], []>} : vector<8x128xf32>, vector<128x512xf32>, vector<8x512xf32> -> vector<8x512xf32>
      %119 = arith.addf %116, %118 : vector<8x512xf32>
      %120 = vector.extract_strided_slice %119 {offsets = [0, 0], sizes = [8, 128], strides = [1, 1]} : vector<8x512xf32> to vector<8x128xf32>
      %121 = arith.negf %120 : vector<8x128xf32>
      %122 = math.exp %121 : vector<8x128xf32>
      %cst_41 = arith.constant 1.000000e+00 : f32
      %123 = vector.broadcast %cst_41 : f32 to vector<8x128xf32>
      %124 = arith.addf %123, %122 : vector<8x128xf32>
      %125 = arith.divf %123, %124 : vector<8x128xf32>
      %126 = vector.extract_strided_slice %119 {offsets = [0, 128], sizes = [8, 128], strides = [1, 1]} : vector<8x512xf32> to vector<8x128xf32>
      %127 = arith.negf %126 : vector<8x128xf32>
      %128 = math.exp %127 : vector<8x128xf32>
      %cst_42 = arith.constant 1.000000e+00 : f32
      %129 = vector.broadcast %cst_42 : f32 to vector<8x128xf32>
      %130 = arith.addf %129, %128 : vector<8x128xf32>
      %131 = arith.divf %129, %130 : vector<8x128xf32>
      %132 = vector.extract_strided_slice %119 {offsets = [0, 256], sizes = [8, 128], strides = [1, 1]} : vector<8x512xf32> to vector<8x128xf32>
      %133 = math.tanh %132 : vector<8x128xf32>
      %134 = vector.extract_strided_slice %119 {offsets = [0, 384], sizes = [8, 128], strides = [1, 1]} : vector<8x512xf32> to vector<8x128xf32>
      %135 = arith.negf %134 : vector<8x128xf32>
      %136 = math.exp %135 : vector<8x128xf32>
      %cst_43 = arith.constant 1.000000e+00 : f32
      %137 = vector.broadcast %cst_43 : f32 to vector<8x128xf32>
      %138 = arith.addf %137, %136 : vector<8x128xf32>
      %139 = arith.divf %137, %138 : vector<8x128xf32>
      %140 = arith.mulf %131, %114 : vector<8x128xf32>
      %141 = arith.mulf %125, %133 : vector<8x128xf32>
      %142 = arith.addf %140, %141 : vector<8x128xf32>
      %143 = math.tanh %142 : vector<8x128xf32>
      %144 = arith.mulf %139, %143 : vector<8x128xf32>
      %145 = vector.broadcast %95 : i32 to vector<8x128xi32>
      %146 = arith.cmpi slt, %145, %14 : vector<8x128xi32>
      %147 = arith.select %146, %144, %112 : vector<8x128xi1>, vector<8x128xf32>
      %c0_44 = arith.constant 0 : index
      %c0_45 = arith.constant 0 : index
      %c0_46 = arith.constant 0 : index
      %148 = vector.load %arg7[%c0_44, %c0_45, %c0_46] : memref<1x8x128xf32, #tpu.memory_space<vmem>>, vector<1x8x128xf32>
      %149 = vector.shape_cast %148 : vector<1x8x128xf32> to vector<8x128xf32>
      %150 = vector.shape_cast %147 : vector<8x128xf32> to vector<1x8x128xf32>
      tpu.vector_store %arg7[%c0_44, %c0_45, %c0_46], %150 {strides = array<i32>} : memref<1x8x128xf32, #tpu.memory_space<vmem>>, vector<1x8x128xf32>,
      %151 = arith.select %146, %142, %114 : vector<8x128xi1>, vector<8x128xf32>
      %c0_47 = arith.constant 0 : index
      %c0_48 = arith.constant 0 : index
      %c0_49 = arith.constant 0 : index
      %152 = vector.load %arg8[%c0_47, %c0_48, %c0_49] : memref<1x8x128xf32, #tpu.memory_space<vmem>>, vector<1x8x128xf32>
      %153 = vector.shape_cast %152 : vector<1x8x128xf32> to vector<8x128xf32>
      %154 = vector.shape_cast %151 : vector<8x128xf32> to vector<1x8x128xf32>
      tpu.vector_store %arg8[%c0_47, %c0_48, %c0_49], %154 {strides = array<i32>} : memref<1x8x128xf32, #tpu.memory_space<vmem>>, vector<1x8x128xf32>,
      %cst_50 = arith.constant 0.000000e+00 : f32
      %155 = vector.broadcast %cst_50 : f32 to vector<8x128xf32>
      %156 = arith.select %146, %144, %155 : vector<8x128xi1>, vector<8x128xf32>
      %c0_51 = arith.constant 0 : index
      %c160_52 = arith.constant 160 : index
      %c0_53 = arith.constant 0 : index
      %157 = vector.load %arg6[%c0_51, %c160_52, %c0_53] : memref<1x192x128xf32, #tpu.memory_space<vmem>>, vector<1x8x128xf32>
      %158 = vector.shape_cast %157 : vector<1x8x128xf32> to vector<8x128xf32>
      %159 = vector.shape_cast %156 : vector<8x128xf32> to vector<1x8x128xf32>
      tpu.vector_store %arg6[%c0_51, %c160_52, %c0_53], %159 {strides = array<i32>} : memref<1x192x128xf32, #tpu.memory_space<vmem>>, vector<1x8x128xf32>,
    } else {
    }
    %c21_i32 = arith.constant 21 : i32
    %99 = arith.addi %6, %c21_i32 : i32
    %100 = arith.cmpi slt, %99, %5 : i32
    %101 = arith.extui %100 : i1 to i32
    %c0_i32_28 = arith.constant 0 : i32
    %102 = arith.cmpi ne, %101, %c0_i32_28 : i32
    scf.if %102 {
      %c0_31 = arith.constant 0 : index
      %c0_32 = arith.constant 0 : index
      %c0_33 = arith.constant 0 : index
      %111 = vector.load %arg7[%c0_31, %c0_32, %c0_33] : memref<1x8x128xf32, #tpu.memory_space<vmem>>, vector<1x8x128xf32>
      %112 = vector.shape_cast %111 : vector<1x8x128xf32> to vector<8x128xf32>
      %c0_34 = arith.constant 0 : index
      %c0_35 = arith.constant 0 : index
      %c0_36 = arith.constant 0 : index
      %113 = vector.load %arg8[%c0_34, %c0_35, %c0_36] : memref<1x8x128xf32, #tpu.memory_space<vmem>>, vector<1x8x128xf32>
      %114 = vector.shape_cast %113 : vector<1x8x128xf32> to vector<8x128xf32>
      %c0_37 = arith.constant 0 : index
      %c168 = arith.constant 168 : index
      %c0_38 = arith.constant 0 : index
      %115 = vector.load %arg4[%c0_37, %c168, %c0_38] : memref<1x192x512xf32, #tpu.memory_space<vmem>>, vector<1x8x512xf32>
      %116 = vector.shape_cast %115 : vector<1x8x512xf32> to vector<8x512xf32>
      %c0_39 = arith.constant 0 : index
      %c0_40 = arith.constant 0 : index
      %117 = vector.load %arg5[%c0_39, %c0_40] : memref<128x512xf32, #tpu.memory_space<vmem>>, vector<128x512xf32>
      %cst = arith.constant dense<0.000000e+00> : vector<8x512xf32>
      %118 = tpu.matmul %112, %117, %cst {dimension_numbers = #tpu.dot_dimension_numbers<[1], [0], [0], [1], [0, 0, 1, 1], [], []>} : vector<8x128xf32>, vector<128x512xf32>, vector<8x512xf32> -> vector<8x512xf32>
      %119 = arith.addf %116, %118 : vector<8x512xf32>
      %120 = vector.extract_strided_slice %119 {offsets = [0, 0], sizes = [8, 128], strides = [1, 1]} : vector<8x512xf32> to vector<8x128xf32>
      %121 = arith.negf %120 : vector<8x128xf32>
      %122 = math.exp %121 : vector<8x128xf32>
      %cst_41 = arith.constant 1.000000e+00 : f32
      %123 = vector.broadcast %cst_41 : f32 to vector<8x128xf32>
      %124 = arith.addf %123, %122 : vector<8x128xf32>
      %125 = arith.divf %123, %124 : vector<8x128xf32>
      %126 = vector.extract_strided_slice %119 {offsets = [0, 128], sizes = [8, 128], strides = [1, 1]} : vector<8x512xf32> to vector<8x128xf32>
      %127 = arith.negf %126 : vector<8x128xf32>
      %128 = math.exp %127 : vector<8x128xf32>
      %cst_42 = arith.constant 1.000000e+00 : f32
      %129 = vector.broadcast %cst_42 : f32 to vector<8x128xf32>
      %130 = arith.addf %129, %128 : vector<8x128xf32>
      %131 = arith.divf %129, %130 : vector<8x128xf32>
      %132 = vector.extract_strided_slice %119 {offsets = [0, 256], sizes = [8, 128], strides = [1, 1]} : vector<8x512xf32> to vector<8x128xf32>
      %133 = math.tanh %132 : vector<8x128xf32>
      %134 = vector.extract_strided_slice %119 {offsets = [0, 384], sizes = [8, 128], strides = [1, 1]} : vector<8x512xf32> to vector<8x128xf32>
      %135 = arith.negf %134 : vector<8x128xf32>
      %136 = math.exp %135 : vector<8x128xf32>
      %cst_43 = arith.constant 1.000000e+00 : f32
      %137 = vector.broadcast %cst_43 : f32 to vector<8x128xf32>
      %138 = arith.addf %137, %136 : vector<8x128xf32>
      %139 = arith.divf %137, %138 : vector<8x128xf32>
      %140 = arith.mulf %131, %114 : vector<8x128xf32>
      %141 = arith.mulf %125, %133 : vector<8x128xf32>
      %142 = arith.addf %140, %141 : vector<8x128xf32>
      %143 = math.tanh %142 : vector<8x128xf32>
      %144 = arith.mulf %139, %143 : vector<8x128xf32>
      %145 = vector.broadcast %99 : i32 to vector<8x128xi32>
      %146 = arith.cmpi slt, %145, %14 : vector<8x128xi32>
      %147 = arith.select %146, %144, %112 : vector<8x128xi1>, vector<8x128xf32>
      %c0_44 = arith.constant 0 : index
      %c0_45 = arith.constant 0 : index
      %c0_46 = arith.constant 0 : index
      %148 = vector.load %arg7[%c0_44, %c0_45, %c0_46] : memref<1x8x128xf32, #tpu.memory_space<vmem>>, vector<1x8x128xf32>
      %149 = vector.shape_cast %148 : vector<1x8x128xf32> to vector<8x128xf32>
      %150 = vector.shape_cast %147 : vector<8x128xf32> to vector<1x8x128xf32>
      tpu.vector_store %arg7[%c0_44, %c0_45, %c0_46], %150 {strides = array<i32>} : memref<1x8x128xf32, #tpu.memory_space<vmem>>, vector<1x8x128xf32>,
      %151 = arith.select %146, %142, %114 : vector<8x128xi1>, vector<8x128xf32>
      %c0_47 = arith.constant 0 : index
      %c0_48 = arith.constant 0 : index
      %c0_49 = arith.constant 0 : index
      %152 = vector.load %arg8[%c0_47, %c0_48, %c0_49] : memref<1x8x128xf32, #tpu.memory_space<vmem>>, vector<1x8x128xf32>
      %153 = vector.shape_cast %152 : vector<1x8x128xf32> to vector<8x128xf32>
      %154 = vector.shape_cast %151 : vector<8x128xf32> to vector<1x8x128xf32>
      tpu.vector_store %arg8[%c0_47, %c0_48, %c0_49], %154 {strides = array<i32>} : memref<1x8x128xf32, #tpu.memory_space<vmem>>, vector<1x8x128xf32>,
      %cst_50 = arith.constant 0.000000e+00 : f32
      %155 = vector.broadcast %cst_50 : f32 to vector<8x128xf32>
      %156 = arith.select %146, %144, %155 : vector<8x128xi1>, vector<8x128xf32>
      %c0_51 = arith.constant 0 : index
      %c168_52 = arith.constant 168 : index
      %c0_53 = arith.constant 0 : index
      %157 = vector.load %arg6[%c0_51, %c168_52, %c0_53] : memref<1x192x128xf32, #tpu.memory_space<vmem>>, vector<1x8x128xf32>
      %158 = vector.shape_cast %157 : vector<1x8x128xf32> to vector<8x128xf32>
      %159 = vector.shape_cast %156 : vector<8x128xf32> to vector<1x8x128xf32>
      tpu.vector_store %arg6[%c0_51, %c168_52, %c0_53], %159 {strides = array<i32>} : memref<1x192x128xf32, #tpu.memory_space<vmem>>, vector<1x8x128xf32>,
    } else {
    }
    %c22_i32 = arith.constant 22 : i32
    %103 = arith.addi %6, %c22_i32 : i32
    %104 = arith.cmpi slt, %103, %5 : i32
    %105 = arith.extui %104 : i1 to i32
    %c0_i32_29 = arith.constant 0 : i32
    %106 = arith.cmpi ne, %105, %c0_i32_29 : i32
    scf.if %106 {
      %c0_31 = arith.constant 0 : index
      %c0_32 = arith.constant 0 : index
      %c0_33 = arith.constant 0 : index
      %111 = vector.load %arg7[%c0_31, %c0_32, %c0_33] : memref<1x8x128xf32, #tpu.memory_space<vmem>>, vector<1x8x128xf32>
      %112 = vector.shape_cast %111 : vector<1x8x128xf32> to vector<8x128xf32>
      %c0_34 = arith.constant 0 : index
      %c0_35 = arith.constant 0 : index
      %c0_36 = arith.constant 0 : index
      %113 = vector.load %arg8[%c0_34, %c0_35, %c0_36] : memref<1x8x128xf32, #tpu.memory_space<vmem>>, vector<1x8x128xf32>
      %114 = vector.shape_cast %113 : vector<1x8x128xf32> to vector<8x128xf32>
      %c0_37 = arith.constant 0 : index
      %c176 = arith.constant 176 : index
      %c0_38 = arith.constant 0 : index
      %115 = vector.load %arg4[%c0_37, %c176, %c0_38] : memref<1x192x512xf32, #tpu.memory_space<vmem>>, vector<1x8x512xf32>
      %116 = vector.shape_cast %115 : vector<1x8x512xf32> to vector<8x512xf32>
      %c0_39 = arith.constant 0 : index
      %c0_40 = arith.constant 0 : index
      %117 = vector.load %arg5[%c0_39, %c0_40] : memref<128x512xf32, #tpu.memory_space<vmem>>, vector<128x512xf32>
      %cst = arith.constant dense<0.000000e+00> : vector<8x512xf32>
      %118 = tpu.matmul %112, %117, %cst {dimension_numbers = #tpu.dot_dimension_numbers<[1], [0], [0], [1], [0, 0, 1, 1], [], []>} : vector<8x128xf32>, vector<128x512xf32>, vector<8x512xf32> -> vector<8x512xf32>
      %119 = arith.addf %116, %118 : vector<8x512xf32>
      %120 = vector.extract_strided_slice %119 {offsets = [0, 0], sizes = [8, 128], strides = [1, 1]} : vector<8x512xf32> to vector<8x128xf32>
      %121 = arith.negf %120 : vector<8x128xf32>
      %122 = math.exp %121 : vector<8x128xf32>
      %cst_41 = arith.constant 1.000000e+00 : f32
      %123 = vector.broadcast %cst_41 : f32 to vector<8x128xf32>
      %124 = arith.addf %123, %122 : vector<8x128xf32>
      %125 = arith.divf %123, %124 : vector<8x128xf32>
      %126 = vector.extract_strided_slice %119 {offsets = [0, 128], sizes = [8, 128], strides = [1, 1]} : vector<8x512xf32> to vector<8x128xf32>
      %127 = arith.negf %126 : vector<8x128xf32>
      %128 = math.exp %127 : vector<8x128xf32>
      %cst_42 = arith.constant 1.000000e+00 : f32
      %129 = vector.broadcast %cst_42 : f32 to vector<8x128xf32>
      %130 = arith.addf %129, %128 : vector<8x128xf32>
      %131 = arith.divf %129, %130 : vector<8x128xf32>
      %132 = vector.extract_strided_slice %119 {offsets = [0, 256], sizes = [8, 128], strides = [1, 1]} : vector<8x512xf32> to vector<8x128xf32>
      %133 = math.tanh %132 : vector<8x128xf32>
      %134 = vector.extract_strided_slice %119 {offsets = [0, 384], sizes = [8, 128], strides = [1, 1]} : vector<8x512xf32> to vector<8x128xf32>
      %135 = arith.negf %134 : vector<8x128xf32>
      %136 = math.exp %135 : vector<8x128xf32>
      %cst_43 = arith.constant 1.000000e+00 : f32
      %137 = vector.broadcast %cst_43 : f32 to vector<8x128xf32>
      %138 = arith.addf %137, %136 : vector<8x128xf32>
      %139 = arith.divf %137, %138 : vector<8x128xf32>
      %140 = arith.mulf %131, %114 : vector<8x128xf32>
      %141 = arith.mulf %125, %133 : vector<8x128xf32>
      %142 = arith.addf %140, %141 : vector<8x128xf32>
      %143 = math.tanh %142 : vector<8x128xf32>
      %144 = arith.mulf %139, %143 : vector<8x128xf32>
      %145 = vector.broadcast %103 : i32 to vector<8x128xi32>
      %146 = arith.cmpi slt, %145, %14 : vector<8x128xi32>
      %147 = arith.select %146, %144, %112 : vector<8x128xi1>, vector<8x128xf32>
      %c0_44 = arith.constant 0 : index
      %c0_45 = arith.constant 0 : index
      %c0_46 = arith.constant 0 : index
      %148 = vector.load %arg7[%c0_44, %c0_45, %c0_46] : memref<1x8x128xf32, #tpu.memory_space<vmem>>, vector<1x8x128xf32>
      %149 = vector.shape_cast %148 : vector<1x8x128xf32> to vector<8x128xf32>
      %150 = vector.shape_cast %147 : vector<8x128xf32> to vector<1x8x128xf32>
      tpu.vector_store %arg7[%c0_44, %c0_45, %c0_46], %150 {strides = array<i32>} : memref<1x8x128xf32, #tpu.memory_space<vmem>>, vector<1x8x128xf32>,
      %151 = arith.select %146, %142, %114 : vector<8x128xi1>, vector<8x128xf32>
      %c0_47 = arith.constant 0 : index
      %c0_48 = arith.constant 0 : index
      %c0_49 = arith.constant 0 : index
      %152 = vector.load %arg8[%c0_47, %c0_48, %c0_49] : memref<1x8x128xf32, #tpu.memory_space<vmem>>, vector<1x8x128xf32>
      %153 = vector.shape_cast %152 : vector<1x8x128xf32> to vector<8x128xf32>
      %154 = vector.shape_cast %151 : vector<8x128xf32> to vector<1x8x128xf32>
      tpu.vector_store %arg8[%c0_47, %c0_48, %c0_49], %154 {strides = array<i32>} : memref<1x8x128xf32, #tpu.memory_space<vmem>>, vector<1x8x128xf32>,
      %cst_50 = arith.constant 0.000000e+00 : f32
      %155 = vector.broadcast %cst_50 : f32 to vector<8x128xf32>
      %156 = arith.select %146, %144, %155 : vector<8x128xi1>, vector<8x128xf32>
      %c0_51 = arith.constant 0 : index
      %c176_52 = arith.constant 176 : index
      %c0_53 = arith.constant 0 : index
      %157 = vector.load %arg6[%c0_51, %c176_52, %c0_53] : memref<1x192x128xf32, #tpu.memory_space<vmem>>, vector<1x8x128xf32>
      %158 = vector.shape_cast %157 : vector<1x8x128xf32> to vector<8x128xf32>
      %159 = vector.shape_cast %156 : vector<8x128xf32> to vector<1x8x128xf32>
      tpu.vector_store %arg6[%c0_51, %c176_52, %c0_53], %159 {strides = array<i32>} : memref<1x192x128xf32, #tpu.memory_space<vmem>>, vector<1x8x128xf32>,
    } else {
    }
    %c23_i32 = arith.constant 23 : i32
    %107 = arith.addi %6, %c23_i32 : i32
    %108 = arith.cmpi slt, %107, %5 : i32
    %109 = arith.extui %108 : i1 to i32
    %c0_i32_30 = arith.constant 0 : i32
    %110 = arith.cmpi ne, %109, %c0_i32_30 : i32
    scf.if %110 {
      %c0_31 = arith.constant 0 : index
      %c0_32 = arith.constant 0 : index
      %c0_33 = arith.constant 0 : index
      %111 = vector.load %arg7[%c0_31, %c0_32, %c0_33] : memref<1x8x128xf32, #tpu.memory_space<vmem>>, vector<1x8x128xf32>
      %112 = vector.shape_cast %111 : vector<1x8x128xf32> to vector<8x128xf32>
      %c0_34 = arith.constant 0 : index
      %c0_35 = arith.constant 0 : index
      %c0_36 = arith.constant 0 : index
      %113 = vector.load %arg8[%c0_34, %c0_35, %c0_36] : memref<1x8x128xf32, #tpu.memory_space<vmem>>, vector<1x8x128xf32>
      %114 = vector.shape_cast %113 : vector<1x8x128xf32> to vector<8x128xf32>
      %c0_37 = arith.constant 0 : index
      %c184 = arith.constant 184 : index
      %c0_38 = arith.constant 0 : index
      %115 = vector.load %arg4[%c0_37, %c184, %c0_38] : memref<1x192x512xf32, #tpu.memory_space<vmem>>, vector<1x8x512xf32>
      %116 = vector.shape_cast %115 : vector<1x8x512xf32> to vector<8x512xf32>
      %c0_39 = arith.constant 0 : index
      %c0_40 = arith.constant 0 : index
      %117 = vector.load %arg5[%c0_39, %c0_40] : memref<128x512xf32, #tpu.memory_space<vmem>>, vector<128x512xf32>
      %cst = arith.constant dense<0.000000e+00> : vector<8x512xf32>
      %118 = tpu.matmul %112, %117, %cst {dimension_numbers = #tpu.dot_dimension_numbers<[1], [0], [0], [1], [0, 0, 1, 1], [], []>} : vector<8x128xf32>, vector<128x512xf32>, vector<8x512xf32> -> vector<8x512xf32>
      %119 = arith.addf %116, %118 : vector<8x512xf32>
      %120 = vector.extract_strided_slice %119 {offsets = [0, 0], sizes = [8, 128], strides = [1, 1]} : vector<8x512xf32> to vector<8x128xf32>
      %121 = arith.negf %120 : vector<8x128xf32>
      %122 = math.exp %121 : vector<8x128xf32>
      %cst_41 = arith.constant 1.000000e+00 : f32
      %123 = vector.broadcast %cst_41 : f32 to vector<8x128xf32>
      %124 = arith.addf %123, %122 : vector<8x128xf32>
      %125 = arith.divf %123, %124 : vector<8x128xf32>
      %126 = vector.extract_strided_slice %119 {offsets = [0, 128], sizes = [8, 128], strides = [1, 1]} : vector<8x512xf32> to vector<8x128xf32>
      %127 = arith.negf %126 : vector<8x128xf32>
      %128 = math.exp %127 : vector<8x128xf32>
      %cst_42 = arith.constant 1.000000e+00 : f32
      %129 = vector.broadcast %cst_42 : f32 to vector<8x128xf32>
      %130 = arith.addf %129, %128 : vector<8x128xf32>
      %131 = arith.divf %129, %130 : vector<8x128xf32>
      %132 = vector.extract_strided_slice %119 {offsets = [0, 256], sizes = [8, 128], strides = [1, 1]} : vector<8x512xf32> to vector<8x128xf32>
      %133 = math.tanh %132 : vector<8x128xf32>
      %134 = vector.extract_strided_slice %119 {offsets = [0, 384], sizes = [8, 128], strides = [1, 1]} : vector<8x512xf32> to vector<8x128xf32>
      %135 = arith.negf %134 : vector<8x128xf32>
      %136 = math.exp %135 : vector<8x128xf32>
      %cst_43 = arith.constant 1.000000e+00 : f32
      %137 = vector.broadcast %cst_43 : f32 to vector<8x128xf32>
      %138 = arith.addf %137, %136 : vector<8x128xf32>
      %139 = arith.divf %137, %138 : vector<8x128xf32>
      %140 = arith.mulf %131, %114 : vector<8x128xf32>
      %141 = arith.mulf %125, %133 : vector<8x128xf32>
      %142 = arith.addf %140, %141 : vector<8x128xf32>
      %143 = math.tanh %142 : vector<8x128xf32>
      %144 = arith.mulf %139, %143 : vector<8x128xf32>
      %145 = vector.broadcast %107 : i32 to vector<8x128xi32>
      %146 = arith.cmpi slt, %145, %14 : vector<8x128xi32>
      %147 = arith.select %146, %144, %112 : vector<8x128xi1>, vector<8x128xf32>
      %c0_44 = arith.constant 0 : index
      %c0_45 = arith.constant 0 : index
      %c0_46 = arith.constant 0 : index
      %148 = vector.load %arg7[%c0_44, %c0_45, %c0_46] : memref<1x8x128xf32, #tpu.memory_space<vmem>>, vector<1x8x128xf32>
      %149 = vector.shape_cast %148 : vector<1x8x128xf32> to vector<8x128xf32>
      %150 = vector.shape_cast %147 : vector<8x128xf32> to vector<1x8x128xf32>
      tpu.vector_store %arg7[%c0_44, %c0_45, %c0_46], %150 {strides = array<i32>} : memref<1x8x128xf32, #tpu.memory_space<vmem>>, vector<1x8x128xf32>,
      %151 = arith.select %146, %142, %114 : vector<8x128xi1>, vector<8x128xf32>
      %c0_47 = arith.constant 0 : index
      %c0_48 = arith.constant 0 : index
      %c0_49 = arith.constant 0 : index
      %152 = vector.load %arg8[%c0_47, %c0_48, %c0_49] : memref<1x8x128xf32, #tpu.memory_space<vmem>>, vector<1x8x128xf32>
      %153 = vector.shape_cast %152 : vector<1x8x128xf32> to vector<8x128xf32>
      %154 = vector.shape_cast %151 : vector<8x128xf32> to vector<1x8x128xf32>
      tpu.vector_store %arg8[%c0_47, %c0_48, %c0_49], %154 {strides = array<i32>} : memref<1x8x128xf32, #tpu.memory_space<vmem>>, vector<1x8x128xf32>,
      %cst_50 = arith.constant 0.000000e+00 : f32
      %155 = vector.broadcast %cst_50 : f32 to vector<8x128xf32>
      %156 = arith.select %146, %144, %155 : vector<8x128xi1>, vector<8x128xf32>
      %c0_51 = arith.constant 0 : index
      %c184_52 = arith.constant 184 : index
      %c0_53 = arith.constant 0 : index
      %157 = vector.load %arg6[%c0_51, %c184_52, %c0_53] : memref<1x192x128xf32, #tpu.memory_space<vmem>>, vector<1x8x128xf32>
      %158 = vector.shape_cast %157 : vector<1x8x128xf32> to vector<8x128xf32>
      %159 = vector.shape_cast %156 : vector<8x128xf32> to vector<1x8x128xf32>
      tpu.vector_store %arg6[%c0_51, %c184_52, %c0_53], %159 {strides = array<i32>} : memref<1x192x128xf32, #tpu.memory_space<vmem>>, vector<1x8x128xf32>,
    } else {
    }
    return
  }
  func.func @transform_0(%arg0: i32, %arg1: i32, %arg2: memref<8xi32, #tpu.memory_space<smem>>) -> (i32, i32, i32) {
    %c0_i32 = arith.constant 0 : i32
    %c0_i32_0 = arith.constant 0 : i32
    %c0_i32_1 = arith.constant 0 : i32
    return %arg0, %c0_i32, %c0_i32_0 : i32, i32, i32
  }
  func.func @transform_1(%arg0: i32, %arg1: i32, %arg2: memref<8xi32, #tpu.memory_space<smem>>) -> (i32, i32, i32) {
    %c0_i32 = arith.constant 0 : i32
    %c0_i32_0 = arith.constant 0 : i32
    return %arg0, %arg1, %c0_i32 : i32, i32, i32
  }
  func.func @transform_2(%arg0: i32, %arg1: i32, %arg2: memref<8xi32, #tpu.memory_space<smem>>) -> (i32, i32) {
    %c0_i32 = arith.constant 0 : i32
    %c0_i32_0 = arith.constant 0 : i32
    %c0_i32_1 = arith.constant 0 : i32
    return %c0_i32, %c0_i32_0 : i32, i32
  }
  func.func @transform_3(%arg0: i32, %arg1: i32, %arg2: memref<8xi32, #tpu.memory_space<smem>>) -> (i32, i32, i32) {
    %c0_i32 = arith.constant 0 : i32
    %c0_i32_0 = arith.constant 0 : i32
    return %arg0, %arg1, %c0_i32 : i32, i32, i32
  }
  func.func @transform_4(%arg0: i32, %arg1: i32, %arg2: memref<8xi32, #tpu.memory_space<smem>>) -> (i32, i32, i32) {
    %c0_i32 = arith.constant 0 : i32
    %c0_i32_0 = arith.constant 0 : i32
    %c0_i32_1 = arith.constant 0 : i32
    return %arg0, %c0_i32, %c0_i32_0 : i32, i32, i32
  }
  func.func @transform_5(%arg0: i32, %arg1: i32, %arg2: memref<8xi32, #tpu.memory_space<smem>>) -> (i32, i32, i32) {
    %c0_i32 = arith.constant 0 : i32
    %c0_i32_0 = arith.constant 0 : i32
    %c0_i32_1 = arith.constant 0 : i32
    return %arg0, %c0_i32, %c0_i32_0 : i32, i32, i32
  }
}

</mosaic_0001>

<bundles_post_ra>
// kernel: _encoder_forward.1
= control target key start
LH: loop header
LB: loop body
LE: loop exit
PB: predicated region body
PF: predicated region fallthrough
CT: control target
= control target key end

     0   :  { %s13714_s0 = inlined_call_operand.vmem [shape: s32[8], index: 0, kind: input, shape index: {}]   ;;  %s13715_s1 = inlined_call_operand.vmem [shape: s32[1,8,1], index: 1, kind: input, shape index: {}]   ;;  %s13716_s2 = inlined_call_operand.vmem [shape: f32[1,192,512], index: 2, kind: input, shape index: {}]   ;;  %s13717_s3 = inlined_call_operand.vmem [shape: f32[128,512], index: 3, kind: input, shape index: {}]   ;;  %s13718_s4 = inlined_call_operand.vmem [shape: f32[1,192,128], index: 4, kind: output, shape index: {0}]   ;;  %s13719_s5 = inlined_call_operand.vmem [shape: f32[1,8,128], index: 5, kind: output, shape index: {1}]   ;;  %s13720_s6 = inlined_call_operand.vmem [shape: f32[1,8,128], index: 6, kind: output, shape index: {2}]  }
   0x1   :  { %s12_s23 = sshll.u32 %s13714_s0, 4  ;;  %s13_s23 = int_to_ptr.vmem [resolvable:$true] %s12_s23 }
   0x2   :  { %s8244_s24 = scalar_lea.vmem %s13_s23, 16  ;;  %p8249_p1 = scmp.lt.s32.totalorder %s13_s23, %s13_s23 }
   0x3   :  { %p8245_p0 = scmp.ne.s32.totalorder %s13_s23, %s8244_s24  ;;  %p8250_p2 = scmp.lt.s32.totalorder %s8244_s24, %s8244_s24 }
   0x5   :  { %p8251_p3 = por %p8250_p2, %p8249_p1 }
   0x7   :  { %p8252_p4 = pnand %p8251_p3, %p8245_p0 }
   0x9   :  { %8255 = shalt.err (!%p8252_p4)  }
   0xa   :  { %s8258_s25 = smov [#allocation3]  }
   0xb   :  { %15 = dma.vmem_to_smem %s13_s23, 16, %s8258_s25, [#allocation2] }
   0xc   :  { %8256 = dma.done.wait [#allocation2], 16 }
   0xd   :  { %8257 = vsyncadd [#allocation2], 4294967280 }
   0xe   :  { %17 = sfence }
   0xf   :  { %s8324_s26 = sld [smem:[#allocation3]]  ;;  %v8259_v0 = vmov 0.0  }
  0x10   :  { %28 = vst [vmem:[%s13719_s5] sm:$0xff] %v8259_v0  ;;  %29 = vst [vmem:[%s13720_s6] sm:$0xff] %v8259_v0 }
  0x15   :  { %p6150_p5 = scmp.ge.s32.totalorder %s8324_s26, 24 }
  0x16   :  { %v8260_v1 = vmov (!%p6150_p5), 0.0  }
  0x17   :  { %37 = sbr.rel (%p6150_p5) target bundleno = 35 (0x23), region = 21  ;;  %38 = vst [vmem:[%s13718_s4] sm:$0xff] (!%p6150_p5), %v8260_v1  ;;  %39 = vst [vmem:[%s13718_s4 + $0x8] sm:$0xff] (!%p6150_p5), %v8260_v1 }
  0x18   :  { %40 = vst [vmem:[%s13718_s4 + $0x10] sm:$0xff] (!%p6150_p5), %v8260_v1  ;;  %41 = vst [vmem:[%s13718_s4 + $0x18] sm:$0xff] (!%p6150_p5), %v8260_v1 }
  0x19   :  { %42 = vst [vmem:[%s13718_s4 + $0x20] sm:$0xff] (!%p6150_p5), %v8260_v1  ;;  %43 = vst [vmem:[%s13718_s4 + $0x28] sm:$0xff] (!%p6150_p5), %v8260_v1 }
  0x1a   :  { %44 = vst [vmem:[%s13718_s4 + $0x30] sm:$0xff] (!%p6150_p5), %v8260_v1  ;;  %45 = vst [vmem:[%s13718_s4 + $0x38] sm:$0xff] (!%p6150_p5), %v8260_v1 }
  0x1b   :  { %46 = vst [vmem:[%s13718_s4 + $0x40] sm:$0xff] (!%p6150_p5), %v8260_v1  ;;  %47 = vst [vmem:[%s13718_s4 + $0x48] sm:$0xff] (!%p6150_p5), %v8260_v1 }
  0x1c   :  { %48 = vst [vmem:[%s13718_s4 + $0x50] sm:$0xff] (!%p6150_p5), %v8260_v1  ;;  %49 = vst [vmem:[%s13718_s4 + $0x58] sm:$0xff] (!%p6150_p5), %v8260_v1 }
  0x1d   :  { %50 = vst [vmem:[%s13718_s4 + $0x60] sm:$0xff] (!%p6150_p5), %v8260_v1  ;;  %51 = vst [vmem:[%s13718_s4 + $0x68] sm:$0xff] (!%p6150_p5), %v8260_v1 }
  0x1e   :  { %52 = vst [vmem:[%s13718_s4 + $0x70] sm:$0xff] %v8260_v1  ;;  %53 = vst [vmem:[%s13718_s4 + $0x78] sm:$0xff] %v8260_v1 }
  0x1f   :  { %54 = vst [vmem:[%s13718_s4 + $0x80] sm:$0xff] %v8260_v1  ;;  %55 = vst [vmem:[%s13718_s4 + $0x88] sm:$0xff] %v8260_v1 }
  0x20   :  { %56 = vst [vmem:[%s13718_s4 + $0x90] sm:$0xff] %v8260_v1  ;;  %57 = vst [vmem:[%s13718_s4 + $0x98] sm:$0xff] %v8260_v1 }
  0x21   :  { %58 = vst [vmem:[%s13718_s4 + $0xa0] sm:$0xff] %v8260_v1  ;;  %59 = vst [vmem:[%s13718_s4 + $0xa8] sm:$0xff] %v8260_v1 }
  0x22   :  { %60 = vst [vmem:[%s13718_s4 + $0xb0] sm:$0xff] %v8260_v1  ;;  %61 = vst [vmem:[%s13718_s4 + $0xb8] sm:$0xff] %v8260_v1 }
  0x23 PF:  { %v62_v2 = vld [vmem:[%s13715_s1] sm:$0xff]  ;;  %v8261_v3 = vmov 0   ;;  %p6152_p6 = scmp.le.s32.totalorder %s8324_s26, 0 }
  0x24   :  { %7859 = vset.pattern.permute.xlu0 %v8261_v3  ;;  %v77_v5 = vld [vmem:[%s13717_s3 + $0x8] sm:$0xff] (!%p6152_p6)  ;;  %v76_v7 = vld [vmem:[%s13717_s3] sm:$0xff] (!%p6152_p6)  ;;  %v8262_v12 = vmov (!%p6152_p6), 0.0   ;;  %v79_v24 = vld [vmem:[%s13717_s3 + $0x18] sm:$0xff] (!%p6152_p6) }
  0x25   :  { %64 = vperm.xlu0 %7859, %v62_v2   ;;  %v81_v6 = vld [vmem:[%s13717_s3 + $0x28] sm:$0xff] (!%p6152_p6)  ;;  %v80_v9 = vld [vmem:[%s13717_s3 + $0x20] sm:$0xff] (!%p6152_p6)  ;;  %204 = vmatprep.mubr.f32.mxu0 (!%p6152_p6), %v8262_v12  ;;  %v83_v25 = vld [vmem:[%s13717_s3 + $0x38] sm:$0xff] (!%p6152_p6) }
  0x26   :  { %v6295_v8 = vpack.c.bf16 (!%p6152_p6), %v81_v6, %v77_v5  ;;  %v85_v10 = vld [vmem:[%s13717_s3 + $0x48] sm:$0xff] (!%p6152_p6)  ;;  %275 = vmatprep.mubr.f32.mxu1 (!%p6152_p6), %v8262_v12  ;;  %v6297_v13 = vpack.c.bf16 (!%p6152_p6), %v80_v9, %v76_v7  ;;  %v84_v15 = vld [vmem:[%s13717_s3 + $0x40] sm:$0xff] (!%p6152_p6)  ;;  %v6327_v27 = vpack.c.bf16 (!%p6152_p6), %v83_v25, %v79_v24  ;;  %v78_v28 = vld [vmem:[%s13717_s3 + $0x10] sm:$0xff] (!%p6152_p6) }
  0x27   :  { %v89_v11 = vld [vmem:[%s13717_s3 + $0x68] sm:$0xff] (!%p6152_p6)  ;;  %v88_v16 = vld [vmem:[%s13717_s3 + $0x60] sm:$0xff] (!%p6152_p6)  ;;  %v82_v29 = vld [vmem:[%s13717_s3 + $0x30] sm:$0xff] (!%p6152_p6) }
  0x28   :  { %v6299_v14 = vpack.c.bf16 (!%p6152_p6), %v89_v11, %v85_v10  ;;  %v93_v17 = vld [vmem:[%s13717_s3 + $0x88] sm:$0xff] (!%p6152_p6)  ;;  %6296 = vmatprep.subr.bf16.mxu0 (!%p6152_p6), %v6295_v8  ;;  %v6301_v19 = vpack.c.bf16 (!%p6152_p6), %v88_v16, %v84_v15  ;;  %v92_v20 = vld [vmem:[%s13717_s3 + $0x80] sm:$0xff] (!%p6152_p6)  ;;  %v6329_v30 = vpack.c.bf16 (!%p6152_p6), %v82_v29, %v78_v28  ;;  %6328 = vmatprep.subr.bf16.mxu1 (!%p6152_p6), %v6327_v27  ;;  %v87_v32 = vld [vmem:[%s13717_s3 + $0x58] sm:$0xff] (!%p6152_p6) }
  0x29   :  { %v97_v18 = vld [vmem:[%s13717_s3 + $0xa8] sm:$0xff] (!%p6152_p6)  ;;  %6298 = vmatpush1.bf16.msra.mxu0 (!%p6152_p6), %v6297_v13  ;;  %v96_v21 = vld [vmem:[%s13717_s3 + $0xa0] sm:$0xff] (!%p6152_p6)  ;;  %v91_v33 = vld [vmem:[%s13717_s3 + $0x78] sm:$0xff] (!%p6152_p6) }
  0x2a   :  { %6300 = vmatprep.subr.bf16.mxu0 (!%p6152_p6), %v6299_v14  ;;  %v6303_v22 = vpack.c.bf16 (!%p6152_p6), %v97_v18, %v93_v17  ;;  %v101_v23 = vld [vmem:[%s13717_s3 + $0xc8] sm:$0xff] (!%p6152_p6)  ;;  %v6305_v31 = vpack.c.bf16 (!%p6152_p6), %v96_v21, %v92_v20  ;;  %v86_v34 = vld [vmem:[%s13717_s3 + $0x50] sm:$0xff] (!%p6152_p6)  ;;  %v100_v36 = vld [vmem:[%s13717_s3 + $0xc0] sm:$0xff] (!%p6152_p6)  ;;  %6330 = vmatpush1.bf16.msra.mxu1 (!%p6152_p6), %v6329_v30  ;;  %v6331_v38 = vpack.c.bf16 (!%p6152_p6), %v91_v33, %v87_v32 }
  0x2b   :  { %v105_v26 = vld [vmem:[%s13717_s3 + $0xe8] sm:$0xff] (!%p6152_p6)  ;;  %v104_v37 = vld [vmem:[%s13717_s3 + $0xe0] sm:$0xff] (!%p6152_p6)  ;;  %v90_v39 = vld [vmem:[%s13717_s3 + $0x70] sm:$0xff] (!%p6152_p6) }
  0x2c   :  { %v6307_v35 = vpack.c.bf16 (!%p6152_p6), %v105_v26, %v101_v23  ;;  %v109_v40 = vld [vmem:[%s13717_s3 + $0x108] sm:$0xff] (!%p6152_p6)  ;;  %v6333_v42 = vpack.c.bf16 (!%p6152_p6), %v90_v39, %v86_v34  ;;  %v95_v43 = vld [vmem:[%s13717_s3 + $0x98] sm:$0xff] (!%p6152_p6)  ;;  %6332 = vmatprep.subr.bf16.mxu1 (!%p6152_p6), %v6331_v38  ;;  %v94_v45 = vld [vmem:[%s13717_s3 + $0x90] sm:$0xff] (!%p6152_p6)  ;;  %v6309_v47 = vpack.c.bf16 (!%p6152_p6), %v104_v37, %v100_v36 }
  0x2d   :  { %6302 = vmatpush1.bf16.msra.mxu0 (!%p6152_p6), %v6301_v19  ;;  %v113_v41 = vld [vmem:[%s13717_s3 + $0x128] sm:$0xff] (!%p6152_p6)  ;;  %v99_v44 = vld [vmem:[%s13717_s3 + $0xb8] sm:$0xff] (!%p6152_p6)  ;;  %v98_v46 = vld [vmem:[%s13717_s3 + $0xb0] sm:$0xff] (!%p6152_p6) }
  0x2e   :  { %6304 = vmatprep.subr.bf16.mxu0 (!%p6152_p6), %v6303_v22  ;;  %v108_v48 = vld [vmem:[%s13717_s3 + $0x100] sm:$0xff] (!%p6152_p6)  ;;  %v6335_v50 = vpack.c.bf16 (!%p6152_p6), %v99_v44, %v95_v43  ;;  %v6311_v51 = vpack.c.bf16 (!%p6152_p6), %v113_v41, %v109_v40  ;;  %6334 = vmatpush1.bf16.msra.mxu1 (!%p6152_p6), %v6333_v42  ;;  %v117_v52 = vld [vmem:[%s13717_s3 + $0x148] sm:$0xff] (!%p6152_p6)  ;;  %v6337_v53 = vpack.c.bf16 (!%p6152_p6), %v98_v46, %v94_v45  ;;  %v103_v54 = vld [vmem:[%s13717_s3 + $0xd8] sm:$0xff] (!%p6152_p6) }
  0x2f   :  { %v112_v49 = vld [vmem:[%s13717_s3 + $0x120] sm:$0xff] (!%p6152_p6)  ;;  %v107_v55 = vld [vmem:[%s13717_s3 + $0xf8] sm:$0xff] (!%p6152_p6)  ;;  %v121_v56 = vld [vmem:[%s13717_s3 + $0x168] sm:$0xff] (!%p6152_p6) }
  0x30   :  { %6336 = vmatprep.subr.bf16.mxu1 (!%p6152_p6), %v6335_v50  ;;  %v6339_v57 = vpack.c.bf16 (!%p6152_p6), %v107_v55, %v103_v54  ;;  %v102_v58 = vld [vmem:[%s13717_s3 + $0xd0] sm:$0xff] (!%p6152_p6)  ;;  %v6313_v60 = vpack.c.bf16 (!%p6152_p6), %v112_v49, %v108_v48  ;;  %v111_v61 = vld [vmem:[%s13717_s3 + $0x118] sm:$0xff] (!%p6152_p6)  ;;  %v6315_v63 = vpack.c.bf16 (!%p6152_p6), %v121_v56, %v117_v52  ;;  %v116_v0 = vld [vmem:[%s13717_s3 + $0x140] sm:$0xff] (!%p6152_p6) }
  0x31   :  { %6306 = vmatpush1.bf16.msra.mxu0 (!%p6152_p6), %v6305_v31  ;;  %v106_v59 = vld [vmem:[%s13717_s3 + $0xf0] sm:$0xff] (!%p6152_p6)  ;;  %v115_v62 = vld [vmem:[%s13717_s3 + $0x138] sm:$0xff] (!%p6152_p6)  ;;  %v120_v1 = vld [vmem:[%s13717_s3 + $0x160] sm:$0xff] (!%p6152_p6) }
  0x32   :  { %6308 = vmatprep.subr.bf16.mxu0 (!%p6152_p6), %v6307_v35  ;;  %6338 = vmatpush1.bf16.msra.mxu1 (!%p6152_p6), %v6337_v53  ;;  %v125_v2 = vld [vmem:[%s13717_s3 + $0x188] sm:$0xff] (!%p6152_p6)  ;;  %v6341_v3 = vpack.c.bf16 (!%p6152_p6), %v106_v59, %v102_v58  ;;  %v6343_v6 = vpack.c.bf16 (!%p6152_p6), %v115_v62, %v111_v61  ;;  %v110_v7 = vld [vmem:[%s13717_s3 + $0x110] sm:$0xff] (!%p6152_p6)  ;;  %v119_v9 = vld [vmem:[%s13717_s3 + $0x158] sm:$0xff] (!%p6152_p6)  ;;  %v6317_v11 = vpack.c.bf16 (!%p6152_p6), %v120_v1, %v116_v0 }
  0x33   :  { %v129_v5 = vld [vmem:[%s13717_s3 + $0x1a8] sm:$0xff] (!%p6152_p6)  ;;  %6340 = vmatprep.subr.bf16.mxu1 (!%p6152_p6), %v6339_v57  ;;  %v114_v8 = vld [vmem:[%s13717_s3 + $0x130] sm:$0xff] (!%p6152_p6)  ;;  %v123_v10 = vld [vmem:[%s13717_s3 + $0x178] sm:$0xff] (!%p6152_p6) }
  0x34   :  { %v6319_v12 = vpack.c.bf16 (!%p6152_p6), %v129_v5, %v125_v2  ;;  %v124_v13 = vld [vmem:[%s13717_s3 + $0x180] sm:$0xff] (!%p6152_p6)  ;;  %v133_v15 = vld [vmem:[%s13717_s3 + $0x1c8] sm:$0xff] (!%p6152_p6)  ;;  %v6345_v16 = vpack.c.bf16 (!%p6152_p6), %v114_v8, %v110_v7  ;;  %v6347_v18 = vpack.c.bf16 (!%p6152_p6), %v123_v10, %v119_v9  ;;  %v118_v19 = vld [vmem:[%s13717_s3 + $0x150] sm:$0xff] (!%p6152_p6) }
  0x35   :  { %6310 = vmatpush1.bf16.msra.mxu0 (!%p6152_p6), %v6309_v47  ;;  %v128_v14 = vld [vmem:[%s13717_s3 + $0x1a0] sm:$0xff] (!%p6152_p6)  ;;  %v137_v17 = vld [vmem:[%s13717_s3 + $0x1e8] sm:$0xff] (!%p6152_p6)  ;;  %v122_v20 = vld [vmem:[%s13717_s3 + $0x170] sm:$0xff] (!%p6152_p6) }
  0x36   :  { %6312 = vmatprep.subr.bf16.mxu0 (!%p6152_p6), %v6311_v51  ;;  %6342 = vmatpush1.bf16.msra.mxu1 (!%p6152_p6), %v6341_v3  ;;  %v127_v21 = vld [vmem:[%s13717_s3 + $0x198] sm:$0xff] (!%p6152_p6)  ;;  %v6321_v23 = vpack.c.bf16 (!%p6152_p6), %v128_v14, %v124_v13  ;;  %v6323_v24 = vpack.c.bf16 (!%p6152_p6), %v137_v17, %v133_v15  ;;  %v132_v25 = vld [vmem:[%s13717_s3 + $0x1c0] sm:$0xff] (!%p6152_p6)  ;;  %v6349_v27 = vpack.c.bf16 (!%p6152_p6), %v122_v20, %v118_v19  ;;  %v126_v29 = vld [vmem:[%s13717_s3 + $0x190] sm:$0xff] (!%p6152_p6) }
  0x37   :  { %6344 = vmatprep.subr.bf16.mxu1 (!%p6152_p6), %v6343_v6  ;;  %v131_v22 = vld [vmem:[%s13717_s3 + $0x1b8] sm:$0xff] (!%p6152_p6)  ;;  %v136_v26 = vld [vmem:[%s13717_s3 + $0x1e0] sm:$0xff] (!%p6152_p6)  ;;  %v130_v30 = vld [vmem:[%s13717_s3 + $0x1b0] sm:$0xff] (!%p6152_p6) }
  0x38   :  { %v6351_v28 = vpack.c.bf16 (!%p6152_p6), %v131_v22, %v127_v21  ;;  %v135_v31 = vld [vmem:[%s13717_s3 + $0x1d8] sm:$0xff] (!%p6152_p6)  ;;  %v6325_v33 = vpack.c.bf16 (!%p6152_p6), %v136_v26, %v132_v25  ;;  %v6353_v34 = vpack.c.bf16 (!%p6152_p6), %v130_v30, %v126_v29  ;;  %v134_v36 = vld [vmem:[%s13717_s3 + $0x1d0] sm:$0xff] (!%p6152_p6)  ;;  %v70_v38 = vld [vmem:[%s13719_s5] sm:$0xff] (!%p6152_p6) }
  0x39   :  { %6314 = vmatpush1.bf16.msra.mxu0 (!%p6152_p6), %v6313_v60  ;;  %v139_v32 = vld [vmem:[%s13717_s3 + $0x1f8] sm:$0xff] (!%p6152_p6)  ;;  %v138_v37 = vld [vmem:[%s13717_s3 + $0x1f0] sm:$0xff] (!%p6152_p6)  ;;  %v72_v40 = vld [vmem:[%s13716_s2] sm:$0xff] (!%p6152_p6) }
  0x3a   :  { %6316 = vmatprep.subr.bf16.mxu0 (!%p6152_p6), %v6315_v63  ;;  %6346 = vmatpush1.bf16.msra.mxu1 (!%p6152_p6), %v6345_v16  ;;  %v6355_v35 = vpack.c.bf16 (!%p6152_p6), %v139_v32, %v135_v31  ;;  %v6357_v39 = vpack.c.bf16 (!%p6152_p6), %v138_v37, %v134_v36  ;;  %v73_v41 = vld [vmem:[%s13716_s2 + $0x8] sm:$0xff] (!%p6152_p6)  ;;  %v75_v48 = vld [vmem:[%s13716_s2 + $0x18] sm:$0xff] (!%p6152_p6)  ;;  %v74_v52 = vld [vmem:[%s13716_s2 + $0x10] sm:$0xff] (!%p6152_p6) }
  0x3b   :  { %6348 = vmatprep.subr.bf16.mxu1 (!%p6152_p6), %v6347_v18  ;;  %v71_v61 = vld [vmem:[%s13720_s6] sm:$0xff] (!%p6152_p6) }
  0x3d   :  { %6318 = vmatpush1.bf16.msra.mxu0 (!%p6152_p6), %v6317_v11 }
  0x3e   :  { %6320 = vmatprep.subr.bf16.mxu0 (!%p6152_p6), %v6319_v12  ;;  %6350 = vmatpush1.bf16.msra.mxu1 (!%p6152_p6), %v6349_v27 }
  0x3f   :  { %6352 = vmatprep.subr.bf16.mxu1 (!%p6152_p6), %v6351_v28 }
  0x41   :  { %6322 = vmatpush1.bf16.msra.mxu0 (!%p6152_p6), %v6321_v23 }
  0x42   :  { %6324 = vmatprep.subr.bf16.mxu0 (!%p6152_p6), %v6323_v24  ;;  %6354 = vmatpush1.bf16.msra.mxu1 (!%p6152_p6), %v6353_v34 }
  0x43   :  { %6356 = vmatprep.subr.bf16.mxu1 (!%p6152_p6), %v6355_v35 }
  0x45   :  { %6326 = vmatpush1.bf16.msra.mxu0 (!%p6152_p6), %v6325_v33 }
  0x46   :  { %6358 = vmatpush1.bf16.msra.mxu1 (!%p6152_p6), %v6357_v39 }
  0x48   :  { %205 = vmatmul.mubr.f32.vlgmr.msra.gmra.mrb[0].mxu0 (!%p6152_p6), %v70_v38 }
  0x49   :  { %276 = vmatmul.mubr.f32.vlgmr.msra.gmra.mrb[0].mxu1 (!%p6152_p6), %v70_v38 }
  0x9e   :  { %69 = sbr.rel (%p6152_p6) target bundleno = 332 (0x14c), region = 25 }
  0xa4   :  { %v8408_v4 = vpop.permute.xlu0 %64 }
  0xa5   :  { %vm6156_vm0 = vcmp.gt.s32.totalorder %v8408_v4, 0 }
 0x11b   :  { %v206_v42 = vpop.f32.mrb[0].mxu0 }
 0x11c   :  { %v282_v43 = vadd.f32 %v206_v42, %v72_v40  ;;  %v208_v44 = vpop.f32.mrb[1].mxu0  ;;  %v277_v49 = vpop.f32.mrb[0].mxu1 }
 0x11d   :  { %v283_v45 = vadd.f32 %v208_v44, %v73_v41  ;;  %v279_v50 = vpop.f32.mrb[1].mxu1  ;;  %v284_v54 = vadd.f32 %v277_v49, %v74_v52 }
 0x11e   :  { %v6153_v46 = vmul.f32 -1.442695, %v282_v43  ;;  %v285_v51 = vadd.f32 %v279_v50, %v75_v48 }
 0x11f   :  { %v6154_v47 = vmul.f32 -1.442695, %v283_v45 }
 0x120   :  { %7860 = vpow2.f32 %v6153_v46  ;;  %v6155_v53 = vmul.f32 -1.442695, %v285_v51 }
 0x121   :  { %7862 = vpow2.f32 %v6154_v47 }
 0x122   :  { %7864 = vpow2.f32 %v6155_v53 }
 0x123   :  { %7866 = vtanh.f32 %v284_v54 }
 0x12a   :  { %v7861_v55 = vpop.eup %7860 }
 0x12b   :  { %v7863_v56 = vpop.eup %7862  ;;  %v289_v57 = vadd.f32 1.0, %v7861_v55 }
 0x12c   :  { %v295_v58 = vadd.f32 1.0, %v7863_v56  ;;  %v7865_v59 = vpop.eup %7864 }
 0x12d   :  { %7868 = vrcp.f32 %v289_v57  ;;  %v7867_v60 = vpop.eup %7866  ;;  %v302_v63 = vadd.f32 1.0, %v7865_v59 }
 0x12e   :  { %7870 = vrcp.f32 %v295_v58 }
 0x12f   :  { %7872 = vrcp.f32 %v302_v63 }
 0x137   :  { %v7869_v62 = vpop.eup %7868 }
 0x138   :  { %v7871_v0 = vpop.eup %7870  ;;  %v306_v1 = vmul.f32 %v7869_v62, %v7867_v60 }
 0x139   :  { %v305_v2 = vmul.f32 %v7871_v0, %v71_v61  ;;  %v7873_v6 = vpop.eup %7872 }
 0x13b   :  { %v307_v3 = vadd.f32 %v306_v1, %v305_v2 }
 0x13d   :  { %7874 = vtanh.f32 %v307_v3  ;;  %v314_v5 = vsel %vm6156_vm0, %v307_v3, %v71_v61 }
 0x13e   :  { %315 = vst [vmem:[%s13720_s6] sm:$0xff] %v314_v5 }
 0x147   :  { %v7875_v7 = vpop.eup %7874 }
 0x148   :  { %v309_v8 = vmul.f32 %v7875_v7, %v7873_v6 }
 0x14a   :  { %v312_v9 = vsel %vm6156_vm0, %v309_v8, %v70_v38  ;;  %v316_v10 = vsel %vm6156_vm0, %v309_v8, 0.0 }
 0x14b   :  { %313 = vst [vmem:[%s13719_s5] sm:$0xff] %v312_v9  ;;  %317 = vst [vmem:[%s13718_s4] sm:$0xff] %v316_v10 }
 0x14c PF:  { %p6158_p7 = scmp.le.s32.totalorder %s8324_s26, 1 }
 0x14d   :  { %v330_v11 = vld [vmem:[%s13717_s3 + $0x8] sm:$0xff] (!%p6158_p7)  ;;  %v329_v13 = vld [vmem:[%s13717_s3] sm:$0xff] (!%p6158_p7)  ;;  %v8263_v18 = vmov (!%p6158_p7), 0.0   ;;  %v332_v30 = vld [vmem:[%s13717_s3 + $0x18] sm:$0xff] (!%p6158_p7)  ;;  %vm6162_vm1 = vcmp.gt.s32.totalorder (!%p6158_p7), %v8408_v4, 1 }
 0x14e   :  { %322 = sbr.rel (%p6158_p7) target bundleno = 629 (0x275), region = 29  ;;  %v334_v12 = vld [vmem:[%s13717_s3 + $0x28] sm:$0xff] (!%p6158_p7)  ;;  %v333_v15 = vld [vmem:[%s13717_s3 + $0x20] sm:$0xff] (!%p6158_p7)  ;;  %457 = vmatprep.mubr.f32.mxu0 (!%p6158_p7), %v8263_v18  ;;  %528 = vmatprep.mubr.f32.mxu1 (!%p6158_p7), %v8263_v18  ;;  %v336_v31 = vld [vmem:[%s13717_s3 + $0x38] sm:$0xff] (!%p6158_p7) }
 0x14f   :  { %v6359_v14 = vpack.c.bf16 (!%p6158_p7), %v334_v12, %v330_v11  ;;  %v338_v16 = vld [vmem:[%s13717_s3 + $0x48] sm:$0xff] (!%p6158_p7)  ;;  %v6361_v19 = vpack.c.bf16 (!%p6158_p7), %v333_v15, %v329_v13  ;;  %v337_v21 = vld [vmem:[%s13717_s3 + $0x40] sm:$0xff] (!%p6158_p7)  ;;  %v6391_v33 = vpack.c.bf16 (!%p6158_p7), %v336_v31, %v332_v30  ;;  %v331_v34 = vld [vmem:[%s13717_s3 + $0x10] sm:$0xff] (!%p6158_p7) }
 0x150   :  { %v342_v17 = vld [vmem:[%s13717_s3 + $0x68] sm:$0xff] (!%p6158_p7)  ;;  %v341_v22 = vld [vmem:[%s13717_s3 + $0x60] sm:$0xff] (!%p6158_p7)  ;;  %v335_v35 = vld [vmem:[%s13717_s3 + $0x30] sm:$0xff] (!%p6158_p7) }
 0x151   :  { %v6363_v20 = vpack.c.bf16 (!%p6158_p7), %v342_v17, %v338_v16  ;;  %v346_v23 = vld [vmem:[%s13717_s3 + $0x88] sm:$0xff] (!%p6158_p7)  ;;  %6360 = vmatprep.subr.bf16.mxu0 (!%p6158_p7), %v6359_v14  ;;  %v6365_v25 = vpack.c.bf16 (!%p6158_p7), %v341_v22, %v337_v21  ;;  %v345_v26 = vld [vmem:[%s13717_s3 + $0x80] sm:$0xff] (!%p6158_p7)  ;;  %v6393_v36 = vpack.c.bf16 (!%p6158_p7), %v335_v35, %v331_v34  ;;  %6392 = vmatprep.subr.bf16.mxu1 (!%p6158_p7), %v6391_v33  ;;  %v340_v38 = vld [vmem:[%s13717_s3 + $0x58] sm:$0xff] (!%p6158_p7) }
 0x152   :  { %v350_v24 = vld [vmem:[%s13717_s3 + $0xa8] sm:$0xff] (!%p6158_p7)  ;;  %6362 = vmatpush1.bf16.msra.mxu0 (!%p6158_p7), %v6361_v19  ;;  %v349_v27 = vld [vmem:[%s13717_s3 + $0xa0] sm:$0xff] (!%p6158_p7)  ;;  %v344_v39 = vld [vmem:[%s13717_s3 + $0x78] sm:$0xff] (!%p6158_p7) }
 0x153   :  { %6364 = vmatprep.subr.bf16.mxu0 (!%p6158_p7), %v6363_v20  ;;  %v6367_v28 = vpack.c.bf16 (!%p6158_p7), %v350_v24, %v346_v23  ;;  %v354_v29 = vld [vmem:[%s13717_s3 + $0xc8] sm:$0xff] (!%p6158_p7)  ;;  %v6369_v37 = vpack.c.bf16 (!%p6158_p7), %v349_v27, %v345_v26  ;;  %v339_v40 = vld [vmem:[%s13717_s3 + $0x50] sm:$0xff] (!%p6158_p7)  ;;  %v353_v42 = vld [vmem:[%s13717_s3 + $0xc0] sm:$0xff] (!%p6158_p7)  ;;  %6394 = vmatpush1.bf16.msra.mxu1 (!%p6158_p7), %v6393_v36  ;;  %v6395_v44 = vpack.c.bf16 (!%p6158_p7), %v344_v39, %v340_v38 }
 0x154   :  { %v358_v32 = vld [vmem:[%s13717_s3 + $0xe8] sm:$0xff] (!%p6158_p7)  ;;  %v357_v43 = vld [vmem:[%s13717_s3 + $0xe0] sm:$0xff] (!%p6158_p7)  ;;  %v343_v45 = vld [vmem:[%s13717_s3 + $0x70] sm:$0xff] (!%p6158_p7) }
 0x155   :  { %v6371_v41 = vpack.c.bf16 %v358_v32, %v354_v29  ;;  %v362_v46 = vld [vmem:[%s13717_s3 + $0x108] sm:$0xff]  ;;  %v6397_v48 = vpack.c.bf16 %v343_v45, %v339_v40  ;;  %v348_v49 = vld [vmem:[%s13717_s3 + $0x98] sm:$0xff]  ;;  %6396 = vmatprep.subr.bf16.mxu1 %v6395_v44  ;;  %v347_v51 = vld [vmem:[%s13717_s3 + $0x90] sm:$0xff]  ;;  %v6373_v53 = vpack.c.bf16 %v357_v43, %v353_v42 }
 0x156   :  { %6366 = vmatpush1.bf16.msra.mxu0 %v6365_v25  ;;  %v366_v47 = vld [vmem:[%s13717_s3 + $0x128] sm:$0xff]  ;;  %v352_v50 = vld [vmem:[%s13717_s3 + $0xb8] sm:$0xff]  ;;  %v351_v52 = vld [vmem:[%s13717_s3 + $0xb0] sm:$0xff] }
 0x157   :  { %6368 = vmatprep.subr.bf16.mxu0 %v6367_v28  ;;  %v361_v54 = vld [vmem:[%s13717_s3 + $0x100] sm:$0xff]  ;;  %v6399_v56 = vpack.c.bf16 %v352_v50, %v348_v49  ;;  %v6375_v57 = vpack.c.bf16 %v366_v47, %v362_v46  ;;  %6398 = vmatpush1.bf16.msra.mxu1 %v6397_v48  ;;  %v370_v58 = vld [vmem:[%s13717_s3 + $0x148] sm:$0xff]  ;;  %v6401_v59 = vpack.c.bf16 %v351_v52, %v347_v51  ;;  %v356_v60 = vld [vmem:[%s13717_s3 + $0xd8] sm:$0xff] }
 0x158   :  { %v365_v55 = vld [vmem:[%s13717_s3 + $0x120] sm:$0xff]  ;;  %v360_v61 = vld [vmem:[%s13717_s3 + $0xf8] sm:$0xff]  ;;  %v374_v62 = vld [vmem:[%s13717_s3 + $0x168] sm:$0xff] }
 0x159   :  { %6400 = vmatprep.subr.bf16.mxu1 %v6399_v56  ;;  %v6403_v63 = vpack.c.bf16 %v360_v61, %v356_v60  ;;  %v355_v0 = vld [vmem:[%s13717_s3 + $0xd0] sm:$0xff]  ;;  %v6377_v2 = vpack.c.bf16 %v365_v55, %v361_v54  ;;  %v364_v3 = vld [vmem:[%s13717_s3 + $0x118] sm:$0xff]  ;;  %v6379_v6 = vpack.c.bf16 %v374_v62, %v370_v58  ;;  %v369_v7 = vld [vmem:[%s13717_s3 + $0x140] sm:$0xff] }
 0x15a   :  { %6370 = vmatpush1.bf16.msra.mxu0 %v6369_v37  ;;  %v359_v1 = vld [vmem:[%s13717_s3 + $0xf0] sm:$0xff]  ;;  %v368_v5 = vld [vmem:[%s13717_s3 + $0x138] sm:$0xff]  ;;  %v373_v8 = vld [vmem:[%s13717_s3 + $0x160] sm:$0xff] }
 0x15b   :  { %6372 = vmatprep.subr.bf16.mxu0 %v6371_v41  ;;  %6402 = vmatpush1.bf16.msra.mxu1 %v6401_v59  ;;  %v378_v9 = vld [vmem:[%s13717_s3 + $0x188] sm:$0xff]  ;;  %v6405_v10 = vpack.c.bf16 %v359_v1, %v355_v0  ;;  %v6407_v12 = vpack.c.bf16 %v368_v5, %v364_v3  ;;  %v363_v13 = vld [vmem:[%s13717_s3 + $0x110] sm:$0xff]  ;;  %v372_v15 = vld [vmem:[%s13717_s3 + $0x158] sm:$0xff]  ;;  %v6381_v17 = vpack.c.bf16 %v373_v8, %v369_v7 }
 0x15c   :  { %v382_v11 = vld [vmem:[%s13717_s3 + $0x1a8] sm:$0xff]  ;;  %6404 = vmatprep.subr.bf16.mxu1 %v6403_v63  ;;  %v367_v14 = vld [vmem:[%s13717_s3 + $0x130] sm:$0xff]  ;;  %v376_v16 = vld [vmem:[%s13717_s3 + $0x178] sm:$0xff] }
 0x15d   :  { %v6383_v18 = vpack.c.bf16 %v382_v11, %v378_v9  ;;  %v377_v19 = vld [vmem:[%s13717_s3 + $0x180] sm:$0xff]  ;;  %v386_v21 = vld [vmem:[%s13717_s3 + $0x1c8] sm:$0xff]  ;;  %v6409_v22 = vpack.c.bf16 %v367_v14, %v363_v13  ;;  %v6411_v24 = vpack.c.bf16 %v376_v16, %v372_v15  ;;  %v371_v25 = vld [vmem:[%s13717_s3 + $0x150] sm:$0xff] }
 0x15e   :  { %6374 = vmatpush1.bf16.msra.mxu0 %v6373_v53  ;;  %v381_v20 = vld [vmem:[%s13717_s3 + $0x1a0] sm:$0xff]  ;;  %v390_v23 = vld [vmem:[%s13717_s3 + $0x1e8] sm:$0xff]  ;;  %v375_v26 = vld [vmem:[%s13717_s3 + $0x170] sm:$0xff] }
 0x15f   :  { %6376 = vmatprep.subr.bf16.mxu0 %v6375_v57  ;;  %6406 = vmatpush1.bf16.msra.mxu1 %v6405_v10  ;;  %v380_v27 = vld [vmem:[%s13717_s3 + $0x198] sm:$0xff]  ;;  %v6385_v29 = vpack.c.bf16 %v381_v20, %v377_v19  ;;  %v6387_v30 = vpack.c.bf16 %v390_v23, %v386_v21  ;;  %v385_v31 = vld [vmem:[%s13717_s3 + $0x1c0] sm:$0xff]  ;;  %v6413_v33 = vpack.c.bf16 %v375_v26, %v371_v25  ;;  %v379_v35 = vld [vmem:[%s13717_s3 + $0x190] sm:$0xff] }
 0x160   :  { %6408 = vmatprep.subr.bf16.mxu1 %v6407_v12  ;;  %v384_v28 = vld [vmem:[%s13717_s3 + $0x1b8] sm:$0xff]  ;;  %v389_v32 = vld [vmem:[%s13717_s3 + $0x1e0] sm:$0xff]  ;;  %v383_v36 = vld [vmem:[%s13717_s3 + $0x1b0] sm:$0xff] }
 0x161   :  { %v6415_v34 = vpack.c.bf16 %v384_v28, %v380_v27  ;;  %v388_v37 = vld [vmem:[%s13717_s3 + $0x1d8] sm:$0xff]  ;;  %v6389_v39 = vpack.c.bf16 %v389_v32, %v385_v31  ;;  %v6417_v40 = vpack.c.bf16 %v383_v36, %v379_v35  ;;  %v387_v42 = vld [vmem:[%s13717_s3 + $0x1d0] sm:$0xff]  ;;  %v323_v44 = vld [vmem:[%s13719_s5] sm:$0xff] }
 0x162   :  { %6378 = vmatpush1.bf16.msra.mxu0 %v6377_v2  ;;  %v392_v38 = vld [vmem:[%s13717_s3 + $0x1f8] sm:$0xff]  ;;  %v391_v43 = vld [vmem:[%s13717_s3 + $0x1f0] sm:$0xff]  ;;  %v325_v46 = vld [vmem:[%s13716_s2 + $0x20] sm:$0xff] }
 0x163   :  { %6380 = vmatprep.subr.bf16.mxu0 %v6379_v6  ;;  %6410 = vmatpush1.bf16.msra.mxu1 %v6409_v22  ;;  %v6419_v41 = vpack.c.bf16 %v392_v38, %v388_v37  ;;  %v6421_v45 = vpack.c.bf16 %v391_v43, %v387_v42  ;;  %v326_v47 = vld [vmem:[%s13716_s2 + $0x28] sm:$0xff]  ;;  %v328_v54 = vld [vmem:[%s13716_s2 + $0x38] sm:$0xff]  ;;  %v327_v58 = vld [vmem:[%s13716_s2 + $0x30] sm:$0xff] }
 0x164   :  { %6412 = vmatprep.subr.bf16.mxu1 %v6411_v24  ;;  %v324_v3 = vld [vmem:[%s13720_s6] sm:$0xff] }
 0x166   :  { %6382 = vmatpush1.bf16.msra.mxu0 %v6381_v17 }
 0x167   :  { %6384 = vmatprep.subr.bf16.mxu0 %v6383_v18  ;;  %6414 = vmatpush1.bf16.msra.mxu1 %v6413_v33 }
 0x168   :  { %6416 = vmatprep.subr.bf16.mxu1 %v6415_v34 }
 0x16a   :  { %6386 = vmatpush1.bf16.msra.mxu0 %v6385_v29 }
 0x16b   :  { %6388 = vmatprep.subr.bf16.mxu0 %v6387_v30  ;;  %6418 = vmatpush1.bf16.msra.mxu1 %v6417_v40 }
 0x16c   :  { %6420 = vmatprep.subr.bf16.mxu1 %v6419_v41 }
 0x16e   :  { %6390 = vmatpush1.bf16.msra.mxu0 %v6389_v39 }
 0x16f   :  { %6422 = vmatpush1.bf16.msra.mxu1 %v6421_v45 }
 0x171   :  { %458 = vmatmul.mubr.f32.vlgmr.msra.gmra.mrb[0].mxu0 %v323_v44 }
 0x172   :  { %529 = vmatmul.mubr.f32.vlgmr.msra.gmra.mrb[0].mxu1 %v323_v44 }
 0x244   :  { %v459_v48 = vpop.f32.mrb[0].mxu0 }
 0x245   :  { %v535_v49 = vadd.f32 %v459_v48, %v325_v46  ;;  %v461_v50 = vpop.f32.mrb[1].mxu0  ;;  %v530_v55 = vpop.f32.mrb[0].mxu1 }
 0x246   :  { %v536_v51 = vadd.f32 %v461_v50, %v326_v47  ;;  %v532_v56 = vpop.f32.mrb[1].mxu1  ;;  %v537_v60 = vadd.f32 %v530_v55, %v327_v58 }
 0x247   :  { %v6159_v52 = vmul.f32 -1.442695, %v535_v49  ;;  %v538_v57 = vadd.f32 %v532_v56, %v328_v54 }
 0x248   :  { %v6160_v53 = vmul.f32 -1.442695, %v536_v51 }
 0x249   :  { %7876 = vpow2.f32 %v6159_v52  ;;  %v6161_v59 = vmul.f32 -1.442695, %v538_v57 }
 0x24a   :  { %7878 = vpow2.f32 %v6160_v53 }
 0x24b   :  { %7880 = vpow2.f32 %v6161_v59 }
 0x24c   :  { %7882 = vtanh.f32 %v537_v60 }
 0x253   :  { %v7877_v61 = vpop.eup %7876 }
 0x254   :  { %v7879_v62 = vpop.eup %7878  ;;  %v542_v63 = vadd.f32 1.0, %v7877_v61 }
 0x255   :  { %v548_v0 = vadd.f32 1.0, %v7879_v62  ;;  %v7881_v1 = vpop.eup %7880 }
 0x256   :  { %7884 = vrcp.f32 %v542_v63  ;;  %v7883_v2 = vpop.eup %7882  ;;  %v555_v6 = vadd.f32 1.0, %v7881_v1 }
 0x257   :  { %7886 = vrcp.f32 %v548_v0 }
 0x258   :  { %7888 = vrcp.f32 %v555_v6 }
 0x260   :  { %v7885_v5 = vpop.eup %7884 }
 0x261   :  { %v7887_v7 = vpop.eup %7886  ;;  %v559_v8 = vmul.f32 %v7885_v5, %v7883_v2 }
 0x262   :  { %v558_v9 = vmul.f32 %v7887_v7, %v324_v3  ;;  %v7889_v12 = vpop.eup %7888 }
 0x264   :  { %v560_v10 = vadd.f32 %v559_v8, %v558_v9 }
 0x266   :  { %7890 = vtanh.f32 %v560_v10  ;;  %v567_v11 = vsel %vm6162_vm1, %v560_v10, %v324_v3 }
 0x267   :  { %568 = vst [vmem:[%s13720_s6] sm:$0xff] %v567_v11 }
 0x270   :  { %v7891_v13 = vpop.eup %7890 }
 0x271   :  { %v562_v14 = vmul.f32 %v7891_v13, %v7889_v12 }
 0x273   :  { %v565_v15 = vsel %vm6162_vm1, %v562_v14, %v323_v44  ;;  %v569_v16 = vsel %vm6162_vm1, %v562_v14, 0.0 }
 0x274   :  { %566 = vst [vmem:[%s13719_s5] sm:$0xff] %v565_v15  ;;  %570 = vst [vmem:[%s13718_s4 + $0x8] sm:$0xff] %v569_v16 }
 0x275 PF:  { %p6164_p8 = scmp.le.s32.totalorder %s8324_s26, 2 }
 0x276   :  { %v583_v17 = vld [vmem:[%s13717_s3 + $0x8] sm:$0xff] (!%p6164_p8)  ;;  %v582_v19 = vld [vmem:[%s13717_s3] sm:$0xff] (!%p6164_p8)  ;;  %v8264_v24 = vmov (!%p6164_p8), 0.0   ;;  %v585_v36 = vld [vmem:[%s13717_s3 + $0x18] sm:$0xff] (!%p6164_p8)  ;;  %vm6168_vm2 = vcmp.gt.s32.totalorder (!%p6164_p8), %v8408_v4, 2 }
 0x277   :  { %575 = sbr.rel (%p6164_p8) target bundleno = 926 (0x39e), region = 33  ;;  %v587_v18 = vld [vmem:[%s13717_s3 + $0x28] sm:$0xff] (!%p6164_p8)  ;;  %v586_v21 = vld [vmem:[%s13717_s3 + $0x20] sm:$0xff] (!%p6164_p8)  ;;  %710 = vmatprep.mubr.f32.mxu0 (!%p6164_p8), %v8264_v24  ;;  %781 = vmatprep.mubr.f32.mxu1 (!%p6164_p8), %v8264_v24  ;;  %v589_v37 = vld [vmem:[%s13717_s3 + $0x38] sm:$0xff] (!%p6164_p8) }
 0x278   :  { %v6423_v20 = vpack.c.bf16 (!%p6164_p8), %v587_v18, %v583_v17  ;;  %v591_v22 = vld [vmem:[%s13717_s3 + $0x48] sm:$0xff] (!%p6164_p8)  ;;  %v6425_v25 = vpack.c.bf16 (!%p6164_p8), %v586_v21, %v582_v19  ;;  %v590_v27 = vld [vmem:[%s13717_s3 + $0x40] sm:$0xff] (!%p6164_p8)  ;;  %v6455_v39 = vpack.c.bf16 (!%p6164_p8), %v589_v37, %v585_v36  ;;  %v584_v40 = vld [vmem:[%s13717_s3 + $0x10] sm:$0xff] (!%p6164_p8) }
 0x279   :  { %v595_v23 = vld [vmem:[%s13717_s3 + $0x68] sm:$0xff] (!%p6164_p8)  ;;  %v594_v28 = vld [vmem:[%s13717_s3 + $0x60] sm:$0xff] (!%p6164_p8)  ;;  %v588_v41 = vld [vmem:[%s13717_s3 + $0x30] sm:$0xff] (!%p6164_p8) }
 0x27a   :  { %v6427_v26 = vpack.c.bf16 (!%p6164_p8), %v595_v23, %v591_v22  ;;  %v599_v29 = vld [vmem:[%s13717_s3 + $0x88] sm:$0xff] (!%p6164_p8)  ;;  %6424 = vmatprep.subr.bf16.mxu0 (!%p6164_p8), %v6423_v20  ;;  %v6429_v31 = vpack.c.bf16 (!%p6164_p8), %v594_v28, %v590_v27  ;;  %v598_v32 = vld [vmem:[%s13717_s3 + $0x80] sm:$0xff] (!%p6164_p8)  ;;  %v6457_v42 = vpack.c.bf16 (!%p6164_p8), %v588_v41, %v584_v40  ;;  %6456 = vmatprep.subr.bf16.mxu1 (!%p6164_p8), %v6455_v39  ;;  %v593_v44 = vld [vmem:[%s13717_s3 + $0x58] sm:$0xff] (!%p6164_p8) }
 0x27b   :  { %v603_v30 = vld [vmem:[%s13717_s3 + $0xa8] sm:$0xff] (!%p6164_p8)  ;;  %6426 = vmatpush1.bf16.msra.mxu0 (!%p6164_p8), %v6425_v25  ;;  %v602_v33 = vld [vmem:[%s13717_s3 + $0xa0] sm:$0xff] (!%p6164_p8)  ;;  %v597_v45 = vld [vmem:[%s13717_s3 + $0x78] sm:$0xff] (!%p6164_p8) }
 0x27c   :  { %6428 = vmatprep.subr.bf16.mxu0 (!%p6164_p8), %v6427_v26  ;;  %v6431_v34 = vpack.c.bf16 (!%p6164_p8), %v603_v30, %v599_v29  ;;  %v607_v35 = vld [vmem:[%s13717_s3 + $0xc8] sm:$0xff] (!%p6164_p8)  ;;  %v6433_v43 = vpack.c.bf16 (!%p6164_p8), %v602_v33, %v598_v32  ;;  %v592_v46 = vld [vmem:[%s13717_s3 + $0x50] sm:$0xff] (!%p6164_p8)  ;;  %v606_v48 = vld [vmem:[%s13717_s3 + $0xc0] sm:$0xff] (!%p6164_p8)  ;;  %6458 = vmatpush1.bf16.msra.mxu1 (!%p6164_p8), %v6457_v42  ;;  %v6459_v50 = vpack.c.bf16 (!%p6164_p8), %v597_v45, %v593_v44 }
 0x27d   :  { %v611_v38 = vld [vmem:[%s13717_s3 + $0xe8] sm:$0xff] (!%p6164_p8)  ;;  %v610_v49 = vld [vmem:[%s13717_s3 + $0xe0] sm:$0xff] (!%p6164_p8)  ;;  %v596_v51 = vld [vmem:[%s13717_s3 + $0x70] sm:$0xff] (!%p6164_p8) }
 0x27e   :  { %v6435_v47 = vpack.c.bf16 %v611_v38, %v607_v35  ;;  %v615_v52 = vld [vmem:[%s13717_s3 + $0x108] sm:$0xff]  ;;  %v6461_v54 = vpack.c.bf16 %v596_v51, %v592_v46  ;;  %v601_v55 = vld [vmem:[%s13717_s3 + $0x98] sm:$0xff]  ;;  %6460 = vmatprep.subr.bf16.mxu1 %v6459_v50  ;;  %v600_v57 = vld [vmem:[%s13717_s3 + $0x90] sm:$0xff]  ;;  %v6437_v59 = vpack.c.bf16 %v610_v49, %v606_v48 }
 0x27f   :  { %6430 = vmatpush1.bf16.msra.mxu0 %v6429_v31  ;;  %v619_v53 = vld [vmem:[%s13717_s3 + $0x128] sm:$0xff]  ;;  %v605_v56 = vld [vmem:[%s13717_s3 + $0xb8] sm:$0xff]  ;;  %v604_v58 = vld [vmem:[%s13717_s3 + $0xb0] sm:$0xff] }
 0x280   :  { %6432 = vmatprep.subr.bf16.mxu0 %v6431_v34  ;;  %v614_v60 = vld [vmem:[%s13717_s3 + $0x100] sm:$0xff]  ;;  %v6463_v62 = vpack.c.bf16 %v605_v56, %v601_v55  ;;  %v6439_v63 = vpack.c.bf16 %v619_v53, %v615_v52  ;;  %6462 = vmatpush1.bf16.msra.mxu1 %v6461_v54  ;;  %v623_v0 = vld [vmem:[%s13717_s3 + $0x148] sm:$0xff]  ;;  %v6465_v1 = vpack.c.bf16 %v604_v58, %v600_v57  ;;  %v609_v2 = vld [vmem:[%s13717_s3 + $0xd8] sm:$0xff] }
 0x281   :  { %v618_v61 = vld [vmem:[%s13717_s3 + $0x120] sm:$0xff]  ;;  %v613_v3 = vld [vmem:[%s13717_s3 + $0xf8] sm:$0xff]  ;;  %v627_v5 = vld [vmem:[%s13717_s3 + $0x168] sm:$0xff] }
 0x282   :  { %6464 = vmatprep.subr.bf16.mxu1 %v6463_v62  ;;  %v6467_v6 = vpack.c.bf16 %v613_v3, %v609_v2  ;;  %v608_v7 = vld [vmem:[%s13717_s3 + $0xd0] sm:$0xff]  ;;  %v6441_v9 = vpack.c.bf16 %v618_v61, %v614_v60  ;;  %v617_v10 = vld [vmem:[%s13717_s3 + $0x118] sm:$0xff]  ;;  %v6443_v12 = vpack.c.bf16 %v627_v5, %v623_v0  ;;  %v622_v13 = vld [vmem:[%s13717_s3 + $0x140] sm:$0xff] }
 0x283   :  { %6434 = vmatpush1.bf16.msra.mxu0 %v6433_v43  ;;  %v612_v8 = vld [vmem:[%s13717_s3 + $0xf0] sm:$0xff]  ;;  %v621_v11 = vld [vmem:[%s13717_s3 + $0x138] sm:$0xff]  ;;  %v626_v14 = vld [vmem:[%s13717_s3 + $0x160] sm:$0xff] }
 0x284   :  { %6436 = vmatprep.subr.bf16.mxu0 %v6435_v47  ;;  %6466 = vmatpush1.bf16.msra.mxu1 %v6465_v1  ;;  %v631_v15 = vld [vmem:[%s13717_s3 + $0x188] sm:$0xff]  ;;  %v6469_v16 = vpack.c.bf16 %v612_v8, %v608_v7  ;;  %v6471_v18 = vpack.c.bf16 %v621_v11, %v617_v10  ;;  %v616_v19 = vld [vmem:[%s13717_s3 + $0x110] sm:$0xff]  ;;  %v625_v21 = vld [vmem:[%s13717_s3 + $0x158] sm:$0xff]  ;;  %v6445_v23 = vpack.c.bf16 %v626_v14, %v622_v13 }
 0x285   :  { %v635_v17 = vld [vmem:[%s13717_s3 + $0x1a8] sm:$0xff]  ;;  %6468 = vmatprep.subr.bf16.mxu1 %v6467_v6  ;;  %v620_v20 = vld [vmem:[%s13717_s3 + $0x130] sm:$0xff]  ;;  %v629_v22 = vld [vmem:[%s13717_s3 + $0x178] sm:$0xff] }
 0x286   :  { %v6447_v24 = vpack.c.bf16 %v635_v17, %v631_v15  ;;  %v630_v25 = vld [vmem:[%s13717_s3 + $0x180] sm:$0xff]  ;;  %v639_v27 = vld [vmem:[%s13717_s3 + $0x1c8] sm:$0xff]  ;;  %v6473_v28 = vpack.c.bf16 %v620_v20, %v616_v19  ;;  %v6475_v30 = vpack.c.bf16 %v629_v22, %v625_v21  ;;  %v624_v31 = vld [vmem:[%s13717_s3 + $0x150] sm:$0xff] }
 0x287   :  { %6438 = vmatpush1.bf16.msra.mxu0 %v6437_v59  ;;  %v634_v26 = vld [vmem:[%s13717_s3 + $0x1a0] sm:$0xff]  ;;  %v643_v29 = vld [vmem:[%s13717_s3 + $0x1e8] sm:$0xff]  ;;  %v628_v32 = vld [vmem:[%s13717_s3 + $0x170] sm:$0xff] }
 0x288   :  { %6440 = vmatprep.subr.bf16.mxu0 %v6439_v63  ;;  %6470 = vmatpush1.bf16.msra.mxu1 %v6469_v16  ;;  %v633_v33 = vld [vmem:[%s13717_s3 + $0x198] sm:$0xff]  ;;  %v6449_v35 = vpack.c.bf16 %v634_v26, %v630_v25  ;;  %v6451_v36 = vpack.c.bf16 %v643_v29, %v639_v27  ;;  %v638_v37 = vld [vmem:[%s13717_s3 + $0x1c0] sm:$0xff]  ;;  %v6477_v39 = vpack.c.bf16 %v628_v32, %v624_v31  ;;  %v632_v41 = vld [vmem:[%s13717_s3 + $0x190] sm:$0xff] }
 0x289   :  { %6472 = vmatprep.subr.bf16.mxu1 %v6471_v18  ;;  %v637_v34 = vld [vmem:[%s13717_s3 + $0x1b8] sm:$0xff]  ;;  %v642_v38 = vld [vmem:[%s13717_s3 + $0x1e0] sm:$0xff]  ;;  %v636_v42 = vld [vmem:[%s13717_s3 + $0x1b0] sm:$0xff] }
 0x28a   :  { %v6479_v40 = vpack.c.bf16 %v637_v34, %v633_v33  ;;  %v641_v43 = vld [vmem:[%s13717_s3 + $0x1d8] sm:$0xff]  ;;  %v6453_v45 = vpack.c.bf16 %v642_v38, %v638_v37  ;;  %v6481_v46 = vpack.c.bf16 %v636_v42, %v632_v41  ;;  %v640_v48 = vld [vmem:[%s13717_s3 + $0x1d0] sm:$0xff]  ;;  %v576_v50 = vld [vmem:[%s13719_s5] sm:$0xff] }
 0x28b   :  { %6442 = vmatpush1.bf16.msra.mxu0 %v6441_v9  ;;  %v645_v44 = vld [vmem:[%s13717_s3 + $0x1f8] sm:$0xff]  ;;  %v644_v49 = vld [vmem:[%s13717_s3 + $0x1f0] sm:$0xff]  ;;  %v578_v52 = vld [vmem:[%s13716_s2 + $0x40] sm:$0xff] }
 0x28c   :  { %6444 = vmatprep.subr.bf16.mxu0 %v6443_v12  ;;  %6474 = vmatpush1.bf16.msra.mxu1 %v6473_v28  ;;  %v6483_v47 = vpack.c.bf16 %v645_v44, %v641_v43  ;;  %v6485_v51 = vpack.c.bf16 %v644_v49, %v640_v48  ;;  %v579_v53 = vld [vmem:[%s13716_s2 + $0x48] sm:$0xff]  ;;  %v581_v60 = vld [vmem:[%s13716_s2 + $0x58] sm:$0xff]  ;;  %v580_v0 = vld [vmem:[%s13716_s2 + $0x50] sm:$0xff] }
 0x28d   :  { %6476 = vmatprep.subr.bf16.mxu1 %v6475_v30  ;;  %v577_v10 = vld [vmem:[%s13720_s6] sm:$0xff] }
 0x28f   :  { %6446 = vmatpush1.bf16.msra.mxu0 %v6445_v23 }
 0x290   :  { %6448 = vmatprep.subr.bf16.mxu0 %v6447_v24  ;;  %6478 = vmatpush1.bf16.msra.mxu1 %v6477_v39 }
 0x291   :  { %6480 = vmatprep.subr.bf16.mxu1 %v6479_v40 }
 0x293   :  { %6450 = vmatpush1.bf16.msra.mxu0 %v6449_v35 }
 0x294   :  { %6452 = vmatprep.subr.bf16.mxu0 %v6451_v36  ;;  %6482 = vmatpush1.bf16.msra.mxu1 %v6481_v46 }
 0x295   :  { %6484 = vmatprep.subr.bf16.mxu1 %v6483_v47 }
 0x297   :  { %6454 = vmatpush1.bf16.msra.mxu0 %v6453_v45 }
 0x298   :  { %6486 = vmatpush1.bf16.msra.mxu1 %v6485_v51 }
 0x29a   :  { %711 = vmatmul.mubr.f32.vlgmr.msra.gmra.mrb[0].mxu0 %v576_v50 }
 0x29b   :  { %782 = vmatmul.mubr.f32.vlgmr.msra.gmra.mrb[0].mxu1 %v576_v50 }
 0x36d   :  { %v712_v54 = vpop.f32.mrb[0].mxu0 }
 0x36e   :  { %v788_v55 = vadd.f32 %v712_v54, %v578_v52  ;;  %v714_v56 = vpop.f32.mrb[1].mxu0  ;;  %v783_v61 = vpop.f32.mrb[0].mxu1 }
 0x36f   :  { %v789_v57 = vadd.f32 %v714_v56, %v579_v53  ;;  %v785_v62 = vpop.f32.mrb[1].mxu1  ;;  %v790_v2 = vadd.f32 %v783_v61, %v580_v0 }
 0x370   :  { %v6165_v58 = vmul.f32 -1.442695, %v788_v55  ;;  %v791_v63 = vadd.f32 %v785_v62, %v581_v60 }
 0x371   :  { %v6166_v59 = vmul.f32 -1.442695, %v789_v57 }
 0x372   :  { %7892 = vpow2.f32 %v6165_v58  ;;  %v6167_v1 = vmul.f32 -1.442695, %v791_v63 }
 0x373   :  { %7894 = vpow2.f32 %v6166_v59 }
 0x374   :  { %7896 = vpow2.f32 %v6167_v1 }
 0x375   :  { %7898 = vtanh.f32 %v790_v2 }
 0x37c   :  { %v7893_v3 = vpop.eup %7892 }
 0x37d   :  { %v7895_v5 = vpop.eup %7894  ;;  %v795_v6 = vadd.f32 1.0, %v7893_v3 }
 0x37e   :  { %v801_v7 = vadd.f32 1.0, %v7895_v5  ;;  %v7897_v8 = vpop.eup %7896 }
 0x37f   :  { %7900 = vrcp.f32 %v795_v6  ;;  %v7899_v9 = vpop.eup %7898  ;;  %v808_v12 = vadd.f32 1.0, %v7897_v8 }
 0x380   :  { %7902 = vrcp.f32 %v801_v7 }
 0x381   :  { %7904 = vrcp.f32 %v808_v12 }
 0x389   :  { %v7901_v11 = vpop.eup %7900 }
 0x38a   :  { %v7903_v13 = vpop.eup %7902  ;;  %v812_v14 = vmul.f32 %v7901_v11, %v7899_v9 }
 0x38b   :  { %v811_v15 = vmul.f32 %v7903_v13, %v577_v10  ;;  %v7905_v18 = vpop.eup %7904 }
 0x38d   :  { %v813_v16 = vadd.f32 %v812_v14, %v811_v15 }
 0x38f   :  { %7906 = vtanh.f32 %v813_v16  ;;  %v820_v17 = vsel %vm6168_vm2, %v813_v16, %v577_v10 }
 0x390   :  { %821 = vst [vmem:[%s13720_s6] sm:$0xff] %v820_v17 }
 0x399   :  { %v7907_v19 = vpop.eup %7906 }
 0x39a   :  { %v815_v20 = vmul.f32 %v7907_v19, %v7905_v18 }
 0x39c   :  { %v818_v21 = vsel %vm6168_vm2, %v815_v20, %v576_v50  ;;  %v822_v22 = vsel %vm6168_vm2, %v815_v20, 0.0 }
 0x39d   :  { %819 = vst [vmem:[%s13719_s5] sm:$0xff] %v818_v21  ;;  %823 = vst [vmem:[%s13718_s4 + $0x10] sm:$0xff] %v822_v22 }
 0x39e PF:  { %p6170_p9 = scmp.le.s32.totalorder %s8324_s26, 3 }
 0x39f   :  { %v836_v23 = vld [vmem:[%s13717_s3 + $0x8] sm:$0xff] (!%p6170_p9)  ;;  %v835_v25 = vld [vmem:[%s13717_s3] sm:$0xff] (!%p6170_p9)  ;;  %v8265_v30 = vmov (!%p6170_p9), 0.0   ;;  %v838_v42 = vld [vmem:[%s13717_s3 + $0x18] sm:$0xff] (!%p6170_p9)  ;;  %vm6174_vm3 = vcmp.gt.s32.totalorder (!%p6170_p9), %v8408_v4, 3 }
 0x3a0   :  { %828 = sbr.rel (%p6170_p9) target bundleno = 1223 (0x4c7), region = 37  ;;  %v840_v24 = vld [vmem:[%s13717_s3 + $0x28] sm:$0xff] (!%p6170_p9)  ;;  %v839_v27 = vld [vmem:[%s13717_s3 + $0x20] sm:$0xff] (!%p6170_p9)  ;;  %963 = vmatprep.mubr.f32.mxu0 (!%p6170_p9), %v8265_v30  ;;  %1034 = vmatprep.mubr.f32.mxu1 (!%p6170_p9), %v8265_v30  ;;  %v842_v43 = vld [vmem:[%s13717_s3 + $0x38] sm:$0xff] (!%p6170_p9) }
 0x3a1   :  { %v6487_v26 = vpack.c.bf16 (!%p6170_p9), %v840_v24, %v836_v23  ;;  %v844_v28 = vld [vmem:[%s13717_s3 + $0x48] sm:$0xff] (!%p6170_p9)  ;;  %v6489_v31 = vpack.c.bf16 (!%p6170_p9), %v839_v27, %v835_v25  ;;  %v843_v33 = vld [vmem:[%s13717_s3 + $0x40] sm:$0xff] (!%p6170_p9)  ;;  %v6519_v45 = vpack.c.bf16 (!%p6170_p9), %v842_v43, %v838_v42  ;;  %v837_v46 = vld [vmem:[%s13717_s3 + $0x10] sm:$0xff] (!%p6170_p9) }
 0x3a2   :  { %v848_v29 = vld [vmem:[%s13717_s3 + $0x68] sm:$0xff] (!%p6170_p9)  ;;  %v847_v34 = vld [vmem:[%s13717_s3 + $0x60] sm:$0xff] (!%p6170_p9)  ;;  %v841_v47 = vld [vmem:[%s13717_s3 + $0x30] sm:$0xff] (!%p6170_p9) }
 0x3a3   :  { %v6491_v32 = vpack.c.bf16 (!%p6170_p9), %v848_v29, %v844_v28  ;;  %v852_v35 = vld [vmem:[%s13717_s3 + $0x88] sm:$0xff] (!%p6170_p9)  ;;  %6488 = vmatprep.subr.bf16.mxu0 (!%p6170_p9), %v6487_v26  ;;  %v6493_v37 = vpack.c.bf16 (!%p6170_p9), %v847_v34, %v843_v33  ;;  %v851_v38 = vld [vmem:[%s13717_s3 + $0x80] sm:$0xff] (!%p6170_p9)  ;;  %v6521_v48 = vpack.c.bf16 (!%p6170_p9), %v841_v47, %v837_v46  ;;  %6520 = vmatprep.subr.bf16.mxu1 (!%p6170_p9), %v6519_v45  ;;  %v846_v50 = vld [vmem:[%s13717_s3 + $0x58] sm:$0xff] (!%p6170_p9) }
 0x3a4   :  { %v856_v36 = vld [vmem:[%s13717_s3 + $0xa8] sm:$0xff] (!%p6170_p9)  ;;  %6490 = vmatpush1.bf16.msra.mxu0 (!%p6170_p9), %v6489_v31  ;;  %v855_v39 = vld [vmem:[%s13717_s3 + $0xa0] sm:$0xff] (!%p6170_p9)  ;;  %v850_v51 = vld [vmem:[%s13717_s3 + $0x78] sm:$0xff] (!%p6170_p9) }
 0x3a5   :  { %6492 = vmatprep.subr.bf16.mxu0 (!%p6170_p9), %v6491_v32  ;;  %v6495_v40 = vpack.c.bf16 (!%p6170_p9), %v856_v36, %v852_v35  ;;  %v860_v41 = vld [vmem:[%s13717_s3 + $0xc8] sm:$0xff] (!%p6170_p9)  ;;  %v6497_v49 = vpack.c.bf16 (!%p6170_p9), %v855_v39, %v851_v38  ;;  %v845_v52 = vld [vmem:[%s13717_s3 + $0x50] sm:$0xff] (!%p6170_p9)  ;;  %v859_v54 = vld [vmem:[%s13717_s3 + $0xc0] sm:$0xff] (!%p6170_p9)  ;;  %6522 = vmatpush1.bf16.msra.mxu1 (!%p6170_p9), %v6521_v48  ;;  %v6523_v56 = vpack.c.bf16 (!%p6170_p9), %v850_v51, %v846_v50 }
 0x3a6   :  { %v864_v44 = vld [vmem:[%s13717_s3 + $0xe8] sm:$0xff] (!%p6170_p9)  ;;  %v863_v55 = vld [vmem:[%s13717_s3 + $0xe0] sm:$0xff] (!%p6170_p9)  ;;  %v849_v57 = vld [vmem:[%s13717_s3 + $0x70] sm:$0xff] (!%p6170_p9) }
 0x3a7   :  { %v6499_v53 = vpack.c.bf16 %v864_v44, %v860_v41  ;;  %v868_v58 = vld [vmem:[%s13717_s3 + $0x108] sm:$0xff]  ;;  %v6525_v60 = vpack.c.bf16 %v849_v57, %v845_v52  ;;  %v854_v61 = vld [vmem:[%s13717_s3 + $0x98] sm:$0xff]  ;;  %6524 = vmatprep.subr.bf16.mxu1 %v6523_v56  ;;  %v853_v63 = vld [vmem:[%s13717_s3 + $0x90] sm:$0xff]  ;;  %v6501_v1 = vpack.c.bf16 %v863_v55, %v859_v54 }
 0x3a8   :  { %6494 = vmatpush1.bf16.msra.mxu0 %v6493_v37  ;;  %v872_v59 = vld [vmem:[%s13717_s3 + $0x128] sm:$0xff]  ;;  %v858_v62 = vld [vmem:[%s13717_s3 + $0xb8] sm:$0xff]  ;;  %v857_v0 = vld [vmem:[%s13717_s3 + $0xb0] sm:$0xff] }
 0x3a9   :  { %6496 = vmatprep.subr.bf16.mxu0 %v6495_v40  ;;  %v867_v2 = vld [vmem:[%s13717_s3 + $0x100] sm:$0xff]  ;;  %v6527_v5 = vpack.c.bf16 %v858_v62, %v854_v61  ;;  %v6503_v6 = vpack.c.bf16 %v872_v59, %v868_v58  ;;  %6526 = vmatpush1.bf16.msra.mxu1 %v6525_v60  ;;  %v876_v7 = vld [vmem:[%s13717_s3 + $0x148] sm:$0xff]  ;;  %v6529_v8 = vpack.c.bf16 %v857_v0, %v853_v63  ;;  %v862_v9 = vld [vmem:[%s13717_s3 + $0xd8] sm:$0xff] }
 0x3aa   :  { %v871_v3 = vld [vmem:[%s13717_s3 + $0x120] sm:$0xff]  ;;  %v866_v10 = vld [vmem:[%s13717_s3 + $0xf8] sm:$0xff]  ;;  %v880_v11 = vld [vmem:[%s13717_s3 + $0x168] sm:$0xff] }
 0x3ab   :  { %6528 = vmatprep.subr.bf16.mxu1 %v6527_v5  ;;  %v6531_v12 = vpack.c.bf16 %v866_v10, %v862_v9  ;;  %v861_v13 = vld [vmem:[%s13717_s3 + $0xd0] sm:$0xff]  ;;  %v6505_v15 = vpack.c.bf16 %v871_v3, %v867_v2  ;;  %v870_v16 = vld [vmem:[%s13717_s3 + $0x118] sm:$0xff]  ;;  %v6507_v18 = vpack.c.bf16 %v880_v11, %v876_v7  ;;  %v875_v19 = vld [vmem:[%s13717_s3 + $0x140] sm:$0xff] }
 0x3ac   :  { %6498 = vmatpush1.bf16.msra.mxu0 %v6497_v49  ;;  %v865_v14 = vld [vmem:[%s13717_s3 + $0xf0] sm:$0xff]  ;;  %v874_v17 = vld [vmem:[%s13717_s3 + $0x138] sm:$0xff]  ;;  %v879_v20 = vld [vmem:[%s13717_s3 + $0x160] sm:$0xff] }
 0x3ad   :  { %6500 = vmatprep.subr.bf16.mxu0 %v6499_v53  ;;  %6530 = vmatpush1.bf16.msra.mxu1 %v6529_v8  ;;  %v884_v21 = vld [vmem:[%s13717_s3 + $0x188] sm:$0xff]  ;;  %v6533_v22 = vpack.c.bf16 %v865_v14, %v861_v13  ;;  %v6535_v24 = vpack.c.bf16 %v874_v17, %v870_v16  ;;  %v869_v25 = vld [vmem:[%s13717_s3 + $0x110] sm:$0xff]  ;;  %v878_v27 = vld [vmem:[%s13717_s3 + $0x158] sm:$0xff]  ;;  %v6509_v29 = vpack.c.bf16 %v879_v20, %v875_v19 }
 0x3ae   :  { %v888_v23 = vld [vmem:[%s13717_s3 + $0x1a8] sm:$0xff]  ;;  %6532 = vmatprep.subr.bf16.mxu1 %v6531_v12  ;;  %v873_v26 = vld [vmem:[%s13717_s3 + $0x130] sm:$0xff]  ;;  %v882_v28 = vld [vmem:[%s13717_s3 + $0x178] sm:$0xff] }
 0x3af   :  { %v6511_v30 = vpack.c.bf16 %v888_v23, %v884_v21  ;;  %v883_v31 = vld [vmem:[%s13717_s3 + $0x180] sm:$0xff]  ;;  %v892_v33 = vld [vmem:[%s13717_s3 + $0x1c8] sm:$0xff]  ;;  %v6537_v34 = vpack.c.bf16 %v873_v26, %v869_v25  ;;  %v6539_v36 = vpack.c.bf16 %v882_v28, %v878_v27  ;;  %v877_v37 = vld [vmem:[%s13717_s3 + $0x150] sm:$0xff] }
 0x3b0   :  { %6502 = vmatpush1.bf16.msra.mxu0 %v6501_v1  ;;  %v887_v32 = vld [vmem:[%s13717_s3 + $0x1a0] sm:$0xff]  ;;  %v896_v35 = vld [vmem:[%s13717_s3 + $0x1e8] sm:$0xff]  ;;  %v881_v38 = vld [vmem:[%s13717_s3 + $0x170] sm:$0xff] }
 0x3b1   :  { %6504 = vmatprep.subr.bf16.mxu0 %v6503_v6  ;;  %6534 = vmatpush1.bf16.msra.mxu1 %v6533_v22  ;;  %v886_v39 = vld [vmem:[%s13717_s3 + $0x198] sm:$0xff]  ;;  %v6513_v41 = vpack.c.bf16 %v887_v32, %v883_v31  ;;  %v6515_v42 = vpack.c.bf16 %v896_v35, %v892_v33  ;;  %v891_v43 = vld [vmem:[%s13717_s3 + $0x1c0] sm:$0xff]  ;;  %v6541_v45 = vpack.c.bf16 %v881_v38, %v877_v37  ;;  %v885_v47 = vld [vmem:[%s13717_s3 + $0x190] sm:$0xff] }
 0x3b2   :  { %6536 = vmatprep.subr.bf16.mxu1 %v6535_v24  ;;  %v890_v40 = vld [vmem:[%s13717_s3 + $0x1b8] sm:$0xff]  ;;  %v895_v44 = vld [vmem:[%s13717_s3 + $0x1e0] sm:$0xff]  ;;  %v889_v48 = vld [vmem:[%s13717_s3 + $0x1b0] sm:$0xff] }
 0x3b3   :  { %v6543_v46 = vpack.c.bf16 %v890_v40, %v886_v39  ;;  %v894_v49 = vld [vmem:[%s13717_s3 + $0x1d8] sm:$0xff]  ;;  %v6517_v51 = vpack.c.bf16 %v895_v44, %v891_v43  ;;  %v6545_v52 = vpack.c.bf16 %v889_v48, %v885_v47  ;;  %v893_v54 = vld [vmem:[%s13717_s3 + $0x1d0] sm:$0xff]  ;;  %v829_v56 = vld [vmem:[%s13719_s5] sm:$0xff] }
 0x3b4   :  { %6506 = vmatpush1.bf16.msra.mxu0 %v6505_v15  ;;  %v898_v50 = vld [vmem:[%s13717_s3 + $0x1f8] sm:$0xff]  ;;  %v897_v55 = vld [vmem:[%s13717_s3 + $0x1f0] sm:$0xff]  ;;  %v831_v58 = vld [vmem:[%s13716_s2 + $0x60] sm:$0xff] }
 0x3b5   :  { %6508 = vmatprep.subr.bf16.mxu0 %v6507_v18  ;;  %6538 = vmatpush1.bf16.msra.mxu1 %v6537_v34  ;;  %v6547_v53 = vpack.c.bf16 %v898_v50, %v894_v49  ;;  %v6549_v57 = vpack.c.bf16 %v897_v55, %v893_v54  ;;  %v832_v59 = vld [vmem:[%s13716_s2 + $0x68] sm:$0xff]  ;;  %v834_v2 = vld [vmem:[%s13716_s2 + $0x78] sm:$0xff]  ;;  %v833_v7 = vld [vmem:[%s13716_s2 + $0x70] sm:$0xff] }
 0x3b6   :  { %6540 = vmatprep.subr.bf16.mxu1 %v6539_v36  ;;  %v830_v16 = vld [vmem:[%s13720_s6] sm:$0xff] }
 0x3b8   :  { %6510 = vmatpush1.bf16.msra.mxu0 %v6509_v29 }
 0x3b9   :  { %6512 = vmatprep.subr.bf16.mxu0 %v6511_v30  ;;  %6542 = vmatpush1.bf16.msra.mxu1 %v6541_v45 }
 0x3ba   :  { %6544 = vmatprep.subr.bf16.mxu1 %v6543_v46 }
 0x3bc   :  { %6514 = vmatpush1.bf16.msra.mxu0 %v6513_v41 }
 0x3bd   :  { %6516 = vmatprep.subr.bf16.mxu0 %v6515_v42  ;;  %6546 = vmatpush1.bf16.msra.mxu1 %v6545_v52 }
 0x3be   :  { %6548 = vmatprep.subr.bf16.mxu1 %v6547_v53 }
 0x3c0   :  { %6518 = vmatpush1.bf16.msra.mxu0 %v6517_v51 }
 0x3c1   :  { %6550 = vmatpush1.bf16.msra.mxu1 %v6549_v57 }
 0x3c3   :  { %964 = vmatmul.mubr.f32.vlgmr.msra.gmra.mrb[0].mxu0 %v829_v56 }
 0x3c4   :  { %1035 = vmatmul.mubr.f32.vlgmr.msra.gmra.mrb[0].mxu1 %v829_v56 }
 0x496   :  { %v965_v60 = vpop.f32.mrb[0].mxu0 }
 0x497   :  { %v1041_v61 = vadd.f32 %v965_v60, %v831_v58  ;;  %v967_v62 = vpop.f32.mrb[1].mxu0  ;;  %v1036_v3 = vpop.f32.mrb[0].mxu1 }
 0x498   :  { %v1042_v63 = vadd.f32 %v967_v62, %v832_v59  ;;  %v1038_v5 = vpop.f32.mrb[1].mxu1  ;;  %v1043_v9 = vadd.f32 %v1036_v3, %v833_v7 }
 0x499   :  { %v6171_v0 = vmul.f32 -1.442695, %v1041_v61  ;;  %v1044_v6 = vadd.f32 %v1038_v5, %v834_v2 }
 0x49a   :  { %v6172_v1 = vmul.f32 -1.442695, %v1042_v63 }
 0x49b   :  { %7908 = vpow2.f32 %v6171_v0  ;;  %v6173_v8 = vmul.f32 -1.442695, %v1044_v6 }
 0x49c   :  { %7910 = vpow2.f32 %v6172_v1 }
 0x49d   :  { %7912 = vpow2.f32 %v6173_v8 }
 0x49e   :  { %7914 = vtanh.f32 %v1043_v9 }
 0x4a5   :  { %v7909_v10 = vpop.eup %7908 }
 0x4a6   :  { %v7911_v11 = vpop.eup %7910  ;;  %v1048_v12 = vadd.f32 1.0, %v7909_v10 }
 0x4a7   :  { %v1054_v13 = vadd.f32 1.0, %v7911_v11  ;;  %v7913_v14 = vpop.eup %7912 }
 0x4a8   :  { %7916 = vrcp.f32 %v1048_v12  ;;  %v7915_v15 = vpop.eup %7914  ;;  %v1061_v18 = vadd.f32 1.0, %v7913_v14 }
 0x4a9   :  { %7918 = vrcp.f32 %v1054_v13 }
 0x4aa   :  { %7920 = vrcp.f32 %v1061_v18 }
 0x4b2   :  { %v7917_v17 = vpop.eup %7916 }
 0x4b3   :  { %v7919_v19 = vpop.eup %7918  ;;  %v1065_v20 = vmul.f32 %v7917_v17, %v7915_v15 }
 0x4b4   :  { %v1064_v21 = vmul.f32 %v7919_v19, %v830_v16  ;;  %v7921_v24 = vpop.eup %7920 }
 0x4b6   :  { %v1066_v22 = vadd.f32 %v1065_v20, %v1064_v21 }
 0x4b8   :  { %7922 = vtanh.f32 %v1066_v22  ;;  %v1073_v23 = vsel %vm6174_vm3, %v1066_v22, %v830_v16 }
 0x4b9   :  { %1074 = vst [vmem:[%s13720_s6] sm:$0xff] %v1073_v23 }
 0x4c2   :  { %v7923_v25 = vpop.eup %7922 }
 0x4c3   :  { %v1068_v26 = vmul.f32 %v7923_v25, %v7921_v24 }
 0x4c5   :  { %v1071_v27 = vsel %vm6174_vm3, %v1068_v26, %v829_v56  ;;  %v1075_v28 = vsel %vm6174_vm3, %v1068_v26, 0.0 }
 0x4c6   :  { %1072 = vst [vmem:[%s13719_s5] sm:$0xff] %v1071_v27  ;;  %1076 = vst [vmem:[%s13718_s4 + $0x18] sm:$0xff] %v1075_v28 }
 0x4c7 PF:  { %p6176_p10 = scmp.le.s32.totalorder %s8324_s26, 4 }
 0x4c8   :  { %v1089_v29 = vld [vmem:[%s13717_s3 + $0x8] sm:$0xff] (!%p6176_p10)  ;;  %v1088_v31 = vld [vmem:[%s13717_s3] sm:$0xff] (!%p6176_p10)  ;;  %v8266_v36 = vmov (!%p6176_p10), 0.0   ;;  %v1091_v48 = vld [vmem:[%s13717_s3 + $0x18] sm:$0xff] (!%p6176_p10)  ;;  %vm6180_vm4 = vcmp.gt.s32.totalorder (!%p6176_p10), %v8408_v4, 4 }
 0x4c9   :  { %1081 = sbr.rel (%p6176_p10) target bundleno = 1520 (0x5f0), region = 41  ;;  %v1093_v30 = vld [vmem:[%s13717_s3 + $0x28] sm:$0xff] (!%p6176_p10)  ;;  %v1092_v33 = vld [vmem:[%s13717_s3 + $0x20] sm:$0xff] (!%p6176_p10)  ;;  %1216 = vmatprep.mubr.f32.mxu0 (!%p6176_p10), %v8266_v36  ;;  %1287 = vmatprep.mubr.f32.mxu1 (!%p6176_p10), %v8266_v36  ;;  %v1095_v49 = vld [vmem:[%s13717_s3 + $0x38] sm:$0xff] (!%p6176_p10) }
 0x4ca   :  { %v6551_v32 = vpack.c.bf16 (!%p6176_p10), %v1093_v30, %v1089_v29  ;;  %v1097_v34 = vld [vmem:[%s13717_s3 + $0x48] sm:$0xff] (!%p6176_p10)  ;;  %v6553_v37 = vpack.c.bf16 (!%p6176_p10), %v1092_v33, %v1088_v31  ;;  %v1096_v39 = vld [vmem:[%s13717_s3 + $0x40] sm:$0xff] (!%p6176_p10)  ;;  %v6583_v51 = vpack.c.bf16 (!%p6176_p10), %v1095_v49, %v1091_v48  ;;  %v1090_v52 = vld [vmem:[%s13717_s3 + $0x10] sm:$0xff] (!%p6176_p10) }
 0x4cb   :  { %v1101_v35 = vld [vmem:[%s13717_s3 + $0x68] sm:$0xff] (!%p6176_p10)  ;;  %v1100_v40 = vld [vmem:[%s13717_s3 + $0x60] sm:$0xff] (!%p6176_p10)  ;;  %v1094_v53 = vld [vmem:[%s13717_s3 + $0x30] sm:$0xff] (!%p6176_p10) }
 0x4cc   :  { %v6555_v38 = vpack.c.bf16 (!%p6176_p10), %v1101_v35, %v1097_v34  ;;  %v1105_v41 = vld [vmem:[%s13717_s3 + $0x88] sm:$0xff] (!%p6176_p10)  ;;  %6552 = vmatprep.subr.bf16.mxu0 (!%p6176_p10), %v6551_v32  ;;  %v6557_v43 = vpack.c.bf16 (!%p6176_p10), %v1100_v40, %v1096_v39  ;;  %v1104_v44 = vld [vmem:[%s13717_s3 + $0x80] sm:$0xff] (!%p6176_p10)  ;;  %v6585_v54 = vpack.c.bf16 (!%p6176_p10), %v1094_v53, %v1090_v52  ;;  %6584 = vmatprep.subr.bf16.mxu1 (!%p6176_p10), %v6583_v51  ;;  %v1099_v56 = vld [vmem:[%s13717_s3 + $0x58] sm:$0xff] (!%p6176_p10) }
 0x4cd   :  { %v1109_v42 = vld [vmem:[%s13717_s3 + $0xa8] sm:$0xff] (!%p6176_p10)  ;;  %6554 = vmatpush1.bf16.msra.mxu0 (!%p6176_p10), %v6553_v37  ;;  %v1108_v45 = vld [vmem:[%s13717_s3 + $0xa0] sm:$0xff] (!%p6176_p10)  ;;  %v1103_v57 = vld [vmem:[%s13717_s3 + $0x78] sm:$0xff] (!%p6176_p10) }
 0x4ce   :  { %6556 = vmatprep.subr.bf16.mxu0 (!%p6176_p10), %v6555_v38  ;;  %v6559_v46 = vpack.c.bf16 (!%p6176_p10), %v1109_v42, %v1105_v41  ;;  %v1113_v47 = vld [vmem:[%s13717_s3 + $0xc8] sm:$0xff] (!%p6176_p10)  ;;  %v6561_v55 = vpack.c.bf16 (!%p6176_p10), %v1108_v45, %v1104_v44  ;;  %v1098_v58 = vld [vmem:[%s13717_s3 + $0x50] sm:$0xff] (!%p6176_p10)  ;;  %v1112_v60 = vld [vmem:[%s13717_s3 + $0xc0] sm:$0xff] (!%p6176_p10)  ;;  %6586 = vmatpush1.bf16.msra.mxu1 (!%p6176_p10), %v6585_v54  ;;  %v6587_v62 = vpack.c.bf16 (!%p6176_p10), %v1103_v57, %v1099_v56 }
 0x4cf   :  { %v1117_v50 = vld [vmem:[%s13717_s3 + $0xe8] sm:$0xff] (!%p6176_p10)  ;;  %v1116_v61 = vld [vmem:[%s13717_s3 + $0xe0] sm:$0xff] (!%p6176_p10)  ;;  %v1102_v63 = vld [vmem:[%s13717_s3 + $0x70] sm:$0xff] (!%p6176_p10) }
 0x4d0   :  { %v6563_v59 = vpack.c.bf16 %v1117_v50, %v1113_v47  ;;  %v1121_v0 = vld [vmem:[%s13717_s3 + $0x108] sm:$0xff]  ;;  %v6589_v2 = vpack.c.bf16 %v1102_v63, %v1098_v58  ;;  %v1107_v3 = vld [vmem:[%s13717_s3 + $0x98] sm:$0xff]  ;;  %6588 = vmatprep.subr.bf16.mxu1 %v6587_v62  ;;  %v1106_v6 = vld [vmem:[%s13717_s3 + $0x90] sm:$0xff]  ;;  %v6565_v8 = vpack.c.bf16 %v1116_v61, %v1112_v60 }
 0x4d1   :  { %6558 = vmatpush1.bf16.msra.mxu0 %v6557_v43  ;;  %v1125_v1 = vld [vmem:[%s13717_s3 + $0x128] sm:$0xff]  ;;  %v1111_v5 = vld [vmem:[%s13717_s3 + $0xb8] sm:$0xff]  ;;  %v1110_v7 = vld [vmem:[%s13717_s3 + $0xb0] sm:$0xff] }
 0x4d2   :  { %6560 = vmatprep.subr.bf16.mxu0 %v6559_v46  ;;  %v1120_v9 = vld [vmem:[%s13717_s3 + $0x100] sm:$0xff]  ;;  %v6591_v11 = vpack.c.bf16 %v1111_v5, %v1107_v3  ;;  %v6567_v12 = vpack.c.bf16 %v1125_v1, %v1121_v0  ;;  %6590 = vmatpush1.bf16.msra.mxu1 %v6589_v2  ;;  %v1129_v13 = vld [vmem:[%s13717_s3 + $0x148] sm:$0xff]  ;;  %v6593_v14 = vpack.c.bf16 %v1110_v7, %v1106_v6  ;;  %v1115_v15 = vld [vmem:[%s13717_s3 + $0xd8] sm:$0xff] }
 0x4d3   :  { %v1124_v10 = vld [vmem:[%s13717_s3 + $0x120] sm:$0xff]  ;;  %v1119_v16 = vld [vmem:[%s13717_s3 + $0xf8] sm:$0xff]  ;;  %v1133_v17 = vld [vmem:[%s13717_s3 + $0x168] sm:$0xff] }
 0x4d4   :  { %6592 = vmatprep.subr.bf16.mxu1 %v6591_v11  ;;  %v6595_v18 = vpack.c.bf16 %v1119_v16, %v1115_v15  ;;  %v1114_v19 = vld [vmem:[%s13717_s3 + $0xd0] sm:$0xff]  ;;  %v6569_v21 = vpack.c.bf16 %v1124_v10, %v1120_v9  ;;  %v1123_v22 = vld [vmem:[%s13717_s3 + $0x118] sm:$0xff]  ;;  %v6571_v24 = vpack.c.bf16 %v1133_v17, %v1129_v13  ;;  %v1128_v25 = vld [vmem:[%s13717_s3 + $0x140] sm:$0xff] }
 0x4d5   :  { %6562 = vmatpush1.bf16.msra.mxu0 %v6561_v55  ;;  %v1118_v20 = vld [vmem:[%s13717_s3 + $0xf0] sm:$0xff]  ;;  %v1127_v23 = vld [vmem:[%s13717_s3 + $0x138] sm:$0xff]  ;;  %v1132_v26 = vld [vmem:[%s13717_s3 + $0x160] sm:$0xff] }
 0x4d6   :  { %6564 = vmatprep.subr.bf16.mxu0 %v6563_v59  ;;  %6594 = vmatpush1.bf16.msra.mxu1 %v6593_v14  ;;  %v1137_v27 = vld [vmem:[%s13717_s3 + $0x188] sm:$0xff]  ;;  %v6597_v28 = vpack.c.bf16 %v1118_v20, %v1114_v19  ;;  %v6599_v30 = vpack.c.bf16 %v1127_v23, %v1123_v22  ;;  %v1122_v31 = vld [vmem:[%s13717_s3 + $0x110] sm:$0xff]  ;;  %v1131_v33 = vld [vmem:[%s13717_s3 + $0x158] sm:$0xff]  ;;  %v6573_v35 = vpack.c.bf16 %v1132_v26, %v1128_v25 }
 0x4d7   :  { %v1141_v29 = vld [vmem:[%s13717_s3 + $0x1a8] sm:$0xff]  ;;  %6596 = vmatprep.subr.bf16.mxu1 %v6595_v18  ;;  %v1126_v32 = vld [vmem:[%s13717_s3 + $0x130] sm:$0xff]  ;;  %v1135_v34 = vld [vmem:[%s13717_s3 + $0x178] sm:$0xff] }
 0x4d8   :  { %v6575_v36 = vpack.c.bf16 %v1141_v29, %v1137_v27  ;;  %v1136_v37 = vld [vmem:[%s13717_s3 + $0x180] sm:$0xff]  ;;  %v1145_v39 = vld [vmem:[%s13717_s3 + $0x1c8] sm:$0xff]  ;;  %v6601_v40 = vpack.c.bf16 %v1126_v32, %v1122_v31  ;;  %v6603_v42 = vpack.c.bf16 %v1135_v34, %v1131_v33  ;;  %v1130_v43 = vld [vmem:[%s13717_s3 + $0x150] sm:$0xff] }
 0x4d9   :  { %6566 = vmatpush1.bf16.msra.mxu0 %v6565_v8  ;;  %v1140_v38 = vld [vmem:[%s13717_s3 + $0x1a0] sm:$0xff]  ;;  %v1149_v41 = vld [vmem:[%s13717_s3 + $0x1e8] sm:$0xff]  ;;  %v1134_v44 = vld [vmem:[%s13717_s3 + $0x170] sm:$0xff] }
 0x4da   :  { %6568 = vmatprep.subr.bf16.mxu0 %v6567_v12  ;;  %6598 = vmatpush1.bf16.msra.mxu1 %v6597_v28  ;;  %v1139_v45 = vld [vmem:[%s13717_s3 + $0x198] sm:$0xff]  ;;  %v6577_v47 = vpack.c.bf16 %v1140_v38, %v1136_v37  ;;  %v6579_v48 = vpack.c.bf16 %v1149_v41, %v1145_v39  ;;  %v1144_v49 = vld [vmem:[%s13717_s3 + $0x1c0] sm:$0xff]  ;;  %v6605_v51 = vpack.c.bf16 %v1134_v44, %v1130_v43  ;;  %v1138_v53 = vld [vmem:[%s13717_s3 + $0x190] sm:$0xff] }
 0x4db   :  { %6600 = vmatprep.subr.bf16.mxu1 %v6599_v30  ;;  %v1143_v46 = vld [vmem:[%s13717_s3 + $0x1b8] sm:$0xff]  ;;  %v1148_v50 = vld [vmem:[%s13717_s3 + $0x1e0] sm:$0xff]  ;;  %v1142_v54 = vld [vmem:[%s13717_s3 + $0x1b0] sm:$0xff] }
 0x4dc   :  { %v6607_v52 = vpack.c.bf16 %v1143_v46, %v1139_v45  ;;  %v1147_v55 = vld [vmem:[%s13717_s3 + $0x1d8] sm:$0xff]  ;;  %v6581_v57 = vpack.c.bf16 %v1148_v50, %v1144_v49  ;;  %v6609_v58 = vpack.c.bf16 %v1142_v54, %v1138_v53  ;;  %v1146_v60 = vld [vmem:[%s13717_s3 + $0x1d0] sm:$0xff]  ;;  %v1082_v62 = vld [vmem:[%s13719_s5] sm:$0xff] }
 0x4dd   :  { %6570 = vmatpush1.bf16.msra.mxu0 %v6569_v21  ;;  %v1151_v56 = vld [vmem:[%s13717_s3 + $0x1f8] sm:$0xff]  ;;  %v1150_v61 = vld [vmem:[%s13717_s3 + $0x1f0] sm:$0xff]  ;;  %v1084_v0 = vld [vmem:[%s13716_s2 + $0x80] sm:$0xff] }
 0x4de   :  { %6572 = vmatprep.subr.bf16.mxu0 %v6571_v24  ;;  %6602 = vmatpush1.bf16.msra.mxu1 %v6601_v40  ;;  %v6611_v59 = vpack.c.bf16 %v1151_v56, %v1147_v55  ;;  %v6613_v63 = vpack.c.bf16 %v1150_v61, %v1146_v60  ;;  %v1085_v1 = vld [vmem:[%s13716_s2 + $0x88] sm:$0xff]  ;;  %v1087_v9 = vld [vmem:[%s13716_s2 + $0x98] sm:$0xff]  ;;  %v1086_v13 = vld [vmem:[%s13716_s2 + $0x90] sm:$0xff] }
 0x4df   :  { %6604 = vmatprep.subr.bf16.mxu1 %v6603_v42  ;;  %v1083_v22 = vld [vmem:[%s13720_s6] sm:$0xff] }
 0x4e1   :  { %6574 = vmatpush1.bf16.msra.mxu0 %v6573_v35 }
 0x4e2   :  { %6576 = vmatprep.subr.bf16.mxu0 %v6575_v36  ;;  %6606 = vmatpush1.bf16.msra.mxu1 %v6605_v51 }
 0x4e3   :  { %6608 = vmatprep.subr.bf16.mxu1 %v6607_v52 }
 0x4e5   :  { %6578 = vmatpush1.bf16.msra.mxu0 %v6577_v47 }
 0x4e6   :  { %6580 = vmatprep.subr.bf16.mxu0 %v6579_v48  ;;  %6610 = vmatpush1.bf16.msra.mxu1 %v6609_v58 }
 0x4e7   :  { %6612 = vmatprep.subr.bf16.mxu1 %v6611_v59 }
 0x4e9   :  { %6582 = vmatpush1.bf16.msra.mxu0 %v6581_v57 }
 0x4ea   :  { %6614 = vmatpush1.bf16.msra.mxu1 %v6613_v63 }
 0x4ec   :  { %1217 = vmatmul.mubr.f32.vlgmr.msra.gmra.mrb[0].mxu0 %v1082_v62 }
 0x4ed   :  { %1288 = vmatmul.mubr.f32.vlgmr.msra.gmra.mrb[0].mxu1 %v1082_v62 }
 0x5bf   :  { %v1218_v2 = vpop.f32.mrb[0].mxu0 }
 0x5c0   :  { %v1294_v3 = vadd.f32 %v1218_v2, %v1084_v0  ;;  %v1220_v5 = vpop.f32.mrb[1].mxu0  ;;  %v1289_v10 = vpop.f32.mrb[0].mxu1 }
 0x5c1   :  { %v1295_v6 = vadd.f32 %v1220_v5, %v1085_v1  ;;  %v1291_v11 = vpop.f32.mrb[1].mxu1  ;;  %v1296_v15 = vadd.f32 %v1289_v10, %v1086_v13 }
 0x5c2   :  { %v6177_v7 = vmul.f32 -1.442695, %v1294_v3  ;;  %v1297_v12 = vadd.f32 %v1291_v11, %v1087_v9 }
 0x5c3   :  { %v6178_v8 = vmul.f32 -1.442695, %v1295_v6 }
 0x5c4   :  { %7924 = vpow2.f32 %v6177_v7  ;;  %v6179_v14 = vmul.f32 -1.442695, %v1297_v12 }
 0x5c5   :  { %7926 = vpow2.f32 %v6178_v8 }
 0x5c6   :  { %7928 = vpow2.f32 %v6179_v14 }
 0x5c7   :  { %7930 = vtanh.f32 %v1296_v15 }
 0x5ce   :  { %v7925_v16 = vpop.eup %7924 }
 0x5cf   :  { %v7927_v17 = vpop.eup %7926  ;;  %v1301_v18 = vadd.f32 1.0, %v7925_v16 }
 0x5d0   :  { %v1307_v19 = vadd.f32 1.0, %v7927_v17  ;;  %v7929_v20 = vpop.eup %7928 }
 0x5d1   :  { %7932 = vrcp.f32 %v1301_v18  ;;  %v7931_v21 = vpop.eup %7930  ;;  %v1314_v24 = vadd.f32 1.0, %v7929_v20 }
 0x5d2   :  { %7934 = vrcp.f32 %v1307_v19 }
 0x5d3   :  { %7936 = vrcp.f32 %v1314_v24 }
 0x5db   :  { %v7933_v23 = vpop.eup %7932 }
 0x5dc   :  { %v7935_v25 = vpop.eup %7934  ;;  %v1318_v26 = vmul.f32 %v7933_v23, %v7931_v21 }
 0x5dd   :  { %v1317_v27 = vmul.f32 %v7935_v25, %v1083_v22  ;;  %v7937_v30 = vpop.eup %7936 }
 0x5df   :  { %v1319_v28 = vadd.f32 %v1318_v26, %v1317_v27 }
 0x5e1   :  { %7938 = vtanh.f32 %v1319_v28  ;;  %v1326_v29 = vsel %vm6180_vm4, %v1319_v28, %v1083_v22 }
 0x5e2   :  { %1327 = vst [vmem:[%s13720_s6] sm:$0xff] %v1326_v29 }
 0x5eb   :  { %v7939_v31 = vpop.eup %7938 }
 0x5ec   :  { %v1321_v32 = vmul.f32 %v7939_v31, %v7937_v30 }
 0x5ee   :  { %v1324_v33 = vsel %vm6180_vm4, %v1321_v32, %v1082_v62  ;;  %v1328_v34 = vsel %vm6180_vm4, %v1321_v32, 0.0 }
 0x5ef   :  { %1325 = vst [vmem:[%s13719_s5] sm:$0xff] %v1324_v33  ;;  %1329 = vst [vmem:[%s13718_s4 + $0x20] sm:$0xff] %v1328_v34 }
 0x5f0 PF:  { %p6182_p11 = scmp.le.s32.totalorder %s8324_s26, 5 }
 0x5f1   :  { %v1342_v35 = vld [vmem:[%s13717_s3 + $0x8] sm:$0xff] (!%p6182_p11)  ;;  %v1341_v37 = vld [vmem:[%s13717_s3] sm:$0xff] (!%p6182_p11)  ;;  %v8267_v42 = vmov (!%p6182_p11), 0.0   ;;  %v1344_v54 = vld [vmem:[%s13717_s3 + $0x18] sm:$0xff] (!%p6182_p11)  ;;  %vm6186_vm5 = vcmp.gt.s32.totalorder (!%p6182_p11), %v8408_v4, 5 }
 0x5f2   :  { %1334 = sbr.rel (%p6182_p11) target bundleno = 1817 (0x719), region = 45  ;;  %v1346_v36 = vld [vmem:[%s13717_s3 + $0x28] sm:$0xff] (!%p6182_p11)  ;;  %v1345_v39 = vld [vmem:[%s13717_s3 + $0x20] sm:$0xff] (!%p6182_p11)  ;;  %1469 = vmatprep.mubr.f32.mxu0 (!%p6182_p11), %v8267_v42  ;;  %1540 = vmatprep.mubr.f32.mxu1 (!%p6182_p11), %v8267_v42  ;;  %v1348_v55 = vld [vmem:[%s13717_s3 + $0x38] sm:$0xff] (!%p6182_p11) }
 0x5f3   :  { %v6615_v38 = vpack.c.bf16 (!%p6182_p11), %v1346_v36, %v1342_v35  ;;  %v1350_v40 = vld [vmem:[%s13717_s3 + $0x48] sm:$0xff] (!%p6182_p11)  ;;  %v6617_v43 = vpack.c.bf16 (!%p6182_p11), %v1345_v39, %v1341_v37  ;;  %v1349_v45 = vld [vmem:[%s13717_s3 + $0x40] sm:$0xff] (!%p6182_p11)  ;;  %v6647_v57 = vpack.c.bf16 (!%p6182_p11), %v1348_v55, %v1344_v54  ;;  %v1343_v58 = vld [vmem:[%s13717_s3 + $0x10] sm:$0xff] (!%p6182_p11) }
 0x5f4   :  { %v1354_v41 = vld [vmem:[%s13717_s3 + $0x68] sm:$0xff] (!%p6182_p11)  ;;  %v1353_v46 = vld [vmem:[%s13717_s3 + $0x60] sm:$0xff] (!%p6182_p11)  ;;  %v1347_v59 = vld [vmem:[%s13717_s3 + $0x30] sm:$0xff] (!%p6182_p11) }
 0x5f5   :  { %v6619_v44 = vpack.c.bf16 (!%p6182_p11), %v1354_v41, %v1350_v40  ;;  %v1358_v47 = vld [vmem:[%s13717_s3 + $0x88] sm:$0xff] (!%p6182_p11)  ;;  %6616 = vmatprep.subr.bf16.mxu0 (!%p6182_p11), %v6615_v38  ;;  %v6621_v49 = vpack.c.bf16 (!%p6182_p11), %v1353_v46, %v1349_v45  ;;  %v1357_v50 = vld [vmem:[%s13717_s3 + $0x80] sm:$0xff] (!%p6182_p11)  ;;  %v6649_v60 = vpack.c.bf16 (!%p6182_p11), %v1347_v59, %v1343_v58  ;;  %6648 = vmatprep.subr.bf16.mxu1 (!%p6182_p11), %v6647_v57  ;;  %v1352_v62 = vld [vmem:[%s13717_s3 + $0x58] sm:$0xff] (!%p6182_p11) }
 0x5f6   :  { %v1362_v48 = vld [vmem:[%s13717_s3 + $0xa8] sm:$0xff] (!%p6182_p11)  ;;  %6618 = vmatpush1.bf16.msra.mxu0 (!%p6182_p11), %v6617_v43  ;;  %v1361_v51 = vld [vmem:[%s13717_s3 + $0xa0] sm:$0xff] (!%p6182_p11)  ;;  %v1356_v63 = vld [vmem:[%s13717_s3 + $0x78] sm:$0xff] (!%p6182_p11) }
 0x5f7   :  { %6620 = vmatprep.subr.bf16.mxu0 (!%p6182_p11), %v6619_v44  ;;  %v6623_v52 = vpack.c.bf16 (!%p6182_p11), %v1362_v48, %v1358_v47  ;;  %v1366_v53 = vld [vmem:[%s13717_s3 + $0xc8] sm:$0xff] (!%p6182_p11)  ;;  %v6625_v61 = vpack.c.bf16 (!%p6182_p11), %v1361_v51, %v1357_v50  ;;  %v1351_v0 = vld [vmem:[%s13717_s3 + $0x50] sm:$0xff] (!%p6182_p11)  ;;  %v1365_v2 = vld [vmem:[%s13717_s3 + $0xc0] sm:$0xff] (!%p6182_p11)  ;;  %6650 = vmatpush1.bf16.msra.mxu1 (!%p6182_p11), %v6649_v60  ;;  %v6651_v5 = vpack.c.bf16 (!%p6182_p11), %v1356_v63, %v1352_v62 }
 0x5f8   :  { %v1370_v56 = vld [vmem:[%s13717_s3 + $0xe8] sm:$0xff] (!%p6182_p11)  ;;  %v1369_v3 = vld [vmem:[%s13717_s3 + $0xe0] sm:$0xff] (!%p6182_p11)  ;;  %v1355_v6 = vld [vmem:[%s13717_s3 + $0x70] sm:$0xff] (!%p6182_p11) }
 0x5f9   :  { %v6627_v1 = vpack.c.bf16 %v1370_v56, %v1366_v53  ;;  %v1374_v7 = vld [vmem:[%s13717_s3 + $0x108] sm:$0xff]  ;;  %v6653_v9 = vpack.c.bf16 %v1355_v6, %v1351_v0  ;;  %v1360_v10 = vld [vmem:[%s13717_s3 + $0x98] sm:$0xff]  ;;  %6652 = vmatprep.subr.bf16.mxu1 %v6651_v5  ;;  %v1359_v12 = vld [vmem:[%s13717_s3 + $0x90] sm:$0xff]  ;;  %v6629_v14 = vpack.c.bf16 %v1369_v3, %v1365_v2 }
 0x5fa   :  { %6622 = vmatpush1.bf16.msra.mxu0 %v6621_v49  ;;  %v1378_v8 = vld [vmem:[%s13717_s3 + $0x128] sm:$0xff]  ;;  %v1364_v11 = vld [vmem:[%s13717_s3 + $0xb8] sm:$0xff]  ;;  %v1363_v13 = vld [vmem:[%s13717_s3 + $0xb0] sm:$0xff] }
 0x5fb   :  { %6624 = vmatprep.subr.bf16.mxu0 %v6623_v52  ;;  %v1373_v15 = vld [vmem:[%s13717_s3 + $0x100] sm:$0xff]  ;;  %v6655_v17 = vpack.c.bf16 %v1364_v11, %v1360_v10  ;;  %v6631_v18 = vpack.c.bf16 %v1378_v8, %v1374_v7  ;;  %6654 = vmatpush1.bf16.msra.mxu1 %v6653_v9  ;;  %v1382_v19 = vld [vmem:[%s13717_s3 + $0x148] sm:$0xff]  ;;  %v6657_v20 = vpack.c.bf16 %v1363_v13, %v1359_v12  ;;  %v1368_v21 = vld [vmem:[%s13717_s3 + $0xd8] sm:$0xff] }
 0x5fc   :  { %v1377_v16 = vld [vmem:[%s13717_s3 + $0x120] sm:$0xff]  ;;  %v1372_v22 = vld [vmem:[%s13717_s3 + $0xf8] sm:$0xff]  ;;  %v1386_v23 = vld [vmem:[%s13717_s3 + $0x168] sm:$0xff] }
 0x5fd   :  { %6656 = vmatprep.subr.bf16.mxu1 %v6655_v17  ;;  %v6659_v24 = vpack.c.bf16 %v1372_v22, %v1368_v21  ;;  %v1367_v25 = vld [vmem:[%s13717_s3 + $0xd0] sm:$0xff]  ;;  %v6633_v27 = vpack.c.bf16 %v1377_v16, %v1373_v15  ;;  %v1376_v28 = vld [vmem:[%s13717_s3 + $0x118] sm:$0xff]  ;;  %v6635_v30 = vpack.c.bf16 %v1386_v23, %v1382_v19  ;;  %v1381_v31 = vld [vmem:[%s13717_s3 + $0x140] sm:$0xff] }
 0x5fe   :  { %6626 = vmatpush1.bf16.msra.mxu0 %v6625_v61  ;;  %v1371_v26 = vld [vmem:[%s13717_s3 + $0xf0] sm:$0xff]  ;;  %v1380_v29 = vld [vmem:[%s13717_s3 + $0x138] sm:$0xff]  ;;  %v1385_v32 = vld [vmem:[%s13717_s3 + $0x160] sm:$0xff] }
 0x5ff   :  { %6628 = vmatprep.subr.bf16.mxu0 %v6627_v1  ;;  %6658 = vmatpush1.bf16.msra.mxu1 %v6657_v20  ;;  %v1390_v33 = vld [vmem:[%s13717_s3 + $0x188] sm:$0xff]  ;;  %v6661_v34 = vpack.c.bf16 %v1371_v26, %v1367_v25  ;;  %v6663_v36 = vpack.c.bf16 %v1380_v29, %v1376_v28  ;;  %v1375_v37 = vld [vmem:[%s13717_s3 + $0x110] sm:$0xff]  ;;  %v1384_v39 = vld [vmem:[%s13717_s3 + $0x158] sm:$0xff]  ;;  %v6637_v41 = vpack.c.bf16 %v1385_v32, %v1381_v31 }
 0x600   :  { %v1394_v35 = vld [vmem:[%s13717_s3 + $0x1a8] sm:$0xff]  ;;  %6660 = vmatprep.subr.bf16.mxu1 %v6659_v24  ;;  %v1379_v38 = vld [vmem:[%s13717_s3 + $0x130] sm:$0xff]  ;;  %v1388_v40 = vld [vmem:[%s13717_s3 + $0x178] sm:$0xff] }
 0x601   :  { %v6639_v42 = vpack.c.bf16 %v1394_v35, %v1390_v33  ;;  %v1389_v43 = vld [vmem:[%s13717_s3 + $0x180] sm:$0xff]  ;;  %v1398_v45 = vld [vmem:[%s13717_s3 + $0x1c8] sm:$0xff]  ;;  %v6665_v46 = vpack.c.bf16 %v1379_v38, %v1375_v37  ;;  %v6667_v48 = vpack.c.bf16 %v1388_v40, %v1384_v39  ;;  %v1383_v49 = vld [vmem:[%s13717_s3 + $0x150] sm:$0xff] }
 0x602   :  { %6630 = vmatpush1.bf16.msra.mxu0 %v6629_v14  ;;  %v1393_v44 = vld [vmem:[%s13717_s3 + $0x1a0] sm:$0xff]  ;;  %v1402_v47 = vld [vmem:[%s13717_s3 + $0x1e8] sm:$0xff]  ;;  %v1387_v50 = vld [vmem:[%s13717_s3 + $0x170] sm:$0xff] }
 0x603   :  { %6632 = vmatprep.subr.bf16.mxu0 %v6631_v18  ;;  %6662 = vmatpush1.bf16.msra.mxu1 %v6661_v34  ;;  %v1392_v51 = vld [vmem:[%s13717_s3 + $0x198] sm:$0xff]  ;;  %v6641_v53 = vpack.c.bf16 %v1393_v44, %v1389_v43  ;;  %v6643_v54 = vpack.c.bf16 %v1402_v47, %v1398_v45  ;;  %v1397_v55 = vld [vmem:[%s13717_s3 + $0x1c0] sm:$0xff]  ;;  %v6669_v57 = vpack.c.bf16 %v1387_v50, %v1383_v49  ;;  %v1391_v59 = vld [vmem:[%s13717_s3 + $0x190] sm:$0xff] }
 0x604   :  { %6664 = vmatprep.subr.bf16.mxu1 %v6663_v36  ;;  %v1396_v52 = vld [vmem:[%s13717_s3 + $0x1b8] sm:$0xff]  ;;  %v1401_v56 = vld [vmem:[%s13717_s3 + $0x1e0] sm:$0xff]  ;;  %v1395_v60 = vld [vmem:[%s13717_s3 + $0x1b0] sm:$0xff] }
 0x605   :  { %v6671_v58 = vpack.c.bf16 %v1396_v52, %v1392_v51  ;;  %v1400_v61 = vld [vmem:[%s13717_s3 + $0x1d8] sm:$0xff]  ;;  %v6645_v63 = vpack.c.bf16 %v1401_v56, %v1397_v55  ;;  %v6673_v0 = vpack.c.bf16 %v1395_v60, %v1391_v59  ;;  %v1399_v2 = vld [vmem:[%s13717_s3 + $0x1d0] sm:$0xff]  ;;  %v1335_v5 = vld [vmem:[%s13719_s5] sm:$0xff] }
 0x606   :  { %6634 = vmatpush1.bf16.msra.mxu0 %v6633_v27  ;;  %v1404_v62 = vld [vmem:[%s13717_s3 + $0x1f8] sm:$0xff]  ;;  %v1403_v3 = vld [vmem:[%s13717_s3 + $0x1f0] sm:$0xff]  ;;  %v1337_v7 = vld [vmem:[%s13716_s2 + $0xa0] sm:$0xff] }
 0x607   :  { %6636 = vmatprep.subr.bf16.mxu0 %v6635_v30  ;;  %6666 = vmatpush1.bf16.msra.mxu1 %v6665_v46  ;;  %v6675_v1 = vpack.c.bf16 %v1404_v62, %v1400_v61  ;;  %v6677_v6 = vpack.c.bf16 %v1403_v3, %v1399_v2  ;;  %v1338_v8 = vld [vmem:[%s13716_s2 + $0xa8] sm:$0xff]  ;;  %v1340_v15 = vld [vmem:[%s13716_s2 + $0xb8] sm:$0xff]  ;;  %v1339_v19 = vld [vmem:[%s13716_s2 + $0xb0] sm:$0xff] }
 0x608   :  { %6668 = vmatprep.subr.bf16.mxu1 %v6667_v48  ;;  %v1336_v28 = vld [vmem:[%s13720_s6] sm:$0xff] }
 0x60a   :  { %6638 = vmatpush1.bf16.msra.mxu0 %v6637_v41 }
 0x60b   :  { %6640 = vmatprep.subr.bf16.mxu0 %v6639_v42  ;;  %6670 = vmatpush1.bf16.msra.mxu1 %v6669_v57 }
 0x60c   :  { %6672 = vmatprep.subr.bf16.mxu1 %v6671_v58 }
 0x60e   :  { %6642 = vmatpush1.bf16.msra.mxu0 %v6641_v53 }
 0x60f   :  { %6644 = vmatprep.subr.bf16.mxu0 %v6643_v54  ;;  %6674 = vmatpush1.bf16.msra.mxu1 %v6673_v0 }
 0x610   :  { %6676 = vmatprep.subr.bf16.mxu1 %v6675_v1 }
 0x612   :  { %6646 = vmatpush1.bf16.msra.mxu0 %v6645_v63 }
 0x613   :  { %6678 = vmatpush1.bf16.msra.mxu1 %v6677_v6 }
 0x615   :  { %1470 = vmatmul.mubr.f32.vlgmr.msra.gmra.mrb[0].mxu0 %v1335_v5 }
 0x616   :  { %1541 = vmatmul.mubr.f32.vlgmr.msra.gmra.mrb[0].mxu1 %v1335_v5 }
 0x6e8   :  { %v1471_v9 = vpop.f32.mrb[0].mxu0 }
 0x6e9   :  { %v1547_v10 = vadd.f32 %v1471_v9, %v1337_v7  ;;  %v1473_v11 = vpop.f32.mrb[1].mxu0  ;;  %v1542_v16 = vpop.f32.mrb[0].mxu1 }
 0x6ea   :  { %v1548_v12 = vadd.f32 %v1473_v11, %v1338_v8  ;;  %v1544_v17 = vpop.f32.mrb[1].mxu1  ;;  %v1549_v21 = vadd.f32 %v1542_v16, %v1339_v19 }
 0x6eb   :  { %v6183_v13 = vmul.f32 -1.442695, %v1547_v10  ;;  %v1550_v18 = vadd.f32 %v1544_v17, %v1340_v15 }
 0x6ec   :  { %v6184_v14 = vmul.f32 -1.442695, %v1548_v12 }
 0x6ed   :  { %7940 = vpow2.f32 %v6183_v13  ;;  %v6185_v20 = vmul.f32 -1.442695, %v1550_v18 }
 0x6ee   :  { %7942 = vpow2.f32 %v6184_v14 }
 0x6ef   :  { %7944 = vpow2.f32 %v6185_v20 }
 0x6f0   :  { %7946 = vtanh.f32 %v1549_v21 }
 0x6f7   :  { %v7941_v22 = vpop.eup %7940 }
 0x6f8   :  { %v7943_v23 = vpop.eup %7942  ;;  %v1554_v24 = vadd.f32 1.0, %v7941_v22 }
 0x6f9   :  { %v1560_v25 = vadd.f32 1.0, %v7943_v23  ;;  %v7945_v26 = vpop.eup %7944 }
 0x6fa   :  { %7948 = vrcp.f32 %v1554_v24  ;;  %v7947_v27 = vpop.eup %7946  ;;  %v1567_v30 = vadd.f32 1.0, %v7945_v26 }
 0x6fb   :  { %7950 = vrcp.f32 %v1560_v25 }
 0x6fc   :  { %7952 = vrcp.f32 %v1567_v30 }
 0x704   :  { %v7949_v29 = vpop.eup %7948 }
 0x705   :  { %v7951_v31 = vpop.eup %7950  ;;  %v1571_v32 = vmul.f32 %v7949_v29, %v7947_v27 }
 0x706   :  { %v1570_v33 = vmul.f32 %v7951_v31, %v1336_v28  ;;  %v7953_v36 = vpop.eup %7952 }
 0x708   :  { %v1572_v34 = vadd.f32 %v1571_v32, %v1570_v33 }
 0x70a   :  { %7954 = vtanh.f32 %v1572_v34  ;;  %v1579_v35 = vsel %vm6186_vm5, %v1572_v34, %v1336_v28 }
 0x70b   :  { %1580 = vst [vmem:[%s13720_s6] sm:$0xff] %v1579_v35 }
 0x714   :  { %v7955_v37 = vpop.eup %7954 }
 0x715   :  { %v1574_v38 = vmul.f32 %v7955_v37, %v7953_v36 }
 0x717   :  { %v1577_v39 = vsel %vm6186_vm5, %v1574_v38, %v1335_v5  ;;  %v1581_v40 = vsel %vm6186_vm5, %v1574_v38, 0.0 }
 0x718   :  { %1578 = vst [vmem:[%s13719_s5] sm:$0xff] %v1577_v39  ;;  %1582 = vst [vmem:[%s13718_s4 + $0x28] sm:$0xff] %v1581_v40 }
 0x719 PF:  { %p6188_p12 = scmp.le.s32.totalorder %s8324_s26, 6 }
 0x71a   :  { %v1595_v41 = vld [vmem:[%s13717_s3 + $0x8] sm:$0xff] (!%p6188_p12)  ;;  %v1594_v43 = vld [vmem:[%s13717_s3] sm:$0xff] (!%p6188_p12)  ;;  %v8268_v48 = vmov (!%p6188_p12), 0.0   ;;  %v1597_v60 = vld [vmem:[%s13717_s3 + $0x18] sm:$0xff] (!%p6188_p12)  ;;  %vm6192_vm6 = vcmp.gt.s32.totalorder (!%p6188_p12), %v8408_v4, 6 }
 0x71b   :  { %1587 = sbr.rel (%p6188_p12) target bundleno = 2114 (0x842), region = 49  ;;  %v1599_v42 = vld [vmem:[%s13717_s3 + $0x28] sm:$0xff] (!%p6188_p12)  ;;  %v1598_v45 = vld [vmem:[%s13717_s3 + $0x20] sm:$0xff] (!%p6188_p12)  ;;  %1722 = vmatprep.mubr.f32.mxu0 (!%p6188_p12), %v8268_v48  ;;  %1793 = vmatprep.mubr.f32.mxu1 (!%p6188_p12), %v8268_v48  ;;  %v1601_v61 = vld [vmem:[%s13717_s3 + $0x38] sm:$0xff] (!%p6188_p12) }
 0x71c   :  { %v6679_v44 = vpack.c.bf16 (!%p6188_p12), %v1599_v42, %v1595_v41  ;;  %v1603_v46 = vld [vmem:[%s13717_s3 + $0x48] sm:$0xff] (!%p6188_p12)  ;;  %v6681_v49 = vpack.c.bf16 (!%p6188_p12), %v1598_v45, %v1594_v43  ;;  %v1602_v51 = vld [vmem:[%s13717_s3 + $0x40] sm:$0xff] (!%p6188_p12)  ;;  %v6711_v63 = vpack.c.bf16 (!%p6188_p12), %v1601_v61, %v1597_v60  ;;  %v1596_v0 = vld [vmem:[%s13717_s3 + $0x10] sm:$0xff] (!%p6188_p12) }
 0x71d   :  { %v1607_v47 = vld [vmem:[%s13717_s3 + $0x68] sm:$0xff] (!%p6188_p12)  ;;  %v1606_v52 = vld [vmem:[%s13717_s3 + $0x60] sm:$0xff] (!%p6188_p12)  ;;  %v1600_v1 = vld [vmem:[%s13717_s3 + $0x30] sm:$0xff] (!%p6188_p12) }
 0x71e   :  { %v6683_v50 = vpack.c.bf16 (!%p6188_p12), %v1607_v47, %v1603_v46  ;;  %v1611_v53 = vld [vmem:[%s13717_s3 + $0x88] sm:$0xff] (!%p6188_p12)  ;;  %6680 = vmatprep.subr.bf16.mxu0 (!%p6188_p12), %v6679_v44  ;;  %v6685_v55 = vpack.c.bf16 (!%p6188_p12), %v1606_v52, %v1602_v51  ;;  %v1610_v56 = vld [vmem:[%s13717_s3 + $0x80] sm:$0xff] (!%p6188_p12)  ;;  %v6713_v2 = vpack.c.bf16 (!%p6188_p12), %v1600_v1, %v1596_v0  ;;  %6712 = vmatprep.subr.bf16.mxu1 (!%p6188_p12), %v6711_v63  ;;  %v1605_v5 = vld [vmem:[%s13717_s3 + $0x58] sm:$0xff] (!%p6188_p12) }
 0x71f   :  { %v1615_v54 = vld [vmem:[%s13717_s3 + $0xa8] sm:$0xff] (!%p6188_p12)  ;;  %6682 = vmatpush1.bf16.msra.mxu0 (!%p6188_p12), %v6681_v49  ;;  %v1614_v57 = vld [vmem:[%s13717_s3 + $0xa0] sm:$0xff] (!%p6188_p12)  ;;  %v1609_v6 = vld [vmem:[%s13717_s3 + $0x78] sm:$0xff] (!%p6188_p12) }
 0x720   :  { %6684 = vmatprep.subr.bf16.mxu0 (!%p6188_p12), %v6683_v50  ;;  %v6687_v58 = vpack.c.bf16 (!%p6188_p12), %v1615_v54, %v1611_v53  ;;  %v1619_v59 = vld [vmem:[%s13717_s3 + $0xc8] sm:$0xff] (!%p6188_p12)  ;;  %v6689_v3 = vpack.c.bf16 (!%p6188_p12), %v1614_v57, %v1610_v56  ;;  %v1604_v7 = vld [vmem:[%s13717_s3 + $0x50] sm:$0xff] (!%p6188_p12)  ;;  %v1618_v9 = vld [vmem:[%s13717_s3 + $0xc0] sm:$0xff] (!%p6188_p12)  ;;  %6714 = vmatpush1.bf16.msra.mxu1 (!%p6188_p12), %v6713_v2  ;;  %v6715_v11 = vpack.c.bf16 (!%p6188_p12), %v1609_v6, %v1605_v5 }
 0x721   :  { %v1623_v62 = vld [vmem:[%s13717_s3 + $0xe8] sm:$0xff] (!%p6188_p12)  ;;  %v1622_v10 = vld [vmem:[%s13717_s3 + $0xe0] sm:$0xff] (!%p6188_p12)  ;;  %v1608_v12 = vld [vmem:[%s13717_s3 + $0x70] sm:$0xff] (!%p6188_p12) }
 0x722   :  { %v6691_v8 = vpack.c.bf16 %v1623_v62, %v1619_v59  ;;  %v1627_v13 = vld [vmem:[%s13717_s3 + $0x108] sm:$0xff]  ;;  %v6717_v15 = vpack.c.bf16 %v1608_v12, %v1604_v7  ;;  %v1613_v16 = vld [vmem:[%s13717_s3 + $0x98] sm:$0xff]  ;;  %6716 = vmatprep.subr.bf16.mxu1 %v6715_v11  ;;  %v1612_v18 = vld [vmem:[%s13717_s3 + $0x90] sm:$0xff]  ;;  %v6693_v20 = vpack.c.bf16 %v1622_v10, %v1618_v9 }
 0x723   :  { %6686 = vmatpush1.bf16.msra.mxu0 %v6685_v55  ;;  %v1631_v14 = vld [vmem:[%s13717_s3 + $0x128] sm:$0xff]  ;;  %v1617_v17 = vld [vmem:[%s13717_s3 + $0xb8] sm:$0xff]  ;;  %v1616_v19 = vld [vmem:[%s13717_s3 + $0xb0] sm:$0xff] }
 0x724   :  { %6688 = vmatprep.subr.bf16.mxu0 %v6687_v58  ;;  %v1626_v21 = vld [vmem:[%s13717_s3 + $0x100] sm:$0xff]  ;;  %v6719_v23 = vpack.c.bf16 %v1617_v17, %v1613_v16  ;;  %v6695_v24 = vpack.c.bf16 %v1631_v14, %v1627_v13  ;;  %6718 = vmatpush1.bf16.msra.mxu1 %v6717_v15  ;;  %v1635_v25 = vld [vmem:[%s13717_s3 + $0x148] sm:$0xff]  ;;  %v6721_v26 = vpack.c.bf16 %v1616_v19, %v1612_v18  ;;  %v1621_v27 = vld [vmem:[%s13717_s3 + $0xd8] sm:$0xff] }
 0x725   :  { %v1630_v22 = vld [vmem:[%s13717_s3 + $0x120] sm:$0xff]  ;;  %v1625_v28 = vld [vmem:[%s13717_s3 + $0xf8] sm:$0xff]  ;;  %v1639_v29 = vld [vmem:[%s13717_s3 + $0x168] sm:$0xff] }
 0x726   :  { %6720 = vmatprep.subr.bf16.mxu1 %v6719_v23  ;;  %v6723_v30 = vpack.c.bf16 %v1625_v28, %v1621_v27  ;;  %v1620_v31 = vld [vmem:[%s13717_s3 + $0xd0] sm:$0xff]  ;;  %v6697_v33 = vpack.c.bf16 %v1630_v22, %v1626_v21  ;;  %v1629_v34 = vld [vmem:[%s13717_s3 + $0x118] sm:$0xff]  ;;  %v6699_v36 = vpack.c.bf16 %v1639_v29, %v1635_v25  ;;  %v1634_v37 = vld [vmem:[%s13717_s3 + $0x140] sm:$0xff] }
 0x727   :  { %6690 = vmatpush1.bf16.msra.mxu0 %v6689_v3  ;;  %v1624_v32 = vld [vmem:[%s13717_s3 + $0xf0] sm:$0xff]  ;;  %v1633_v35 = vld [vmem:[%s13717_s3 + $0x138] sm:$0xff]  ;;  %v1638_v38 = vld [vmem:[%s13717_s3 + $0x160] sm:$0xff] }
 0x728   :  { %6692 = vmatprep.subr.bf16.mxu0 %v6691_v8  ;;  %6722 = vmatpush1.bf16.msra.mxu1 %v6721_v26  ;;  %v1643_v39 = vld [vmem:[%s13717_s3 + $0x188] sm:$0xff]  ;;  %v6725_v40 = vpack.c.bf16 %v1624_v32, %v1620_v31  ;;  %v6727_v42 = vpack.c.bf16 %v1633_v35, %v1629_v34  ;;  %v1628_v43 = vld [vmem:[%s13717_s3 + $0x110] sm:$0xff]  ;;  %v1637_v45 = vld [vmem:[%s13717_s3 + $0x158] sm:$0xff]  ;;  %v6701_v47 = vpack.c.bf16 %v1638_v38, %v1634_v37 }
 0x729   :  { %v1647_v41 = vld [vmem:[%s13717_s3 + $0x1a8] sm:$0xff]  ;;  %6724 = vmatprep.subr.bf16.mxu1 %v6723_v30  ;;  %v1632_v44 = vld [vmem:[%s13717_s3 + $0x130] sm:$0xff]  ;;  %v1641_v46 = vld [vmem:[%s13717_s3 + $0x178] sm:$0xff] }
 0x72a   :  { %v6703_v48 = vpack.c.bf16 %v1647_v41, %v1643_v39  ;;  %v1642_v49 = vld [vmem:[%s13717_s3 + $0x180] sm:$0xff]  ;;  %v1651_v51 = vld [vmem:[%s13717_s3 + $0x1c8] sm:$0xff]  ;;  %v6729_v52 = vpack.c.bf16 %v1632_v44, %v1628_v43  ;;  %v6731_v54 = vpack.c.bf16 %v1641_v46, %v1637_v45  ;;  %v1636_v55 = vld [vmem:[%s13717_s3 + $0x150] sm:$0xff] }
 0x72b   :  { %6694 = vmatpush1.bf16.msra.mxu0 %v6693_v20  ;;  %v1646_v50 = vld [vmem:[%s13717_s3 + $0x1a0] sm:$0xff]  ;;  %v1655_v53 = vld [vmem:[%s13717_s3 + $0x1e8] sm:$0xff]  ;;  %v1640_v56 = vld [vmem:[%s13717_s3 + $0x170] sm:$0xff] }
 0x72c   :  { %6696 = vmatprep.subr.bf16.mxu0 %v6695_v24  ;;  %6726 = vmatpush1.bf16.msra.mxu1 %v6725_v40  ;;  %v1645_v57 = vld [vmem:[%s13717_s3 + $0x198] sm:$0xff]  ;;  %v6705_v59 = vpack.c.bf16 %v1646_v50, %v1642_v49  ;;  %v6707_v60 = vpack.c.bf16 %v1655_v53, %v1651_v51  ;;  %v1650_v61 = vld [vmem:[%s13717_s3 + $0x1c0] sm:$0xff]  ;;  %v6733_v63 = vpack.c.bf16 %v1640_v56, %v1636_v55  ;;  %v1644_v1 = vld [vmem:[%s13717_s3 + $0x190] sm:$0xff] }
 0x72d   :  { %6728 = vmatprep.subr.bf16.mxu1 %v6727_v42  ;;  %v1649_v58 = vld [vmem:[%s13717_s3 + $0x1b8] sm:$0xff]  ;;  %v1654_v62 = vld [vmem:[%s13717_s3 + $0x1e0] sm:$0xff]  ;;  %v1648_v2 = vld [vmem:[%s13717_s3 + $0x1b0] sm:$0xff] }
 0x72e   :  { %v6735_v0 = vpack.c.bf16 %v1649_v58, %v1645_v57  ;;  %v1653_v3 = vld [vmem:[%s13717_s3 + $0x1d8] sm:$0xff]  ;;  %v6709_v6 = vpack.c.bf16 %v1654_v62, %v1650_v61  ;;  %v6737_v7 = vpack.c.bf16 %v1648_v2, %v1644_v1  ;;  %v1652_v9 = vld [vmem:[%s13717_s3 + $0x1d0] sm:$0xff]  ;;  %v1588_v11 = vld [vmem:[%s13719_s5] sm:$0xff] }
 0x72f   :  { %6698 = vmatpush1.bf16.msra.mxu0 %v6697_v33  ;;  %v1657_v5 = vld [vmem:[%s13717_s3 + $0x1f8] sm:$0xff]  ;;  %v1656_v10 = vld [vmem:[%s13717_s3 + $0x1f0] sm:$0xff]  ;;  %v1590_v13 = vld [vmem:[%s13716_s2 + $0xc0] sm:$0xff] }
 0x730   :  { %6700 = vmatprep.subr.bf16.mxu0 %v6699_v36  ;;  %6730 = vmatpush1.bf16.msra.mxu1 %v6729_v52  ;;  %v6739_v8 = vpack.c.bf16 %v1657_v5, %v1653_v3  ;;  %v6741_v12 = vpack.c.bf16 %v1656_v10, %v1652_v9  ;;  %v1591_v14 = vld [vmem:[%s13716_s2 + $0xc8] sm:$0xff]  ;;  %v1593_v21 = vld [vmem:[%s13716_s2 + $0xd8] sm:$0xff]  ;;  %v1592_v25 = vld [vmem:[%s13716_s2 + $0xd0] sm:$0xff] }
 0x731   :  { %6732 = vmatprep.subr.bf16.mxu1 %v6731_v54  ;;  %v1589_v34 = vld [vmem:[%s13720_s6] sm:$0xff] }
 0x733   :  { %6702 = vmatpush1.bf16.msra.mxu0 %v6701_v47 }
 0x734   :  { %6704 = vmatprep.subr.bf16.mxu0 %v6703_v48  ;;  %6734 = vmatpush1.bf16.msra.mxu1 %v6733_v63 }
 0x735   :  { %6736 = vmatprep.subr.bf16.mxu1 %v6735_v0 }
 0x737   :  { %6706 = vmatpush1.bf16.msra.mxu0 %v6705_v59 }
 0x738   :  { %6708 = vmatprep.subr.bf16.mxu0 %v6707_v60  ;;  %6738 = vmatpush1.bf16.msra.mxu1 %v6737_v7 }
 0x739   :  { %6740 = vmatprep.subr.bf16.mxu1 %v6739_v8 }
 0x73b   :  { %6710 = vmatpush1.bf16.msra.mxu0 %v6709_v6 }
 0x73c   :  { %6742 = vmatpush1.bf16.msra.mxu1 %v6741_v12 }
 0x73e   :  { %1723 = vmatmul.mubr.f32.vlgmr.msra.gmra.mrb[0].mxu0 %v1588_v11 }
 0x73f   :  { %1794 = vmatmul.mubr.f32.vlgmr.msra.gmra.mrb[0].mxu1 %v1588_v11 }
 0x811   :  { %v1724_v15 = vpop.f32.mrb[0].mxu0 }
 0x812   :  { %v1800_v16 = vadd.f32 %v1724_v15, %v1590_v13  ;;  %v1726_v17 = vpop.f32.mrb[1].mxu0  ;;  %v1795_v22 = vpop.f32.mrb[0].mxu1 }
 0x813   :  { %v1801_v18 = vadd.f32 %v1726_v17, %v1591_v14  ;;  %v1797_v23 = vpop.f32.mrb[1].mxu1  ;;  %v1802_v27 = vadd.f32 %v1795_v22, %v1592_v25 }
 0x814   :  { %v6189_v19 = vmul.f32 -1.442695, %v1800_v16  ;;  %v1803_v24 = vadd.f32 %v1797_v23, %v1593_v21 }
 0x815   :  { %v6190_v20 = vmul.f32 -1.442695, %v1801_v18 }
 0x816   :  { %7956 = vpow2.f32 %v6189_v19  ;;  %v6191_v26 = vmul.f32 -1.442695, %v1803_v24 }
 0x817   :  { %7958 = vpow2.f32 %v6190_v20 }
 0x818   :  { %7960 = vpow2.f32 %v6191_v26 }
 0x819   :  { %7962 = vtanh.f32 %v1802_v27 }
 0x820   :  { %v7957_v28 = vpop.eup %7956 }
 0x821   :  { %v7959_v29 = vpop.eup %7958  ;;  %v1807_v30 = vadd.f32 1.0, %v7957_v28 }
 0x822   :  { %v1813_v31 = vadd.f32 1.0, %v7959_v29  ;;  %v7961_v32 = vpop.eup %7960 }
 0x823   :  { %7964 = vrcp.f32 %v1807_v30  ;;  %v7963_v33 = vpop.eup %7962  ;;  %v1820_v36 = vadd.f32 1.0, %v7961_v32 }
 0x824   :  { %7966 = vrcp.f32 %v1813_v31 }
 0x825   :  { %7968 = vrcp.f32 %v1820_v36 }
 0x82d   :  { %v7965_v35 = vpop.eup %7964 }
 0x82e   :  { %v7967_v37 = vpop.eup %7966  ;;  %v1824_v38 = vmul.f32 %v7965_v35, %v7963_v33 }
 0x82f   :  { %v1823_v39 = vmul.f32 %v7967_v37, %v1589_v34  ;;  %v7969_v42 = vpop.eup %7968 }
 0x831   :  { %v1825_v40 = vadd.f32 %v1824_v38, %v1823_v39 }
 0x833   :  { %7970 = vtanh.f32 %v1825_v40  ;;  %v1832_v41 = vsel %vm6192_vm6, %v1825_v40, %v1589_v34 }
 0x834   :  { %1833 = vst [vmem:[%s13720_s6] sm:$0xff] %v1832_v41 }
 0x83d   :  { %v7971_v43 = vpop.eup %7970 }
 0x83e   :  { %v1827_v44 = vmul.f32 %v7971_v43, %v7969_v42 }
 0x840   :  { %v1830_v45 = vsel %vm6192_vm6, %v1827_v44, %v1588_v11  ;;  %v1834_v46 = vsel %vm6192_vm6, %v1827_v44, 0.0 }
 0x841   :  { %1831 = vst [vmem:[%s13719_s5] sm:$0xff] %v1830_v45  ;;  %1835 = vst [vmem:[%s13718_s4 + $0x30] sm:$0xff] %v1834_v46 }
 0x842 PF:  { %p6194_p13 = scmp.le.s32.totalorder %s8324_s26, 7 }
 0x843   :  { %v1848_v47 = vld [vmem:[%s13717_s3 + $0x8] sm:$0xff] (!%p6194_p13)  ;;  %v1847_v49 = vld [vmem:[%s13717_s3] sm:$0xff] (!%p6194_p13)  ;;  %v8269_v54 = vmov (!%p6194_p13), 0.0   ;;  %v1850_v2 = vld [vmem:[%s13717_s3 + $0x18] sm:$0xff] (!%p6194_p13)  ;;  %vm6198_vm7 = vcmp.gt.s32.totalorder (!%p6194_p13), %v8408_v4, 7 }
 0x844   :  { %1840 = sbr.rel (%p6194_p13) target bundleno = 2411 (0x96b), region = 53  ;;  %v1852_v48 = vld [vmem:[%s13717_s3 + $0x28] sm:$0xff] (!%p6194_p13)  ;;  %v1851_v51 = vld [vmem:[%s13717_s3 + $0x20] sm:$0xff] (!%p6194_p13)  ;;  %1975 = vmatprep.mubr.f32.mxu0 (!%p6194_p13), %v8269_v54  ;;  %2046 = vmatprep.mubr.f32.mxu1 (!%p6194_p13), %v8269_v54  ;;  %v1854_v3 = vld [vmem:[%s13717_s3 + $0x38] sm:$0xff] (!%p6194_p13) }
 0x845   :  { %v6743_v50 = vpack.c.bf16 (!%p6194_p13), %v1852_v48, %v1848_v47  ;;  %v1856_v52 = vld [vmem:[%s13717_s3 + $0x48] sm:$0xff] (!%p6194_p13)  ;;  %v6745_v55 = vpack.c.bf16 (!%p6194_p13), %v1851_v51, %v1847_v49  ;;  %v1855_v57 = vld [vmem:[%s13717_s3 + $0x40] sm:$0xff] (!%p6194_p13)  ;;  %v6775_v6 = vpack.c.bf16 (!%p6194_p13), %v1854_v3, %v1850_v2  ;;  %v1849_v7 = vld [vmem:[%s13717_s3 + $0x10] sm:$0xff] (!%p6194_p13) }
 0x846   :  { %v1860_v53 = vld [vmem:[%s13717_s3 + $0x68] sm:$0xff] (!%p6194_p13)  ;;  %v1859_v58 = vld [vmem:[%s13717_s3 + $0x60] sm:$0xff] (!%p6194_p13)  ;;  %v1853_v8 = vld [vmem:[%s13717_s3 + $0x30] sm:$0xff] (!%p6194_p13) }
 0x847   :  { %v6747_v56 = vpack.c.bf16 (!%p6194_p13), %v1860_v53, %v1856_v52  ;;  %v1864_v59 = vld [vmem:[%s13717_s3 + $0x88] sm:$0xff] (!%p6194_p13)  ;;  %6744 = vmatprep.subr.bf16.mxu0 (!%p6194_p13), %v6743_v50  ;;  %v6749_v61 = vpack.c.bf16 (!%p6194_p13), %v1859_v58, %v1855_v57  ;;  %v1863_v62 = vld [vmem:[%s13717_s3 + $0x80] sm:$0xff] (!%p6194_p13)  ;;  %v6777_v9 = vpack.c.bf16 (!%p6194_p13), %v1853_v8, %v1849_v7  ;;  %6776 = vmatprep.subr.bf16.mxu1 (!%p6194_p13), %v6775_v6  ;;  %v1858_v11 = vld [vmem:[%s13717_s3 + $0x58] sm:$0xff] (!%p6194_p13) }
 0x848   :  { %v1868_v60 = vld [vmem:[%s13717_s3 + $0xa8] sm:$0xff] (!%p6194_p13)  ;;  %6746 = vmatpush1.bf16.msra.mxu0 (!%p6194_p13), %v6745_v55  ;;  %v1867_v63 = vld [vmem:[%s13717_s3 + $0xa0] sm:$0xff] (!%p6194_p13)  ;;  %v1862_v12 = vld [vmem:[%s13717_s3 + $0x78] sm:$0xff] (!%p6194_p13) }
 0x849   :  { %6748 = vmatprep.subr.bf16.mxu0 (!%p6194_p13), %v6747_v56  ;;  %v6751_v0 = vpack.c.bf16 (!%p6194_p13), %v1868_v60, %v1864_v59  ;;  %v1872_v1 = vld [vmem:[%s13717_s3 + $0xc8] sm:$0xff] (!%p6194_p13)  ;;  %v6753_v10 = vpack.c.bf16 (!%p6194_p13), %v1867_v63, %v1863_v62  ;;  %v1857_v13 = vld [vmem:[%s13717_s3 + $0x50] sm:$0xff] (!%p6194_p13)  ;;  %v1871_v15 = vld [vmem:[%s13717_s3 + $0xc0] sm:$0xff] (!%p6194_p13)  ;;  %6778 = vmatpush1.bf16.msra.mxu1 (!%p6194_p13), %v6777_v9  ;;  %v6779_v17 = vpack.c.bf16 (!%p6194_p13), %v1862_v12, %v1858_v11 }
 0x84a   :  { %v1876_v5 = vld [vmem:[%s13717_s3 + $0xe8] sm:$0xff] (!%p6194_p13)  ;;  %v1875_v16 = vld [vmem:[%s13717_s3 + $0xe0] sm:$0xff] (!%p6194_p13)  ;;  %v1861_v18 = vld [vmem:[%s13717_s3 + $0x70] sm:$0xff] (!%p6194_p13) }
 0x84b   :  { %v6755_v14 = vpack.c.bf16 %v1876_v5, %v1872_v1  ;;  %v1880_v19 = vld [vmem:[%s13717_s3 + $0x108] sm:$0xff]  ;;  %v6781_v21 = vpack.c.bf16 %v1861_v18, %v1857_v13  ;;  %v1866_v22 = vld [vmem:[%s13717_s3 + $0x98] sm:$0xff]  ;;  %6780 = vmatprep.subr.bf16.mxu1 %v6779_v17  ;;  %v1865_v24 = vld [vmem:[%s13717_s3 + $0x90] sm:$0xff]  ;;  %v6757_v26 = vpack.c.bf16 %v1875_v16, %v1871_v15 }
 0x84c   :  { %6750 = vmatpush1.bf16.msra.mxu0 %v6749_v61  ;;  %v1884_v20 = vld [vmem:[%s13717_s3 + $0x128] sm:$0xff]  ;;  %v1870_v23 = vld [vmem:[%s13717_s3 + $0xb8] sm:$0xff]  ;;  %v1869_v25 = vld [vmem:[%s13717_s3 + $0xb0] sm:$0xff] }
 0x84d   :  { %6752 = vmatprep.subr.bf16.mxu0 %v6751_v0  ;;  %v1879_v27 = vld [vmem:[%s13717_s3 + $0x100] sm:$0xff]  ;;  %v6783_v29 = vpack.c.bf16 %v1870_v23, %v1866_v22  ;;  %v6759_v30 = vpack.c.bf16 %v1884_v20, %v1880_v19  ;;  %6782 = vmatpush1.bf16.msra.mxu1 %v6781_v21  ;;  %v1888_v31 = vld [vmem:[%s13717_s3 + $0x148] sm:$0xff]  ;;  %v6785_v32 = vpack.c.bf16 %v1869_v25, %v1865_v24  ;;  %v1874_v33 = vld [vmem:[%s13717_s3 + $0xd8] sm:$0xff] }
 0x84e   :  { %v1883_v28 = vld [vmem:[%s13717_s3 + $0x120] sm:$0xff]  ;;  %v1878_v34 = vld [vmem:[%s13717_s3 + $0xf8] sm:$0xff]  ;;  %v1892_v35 = vld [vmem:[%s13717_s3 + $0x168] sm:$0xff] }
 0x84f   :  { %6784 = vmatprep.subr.bf16.mxu1 %v6783_v29  ;;  %v6787_v36 = vpack.c.bf16 %v1878_v34, %v1874_v33  ;;  %v1873_v37 = vld [vmem:[%s13717_s3 + $0xd0] sm:$0xff]  ;;  %v6761_v39 = vpack.c.bf16 %v1883_v28, %v1879_v27  ;;  %v1882_v40 = vld [vmem:[%s13717_s3 + $0x118] sm:$0xff]  ;;  %v6763_v42 = vpack.c.bf16 %v1892_v35, %v1888_v31  ;;  %v1887_v43 = vld [vmem:[%s13717_s3 + $0x140] sm:$0xff] }
 0x850   :  { %6754 = vmatpush1.bf16.msra.mxu0 %v6753_v10  ;;  %v1877_v38 = vld [vmem:[%s13717_s3 + $0xf0] sm:$0xff]  ;;  %v1886_v41 = vld [vmem:[%s13717_s3 + $0x138] sm:$0xff]  ;;  %v1891_v44 = vld [vmem:[%s13717_s3 + $0x160] sm:$0xff] }
 0x851   :  { %6756 = vmatprep.subr.bf16.mxu0 %v6755_v14  ;;  %6786 = vmatpush1.bf16.msra.mxu1 %v6785_v32  ;;  %v1896_v45 = vld [vmem:[%s13717_s3 + $0x188] sm:$0xff]  ;;  %v6789_v46 = vpack.c.bf16 %v1877_v38, %v1873_v37  ;;  %v6791_v48 = vpack.c.bf16 %v1886_v41, %v1882_v40  ;;  %v1881_v49 = vld [vmem:[%s13717_s3 + $0x110] sm:$0xff]  ;;  %v1890_v51 = vld [vmem:[%s13717_s3 + $0x158] sm:$0xff]  ;;  %v6765_v53 = vpack.c.bf16 %v1891_v44, %v1887_v43 }
 0x852   :  { %v1900_v47 = vld [vmem:[%s13717_s3 + $0x1a8] sm:$0xff]  ;;  %6788 = vmatprep.subr.bf16.mxu1 %v6787_v36  ;;  %v1885_v50 = vld [vmem:[%s13717_s3 + $0x130] sm:$0xff]  ;;  %v1894_v52 = vld [vmem:[%s13717_s3 + $0x178] sm:$0xff] }
 0x853   :  { %v6767_v54 = vpack.c.bf16 %v1900_v47, %v1896_v45  ;;  %v1895_v55 = vld [vmem:[%s13717_s3 + $0x180] sm:$0xff]  ;;  %v1904_v57 = vld [vmem:[%s13717_s3 + $0x1c8] sm:$0xff]  ;;  %v6793_v58 = vpack.c.bf16 %v1885_v50, %v1881_v49  ;;  %v6795_v60 = vpack.c.bf16 %v1894_v52, %v1890_v51  ;;  %v1889_v61 = vld [vmem:[%s13717_s3 + $0x150] sm:$0xff] }
 0x854   :  { %6758 = vmatpush1.bf16.msra.mxu0 %v6757_v26  ;;  %v1899_v56 = vld [vmem:[%s13717_s3 + $0x1a0] sm:$0xff]  ;;  %v1908_v59 = vld [vmem:[%s13717_s3 + $0x1e8] sm:$0xff]  ;;  %v1893_v62 = vld [vmem:[%s13717_s3 + $0x170] sm:$0xff] }
 0x855   :  { %6760 = vmatprep.subr.bf16.mxu0 %v6759_v30  ;;  %6790 = vmatpush1.bf16.msra.mxu1 %v6789_v46  ;;  %v1898_v63 = vld [vmem:[%s13717_s3 + $0x198] sm:$0xff]  ;;  %v6769_v1 = vpack.c.bf16 %v1899_v56, %v1895_v55  ;;  %v6771_v2 = vpack.c.bf16 %v1908_v59, %v1904_v57  ;;  %v1903_v3 = vld [vmem:[%s13717_s3 + $0x1c0] sm:$0xff]  ;;  %v6797_v6 = vpack.c.bf16 %v1893_v62, %v1889_v61  ;;  %v1897_v8 = vld [vmem:[%s13717_s3 + $0x190] sm:$0xff] }
 0x856   :  { %6792 = vmatprep.subr.bf16.mxu1 %v6791_v48  ;;  %v1902_v0 = vld [vmem:[%s13717_s3 + $0x1b8] sm:$0xff]  ;;  %v1907_v5 = vld [vmem:[%s13717_s3 + $0x1e0] sm:$0xff]  ;;  %v1901_v9 = vld [vmem:[%s13717_s3 + $0x1b0] sm:$0xff] }
 0x857   :  { %v6799_v7 = vpack.c.bf16 %v1902_v0, %v1898_v63  ;;  %v1906_v10 = vld [vmem:[%s13717_s3 + $0x1d8] sm:$0xff]  ;;  %v6773_v12 = vpack.c.bf16 %v1907_v5, %v1903_v3  ;;  %v6801_v13 = vpack.c.bf16 %v1901_v9, %v1897_v8  ;;  %v1905_v15 = vld [vmem:[%s13717_s3 + $0x1d0] sm:$0xff]  ;;  %v1841_v17 = vld [vmem:[%s13719_s5] sm:$0xff] }
 0x858   :  { %6762 = vmatpush1.bf16.msra.mxu0 %v6761_v39  ;;  %v1910_v11 = vld [vmem:[%s13717_s3 + $0x1f8] sm:$0xff]  ;;  %v1909_v16 = vld [vmem:[%s13717_s3 + $0x1f0] sm:$0xff]  ;;  %v1843_v19 = vld [vmem:[%s13716_s2 + $0xe0] sm:$0xff] }
 0x859   :  { %6764 = vmatprep.subr.bf16.mxu0 %v6763_v42  ;;  %6794 = vmatpush1.bf16.msra.mxu1 %v6793_v58  ;;  %v6803_v14 = vpack.c.bf16 %v1910_v11, %v1906_v10  ;;  %v6805_v18 = vpack.c.bf16 %v1909_v16, %v1905_v15  ;;  %v1844_v20 = vld [vmem:[%s13716_s2 + $0xe8] sm:$0xff]  ;;  %v1846_v27 = vld [vmem:[%s13716_s2 + $0xf8] sm:$0xff]  ;;  %v1845_v31 = vld [vmem:[%s13716_s2 + $0xf0] sm:$0xff] }
 0x85a   :  { %6796 = vmatprep.subr.bf16.mxu1 %v6795_v60  ;;  %v1842_v40 = vld [vmem:[%s13720_s6] sm:$0xff] }
 0x85c   :  { %6766 = vmatpush1.bf16.msra.mxu0 %v6765_v53 }
 0x85d   :  { %6768 = vmatprep.subr.bf16.mxu0 %v6767_v54  ;;  %6798 = vmatpush1.bf16.msra.mxu1 %v6797_v6 }
 0x85e   :  { %6800 = vmatprep.subr.bf16.mxu1 %v6799_v7 }
 0x860   :  { %6770 = vmatpush1.bf16.msra.mxu0 %v6769_v1 }
 0x861   :  { %6772 = vmatprep.subr.bf16.mxu0 %v6771_v2  ;;  %6802 = vmatpush1.bf16.msra.mxu1 %v6801_v13 }
 0x862   :  { %6804 = vmatprep.subr.bf16.mxu1 %v6803_v14 }
 0x864   :  { %6774 = vmatpush1.bf16.msra.mxu0 %v6773_v12 }
 0x865   :  { %6806 = vmatpush1.bf16.msra.mxu1 %v6805_v18 }
 0x867   :  { %1976 = vmatmul.mubr.f32.vlgmr.msra.gmra.mrb[0].mxu0 %v1841_v17 }
 0x868   :  { %2047 = vmatmul.mubr.f32.vlgmr.msra.gmra.mrb[0].mxu1 %v1841_v17 }
 0x93a   :  { %v1977_v21 = vpop.f32.mrb[0].mxu0 }
 0x93b   :  { %v2053_v22 = vadd.f32 %v1977_v21, %v1843_v19  ;;  %v1979_v23 = vpop.f32.mrb[1].mxu0  ;;  %v2048_v28 = vpop.f32.mrb[0].mxu1 }
 0x93c   :  { %v2054_v24 = vadd.f32 %v1979_v23, %v1844_v20  ;;  %v2050_v29 = vpop.f32.mrb[1].mxu1  ;;  %v2055_v33 = vadd.f32 %v2048_v28, %v1845_v31 }
 0x93d   :  { %v6195_v25 = vmul.f32 -1.442695, %v2053_v22  ;;  %v2056_v30 = vadd.f32 %v2050_v29, %v1846_v27 }
 0x93e   :  { %v6196_v26 = vmul.f32 -1.442695, %v2054_v24 }
 0x93f   :  { %7972 = vpow2.f32 %v6195_v25  ;;  %v6197_v32 = vmul.f32 -1.442695, %v2056_v30 }
 0x940   :  { %7974 = vpow2.f32 %v6196_v26 }
 0x941   :  { %7976 = vpow2.f32 %v6197_v32 }
 0x942   :  { %7978 = vtanh.f32 %v2055_v33 }
 0x949   :  { %v7973_v34 = vpop.eup %7972 }
 0x94a   :  { %v7975_v35 = vpop.eup %7974  ;;  %v2060_v36 = vadd.f32 1.0, %v7973_v34 }
 0x94b   :  { %v2066_v37 = vadd.f32 1.0, %v7975_v35  ;;  %v7977_v38 = vpop.eup %7976 }
 0x94c   :  { %7980 = vrcp.f32 %v2060_v36  ;;  %v7979_v39 = vpop.eup %7978  ;;  %v2073_v42 = vadd.f32 1.0, %v7977_v38 }
 0x94d   :  { %7982 = vrcp.f32 %v2066_v37 }
 0x94e   :  { %7984 = vrcp.f32 %v2073_v42 }
 0x956   :  { %v7981_v41 = vpop.eup %7980 }
 0x957   :  { %v7983_v43 = vpop.eup %7982  ;;  %v2077_v44 = vmul.f32 %v7981_v41, %v7979_v39 }
 0x958   :  { %v2076_v45 = vmul.f32 %v7983_v43, %v1842_v40  ;;  %v7985_v48 = vpop.eup %7984 }
 0x95a   :  { %v2078_v46 = vadd.f32 %v2077_v44, %v2076_v45 }
 0x95c   :  { %7986 = vtanh.f32 %v2078_v46  ;;  %v2085_v47 = vsel %vm6198_vm7, %v2078_v46, %v1842_v40 }
 0x95d   :  { %2086 = vst [vmem:[%s13720_s6] sm:$0xff] %v2085_v47 }
 0x966   :  { %v7987_v49 = vpop.eup %7986 }
 0x967   :  { %v2080_v50 = vmul.f32 %v7987_v49, %v7985_v48 }
 0x969   :  { %v2083_v51 = vsel %vm6198_vm7, %v2080_v50, %v1841_v17  ;;  %v2087_v52 = vsel %vm6198_vm7, %v2080_v50, 0.0 }
 0x96a   :  { %2084 = vst [vmem:[%s13719_s5] sm:$0xff] %v2083_v51  ;;  %2088 = vst [vmem:[%s13718_s4 + $0x38] sm:$0xff] %v2087_v52 }
 0x96b PF:  { %p6200_p0 = scmp.le.s32.totalorder %s8324_s26, 8 }
 0x96c   :  { %v2101_v53 = vld [vmem:[%s13717_s3 + $0x8] sm:$0xff] (!%p6200_p0)  ;;  %v2100_v55 = vld [vmem:[%s13717_s3] sm:$0xff] (!%p6200_p0)  ;;  %v8270_v60 = vmov (!%p6200_p0), 0.0   ;;  %v2103_v9 = vld [vmem:[%s13717_s3 + $0x18] sm:$0xff] (!%p6200_p0)  ;;  %vm6204_vm8 = vcmp.gt.s32.totalorder (!%p6200_p0), %v8408_v4, 8 }
 0x96d   :  { %2093 = sbr.rel (%p6200_p0) target bundleno = 2708 (0xa94), region = 57  ;;  %v2105_v54 = vld [vmem:[%s13717_s3 + $0x28] sm:$0xff] (!%p6200_p0)  ;;  %v2104_v57 = vld [vmem:[%s13717_s3 + $0x20] sm:$0xff] (!%p6200_p0)  ;;  %2228 = vmatprep.mubr.f32.mxu0 (!%p6200_p0), %v8270_v60  ;;  %2299 = vmatprep.mubr.f32.mxu1 (!%p6200_p0), %v8270_v60  ;;  %v2107_v10 = vld [vmem:[%s13717_s3 + $0x38] sm:$0xff] (!%p6200_p0) }
 0x96e   :  { %v6807_v56 = vpack.c.bf16 (!%p6200_p0), %v2105_v54, %v2101_v53  ;;  %v2109_v58 = vld [vmem:[%s13717_s3 + $0x48] sm:$0xff] (!%p6200_p0)  ;;  %v6809_v61 = vpack.c.bf16 (!%p6200_p0), %v2104_v57, %v2100_v55  ;;  %v2108_v63 = vld [vmem:[%s13717_s3 + $0x40] sm:$0xff] (!%p6200_p0)  ;;  %v6839_v12 = vpack.c.bf16 (!%p6200_p0), %v2107_v10, %v2103_v9  ;;  %v2102_v13 = vld [vmem:[%s13717_s3 + $0x10] sm:$0xff] (!%p6200_p0) }
 0x96f   :  { %v2113_v59 = vld [vmem:[%s13717_s3 + $0x68] sm:$0xff] (!%p6200_p0)  ;;  %v2112_v0 = vld [vmem:[%s13717_s3 + $0x60] sm:$0xff] (!%p6200_p0)  ;;  %v2106_v14 = vld [vmem:[%s13717_s3 + $0x30] sm:$0xff] (!%p6200_p0) }
 0x970   :  { %v6811_v62 = vpack.c.bf16 (!%p6200_p0), %v2113_v59, %v2109_v58  ;;  %v2117_v1 = vld [vmem:[%s13717_s3 + $0x88] sm:$0xff] (!%p6200_p0)  ;;  %6808 = vmatprep.subr.bf16.mxu0 (!%p6200_p0), %v6807_v56  ;;  %v6813_v3 = vpack.c.bf16 (!%p6200_p0), %v2112_v0, %v2108_v63  ;;  %v2116_v5 = vld [vmem:[%s13717_s3 + $0x80] sm:$0xff] (!%p6200_p0)  ;;  %v6841_v15 = vpack.c.bf16 (!%p6200_p0), %v2106_v14, %v2102_v13  ;;  %6840 = vmatprep.subr.bf16.mxu1 (!%p6200_p0), %v6839_v12  ;;  %v2111_v17 = vld [vmem:[%s13717_s3 + $0x58] sm:$0xff] (!%p6200_p0) }
 0x971   :  { %v2121_v2 = vld [vmem:[%s13717_s3 + $0xa8] sm:$0xff] (!%p6200_p0)  ;;  %6810 = vmatpush1.bf16.msra.mxu0 (!%p6200_p0), %v6809_v61  ;;  %v2120_v6 = vld [vmem:[%s13717_s3 + $0xa0] sm:$0xff] (!%p6200_p0)  ;;  %v2115_v18 = vld [vmem:[%s13717_s3 + $0x78] sm:$0xff] (!%p6200_p0) }
 0x972   :  { %6812 = vmatprep.subr.bf16.mxu0 (!%p6200_p0), %v6811_v62  ;;  %v6815_v7 = vpack.c.bf16 (!%p6200_p0), %v2121_v2, %v2117_v1  ;;  %v2125_v8 = vld [vmem:[%s13717_s3 + $0xc8] sm:$0xff] (!%p6200_p0)  ;;  %v6817_v16 = vpack.c.bf16 (!%p6200_p0), %v2120_v6, %v2116_v5  ;;  %v2110_v19 = vld [vmem:[%s13717_s3 + $0x50] sm:$0xff] (!%p6200_p0)  ;;  %v2124_v21 = vld [vmem:[%s13717_s3 + $0xc0] sm:$0xff] (!%p6200_p0)  ;;  %6842 = vmatpush1.bf16.msra.mxu1 (!%p6200_p0), %v6841_v15  ;;  %v6843_v23 = vpack.c.bf16 (!%p6200_p0), %v2115_v18, %v2111_v17 }
 0x973   :  { %v2129_v11 = vld [vmem:[%s13717_s3 + $0xe8] sm:$0xff] (!%p6200_p0)  ;;  %v2128_v22 = vld [vmem:[%s13717_s3 + $0xe0] sm:$0xff] (!%p6200_p0)  ;;  %v2114_v24 = vld [vmem:[%s13717_s3 + $0x70] sm:$0xff] (!%p6200_p0) }
 0x974   :  { %v6819_v20 = vpack.c.bf16 %v2129_v11, %v2125_v8  ;;  %v2133_v25 = vld [vmem:[%s13717_s3 + $0x108] sm:$0xff]  ;;  %v6845_v27 = vpack.c.bf16 %v2114_v24, %v2110_v19  ;;  %v2119_v28 = vld [vmem:[%s13717_s3 + $0x98] sm:$0xff]  ;;  %6844 = vmatprep.subr.bf16.mxu1 %v6843_v23  ;;  %v2118_v30 = vld [vmem:[%s13717_s3 + $0x90] sm:$0xff]  ;;  %v6821_v32 = vpack.c.bf16 %v2128_v22, %v2124_v21 }
 0x975   :  { %6814 = vmatpush1.bf16.msra.mxu0 %v6813_v3  ;;  %v2137_v26 = vld [vmem:[%s13717_s3 + $0x128] sm:$0xff]  ;;  %v2123_v29 = vld [vmem:[%s13717_s3 + $0xb8] sm:$0xff]  ;;  %v2122_v31 = vld [vmem:[%s13717_s3 + $0xb0] sm:$0xff] }
 0x976   :  { %6816 = vmatprep.subr.bf16.mxu0 %v6815_v7  ;;  %v2132_v33 = vld [vmem:[%s13717_s3 + $0x100] sm:$0xff]  ;;  %v6847_v35 = vpack.c.bf16 %v2123_v29, %v2119_v28  ;;  %v6823_v36 = vpack.c.bf16 %v2137_v26, %v2133_v25  ;;  %6846 = vmatpush1.bf16.msra.mxu1 %v6845_v27  ;;  %v2141_v37 = vld [vmem:[%s13717_s3 + $0x148] sm:$0xff]  ;;  %v6849_v38 = vpack.c.bf16 %v2122_v31, %v2118_v30  ;;  %v2127_v39 = vld [vmem:[%s13717_s3 + $0xd8] sm:$0xff] }
 0x977   :  { %v2136_v34 = vld [vmem:[%s13717_s3 + $0x120] sm:$0xff]  ;;  %v2131_v40 = vld [vmem:[%s13717_s3 + $0xf8] sm:$0xff]  ;;  %v2145_v41 = vld [vmem:[%s13717_s3 + $0x168] sm:$0xff] }
 0x978   :  { %6848 = vmatprep.subr.bf16.mxu1 %v6847_v35  ;;  %v6851_v42 = vpack.c.bf16 %v2131_v40, %v2127_v39  ;;  %v2126_v43 = vld [vmem:[%s13717_s3 + $0xd0] sm:$0xff]  ;;  %v6825_v45 = vpack.c.bf16 %v2136_v34, %v2132_v33  ;;  %v2135_v46 = vld [vmem:[%s13717_s3 + $0x118] sm:$0xff]  ;;  %v6827_v48 = vpack.c.bf16 %v2145_v41, %v2141_v37  ;;  %v2140_v49 = vld [vmem:[%s13717_s3 + $0x140] sm:$0xff] }
 0x979   :  { %6818 = vmatpush1.bf16.msra.mxu0 %v6817_v16  ;;  %v2130_v44 = vld [vmem:[%s13717_s3 + $0xf0] sm:$0xff]  ;;  %v2139_v47 = vld [vmem:[%s13717_s3 + $0x138] sm:$0xff]  ;;  %v2144_v50 = vld [vmem:[%s13717_s3 + $0x160] sm:$0xff] }
 0x97a   :  { %6820 = vmatprep.subr.bf16.mxu0 %v6819_v20  ;;  %6850 = vmatpush1.bf16.msra.mxu1 %v6849_v38  ;;  %v2149_v51 = vld [vmem:[%s13717_s3 + $0x188] sm:$0xff]  ;;  %v6853_v52 = vpack.c.bf16 %v2130_v44, %v2126_v43  ;;  %v6855_v54 = vpack.c.bf16 %v2139_v47, %v2135_v46  ;;  %v2134_v55 = vld [vmem:[%s13717_s3 + $0x110] sm:$0xff]  ;;  %v2143_v57 = vld [vmem:[%s13717_s3 + $0x158] sm:$0xff]  ;;  %v6829_v59 = vpack.c.bf16 %v2144_v50, %v2140_v49 }
 0x97b   :  { %v2153_v53 = vld [vmem:[%s13717_s3 + $0x1a8] sm:$0xff]  ;;  %6852 = vmatprep.subr.bf16.mxu1 %v6851_v42  ;;  %v2138_v56 = vld [vmem:[%s13717_s3 + $0x130] sm:$0xff]  ;;  %v2147_v58 = vld [vmem:[%s13717_s3 + $0x178] sm:$0xff] }
 0x97c   :  { %v6831_v60 = vpack.c.bf16 %v2153_v53, %v2149_v51  ;;  %v2148_v61 = vld [vmem:[%s13717_s3 + $0x180] sm:$0xff]  ;;  %v2157_v63 = vld [vmem:[%s13717_s3 + $0x1c8] sm:$0xff]  ;;  %v6857_v0 = vpack.c.bf16 %v2138_v56, %v2134_v55  ;;  %v6859_v2 = vpack.c.bf16 %v2147_v58, %v2143_v57  ;;  %v2142_v3 = vld [vmem:[%s13717_s3 + $0x150] sm:$0xff] }
 0x97d   :  { %6822 = vmatpush1.bf16.msra.mxu0 %v6821_v32  ;;  %v2152_v62 = vld [vmem:[%s13717_s3 + $0x1a0] sm:$0xff]  ;;  %v2161_v1 = vld [vmem:[%s13717_s3 + $0x1e8] sm:$0xff]  ;;  %v2146_v5 = vld [vmem:[%s13717_s3 + $0x170] sm:$0xff] }
 0x97e   :  { %6824 = vmatprep.subr.bf16.mxu0 %v6823_v36  ;;  %6854 = vmatpush1.bf16.msra.mxu1 %v6853_v52  ;;  %v2151_v6 = vld [vmem:[%s13717_s3 + $0x198] sm:$0xff]  ;;  %v6833_v8 = vpack.c.bf16 %v2152_v62, %v2148_v61  ;;  %v6835_v9 = vpack.c.bf16 %v2161_v1, %v2157_v63  ;;  %v2156_v10 = vld [vmem:[%s13717_s3 + $0x1c0] sm:$0xff]  ;;  %v6861_v12 = vpack.c.bf16 %v2146_v5, %v2142_v3  ;;  %v2150_v14 = vld [vmem:[%s13717_s3 + $0x190] sm:$0xff] }
 0x97f   :  { %6856 = vmatprep.subr.bf16.mxu1 %v6855_v54  ;;  %v2155_v7 = vld [vmem:[%s13717_s3 + $0x1b8] sm:$0xff]  ;;  %v2160_v11 = vld [vmem:[%s13717_s3 + $0x1e0] sm:$0xff]  ;;  %v2154_v15 = vld [vmem:[%s13717_s3 + $0x1b0] sm:$0xff] }
 0x980   :  { %v6863_v13 = vpack.c.bf16 %v2155_v7, %v2151_v6  ;;  %v2159_v16 = vld [vmem:[%s13717_s3 + $0x1d8] sm:$0xff]  ;;  %v6837_v18 = vpack.c.bf16 %v2160_v11, %v2156_v10  ;;  %v6865_v19 = vpack.c.bf16 %v2154_v15, %v2150_v14  ;;  %v2158_v21 = vld [vmem:[%s13717_s3 + $0x1d0] sm:$0xff]  ;;  %v2094_v23 = vld [vmem:[%s13719_s5] sm:$0xff] }
 0x981   :  { %6826 = vmatpush1.bf16.msra.mxu0 %v6825_v45  ;;  %v2163_v17 = vld [vmem:[%s13717_s3 + $0x1f8] sm:$0xff]  ;;  %v2162_v22 = vld [vmem:[%s13717_s3 + $0x1f0] sm:$0xff]  ;;  %v2096_v25 = vld [vmem:[%s13716_s2 + $0x100] sm:$0xff] }
 0x982   :  { %6828 = vmatprep.subr.bf16.mxu0 %v6827_v48  ;;  %6858 = vmatpush1.bf16.msra.mxu1 %v6857_v0  ;;  %v6867_v20 = vpack.c.bf16 %v2163_v17, %v2159_v16  ;;  %v6869_v24 = vpack.c.bf16 %v2162_v22, %v2158_v21  ;;  %v2097_v26 = vld [vmem:[%s13716_s2 + $0x108] sm:$0xff]  ;;  %v2099_v33 = vld [vmem:[%s13716_s2 + $0x118] sm:$0xff]  ;;  %v2098_v37 = vld [vmem:[%s13716_s2 + $0x110] sm:$0xff] }
 0x983   :  { %6860 = vmatprep.subr.bf16.mxu1 %v6859_v2  ;;  %v2095_v46 = vld [vmem:[%s13720_s6] sm:$0xff] }
 0x985   :  { %6830 = vmatpush1.bf16.msra.mxu0 %v6829_v59 }
 0x986   :  { %6832 = vmatprep.subr.bf16.mxu0 %v6831_v60  ;;  %6862 = vmatpush1.bf16.msra.mxu1 %v6861_v12 }
 0x987   :  { %6864 = vmatprep.subr.bf16.mxu1 %v6863_v13 }
 0x989   :  { %6834 = vmatpush1.bf16.msra.mxu0 %v6833_v8 }
 0x98a   :  { %6836 = vmatprep.subr.bf16.mxu0 %v6835_v9  ;;  %6866 = vmatpush1.bf16.msra.mxu1 %v6865_v19 }
 0x98b   :  { %6868 = vmatprep.subr.bf16.mxu1 %v6867_v20 }
 0x98d   :  { %6838 = vmatpush1.bf16.msra.mxu0 %v6837_v18 }
 0x98e   :  { %6870 = vmatpush1.bf16.msra.mxu1 %v6869_v24 }
 0x990   :  { %2229 = vmatmul.mubr.f32.vlgmr.msra.gmra.mrb[0].mxu0 %v2094_v23 }
 0x991   :  { %2300 = vmatmul.mubr.f32.vlgmr.msra.gmra.mrb[0].mxu1 %v2094_v23 }
 0xa63   :  { %v2230_v27 = vpop.f32.mrb[0].mxu0 }
 0xa64   :  { %v2306_v28 = vadd.f32 %v2230_v27, %v2096_v25  ;;  %v2232_v29 = vpop.f32.mrb[1].mxu0  ;;  %v2301_v34 = vpop.f32.mrb[0].mxu1 }
 0xa65   :  { %v2307_v30 = vadd.f32 %v2232_v29, %v2097_v26  ;;  %v2303_v35 = vpop.f32.mrb[1].mxu1  ;;  %v2308_v39 = vadd.f32 %v2301_v34, %v2098_v37 }
 0xa66   :  { %v6201_v31 = vmul.f32 -1.442695, %v2306_v28  ;;  %v2309_v36 = vadd.f32 %v2303_v35, %v2099_v33 }
 0xa67   :  { %v6202_v32 = vmul.f32 -1.442695, %v2307_v30 }
 0xa68   :  { %7988 = vpow2.f32 %v6201_v31  ;;  %v6203_v38 = vmul.f32 -1.442695, %v2309_v36 }
 0xa69   :  { %7990 = vpow2.f32 %v6202_v32 }
 0xa6a   :  { %7992 = vpow2.f32 %v6203_v38 }
 0xa6b   :  { %7994 = vtanh.f32 %v2308_v39 }
 0xa72   :  { %v7989_v40 = vpop.eup %7988 }
 0xa73   :  { %v7991_v41 = vpop.eup %7990  ;;  %v2313_v42 = vadd.f32 1.0, %v7989_v40 }
 0xa74   :  { %v2319_v43 = vadd.f32 1.0, %v7991_v41  ;;  %v7993_v44 = vpop.eup %7992 }
 0xa75   :  { %7996 = vrcp.f32 %v2313_v42  ;;  %v7995_v45 = vpop.eup %7994  ;;  %v2326_v48 = vadd.f32 1.0, %v7993_v44 }
 0xa76   :  { %7998 = vrcp.f32 %v2319_v43 }
 0xa77   :  { %8000 = vrcp.f32 %v2326_v48 }
 0xa7f   :  { %v7997_v47 = vpop.eup %7996 }
 0xa80   :  { %v7999_v49 = vpop.eup %7998  ;;  %v2330_v50 = vmul.f32 %v7997_v47, %v7995_v45 }
 0xa81   :  { %v2329_v51 = vmul.f32 %v7999_v49, %v2095_v46  ;;  %v8001_v54 = vpop.eup %8000 }
 0xa83   :  { %v2331_v52 = vadd.f32 %v2330_v50, %v2329_v51 }
 0xa85   :  { %8002 = vtanh.f32 %v2331_v52  ;;  %v2338_v53 = vsel %vm6204_vm8, %v2331_v52, %v2095_v46 }
 0xa86   :  { %2339 = vst [vmem:[%s13720_s6] sm:$0xff] %v2338_v53 }
 0xa8f   :  { %v8003_v55 = vpop.eup %8002 }
 0xa90   :  { %v2333_v56 = vmul.f32 %v8003_v55, %v8001_v54 }
 0xa92   :  { %v2336_v57 = vsel %vm6204_vm8, %v2333_v56, %v2094_v23  ;;  %v2340_v58 = vsel %vm6204_vm8, %v2333_v56, 0.0 }
 0xa93   :  { %2337 = vst [vmem:[%s13719_s5] sm:$0xff] %v2336_v57  ;;  %2341 = vst [vmem:[%s13718_s4 + $0x40] sm:$0xff] %v2340_v58 }
 0xa94 PF:  { %p6206_p1 = scmp.le.s32.totalorder %s8324_s26, 9 }
 0xa95   :  { %v2354_v59 = vld [vmem:[%s13717_s3 + $0x8] sm:$0xff] (!%p6206_p1)  ;;  %v2353_v61 = vld [vmem:[%s13717_s3] sm:$0xff] (!%p6206_p1)  ;;  %v8271_v2 = vmov (!%p6206_p1), 0.0   ;;  %v2356_v15 = vld [vmem:[%s13717_s3 + $0x18] sm:$0xff] (!%p6206_p1)  ;;  %vm6210_vm9 = vcmp.gt.s32.totalorder (!%p6206_p1), %v8408_v4, 9 }
 0xa96   :  { %2346 = sbr.rel (%p6206_p1) target bundleno = 3005 (0xbbd), region = 61  ;;  %v2358_v60 = vld [vmem:[%s13717_s3 + $0x28] sm:$0xff] (!%p6206_p1)  ;;  %v2357_v63 = vld [vmem:[%s13717_s3 + $0x20] sm:$0xff] (!%p6206_p1)  ;;  %2481 = vmatprep.mubr.f32.mxu0 (!%p6206_p1), %v8271_v2  ;;  %2552 = vmatprep.mubr.f32.mxu1 (!%p6206_p1), %v8271_v2  ;;  %v2360_v16 = vld [vmem:[%s13717_s3 + $0x38] sm:$0xff] (!%p6206_p1) }
 0xa97   :  { %v6871_v62 = vpack.c.bf16 (!%p6206_p1), %v2358_v60, %v2354_v59  ;;  %v2362_v0 = vld [vmem:[%s13717_s3 + $0x48] sm:$0xff] (!%p6206_p1)  ;;  %v6873_v3 = vpack.c.bf16 (!%p6206_p1), %v2357_v63, %v2353_v61  ;;  %v2361_v6 = vld [vmem:[%s13717_s3 + $0x40] sm:$0xff] (!%p6206_p1)  ;;  %v6903_v18 = vpack.c.bf16 (!%p6206_p1), %v2360_v16, %v2356_v15  ;;  %v2355_v19 = vld [vmem:[%s13717_s3 + $0x10] sm:$0xff] (!%p6206_p1) }
 0xa98   :  { %v2366_v1 = vld [vmem:[%s13717_s3 + $0x68] sm:$0xff] (!%p6206_p1)  ;;  %v2365_v7 = vld [vmem:[%s13717_s3 + $0x60] sm:$0xff] (!%p6206_p1)  ;;  %v2359_v20 = vld [vmem:[%s13717_s3 + $0x30] sm:$0xff] (!%p6206_p1) }
 0xa99   :  { %v6875_v5 = vpack.c.bf16 (!%p6206_p1), %v2366_v1, %v2362_v0  ;;  %v2370_v8 = vld [vmem:[%s13717_s3 + $0x88] sm:$0xff] (!%p6206_p1)  ;;  %6872 = vmatprep.subr.bf16.mxu0 (!%p6206_p1), %v6871_v62  ;;  %v6877_v10 = vpack.c.bf16 (!%p6206_p1), %v2365_v7, %v2361_v6  ;;  %v2369_v11 = vld [vmem:[%s13717_s3 + $0x80] sm:$0xff] (!%p6206_p1)  ;;  %v6905_v21 = vpack.c.bf16 (!%p6206_p1), %v2359_v20, %v2355_v19  ;;  %6904 = vmatprep.subr.bf16.mxu1 (!%p6206_p1), %v6903_v18  ;;  %v2364_v23 = vld [vmem:[%s13717_s3 + $0x58] sm:$0xff] (!%p6206_p1) }
 0xa9a   :  { %v2374_v9 = vld [vmem:[%s13717_s3 + $0xa8] sm:$0xff] (!%p6206_p1)  ;;  %6874 = vmatpush1.bf16.msra.mxu0 (!%p6206_p1), %v6873_v3  ;;  %v2373_v12 = vld [vmem:[%s13717_s3 + $0xa0] sm:$0xff] (!%p6206_p1)  ;;  %v2368_v24 = vld [vmem:[%s13717_s3 + $0x78] sm:$0xff] (!%p6206_p1) }
 0xa9b   :  { %6876 = vmatprep.subr.bf16.mxu0 (!%p6206_p1), %v6875_v5  ;;  %v6879_v13 = vpack.c.bf16 (!%p6206_p1), %v2374_v9, %v2370_v8  ;;  %v2378_v14 = vld [vmem:[%s13717_s3 + $0xc8] sm:$0xff] (!%p6206_p1)  ;;  %v6881_v22 = vpack.c.bf16 (!%p6206_p1), %v2373_v12, %v2369_v11  ;;  %v2363_v25 = vld [vmem:[%s13717_s3 + $0x50] sm:$0xff] (!%p6206_p1)  ;;  %v2377_v27 = vld [vmem:[%s13717_s3 + $0xc0] sm:$0xff] (!%p6206_p1)  ;;  %6906 = vmatpush1.bf16.msra.mxu1 (!%p6206_p1), %v6905_v21  ;;  %v6907_v29 = vpack.c.bf16 (!%p6206_p1), %v2368_v24, %v2364_v23 }
 0xa9c   :  { %v2382_v17 = vld [vmem:[%s13717_s3 + $0xe8] sm:$0xff] (!%p6206_p1)  ;;  %v2381_v28 = vld [vmem:[%s13717_s3 + $0xe0] sm:$0xff] (!%p6206_p1)  ;;  %v2367_v30 = vld [vmem:[%s13717_s3 + $0x70] sm:$0xff] (!%p6206_p1) }
 0xa9d   :  { %v6883_v26 = vpack.c.bf16 %v2382_v17, %v2378_v14  ;;  %v2386_v31 = vld [vmem:[%s13717_s3 + $0x108] sm:$0xff]  ;;  %v6909_v33 = vpack.c.bf16 %v2367_v30, %v2363_v25  ;;  %v2372_v34 = vld [vmem:[%s13717_s3 + $0x98] sm:$0xff]  ;;  %6908 = vmatprep.subr.bf16.mxu1 %v6907_v29  ;;  %v2371_v36 = vld [vmem:[%s13717_s3 + $0x90] sm:$0xff]  ;;  %v6885_v38 = vpack.c.bf16 %v2381_v28, %v2377_v27 }
 0xa9e   :  { %6878 = vmatpush1.bf16.msra.mxu0 %v6877_v10  ;;  %v2390_v32 = vld [vmem:[%s13717_s3 + $0x128] sm:$0xff]  ;;  %v2376_v35 = vld [vmem:[%s13717_s3 + $0xb8] sm:$0xff]  ;;  %v2375_v37 = vld [vmem:[%s13717_s3 + $0xb0] sm:$0xff] }
 0xa9f   :  { %6880 = vmatprep.subr.bf16.mxu0 %v6879_v13  ;;  %v2385_v39 = vld [vmem:[%s13717_s3 + $0x100] sm:$0xff]  ;;  %v6911_v41 = vpack.c.bf16 %v2376_v35, %v2372_v34  ;;  %v6887_v42 = vpack.c.bf16 %v2390_v32, %v2386_v31  ;;  %6910 = vmatpush1.bf16.msra.mxu1 %v6909_v33  ;;  %v2394_v43 = vld [vmem:[%s13717_s3 + $0x148] sm:$0xff]  ;;  %v6913_v44 = vpack.c.bf16 %v2375_v37, %v2371_v36  ;;  %v2380_v45 = vld [vmem:[%s13717_s3 + $0xd8] sm:$0xff] }
 0xaa0   :  { %v2389_v40 = vld [vmem:[%s13717_s3 + $0x120] sm:$0xff]  ;;  %v2384_v46 = vld [vmem:[%s13717_s3 + $0xf8] sm:$0xff]  ;;  %v2398_v47 = vld [vmem:[%s13717_s3 + $0x168] sm:$0xff] }
 0xaa1   :  { %6912 = vmatprep.subr.bf16.mxu1 %v6911_v41  ;;  %v6915_v48 = vpack.c.bf16 %v2384_v46, %v2380_v45  ;;  %v2379_v49 = vld [vmem:[%s13717_s3 + $0xd0] sm:$0xff]  ;;  %v6889_v51 = vpack.c.bf16 %v2389_v40, %v2385_v39  ;;  %v2388_v52 = vld [vmem:[%s13717_s3 + $0x118] sm:$0xff]  ;;  %v6891_v54 = vpack.c.bf16 %v2398_v47, %v2394_v43  ;;  %v2393_v55 = vld [vmem:[%s13717_s3 + $0x140] sm:$0xff] }
 0xaa2   :  { %6882 = vmatpush1.bf16.msra.mxu0 %v6881_v22  ;;  %v2383_v50 = vld [vmem:[%s13717_s3 + $0xf0] sm:$0xff]  ;;  %v2392_v53 = vld [vmem:[%s13717_s3 + $0x138] sm:$0xff]  ;;  %v2397_v56 = vld [vmem:[%s13717_s3 + $0x160] sm:$0xff] }
 0xaa3   :  { %6884 = vmatprep.subr.bf16.mxu0 %v6883_v26  ;;  %6914 = vmatpush1.bf16.msra.mxu1 %v6913_v44  ;;  %v2402_v57 = vld [vmem:[%s13717_s3 + $0x188] sm:$0xff]  ;;  %v6917_v58 = vpack.c.bf16 %v2383_v50, %v2379_v49  ;;  %v6919_v60 = vpack.c.bf16 %v2392_v53, %v2388_v52  ;;  %v2387_v61 = vld [vmem:[%s13717_s3 + $0x110] sm:$0xff]  ;;  %v2396_v63 = vld [vmem:[%s13717_s3 + $0x158] sm:$0xff]  ;;  %v6893_v1 = vpack.c.bf16 %v2397_v56, %v2393_v55 }
 0xaa4   :  { %v2406_v59 = vld [vmem:[%s13717_s3 + $0x1a8] sm:$0xff]  ;;  %6916 = vmatprep.subr.bf16.mxu1 %v6915_v48  ;;  %v2391_v62 = vld [vmem:[%s13717_s3 + $0x130] sm:$0xff]  ;;  %v2400_v0 = vld [vmem:[%s13717_s3 + $0x178] sm:$0xff] }
 0xaa5   :  { %v6895_v2 = vpack.c.bf16 %v2406_v59, %v2402_v57  ;;  %v2401_v3 = vld [vmem:[%s13717_s3 + $0x180] sm:$0xff]  ;;  %v2410_v6 = vld [vmem:[%s13717_s3 + $0x1c8] sm:$0xff]  ;;  %v6921_v7 = vpack.c.bf16 %v2391_v62, %v2387_v61  ;;  %v6923_v9 = vpack.c.bf16 %v2400_v0, %v2396_v63  ;;  %v2395_v10 = vld [vmem:[%s13717_s3 + $0x150] sm:$0xff] }
 0xaa6   :  { %6886 = vmatpush1.bf16.msra.mxu0 %v6885_v38  ;;  %v2405_v5 = vld [vmem:[%s13717_s3 + $0x1a0] sm:$0xff]  ;;  %v2414_v8 = vld [vmem:[%s13717_s3 + $0x1e8] sm:$0xff]  ;;  %v2399_v11 = vld [vmem:[%s13717_s3 + $0x170] sm:$0xff] }
 0xaa7   :  { %6888 = vmatprep.subr.bf16.mxu0 %v6887_v42  ;;  %6918 = vmatpush1.bf16.msra.mxu1 %v6917_v58  ;;  %v2404_v12 = vld [vmem:[%s13717_s3 + $0x198] sm:$0xff]  ;;  %v6897_v14 = vpack.c.bf16 %v2405_v5, %v2401_v3  ;;  %v6899_v15 = vpack.c.bf16 %v2414_v8, %v2410_v6  ;;  %v2409_v16 = vld [vmem:[%s13717_s3 + $0x1c0] sm:$0xff]  ;;  %v6925_v18 = vpack.c.bf16 %v2399_v11, %v2395_v10  ;;  %v2403_v20 = vld [vmem:[%s13717_s3 + $0x190] sm:$0xff] }
 0xaa8   :  { %6920 = vmatprep.subr.bf16.mxu1 %v6919_v60  ;;  %v2408_v13 = vld [vmem:[%s13717_s3 + $0x1b8] sm:$0xff]  ;;  %v2413_v17 = vld [vmem:[%s13717_s3 + $0x1e0] sm:$0xff]  ;;  %v2407_v21 = vld [vmem:[%s13717_s3 + $0x1b0] sm:$0xff] }
 0xaa9   :  { %v6927_v19 = vpack.c.bf16 %v2408_v13, %v2404_v12  ;;  %v2412_v22 = vld [vmem:[%s13717_s3 + $0x1d8] sm:$0xff]  ;;  %v6901_v24 = vpack.c.bf16 %v2413_v17, %v2409_v16  ;;  %v6929_v25 = vpack.c.bf16 %v2407_v21, %v2403_v20  ;;  %v2411_v27 = vld [vmem:[%s13717_s3 + $0x1d0] sm:$0xff]  ;;  %v2347_v29 = vld [vmem:[%s13719_s5] sm:$0xff] }
 0xaaa   :  { %6890 = vmatpush1.bf16.msra.mxu0 %v6889_v51  ;;  %v2416_v23 = vld [vmem:[%s13717_s3 + $0x1f8] sm:$0xff]  ;;  %v2415_v28 = vld [vmem:[%s13717_s3 + $0x1f0] sm:$0xff]  ;;  %v2349_v31 = vld [vmem:[%s13716_s2 + $0x120] sm:$0xff] }
 0xaab   :  { %6892 = vmatprep.subr.bf16.mxu0 %v6891_v54  ;;  %6922 = vmatpush1.bf16.msra.mxu1 %v6921_v7  ;;  %v6931_v26 = vpack.c.bf16 %v2416_v23, %v2412_v22  ;;  %v6933_v30 = vpack.c.bf16 %v2415_v28, %v2411_v27  ;;  %v2350_v32 = vld [vmem:[%s13716_s2 + $0x128] sm:$0xff]  ;;  %v2352_v39 = vld [vmem:[%s13716_s2 + $0x138] sm:$0xff]  ;;  %v2351_v43 = vld [vmem:[%s13716_s2 + $0x130] sm:$0xff] }
 0xaac   :  { %6924 = vmatprep.subr.bf16.mxu1 %v6923_v9  ;;  %v2348_v52 = vld [vmem:[%s13720_s6] sm:$0xff] }
 0xaae   :  { %6894 = vmatpush1.bf16.msra.mxu0 %v6893_v1 }
 0xaaf   :  { %6896 = vmatprep.subr.bf16.mxu0 %v6895_v2  ;;  %6926 = vmatpush1.bf16.msra.mxu1 %v6925_v18 }
 0xab0   :  { %6928 = vmatprep.subr.bf16.mxu1 %v6927_v19 }
 0xab2   :  { %6898 = vmatpush1.bf16.msra.mxu0 %v6897_v14 }
 0xab3   :  { %6900 = vmatprep.subr.bf16.mxu0 %v6899_v15  ;;  %6930 = vmatpush1.bf16.msra.mxu1 %v6929_v25 }
 0xab4   :  { %6932 = vmatprep.subr.bf16.mxu1 %v6931_v26 }
 0xab6   :  { %6902 = vmatpush1.bf16.msra.mxu0 %v6901_v24 }
 0xab7   :  { %6934 = vmatpush1.bf16.msra.mxu1 %v6933_v30 }
 0xab9   :  { %2482 = vmatmul.mubr.f32.vlgmr.msra.gmra.mrb[0].mxu0 %v2347_v29 }
 0xaba   :  { %2553 = vmatmul.mubr.f32.vlgmr.msra.gmra.mrb[0].mxu1 %v2347_v29 }
 0xb8c   :  { %v2483_v33 = vpop.f32.mrb[0].mxu0 }
 0xb8d   :  { %v2559_v34 = vadd.f32 %v2483_v33, %v2349_v31  ;;  %v2485_v35 = vpop.f32.mrb[1].mxu0  ;;  %v2554_v40 = vpop.f32.mrb[0].mxu1 }
 0xb8e   :  { %v2560_v36 = vadd.f32 %v2485_v35, %v2350_v32  ;;  %v2556_v41 = vpop.f32.mrb[1].mxu1  ;;  %v2561_v45 = vadd.f32 %v2554_v40, %v2351_v43 }
 0xb8f   :  { %v6207_v37 = vmul.f32 -1.442695, %v2559_v34  ;;  %v2562_v42 = vadd.f32 %v2556_v41, %v2352_v39 }
 0xb90   :  { %v6208_v38 = vmul.f32 -1.442695, %v2560_v36 }
 0xb91   :  { %8004 = vpow2.f32 %v6207_v37  ;;  %v6209_v44 = vmul.f32 -1.442695, %v2562_v42 }
 0xb92   :  { %8006 = vpow2.f32 %v6208_v38 }
 0xb93   :  { %8008 = vpow2.f32 %v6209_v44 }
 0xb94   :  { %8010 = vtanh.f32 %v2561_v45 }
 0xb9b   :  { %v8005_v46 = vpop.eup %8004 }
 0xb9c   :  { %v8007_v47 = vpop.eup %8006  ;;  %v2566_v48 = vadd.f32 1.0, %v8005_v46 }
 0xb9d   :  { %v2572_v49 = vadd.f32 1.0, %v8007_v47  ;;  %v8009_v50 = vpop.eup %8008 }
 0xb9e   :  { %8012 = vrcp.f32 %v2566_v48  ;;  %v8011_v51 = vpop.eup %8010  ;;  %v2579_v54 = vadd.f32 1.0, %v8009_v50 }
 0xb9f   :  { %8014 = vrcp.f32 %v2572_v49 }
 0xba0   :  { %8016 = vrcp.f32 %v2579_v54 }
 0xba8   :  { %v8013_v53 = vpop.eup %8012 }
 0xba9   :  { %v8015_v55 = vpop.eup %8014  ;;  %v2583_v56 = vmul.f32 %v8013_v53, %v8011_v51 }
 0xbaa   :  { %v2582_v57 = vmul.f32 %v8015_v55, %v2348_v52  ;;  %v8017_v60 = vpop.eup %8016 }
 0xbac   :  { %v2584_v58 = vadd.f32 %v2583_v56, %v2582_v57 }
 0xbae   :  { %8018 = vtanh.f32 %v2584_v58  ;;  %v2591_v59 = vsel %vm6210_vm9, %v2584_v58, %v2348_v52 }
 0xbaf   :  { %2592 = vst [vmem:[%s13720_s6] sm:$0xff] %v2591_v59 }
 0xbb8   :  { %v8019_v61 = vpop.eup %8018 }
 0xbb9   :  { %v2586_v62 = vmul.f32 %v8019_v61, %v8017_v60 }
 0xbbb   :  { %v2589_v63 = vsel %vm6210_vm9, %v2586_v62, %v2347_v29  ;;  %v2593_v0 = vsel %vm6210_vm9, %v2586_v62, 0.0 }
 0xbbc   :  { %2590 = vst [vmem:[%s13719_s5] sm:$0xff] %v2589_v63  ;;  %2594 = vst [vmem:[%s13718_s4 + $0x48] sm:$0xff] %v2593_v0 }
 0xbbd PF:  { %p6212_p2 = scmp.le.s32.totalorder %s8324_s26, 10 }
 0xbbe   :  { %v2607_v1 = vld [vmem:[%s13717_s3 + $0x8] sm:$0xff] (!%p6212_p2)  ;;  %v2606_v3 = vld [vmem:[%s13717_s3] sm:$0xff] (!%p6212_p2)  ;;  %v8272_v9 = vmov (!%p6212_p2), 0.0   ;;  %v2609_v21 = vld [vmem:[%s13717_s3 + $0x18] sm:$0xff] (!%p6212_p2)  ;;  %vm6216_vm10 = vcmp.gt.s32.totalorder (!%p6212_p2), %v8408_v4, 10 }
 0xbbf   :  { %2599 = sbr.rel (%p6212_p2) target bundleno = 3302 (0xce6), region = 65  ;;  %v2611_v2 = vld [vmem:[%s13717_s3 + $0x28] sm:$0xff] (!%p6212_p2)  ;;  %v2610_v6 = vld [vmem:[%s13717_s3 + $0x20] sm:$0xff] (!%p6212_p2)  ;;  %2734 = vmatprep.mubr.f32.mxu0 (!%p6212_p2), %v8272_v9  ;;  %2805 = vmatprep.mubr.f32.mxu1 (!%p6212_p2), %v8272_v9  ;;  %v2613_v22 = vld [vmem:[%s13717_s3 + $0x38] sm:$0xff] (!%p6212_p2) }
 0xbc0   :  { %v6935_v5 = vpack.c.bf16 (!%p6212_p2), %v2611_v2, %v2607_v1  ;;  %v2615_v7 = vld [vmem:[%s13717_s3 + $0x48] sm:$0xff] (!%p6212_p2)  ;;  %v6937_v10 = vpack.c.bf16 (!%p6212_p2), %v2610_v6, %v2606_v3  ;;  %v2614_v12 = vld [vmem:[%s13717_s3 + $0x40] sm:$0xff] (!%p6212_p2)  ;;  %v6967_v24 = vpack.c.bf16 (!%p6212_p2), %v2613_v22, %v2609_v21  ;;  %v2608_v25 = vld [vmem:[%s13717_s3 + $0x10] sm:$0xff] (!%p6212_p2) }
 0xbc1   :  { %v2619_v8 = vld [vmem:[%s13717_s3 + $0x68] sm:$0xff] (!%p6212_p2)  ;;  %v2618_v13 = vld [vmem:[%s13717_s3 + $0x60] sm:$0xff] (!%p6212_p2)  ;;  %v2612_v26 = vld [vmem:[%s13717_s3 + $0x30] sm:$0xff] (!%p6212_p2) }
 0xbc2   :  { %v6939_v11 = vpack.c.bf16 (!%p6212_p2), %v2619_v8, %v2615_v7  ;;  %v2623_v14 = vld [vmem:[%s13717_s3 + $0x88] sm:$0xff] (!%p6212_p2)  ;;  %6936 = vmatprep.subr.bf16.mxu0 (!%p6212_p2), %v6935_v5  ;;  %v6941_v16 = vpack.c.bf16 (!%p6212_p2), %v2618_v13, %v2614_v12  ;;  %v2622_v17 = vld [vmem:[%s13717_s3 + $0x80] sm:$0xff] (!%p6212_p2)  ;;  %v6969_v27 = vpack.c.bf16 (!%p6212_p2), %v2612_v26, %v2608_v25  ;;  %6968 = vmatprep.subr.bf16.mxu1 (!%p6212_p2), %v6967_v24  ;;  %v2617_v29 = vld [vmem:[%s13717_s3 + $0x58] sm:$0xff] (!%p6212_p2) }
 0xbc3   :  { %v2627_v15 = vld [vmem:[%s13717_s3 + $0xa8] sm:$0xff] (!%p6212_p2)  ;;  %6938 = vmatpush1.bf16.msra.mxu0 (!%p6212_p2), %v6937_v10  ;;  %v2626_v18 = vld [vmem:[%s13717_s3 + $0xa0] sm:$0xff] (!%p6212_p2)  ;;  %v2621_v30 = vld [vmem:[%s13717_s3 + $0x78] sm:$0xff] (!%p6212_p2) }
 0xbc4   :  { %6940 = vmatprep.subr.bf16.mxu0 (!%p6212_p2), %v6939_v11  ;;  %v6943_v19 = vpack.c.bf16 (!%p6212_p2), %v2627_v15, %v2623_v14  ;;  %v2631_v20 = vld [vmem:[%s13717_s3 + $0xc8] sm:$0xff] (!%p6212_p2)  ;;  %v6945_v28 = vpack.c.bf16 (!%p6212_p2), %v2626_v18, %v2622_v17  ;;  %v2616_v31 = vld [vmem:[%s13717_s3 + $0x50] sm:$0xff] (!%p6212_p2)  ;;  %v2630_v33 = vld [vmem:[%s13717_s3 + $0xc0] sm:$0xff] (!%p6212_p2)  ;;  %6970 = vmatpush1.bf16.msra.mxu1 (!%p6212_p2), %v6969_v27  ;;  %v6971_v35 = vpack.c.bf16 (!%p6212_p2), %v2621_v30, %v2617_v29 }
 0xbc5   :  { %v2635_v23 = vld [vmem:[%s13717_s3 + $0xe8] sm:$0xff] (!%p6212_p2)  ;;  %v2634_v34 = vld [vmem:[%s13717_s3 + $0xe0] sm:$0xff] (!%p6212_p2)  ;;  %v2620_v36 = vld [vmem:[%s13717_s3 + $0x70] sm:$0xff] (!%p6212_p2) }
 0xbc6   :  { %v6947_v32 = vpack.c.bf16 %v2635_v23, %v2631_v20  ;;  %v2639_v37 = vld [vmem:[%s13717_s3 + $0x108] sm:$0xff]  ;;  %v6973_v39 = vpack.c.bf16 %v2620_v36, %v2616_v31  ;;  %v2625_v40 = vld [vmem:[%s13717_s3 + $0x98] sm:$0xff]  ;;  %6972 = vmatprep.subr.bf16.mxu1 %v6971_v35  ;;  %v2624_v42 = vld [vmem:[%s13717_s3 + $0x90] sm:$0xff]  ;;  %v6949_v44 = vpack.c.bf16 %v2634_v34, %v2630_v33 }
 0xbc7   :  { %6942 = vmatpush1.bf16.msra.mxu0 %v6941_v16  ;;  %v2643_v38 = vld [vmem:[%s13717_s3 + $0x128] sm:$0xff]  ;;  %v2629_v41 = vld [vmem:[%s13717_s3 + $0xb8] sm:$0xff]  ;;  %v2628_v43 = vld [vmem:[%s13717_s3 + $0xb0] sm:$0xff] }
 0xbc8   :  { %6944 = vmatprep.subr.bf16.mxu0 %v6943_v19  ;;  %v2638_v45 = vld [vmem:[%s13717_s3 + $0x100] sm:$0xff]  ;;  %v6975_v47 = vpack.c.bf16 %v2629_v41, %v2625_v40  ;;  %v6951_v48 = vpack.c.bf16 %v2643_v38, %v2639_v37  ;;  %6974 = vmatpush1.bf16.msra.mxu1 %v6973_v39  ;;  %v2647_v49 = vld [vmem:[%s13717_s3 + $0x148] sm:$0xff]  ;;  %v6977_v50 = vpack.c.bf16 %v2628_v43, %v2624_v42  ;;  %v2633_v51 = vld [vmem:[%s13717_s3 + $0xd8] sm:$0xff] }
 0xbc9   :  { %v2642_v46 = vld [vmem:[%s13717_s3 + $0x120] sm:$0xff]  ;;  %v2637_v52 = vld [vmem:[%s13717_s3 + $0xf8] sm:$0xff]  ;;  %v2651_v53 = vld [vmem:[%s13717_s3 + $0x168] sm:$0xff] }
 0xbca   :  { %6976 = vmatprep.subr.bf16.mxu1 %v6975_v47  ;;  %v6979_v54 = vpack.c.bf16 %v2637_v52, %v2633_v51  ;;  %v2632_v55 = vld [vmem:[%s13717_s3 + $0xd0] sm:$0xff]  ;;  %v6953_v57 = vpack.c.bf16 %v2642_v46, %v2638_v45  ;;  %v2641_v58 = vld [vmem:[%s13717_s3 + $0x118] sm:$0xff]  ;;  %v6955_v60 = vpack.c.bf16 %v2651_v53, %v2647_v49  ;;  %v2646_v61 = vld [vmem:[%s13717_s3 + $0x140] sm:$0xff] }
 0xbcb   :  { %6946 = vmatpush1.bf16.msra.mxu0 %v6945_v28  ;;  %v2636_v56 = vld [vmem:[%s13717_s3 + $0xf0] sm:$0xff]  ;;  %v2645_v59 = vld [vmem:[%s13717_s3 + $0x138] sm:$0xff]  ;;  %v2650_v62 = vld [vmem:[%s13717_s3 + $0x160] sm:$0xff] }
 0xbcc   :  { %6948 = vmatprep.subr.bf16.mxu0 %v6947_v32  ;;  %6978 = vmatpush1.bf16.msra.mxu1 %v6977_v50  ;;  %v2655_v63 = vld [vmem:[%s13717_s3 + $0x188] sm:$0xff]  ;;  %v6981_v0 = vpack.c.bf16 %v2636_v56, %v2632_v55  ;;  %v6983_v2 = vpack.c.bf16 %v2645_v59, %v2641_v58  ;;  %v2640_v3 = vld [vmem:[%s13717_s3 + $0x110] sm:$0xff]  ;;  %v2649_v6 = vld [vmem:[%s13717_s3 + $0x158] sm:$0xff]  ;;  %v6957_v8 = vpack.c.bf16 %v2650_v62, %v2646_v61 }
 0xbcd   :  { %v2659_v1 = vld [vmem:[%s13717_s3 + $0x1a8] sm:$0xff]  ;;  %6980 = vmatprep.subr.bf16.mxu1 %v6979_v54  ;;  %v2644_v5 = vld [vmem:[%s13717_s3 + $0x130] sm:$0xff]  ;;  %v2653_v7 = vld [vmem:[%s13717_s3 + $0x178] sm:$0xff] }
 0xbce   :  { %v6959_v9 = vpack.c.bf16 %v2659_v1, %v2655_v63  ;;  %v2654_v10 = vld [vmem:[%s13717_s3 + $0x180] sm:$0xff]  ;;  %v2663_v12 = vld [vmem:[%s13717_s3 + $0x1c8] sm:$0xff]  ;;  %v6985_v13 = vpack.c.bf16 %v2644_v5, %v2640_v3  ;;  %v6987_v15 = vpack.c.bf16 %v2653_v7, %v2649_v6  ;;  %v2648_v16 = vld [vmem:[%s13717_s3 + $0x150] sm:$0xff] }
 0xbcf   :  { %6950 = vmatpush1.bf16.msra.mxu0 %v6949_v44  ;;  %v2658_v11 = vld [vmem:[%s13717_s3 + $0x1a0] sm:$0xff]  ;;  %v2667_v14 = vld [vmem:[%s13717_s3 + $0x1e8] sm:$0xff]  ;;  %v2652_v17 = vld [vmem:[%s13717_s3 + $0x170] sm:$0xff] }
 0xbd0   :  { %6952 = vmatprep.subr.bf16.mxu0 %v6951_v48  ;;  %6982 = vmatpush1.bf16.msra.mxu1 %v6981_v0  ;;  %v2657_v18 = vld [vmem:[%s13717_s3 + $0x198] sm:$0xff]  ;;  %v6961_v20 = vpack.c.bf16 %v2658_v11, %v2654_v10  ;;  %v6963_v21 = vpack.c.bf16 %v2667_v14, %v2663_v12  ;;  %v2662_v22 = vld [vmem:[%s13717_s3 + $0x1c0] sm:$0xff]  ;;  %v6989_v24 = vpack.c.bf16 %v2652_v17, %v2648_v16  ;;  %v2656_v26 = vld [vmem:[%s13717_s3 + $0x190] sm:$0xff] }
 0xbd1   :  { %6984 = vmatprep.subr.bf16.mxu1 %v6983_v2  ;;  %v2661_v19 = vld [vmem:[%s13717_s3 + $0x1b8] sm:$0xff]  ;;  %v2666_v23 = vld [vmem:[%s13717_s3 + $0x1e0] sm:$0xff]  ;;  %v2660_v27 = vld [vmem:[%s13717_s3 + $0x1b0] sm:$0xff] }
 0xbd2   :  { %v6991_v25 = vpack.c.bf16 %v2661_v19, %v2657_v18  ;;  %v2665_v28 = vld [vmem:[%s13717_s3 + $0x1d8] sm:$0xff]  ;;  %v6965_v30 = vpack.c.bf16 %v2666_v23, %v2662_v22  ;;  %v6993_v31 = vpack.c.bf16 %v2660_v27, %v2656_v26  ;;  %v2664_v33 = vld [vmem:[%s13717_s3 + $0x1d0] sm:$0xff]  ;;  %v2600_v35 = vld [vmem:[%s13719_s5] sm:$0xff] }
 0xbd3   :  { %6954 = vmatpush1.bf16.msra.mxu0 %v6953_v57  ;;  %v2669_v29 = vld [vmem:[%s13717_s3 + $0x1f8] sm:$0xff]  ;;  %v2668_v34 = vld [vmem:[%s13717_s3 + $0x1f0] sm:$0xff]  ;;  %v2602_v37 = vld [vmem:[%s13716_s2 + $0x140] sm:$0xff] }
 0xbd4   :  { %6956 = vmatprep.subr.bf16.mxu0 %v6955_v60  ;;  %6986 = vmatpush1.bf16.msra.mxu1 %v6985_v13  ;;  %v6995_v32 = vpack.c.bf16 %v2669_v29, %v2665_v28  ;;  %v6997_v36 = vpack.c.bf16 %v2668_v34, %v2664_v33  ;;  %v2603_v38 = vld [vmem:[%s13716_s2 + $0x148] sm:$0xff]  ;;  %v2605_v45 = vld [vmem:[%s13716_s2 + $0x158] sm:$0xff]  ;;  %v2604_v49 = vld [vmem:[%s13716_s2 + $0x150] sm:$0xff] }
 0xbd5   :  { %6988 = vmatprep.subr.bf16.mxu1 %v6987_v15  ;;  %v2601_v58 = vld [vmem:[%s13720_s6] sm:$0xff] }
 0xbd7   :  { %6958 = vmatpush1.bf16.msra.mxu0 %v6957_v8 }
 0xbd8   :  { %6960 = vmatprep.subr.bf16.mxu0 %v6959_v9  ;;  %6990 = vmatpush1.bf16.msra.mxu1 %v6989_v24 }
 0xbd9   :  { %6992 = vmatprep.subr.bf16.mxu1 %v6991_v25 }
 0xbdb   :  { %6962 = vmatpush1.bf16.msra.mxu0 %v6961_v20 }
 0xbdc   :  { %6964 = vmatprep.subr.bf16.mxu0 %v6963_v21  ;;  %6994 = vmatpush1.bf16.msra.mxu1 %v6993_v31 }
 0xbdd   :  { %6996 = vmatprep.subr.bf16.mxu1 %v6995_v32 }
 0xbdf   :  { %6966 = vmatpush1.bf16.msra.mxu0 %v6965_v30 }
 0xbe0   :  { %6998 = vmatpush1.bf16.msra.mxu1 %v6997_v36 }
 0xbe2   :  { %2735 = vmatmul.mubr.f32.vlgmr.msra.gmra.mrb[0].mxu0 %v2600_v35 }
 0xbe3   :  { %2806 = vmatmul.mubr.f32.vlgmr.msra.gmra.mrb[0].mxu1 %v2600_v35 }
 0xcb5   :  { %v2736_v39 = vpop.f32.mrb[0].mxu0 }
 0xcb6   :  { %v2812_v40 = vadd.f32 %v2736_v39, %v2602_v37  ;;  %v2738_v41 = vpop.f32.mrb[1].mxu0  ;;  %v2807_v46 = vpop.f32.mrb[0].mxu1 }
 0xcb7   :  { %v2813_v42 = vadd.f32 %v2738_v41, %v2603_v38  ;;  %v2809_v47 = vpop.f32.mrb[1].mxu1  ;;  %v2814_v51 = vadd.f32 %v2807_v46, %v2604_v49 }
 0xcb8   :  { %v6213_v43 = vmul.f32 -1.442695, %v2812_v40  ;;  %v2815_v48 = vadd.f32 %v2809_v47, %v2605_v45 }
 0xcb9   :  { %v6214_v44 = vmul.f32 -1.442695, %v2813_v42 }
 0xcba   :  { %8020 = vpow2.f32 %v6213_v43  ;;  %v6215_v50 = vmul.f32 -1.442695, %v2815_v48 }
 0xcbb   :  { %8022 = vpow2.f32 %v6214_v44 }
 0xcbc   :  { %8024 = vpow2.f32 %v6215_v50 }
 0xcbd   :  { %8026 = vtanh.f32 %v2814_v51 }
 0xcc4   :  { %v8021_v52 = vpop.eup %8020 }
 0xcc5   :  { %v8023_v53 = vpop.eup %8022  ;;  %v2819_v54 = vadd.f32 1.0, %v8021_v52 }
 0xcc6   :  { %v2825_v55 = vadd.f32 1.0, %v8023_v53  ;;  %v8025_v56 = vpop.eup %8024 }
 0xcc7   :  { %8028 = vrcp.f32 %v2819_v54  ;;  %v8027_v57 = vpop.eup %8026  ;;  %v2832_v60 = vadd.f32 1.0, %v8025_v56 }
 0xcc8   :  { %8030 = vrcp.f32 %v2825_v55 }
 0xcc9   :  { %8032 = vrcp.f32 %v2832_v60 }
 0xcd1   :  { %v8029_v59 = vpop.eup %8028 }
 0xcd2   :  { %v8031_v61 = vpop.eup %8030  ;;  %v2836_v62 = vmul.f32 %v8029_v59, %v8027_v57 }
 0xcd3   :  { %v2835_v63 = vmul.f32 %v8031_v61, %v2601_v58  ;;  %v8033_v2 = vpop.eup %8032 }
 0xcd5   :  { %v2837_v0 = vadd.f32 %v2836_v62, %v2835_v63 }
 0xcd7   :  { %8034 = vtanh.f32 %v2837_v0  ;;  %v2844_v1 = vsel %vm6216_vm10, %v2837_v0, %v2601_v58 }
 0xcd8   :  { %2845 = vst [vmem:[%s13720_s6] sm:$0xff] %v2844_v1 }
 0xce1   :  { %v8035_v3 = vpop.eup %8034 }
 0xce2   :  { %v2839_v5 = vmul.f32 %v8035_v3, %v8033_v2 }
 0xce4   :  { %v2842_v6 = vsel %vm6216_vm10, %v2839_v5, %v2600_v35  ;;  %v2846_v7 = vsel %vm6216_vm10, %v2839_v5, 0.0 }
 0xce5   :  { %2843 = vst [vmem:[%s13719_s5] sm:$0xff] %v2842_v6  ;;  %2847 = vst [vmem:[%s13718_s4 + $0x50] sm:$0xff] %v2846_v7 }
 0xce6 PF:  { %p6218_p3 = scmp.le.s32.totalorder %s8324_s26, 11 }
 0xce7   :  { %v2860_v8 = vld [vmem:[%s13717_s3 + $0x8] sm:$0xff] (!%p6218_p3)  ;;  %v2859_v10 = vld [vmem:[%s13717_s3] sm:$0xff] (!%p6218_p3)  ;;  %v8273_v15 = vmov (!%p6218_p3), 0.0   ;;  %v2862_v27 = vld [vmem:[%s13717_s3 + $0x18] sm:$0xff] (!%p6218_p3)  ;;  %vm6222_vm11 = vcmp.gt.s32.totalorder (!%p6218_p3), %v8408_v4, 11 }
 0xce8   :  { %2852 = sbr.rel (%p6218_p3) target bundleno = 3599 (0xe0f), region = 69  ;;  %v2864_v9 = vld [vmem:[%s13717_s3 + $0x28] sm:$0xff] (!%p6218_p3)  ;;  %v2863_v12 = vld [vmem:[%s13717_s3 + $0x20] sm:$0xff] (!%p6218_p3)  ;;  %2987 = vmatprep.mubr.f32.mxu0 (!%p6218_p3), %v8273_v15  ;;  %3058 = vmatprep.mubr.f32.mxu1 (!%p6218_p3), %v8273_v15  ;;  %v2866_v28 = vld [vmem:[%s13717_s3 + $0x38] sm:$0xff] (!%p6218_p3) }
 0xce9   :  { %v6999_v11 = vpack.c.bf16 (!%p6218_p3), %v2864_v9, %v2860_v8  ;;  %v2868_v13 = vld [vmem:[%s13717_s3 + $0x48] sm:$0xff] (!%p6218_p3)  ;;  %v7001_v16 = vpack.c.bf16 (!%p6218_p3), %v2863_v12, %v2859_v10  ;;  %v2867_v18 = vld [vmem:[%s13717_s3 + $0x40] sm:$0xff] (!%p6218_p3)  ;;  %v7031_v30 = vpack.c.bf16 (!%p6218_p3), %v2866_v28, %v2862_v27  ;;  %v2861_v31 = vld [vmem:[%s13717_s3 + $0x10] sm:$0xff] (!%p6218_p3) }
 0xcea   :  { %v2872_v14 = vld [vmem:[%s13717_s3 + $0x68] sm:$0xff] (!%p6218_p3)  ;;  %v2871_v19 = vld [vmem:[%s13717_s3 + $0x60] sm:$0xff] (!%p6218_p3)  ;;  %v2865_v32 = vld [vmem:[%s13717_s3 + $0x30] sm:$0xff] (!%p6218_p3) }
 0xceb   :  { %v7003_v17 = vpack.c.bf16 (!%p6218_p3), %v2872_v14, %v2868_v13  ;;  %v2876_v20 = vld [vmem:[%s13717_s3 + $0x88] sm:$0xff] (!%p6218_p3)  ;;  %7000 = vmatprep.subr.bf16.mxu0 (!%p6218_p3), %v6999_v11  ;;  %v7005_v22 = vpack.c.bf16 (!%p6218_p3), %v2871_v19, %v2867_v18  ;;  %v2875_v23 = vld [vmem:[%s13717_s3 + $0x80] sm:$0xff] (!%p6218_p3)  ;;  %v7033_v33 = vpack.c.bf16 (!%p6218_p3), %v2865_v32, %v2861_v31  ;;  %7032 = vmatprep.subr.bf16.mxu1 (!%p6218_p3), %v7031_v30  ;;  %v2870_v35 = vld [vmem:[%s13717_s3 + $0x58] sm:$0xff] (!%p6218_p3) }
 0xcec   :  { %v2880_v21 = vld [vmem:[%s13717_s3 + $0xa8] sm:$0xff] (!%p6218_p3)  ;;  %7002 = vmatpush1.bf16.msra.mxu0 (!%p6218_p3), %v7001_v16  ;;  %v2879_v24 = vld [vmem:[%s13717_s3 + $0xa0] sm:$0xff] (!%p6218_p3)  ;;  %v2874_v36 = vld [vmem:[%s13717_s3 + $0x78] sm:$0xff] (!%p6218_p3) }
 0xced   :  { %7004 = vmatprep.subr.bf16.mxu0 (!%p6218_p3), %v7003_v17  ;;  %v7007_v25 = vpack.c.bf16 (!%p6218_p3), %v2880_v21, %v2876_v20  ;;  %v2884_v26 = vld [vmem:[%s13717_s3 + $0xc8] sm:$0xff] (!%p6218_p3)  ;;  %v7009_v34 = vpack.c.bf16 (!%p6218_p3), %v2879_v24, %v2875_v23  ;;  %v2869_v37 = vld [vmem:[%s13717_s3 + $0x50] sm:$0xff] (!%p6218_p3)  ;;  %v2883_v39 = vld [vmem:[%s13717_s3 + $0xc0] sm:$0xff] (!%p6218_p3)  ;;  %7034 = vmatpush1.bf16.msra.mxu1 (!%p6218_p3), %v7033_v33  ;;  %v7035_v41 = vpack.c.bf16 (!%p6218_p3), %v2874_v36, %v2870_v35 }
 0xcee   :  { %v2888_v29 = vld [vmem:[%s13717_s3 + $0xe8] sm:$0xff] (!%p6218_p3)  ;;  %v2887_v40 = vld [vmem:[%s13717_s3 + $0xe0] sm:$0xff] (!%p6218_p3)  ;;  %v2873_v42 = vld [vmem:[%s13717_s3 + $0x70] sm:$0xff] (!%p6218_p3) }
 0xcef   :  { %v7011_v38 = vpack.c.bf16 %v2888_v29, %v2884_v26  ;;  %v2892_v43 = vld [vmem:[%s13717_s3 + $0x108] sm:$0xff]  ;;  %v7037_v45 = vpack.c.bf16 %v2873_v42, %v2869_v37  ;;  %v2878_v46 = vld [vmem:[%s13717_s3 + $0x98] sm:$0xff]  ;;  %7036 = vmatprep.subr.bf16.mxu1 %v7035_v41  ;;  %v2877_v48 = vld [vmem:[%s13717_s3 + $0x90] sm:$0xff]  ;;  %v7013_v50 = vpack.c.bf16 %v2887_v40, %v2883_v39 }
 0xcf0   :  { %7006 = vmatpush1.bf16.msra.mxu0 %v7005_v22  ;;  %v2896_v44 = vld [vmem:[%s13717_s3 + $0x128] sm:$0xff]  ;;  %v2882_v47 = vld [vmem:[%s13717_s3 + $0xb8] sm:$0xff]  ;;  %v2881_v49 = vld [vmem:[%s13717_s3 + $0xb0] sm:$0xff] }
 0xcf1   :  { %7008 = vmatprep.subr.bf16.mxu0 %v7007_v25  ;;  %v2891_v51 = vld [vmem:[%s13717_s3 + $0x100] sm:$0xff]  ;;  %v7039_v53 = vpack.c.bf16 %v2882_v47, %v2878_v46  ;;  %v7015_v54 = vpack.c.bf16 %v2896_v44, %v2892_v43  ;;  %7038 = vmatpush1.bf16.msra.mxu1 %v7037_v45  ;;  %v2900_v55 = vld [vmem:[%s13717_s3 + $0x148] sm:$0xff]  ;;  %v7041_v56 = vpack.c.bf16 %v2881_v49, %v2877_v48  ;;  %v2886_v57 = vld [vmem:[%s13717_s3 + $0xd8] sm:$0xff] }
 0xcf2   :  { %v2895_v52 = vld [vmem:[%s13717_s3 + $0x120] sm:$0xff]  ;;  %v2890_v58 = vld [vmem:[%s13717_s3 + $0xf8] sm:$0xff]  ;;  %v2904_v59 = vld [vmem:[%s13717_s3 + $0x168] sm:$0xff] }
 0xcf3   :  { %7040 = vmatprep.subr.bf16.mxu1 %v7039_v53  ;;  %v7043_v60 = vpack.c.bf16 %v2890_v58, %v2886_v57  ;;  %v2885_v61 = vld [vmem:[%s13717_s3 + $0xd0] sm:$0xff]  ;;  %v7017_v63 = vpack.c.bf16 %v2895_v52, %v2891_v51  ;;  %v2894_v0 = vld [vmem:[%s13717_s3 + $0x118] sm:$0xff]  ;;  %v7019_v2 = vpack.c.bf16 %v2904_v59, %v2900_v55  ;;  %v2899_v3 = vld [vmem:[%s13717_s3 + $0x140] sm:$0xff] }
 0xcf4   :  { %7010 = vmatpush1.bf16.msra.mxu0 %v7009_v34  ;;  %v2889_v62 = vld [vmem:[%s13717_s3 + $0xf0] sm:$0xff]  ;;  %v2898_v1 = vld [vmem:[%s13717_s3 + $0x138] sm:$0xff]  ;;  %v2903_v5 = vld [vmem:[%s13717_s3 + $0x160] sm:$0xff] }
 0xcf5   :  { %7012 = vmatprep.subr.bf16.mxu0 %v7011_v38  ;;  %7042 = vmatpush1.bf16.msra.mxu1 %v7041_v56  ;;  %v2908_v6 = vld [vmem:[%s13717_s3 + $0x188] sm:$0xff]  ;;  %v7045_v7 = vpack.c.bf16 %v2889_v62, %v2885_v61  ;;  %v7047_v9 = vpack.c.bf16 %v2898_v1, %v2894_v0  ;;  %v2893_v10 = vld [vmem:[%s13717_s3 + $0x110] sm:$0xff]  ;;  %v2902_v12 = vld [vmem:[%s13717_s3 + $0x158] sm:$0xff]  ;;  %v7021_v14 = vpack.c.bf16 %v2903_v5, %v2899_v3 }
 0xcf6   :  { %v2912_v8 = vld [vmem:[%s13717_s3 + $0x1a8] sm:$0xff]  ;;  %7044 = vmatprep.subr.bf16.mxu1 %v7043_v60  ;;  %v2897_v11 = vld [vmem:[%s13717_s3 + $0x130] sm:$0xff]  ;;  %v2906_v13 = vld [vmem:[%s13717_s3 + $0x178] sm:$0xff] }
 0xcf7   :  { %v7023_v15 = vpack.c.bf16 %v2912_v8, %v2908_v6  ;;  %v2907_v16 = vld [vmem:[%s13717_s3 + $0x180] sm:$0xff]  ;;  %v2916_v18 = vld [vmem:[%s13717_s3 + $0x1c8] sm:$0xff]  ;;  %v7049_v19 = vpack.c.bf16 %v2897_v11, %v2893_v10  ;;  %v7051_v21 = vpack.c.bf16 %v2906_v13, %v2902_v12  ;;  %v2901_v22 = vld [vmem:[%s13717_s3 + $0x150] sm:$0xff] }
 0xcf8   :  { %7014 = vmatpush1.bf16.msra.mxu0 %v7013_v50  ;;  %v2911_v17 = vld [vmem:[%s13717_s3 + $0x1a0] sm:$0xff]  ;;  %v2920_v20 = vld [vmem:[%s13717_s3 + $0x1e8] sm:$0xff]  ;;  %v2905_v23 = vld [vmem:[%s13717_s3 + $0x170] sm:$0xff] }
 0xcf9   :  { %7016 = vmatprep.subr.bf16.mxu0 %v7015_v54  ;;  %7046 = vmatpush1.bf16.msra.mxu1 %v7045_v7  ;;  %v2910_v24 = vld [vmem:[%s13717_s3 + $0x198] sm:$0xff]  ;;  %v7025_v26 = vpack.c.bf16 %v2911_v17, %v2907_v16  ;;  %v7027_v27 = vpack.c.bf16 %v2920_v20, %v2916_v18  ;;  %v2915_v28 = vld [vmem:[%s13717_s3 + $0x1c0] sm:$0xff]  ;;  %v7053_v30 = vpack.c.bf16 %v2905_v23, %v2901_v22  ;;  %v2909_v32 = vld [vmem:[%s13717_s3 + $0x190] sm:$0xff] }
 0xcfa   :  { %7048 = vmatprep.subr.bf16.mxu1 %v7047_v9  ;;  %v2914_v25 = vld [vmem:[%s13717_s3 + $0x1b8] sm:$0xff]  ;;  %v2919_v29 = vld [vmem:[%s13717_s3 + $0x1e0] sm:$0xff]  ;;  %v2913_v33 = vld [vmem:[%s13717_s3 + $0x1b0] sm:$0xff] }
 0xcfb   :  { %v7055_v31 = vpack.c.bf16 %v2914_v25, %v2910_v24  ;;  %v2918_v34 = vld [vmem:[%s13717_s3 + $0x1d8] sm:$0xff]  ;;  %v7029_v36 = vpack.c.bf16 %v2919_v29, %v2915_v28  ;;  %v7057_v37 = vpack.c.bf16 %v2913_v33, %v2909_v32  ;;  %v2917_v39 = vld [vmem:[%s13717_s3 + $0x1d0] sm:$0xff]  ;;  %v2853_v41 = vld [vmem:[%s13719_s5] sm:$0xff] }
 0xcfc   :  { %7018 = vmatpush1.bf16.msra.mxu0 %v7017_v63  ;;  %v2922_v35 = vld [vmem:[%s13717_s3 + $0x1f8] sm:$0xff]  ;;  %v2921_v40 = vld [vmem:[%s13717_s3 + $0x1f0] sm:$0xff]  ;;  %v2855_v43 = vld [vmem:[%s13716_s2 + $0x160] sm:$0xff] }
 0xcfd   :  { %7020 = vmatprep.subr.bf16.mxu0 %v7019_v2  ;;  %7050 = vmatpush1.bf16.msra.mxu1 %v7049_v19  ;;  %v7059_v38 = vpack.c.bf16 %v2922_v35, %v2918_v34  ;;  %v7061_v42 = vpack.c.bf16 %v2921_v40, %v2917_v39  ;;  %v2856_v44 = vld [vmem:[%s13716_s2 + $0x168] sm:$0xff]  ;;  %v2858_v51 = vld [vmem:[%s13716_s2 + $0x178] sm:$0xff]  ;;  %v2857_v55 = vld [vmem:[%s13716_s2 + $0x170] sm:$0xff] }
 0xcfe   :  { %7052 = vmatprep.subr.bf16.mxu1 %v7051_v21  ;;  %v2854_v0 = vld [vmem:[%s13720_s6] sm:$0xff] }
 0xd00   :  { %7022 = vmatpush1.bf16.msra.mxu0 %v7021_v14 }
 0xd01   :  { %7024 = vmatprep.subr.bf16.mxu0 %v7023_v15  ;;  %7054 = vmatpush1.bf16.msra.mxu1 %v7053_v30 }
 0xd02   :  { %7056 = vmatprep.subr.bf16.mxu1 %v7055_v31 }
 0xd04   :  { %7026 = vmatpush1.bf16.msra.mxu0 %v7025_v26 }
 0xd05   :  { %7028 = vmatprep.subr.bf16.mxu0 %v7027_v27  ;;  %7058 = vmatpush1.bf16.msra.mxu1 %v7057_v37 }
 0xd06   :  { %7060 = vmatprep.subr.bf16.mxu1 %v7059_v38 }
 0xd08   :  { %7030 = vmatpush1.bf16.msra.mxu0 %v7029_v36 }
 0xd09   :  { %7062 = vmatpush1.bf16.msra.mxu1 %v7061_v42 }
 0xd0b   :  { %2988 = vmatmul.mubr.f32.vlgmr.msra.gmra.mrb[0].mxu0 %v2853_v41 }
 0xd0c   :  { %3059 = vmatmul.mubr.f32.vlgmr.msra.gmra.mrb[0].mxu1 %v2853_v41 }
 0xdde   :  { %v2989_v45 = vpop.f32.mrb[0].mxu0 }
 0xddf   :  { %v3065_v46 = vadd.f32 %v2989_v45, %v2855_v43  ;;  %v2991_v47 = vpop.f32.mrb[1].mxu0  ;;  %v3060_v52 = vpop.f32.mrb[0].mxu1 }
 0xde0   :  { %v3066_v48 = vadd.f32 %v2991_v47, %v2856_v44  ;;  %v3062_v53 = vpop.f32.mrb[1].mxu1  ;;  %v3067_v57 = vadd.f32 %v3060_v52, %v2857_v55 }
 0xde1   :  { %v6219_v49 = vmul.f32 -1.442695, %v3065_v46  ;;  %v3068_v54 = vadd.f32 %v3062_v53, %v2858_v51 }
 0xde2   :  { %v6220_v50 = vmul.f32 -1.442695, %v3066_v48 }
 0xde3   :  { %8036 = vpow2.f32 %v6219_v49  ;;  %v6221_v56 = vmul.f32 -1.442695, %v3068_v54 }
 0xde4   :  { %8038 = vpow2.f32 %v6220_v50 }
 0xde5   :  { %8040 = vpow2.f32 %v6221_v56 }
 0xde6   :  { %8042 = vtanh.f32 %v3067_v57 }
 0xded   :  { %v8037_v58 = vpop.eup %8036 }
 0xdee   :  { %v8039_v59 = vpop.eup %8038  ;;  %v3072_v60 = vadd.f32 1.0, %v8037_v58 }
 0xdef   :  { %v3078_v61 = vadd.f32 1.0, %v8039_v59  ;;  %v8041_v62 = vpop.eup %8040 }
 0xdf0   :  { %8044 = vrcp.f32 %v3072_v60  ;;  %v8043_v63 = vpop.eup %8042  ;;  %v3085_v2 = vadd.f32 1.0, %v8041_v62 }
 0xdf1   :  { %8046 = vrcp.f32 %v3078_v61 }
 0xdf2   :  { %8048 = vrcp.f32 %v3085_v2 }
 0xdfa   :  { %v8045_v1 = vpop.eup %8044 }
 0xdfb   :  { %v8047_v3 = vpop.eup %8046  ;;  %v3089_v5 = vmul.f32 %v8045_v1, %v8043_v63 }
 0xdfc   :  { %v3088_v6 = vmul.f32 %v8047_v3, %v2854_v0  ;;  %v8049_v9 = vpop.eup %8048 }
 0xdfe   :  { %v3090_v7 = vadd.f32 %v3089_v5, %v3088_v6 }
 0xe00   :  { %8050 = vtanh.f32 %v3090_v7  ;;  %v3097_v8 = vsel %vm6222_vm11, %v3090_v7, %v2854_v0 }
 0xe01   :  { %3098 = vst [vmem:[%s13720_s6] sm:$0xff] %v3097_v8 }
 0xe0a   :  { %v8051_v10 = vpop.eup %8050 }
 0xe0b   :  { %v3092_v11 = vmul.f32 %v8051_v10, %v8049_v9 }
 0xe0d   :  { %v3095_v12 = vsel %vm6222_vm11, %v3092_v11, %v2853_v41  ;;  %v3099_v13 = vsel %vm6222_vm11, %v3092_v11, 0.0 }
 0xe0e   :  { %3096 = vst [vmem:[%s13719_s5] sm:$0xff] %v3095_v12  ;;  %3100 = vst [vmem:[%s13718_s4 + $0x58] sm:$0xff] %v3099_v13 }
 0xe0f PF:  { %p6224_p4 = scmp.le.s32.totalorder %s8324_s26, 12 }
 0xe10   :  { %v3113_v14 = vld [vmem:[%s13717_s3 + $0x8] sm:$0xff] (!%p6224_p4)  ;;  %v3112_v16 = vld [vmem:[%s13717_s3] sm:$0xff] (!%p6224_p4)  ;;  %v8274_v21 = vmov (!%p6224_p4), 0.0   ;;  %v3115_v33 = vld [vmem:[%s13717_s3 + $0x18] sm:$0xff] (!%p6224_p4)  ;;  %vm6228_vm12 = vcmp.gt.s32.totalorder (!%p6224_p4), %v8408_v4, 12 }
 0xe11   :  { %3105 = sbr.rel (%p6224_p4) target bundleno = 3896 (0xf38), region = 73  ;;  %v3117_v15 = vld [vmem:[%s13717_s3 + $0x28] sm:$0xff] (!%p6224_p4)  ;;  %v3116_v18 = vld [vmem:[%s13717_s3 + $0x20] sm:$0xff] (!%p6224_p4)  ;;  %3240 = vmatprep.mubr.f32.mxu0 (!%p6224_p4), %v8274_v21  ;;  %3311 = vmatprep.mubr.f32.mxu1 (!%p6224_p4), %v8274_v21  ;;  %v3119_v34 = vld [vmem:[%s13717_s3 + $0x38] sm:$0xff] (!%p6224_p4) }
 0xe12   :  { %v7063_v17 = vpack.c.bf16 (!%p6224_p4), %v3117_v15, %v3113_v14  ;;  %v3121_v19 = vld [vmem:[%s13717_s3 + $0x48] sm:$0xff] (!%p6224_p4)  ;;  %v7065_v22 = vpack.c.bf16 (!%p6224_p4), %v3116_v18, %v3112_v16  ;;  %v3120_v24 = vld [vmem:[%s13717_s3 + $0x40] sm:$0xff] (!%p6224_p4)  ;;  %v7095_v36 = vpack.c.bf16 (!%p6224_p4), %v3119_v34, %v3115_v33  ;;  %v3114_v37 = vld [vmem:[%s13717_s3 + $0x10] sm:$0xff] (!%p6224_p4) }
 0xe13   :  { %v3125_v20 = vld [vmem:[%s13717_s3 + $0x68] sm:$0xff] (!%p6224_p4)  ;;  %v3124_v25 = vld [vmem:[%s13717_s3 + $0x60] sm:$0xff] (!%p6224_p4)  ;;  %v3118_v38 = vld [vmem:[%s13717_s3 + $0x30] sm:$0xff] (!%p6224_p4) }
 0xe14   :  { %v7067_v23 = vpack.c.bf16 (!%p6224_p4), %v3125_v20, %v3121_v19  ;;  %v3129_v26 = vld [vmem:[%s13717_s3 + $0x88] sm:$0xff] (!%p6224_p4)  ;;  %7064 = vmatprep.subr.bf16.mxu0 (!%p6224_p4), %v7063_v17  ;;  %v7069_v28 = vpack.c.bf16 (!%p6224_p4), %v3124_v25, %v3120_v24  ;;  %v3128_v29 = vld [vmem:[%s13717_s3 + $0x80] sm:$0xff] (!%p6224_p4)  ;;  %v7097_v39 = vpack.c.bf16 (!%p6224_p4), %v3118_v38, %v3114_v37  ;;  %7096 = vmatprep.subr.bf16.mxu1 (!%p6224_p4), %v7095_v36  ;;  %v3123_v41 = vld [vmem:[%s13717_s3 + $0x58] sm:$0xff] (!%p6224_p4) }
 0xe15   :  { %v3133_v27 = vld [vmem:[%s13717_s3 + $0xa8] sm:$0xff] (!%p6224_p4)  ;;  %7066 = vmatpush1.bf16.msra.mxu0 (!%p6224_p4), %v7065_v22  ;;  %v3132_v30 = vld [vmem:[%s13717_s3 + $0xa0] sm:$0xff] (!%p6224_p4)  ;;  %v3127_v42 = vld [vmem:[%s13717_s3 + $0x78] sm:$0xff] (!%p6224_p4) }
 0xe16   :  { %7068 = vmatprep.subr.bf16.mxu0 (!%p6224_p4), %v7067_v23  ;;  %v7071_v31 = vpack.c.bf16 (!%p6224_p4), %v3133_v27, %v3129_v26  ;;  %v3137_v32 = vld [vmem:[%s13717_s3 + $0xc8] sm:$0xff] (!%p6224_p4)  ;;  %v7073_v40 = vpack.c.bf16 (!%p6224_p4), %v3132_v30, %v3128_v29  ;;  %v3122_v43 = vld [vmem:[%s13717_s3 + $0x50] sm:$0xff] (!%p6224_p4)  ;;  %v3136_v45 = vld [vmem:[%s13717_s3 + $0xc0] sm:$0xff] (!%p6224_p4)  ;;  %7098 = vmatpush1.bf16.msra.mxu1 (!%p6224_p4), %v7097_v39  ;;  %v7099_v47 = vpack.c.bf16 (!%p6224_p4), %v3127_v42, %v3123_v41 }
 0xe17   :  { %v3141_v35 = vld [vmem:[%s13717_s3 + $0xe8] sm:$0xff] (!%p6224_p4)  ;;  %v3140_v46 = vld [vmem:[%s13717_s3 + $0xe0] sm:$0xff] (!%p6224_p4)  ;;  %v3126_v48 = vld [vmem:[%s13717_s3 + $0x70] sm:$0xff] (!%p6224_p4) }
 0xe18   :  { %v7075_v44 = vpack.c.bf16 %v3141_v35, %v3137_v32  ;;  %v3145_v49 = vld [vmem:[%s13717_s3 + $0x108] sm:$0xff]  ;;  %v7101_v51 = vpack.c.bf16 %v3126_v48, %v3122_v43  ;;  %v3131_v52 = vld [vmem:[%s13717_s3 + $0x98] sm:$0xff]  ;;  %7100 = vmatprep.subr.bf16.mxu1 %v7099_v47  ;;  %v3130_v54 = vld [vmem:[%s13717_s3 + $0x90] sm:$0xff]  ;;  %v7077_v56 = vpack.c.bf16 %v3140_v46, %v3136_v45 }
 0xe19   :  { %7070 = vmatpush1.bf16.msra.mxu0 %v7069_v28  ;;  %v3149_v50 = vld [vmem:[%s13717_s3 + $0x128] sm:$0xff]  ;;  %v3135_v53 = vld [vmem:[%s13717_s3 + $0xb8] sm:$0xff]  ;;  %v3134_v55 = vld [vmem:[%s13717_s3 + $0xb0] sm:$0xff] }
 0xe1a   :  { %7072 = vmatprep.subr.bf16.mxu0 %v7071_v31  ;;  %v3144_v57 = vld [vmem:[%s13717_s3 + $0x100] sm:$0xff]  ;;  %v7103_v59 = vpack.c.bf16 %v3135_v53, %v3131_v52  ;;  %v7079_v60 = vpack.c.bf16 %v3149_v50, %v3145_v49  ;;  %7102 = vmatpush1.bf16.msra.mxu1 %v7101_v51  ;;  %v3153_v61 = vld [vmem:[%s13717_s3 + $0x148] sm:$0xff]  ;;  %v7105_v62 = vpack.c.bf16 %v3134_v55, %v3130_v54  ;;  %v3139_v63 = vld [vmem:[%s13717_s3 + $0xd8] sm:$0xff] }
 0xe1b   :  { %v3148_v58 = vld [vmem:[%s13717_s3 + $0x120] sm:$0xff]  ;;  %v3143_v0 = vld [vmem:[%s13717_s3 + $0xf8] sm:$0xff]  ;;  %v3157_v1 = vld [vmem:[%s13717_s3 + $0x168] sm:$0xff] }
 0xe1c   :  { %7104 = vmatprep.subr.bf16.mxu1 %v7103_v59  ;;  %v7107_v2 = vpack.c.bf16 %v3143_v0, %v3139_v63  ;;  %v3138_v3 = vld [vmem:[%s13717_s3 + $0xd0] sm:$0xff]  ;;  %v7081_v6 = vpack.c.bf16 %v3148_v58, %v3144_v57  ;;  %v3147_v7 = vld [vmem:[%s13717_s3 + $0x118] sm:$0xff]  ;;  %v7083_v9 = vpack.c.bf16 %v3157_v1, %v3153_v61  ;;  %v3152_v10 = vld [vmem:[%s13717_s3 + $0x140] sm:$0xff] }
 0xe1d   :  { %7074 = vmatpush1.bf16.msra.mxu0 %v7073_v40  ;;  %v3142_v5 = vld [vmem:[%s13717_s3 + $0xf0] sm:$0xff]  ;;  %v3151_v8 = vld [vmem:[%s13717_s3 + $0x138] sm:$0xff]  ;;  %v3156_v11 = vld [vmem:[%s13717_s3 + $0x160] sm:$0xff] }
 0xe1e   :  { %7076 = vmatprep.subr.bf16.mxu0 %v7075_v44  ;;  %7106 = vmatpush1.bf16.msra.mxu1 %v7105_v62  ;;  %v3161_v12 = vld [vmem:[%s13717_s3 + $0x188] sm:$0xff]  ;;  %v7109_v13 = vpack.c.bf16 %v3142_v5, %v3138_v3  ;;  %v7111_v15 = vpack.c.bf16 %v3151_v8, %v3147_v7  ;;  %v3146_v16 = vld [vmem:[%s13717_s3 + $0x110] sm:$0xff]  ;;  %v3155_v18 = vld [vmem:[%s13717_s3 + $0x158] sm:$0xff]  ;;  %v7085_v20 = vpack.c.bf16 %v3156_v11, %v3152_v10 }
 0xe1f   :  { %v3165_v14 = vld [vmem:[%s13717_s3 + $0x1a8] sm:$0xff]  ;;  %7108 = vmatprep.subr.bf16.mxu1 %v7107_v2  ;;  %v3150_v17 = vld [vmem:[%s13717_s3 + $0x130] sm:$0xff]  ;;  %v3159_v19 = vld [vmem:[%s13717_s3 + $0x178] sm:$0xff] }
 0xe20   :  { %v7087_v21 = vpack.c.bf16 %v3165_v14, %v3161_v12  ;;  %v3160_v22 = vld [vmem:[%s13717_s3 + $0x180] sm:$0xff]  ;;  %v3169_v24 = vld [vmem:[%s13717_s3 + $0x1c8] sm:$0xff]  ;;  %v7113_v25 = vpack.c.bf16 %v3150_v17, %v3146_v16  ;;  %v7115_v27 = vpack.c.bf16 %v3159_v19, %v3155_v18  ;;  %v3154_v28 = vld [vmem:[%s13717_s3 + $0x150] sm:$0xff] }
 0xe21   :  { %7078 = vmatpush1.bf16.msra.mxu0 %v7077_v56  ;;  %v3164_v23 = vld [vmem:[%s13717_s3 + $0x1a0] sm:$0xff]  ;;  %v3173_v26 = vld [vmem:[%s13717_s3 + $0x1e8] sm:$0xff]  ;;  %v3158_v29 = vld [vmem:[%s13717_s3 + $0x170] sm:$0xff] }
 0xe22   :  { %7080 = vmatprep.subr.bf16.mxu0 %v7079_v60  ;;  %7110 = vmatpush1.bf16.msra.mxu1 %v7109_v13  ;;  %v3163_v30 = vld [vmem:[%s13717_s3 + $0x198] sm:$0xff]  ;;  %v7089_v32 = vpack.c.bf16 %v3164_v23, %v3160_v22  ;;  %v7091_v33 = vpack.c.bf16 %v3173_v26, %v3169_v24  ;;  %v3168_v34 = vld [vmem:[%s13717_s3 + $0x1c0] sm:$0xff]  ;;  %v7117_v36 = vpack.c.bf16 %v3158_v29, %v3154_v28  ;;  %v3162_v38 = vld [vmem:[%s13717_s3 + $0x190] sm:$0xff] }
 0xe23   :  { %7112 = vmatprep.subr.bf16.mxu1 %v7111_v15  ;;  %v3167_v31 = vld [vmem:[%s13717_s3 + $0x1b8] sm:$0xff]  ;;  %v3172_v35 = vld [vmem:[%s13717_s3 + $0x1e0] sm:$0xff]  ;;  %v3166_v39 = vld [vmem:[%s13717_s3 + $0x1b0] sm:$0xff] }
 0xe24   :  { %v7119_v37 = vpack.c.bf16 %v3167_v31, %v3163_v30  ;;  %v3171_v40 = vld [vmem:[%s13717_s3 + $0x1d8] sm:$0xff]  ;;  %v7093_v42 = vpack.c.bf16 %v3172_v35, %v3168_v34  ;;  %v7121_v43 = vpack.c.bf16 %v3166_v39, %v3162_v38  ;;  %v3170_v45 = vld [vmem:[%s13717_s3 + $0x1d0] sm:$0xff]  ;;  %v3106_v47 = vld [vmem:[%s13719_s5] sm:$0xff] }
 0xe25   :  { %7082 = vmatpush1.bf16.msra.mxu0 %v7081_v6  ;;  %v3175_v41 = vld [vmem:[%s13717_s3 + $0x1f8] sm:$0xff]  ;;  %v3174_v46 = vld [vmem:[%s13717_s3 + $0x1f0] sm:$0xff]  ;;  %v3108_v49 = vld [vmem:[%s13716_s2 + $0x180] sm:$0xff] }
 0xe26   :  { %7084 = vmatprep.subr.bf16.mxu0 %v7083_v9  ;;  %7114 = vmatpush1.bf16.msra.mxu1 %v7113_v25  ;;  %v7123_v44 = vpack.c.bf16 %v3175_v41, %v3171_v40  ;;  %v7125_v48 = vpack.c.bf16 %v3174_v46, %v3170_v45  ;;  %v3109_v50 = vld [vmem:[%s13716_s2 + $0x188] sm:$0xff]  ;;  %v3111_v57 = vld [vmem:[%s13716_s2 + $0x198] sm:$0xff]  ;;  %v3110_v61 = vld [vmem:[%s13716_s2 + $0x190] sm:$0xff] }
 0xe27   :  { %7116 = vmatprep.subr.bf16.mxu1 %v7115_v27  ;;  %v3107_v7 = vld [vmem:[%s13720_s6] sm:$0xff] }
 0xe29   :  { %7086 = vmatpush1.bf16.msra.mxu0 %v7085_v20 }
 0xe2a   :  { %7088 = vmatprep.subr.bf16.mxu0 %v7087_v21  ;;  %7118 = vmatpush1.bf16.msra.mxu1 %v7117_v36 }
 0xe2b   :  { %7120 = vmatprep.subr.bf16.mxu1 %v7119_v37 }
 0xe2d   :  { %7090 = vmatpush1.bf16.msra.mxu0 %v7089_v32 }
 0xe2e   :  { %7092 = vmatprep.subr.bf16.mxu0 %v7091_v33  ;;  %7122 = vmatpush1.bf16.msra.mxu1 %v7121_v43 }
 0xe2f   :  { %7124 = vmatprep.subr.bf16.mxu1 %v7123_v44 }
 0xe31   :  { %7094 = vmatpush1.bf16.msra.mxu0 %v7093_v42 }
 0xe32   :  { %7126 = vmatpush1.bf16.msra.mxu1 %v7125_v48 }
 0xe34   :  { %3241 = vmatmul.mubr.f32.vlgmr.msra.gmra.mrb[0].mxu0 %v3106_v47 }
 0xe35   :  { %3312 = vmatmul.mubr.f32.vlgmr.msra.gmra.mrb[0].mxu1 %v3106_v47 }
 0xf07   :  { %v3242_v51 = vpop.f32.mrb[0].mxu0 }
 0xf08   :  { %v3318_v52 = vadd.f32 %v3242_v51, %v3108_v49  ;;  %v3244_v53 = vpop.f32.mrb[1].mxu0  ;;  %v3313_v58 = vpop.f32.mrb[0].mxu1 }
 0xf09   :  { %v3319_v54 = vadd.f32 %v3244_v53, %v3109_v50  ;;  %v3315_v59 = vpop.f32.mrb[1].mxu1  ;;  %v3320_v63 = vadd.f32 %v3313_v58, %v3110_v61 }
 0xf0a   :  { %v6225_v55 = vmul.f32 -1.442695, %v3318_v52  ;;  %v3321_v60 = vadd.f32 %v3315_v59, %v3111_v57 }
 0xf0b   :  { %v6226_v56 = vmul.f32 -1.442695, %v3319_v54 }
 0xf0c   :  { %8052 = vpow2.f32 %v6225_v55  ;;  %v6227_v62 = vmul.f32 -1.442695, %v3321_v60 }
 0xf0d   :  { %8054 = vpow2.f32 %v6226_v56 }
 0xf0e   :  { %8056 = vpow2.f32 %v6227_v62 }
 0xf0f   :  { %8058 = vtanh.f32 %v3320_v63 }
 0xf16   :  { %v8053_v0 = vpop.eup %8052 }
 0xf17   :  { %v8055_v1 = vpop.eup %8054  ;;  %v3325_v2 = vadd.f32 1.0, %v8053_v0 }
 0xf18   :  { %v3331_v3 = vadd.f32 1.0, %v8055_v1  ;;  %v8057_v5 = vpop.eup %8056 }
 0xf19   :  { %8060 = vrcp.f32 %v3325_v2  ;;  %v8059_v6 = vpop.eup %8058  ;;  %v3338_v9 = vadd.f32 1.0, %v8057_v5 }
 0xf1a   :  { %8062 = vrcp.f32 %v3331_v3 }
 0xf1b   :  { %8064 = vrcp.f32 %v3338_v9 }
 0xf23   :  { %v8061_v8 = vpop.eup %8060 }
 0xf24   :  { %v8063_v10 = vpop.eup %8062  ;;  %v3342_v11 = vmul.f32 %v8061_v8, %v8059_v6 }
 0xf25   :  { %v3341_v12 = vmul.f32 %v8063_v10, %v3107_v7  ;;  %v8065_v15 = vpop.eup %8064 }
 0xf27   :  { %v3343_v13 = vadd.f32 %v3342_v11, %v3341_v12 }
 0xf29   :  { %8066 = vtanh.f32 %v3343_v13  ;;  %v3350_v14 = vsel %vm6228_vm12, %v3343_v13, %v3107_v7 }
 0xf2a   :  { %3351 = vst [vmem:[%s13720_s6] sm:$0xff] %v3350_v14 }
 0xf33   :  { %v8067_v16 = vpop.eup %8066 }
 0xf34   :  { %v3345_v17 = vmul.f32 %v8067_v16, %v8065_v15 }
 0xf36   :  { %v3348_v18 = vsel %vm6228_vm12, %v3345_v17, %v3106_v47  ;;  %v3352_v19 = vsel %vm6228_vm12, %v3345_v17, 0.0 }
 0xf37   :  { %3349 = vst [vmem:[%s13719_s5] sm:$0xff] %v3348_v18  ;;  %3353 = vst [vmem:[%s13718_s4 + $0x60] sm:$0xff] %v3352_v19 }
 0xf38 PF:  { %p6230_p5 = scmp.le.s32.totalorder %s8324_s26, 13 }
 0xf39   :  { %v3366_v20 = vld [vmem:[%s13717_s3 + $0x8] sm:$0xff] (!%p6230_p5)  ;;  %v3365_v22 = vld [vmem:[%s13717_s3] sm:$0xff] (!%p6230_p5)  ;;  %v8275_v27 = vmov (!%p6230_p5), 0.0   ;;  %v3368_v39 = vld [vmem:[%s13717_s3 + $0x18] sm:$0xff] (!%p6230_p5)  ;;  %vm6234_vm13 = vcmp.gt.s32.totalorder (!%p6230_p5), %v8408_v4, 13 }
 0xf3a   :  { %3358 = sbr.rel (%p6230_p5) target bundleno = 4193 (0x1061), region = 77  ;;  %v3370_v21 = vld [vmem:[%s13717_s3 + $0x28] sm:$0xff] (!%p6230_p5)  ;;  %v3369_v24 = vld [vmem:[%s13717_s3 + $0x20] sm:$0xff] (!%p6230_p5)  ;;  %3493 = vmatprep.mubr.f32.mxu0 (!%p6230_p5), %v8275_v27  ;;  %3564 = vmatprep.mubr.f32.mxu1 (!%p6230_p5), %v8275_v27  ;;  %v3372_v40 = vld [vmem:[%s13717_s3 + $0x38] sm:$0xff] (!%p6230_p5) }
 0xf3b   :  { %v7127_v23 = vpack.c.bf16 (!%p6230_p5), %v3370_v21, %v3366_v20  ;;  %v3374_v25 = vld [vmem:[%s13717_s3 + $0x48] sm:$0xff] (!%p6230_p5)  ;;  %v7129_v28 = vpack.c.bf16 (!%p6230_p5), %v3369_v24, %v3365_v22  ;;  %v3373_v30 = vld [vmem:[%s13717_s3 + $0x40] sm:$0xff] (!%p6230_p5)  ;;  %v7159_v42 = vpack.c.bf16 (!%p6230_p5), %v3372_v40, %v3368_v39  ;;  %v3367_v43 = vld [vmem:[%s13717_s3 + $0x10] sm:$0xff] (!%p6230_p5) }
 0xf3c   :  { %v3378_v26 = vld [vmem:[%s13717_s3 + $0x68] sm:$0xff] (!%p6230_p5)  ;;  %v3377_v31 = vld [vmem:[%s13717_s3 + $0x60] sm:$0xff] (!%p6230_p5)  ;;  %v3371_v44 = vld [vmem:[%s13717_s3 + $0x30] sm:$0xff] (!%p6230_p5) }
 0xf3d   :  { %v7131_v29 = vpack.c.bf16 (!%p6230_p5), %v3378_v26, %v3374_v25  ;;  %v3382_v32 = vld [vmem:[%s13717_s3 + $0x88] sm:$0xff] (!%p6230_p5)  ;;  %7128 = vmatprep.subr.bf16.mxu0 (!%p6230_p5), %v7127_v23  ;;  %v7133_v34 = vpack.c.bf16 (!%p6230_p5), %v3377_v31, %v3373_v30  ;;  %v3381_v35 = vld [vmem:[%s13717_s3 + $0x80] sm:$0xff] (!%p6230_p5)  ;;  %v7161_v45 = vpack.c.bf16 (!%p6230_p5), %v3371_v44, %v3367_v43  ;;  %7160 = vmatprep.subr.bf16.mxu1 (!%p6230_p5), %v7159_v42  ;;  %v3376_v47 = vld [vmem:[%s13717_s3 + $0x58] sm:$0xff] (!%p6230_p5) }
 0xf3e   :  { %v3386_v33 = vld [vmem:[%s13717_s3 + $0xa8] sm:$0xff] (!%p6230_p5)  ;;  %7130 = vmatpush1.bf16.msra.mxu0 (!%p6230_p5), %v7129_v28  ;;  %v3385_v36 = vld [vmem:[%s13717_s3 + $0xa0] sm:$0xff] (!%p6230_p5)  ;;  %v3380_v48 = vld [vmem:[%s13717_s3 + $0x78] sm:$0xff] (!%p6230_p5) }
 0xf3f   :  { %7132 = vmatprep.subr.bf16.mxu0 (!%p6230_p5), %v7131_v29  ;;  %v7135_v37 = vpack.c.bf16 (!%p6230_p5), %v3386_v33, %v3382_v32  ;;  %v3390_v38 = vld [vmem:[%s13717_s3 + $0xc8] sm:$0xff] (!%p6230_p5)  ;;  %v7137_v46 = vpack.c.bf16 (!%p6230_p5), %v3385_v36, %v3381_v35  ;;  %v3375_v49 = vld [vmem:[%s13717_s3 + $0x50] sm:$0xff] (!%p6230_p5)  ;;  %v3389_v51 = vld [vmem:[%s13717_s3 + $0xc0] sm:$0xff] (!%p6230_p5)  ;;  %7162 = vmatpush1.bf16.msra.mxu1 (!%p6230_p5), %v7161_v45  ;;  %v7163_v53 = vpack.c.bf16 (!%p6230_p5), %v3380_v48, %v3376_v47 }
 0xf40   :  { %v3394_v41 = vld [vmem:[%s13717_s3 + $0xe8] sm:$0xff] (!%p6230_p5)  ;;  %v3393_v52 = vld [vmem:[%s13717_s3 + $0xe0] sm:$0xff] (!%p6230_p5)  ;;  %v3379_v54 = vld [vmem:[%s13717_s3 + $0x70] sm:$0xff] (!%p6230_p5) }
 0xf41   :  { %v7139_v50 = vpack.c.bf16 %v3394_v41, %v3390_v38  ;;  %v3398_v55 = vld [vmem:[%s13717_s3 + $0x108] sm:$0xff]  ;;  %v7165_v57 = vpack.c.bf16 %v3379_v54, %v3375_v49  ;;  %v3384_v58 = vld [vmem:[%s13717_s3 + $0x98] sm:$0xff]  ;;  %7164 = vmatprep.subr.bf16.mxu1 %v7163_v53  ;;  %v3383_v60 = vld [vmem:[%s13717_s3 + $0x90] sm:$0xff]  ;;  %v7141_v62 = vpack.c.bf16 %v3393_v52, %v3389_v51 }
 0xf42   :  { %7134 = vmatpush1.bf16.msra.mxu0 %v7133_v34  ;;  %v3402_v56 = vld [vmem:[%s13717_s3 + $0x128] sm:$0xff]  ;;  %v3388_v59 = vld [vmem:[%s13717_s3 + $0xb8] sm:$0xff]  ;;  %v3387_v61 = vld [vmem:[%s13717_s3 + $0xb0] sm:$0xff] }
 0xf43   :  { %7136 = vmatprep.subr.bf16.mxu0 %v7135_v37  ;;  %v3397_v63 = vld [vmem:[%s13717_s3 + $0x100] sm:$0xff]  ;;  %v7167_v1 = vpack.c.bf16 %v3388_v59, %v3384_v58  ;;  %v7143_v2 = vpack.c.bf16 %v3402_v56, %v3398_v55  ;;  %7166 = vmatpush1.bf16.msra.mxu1 %v7165_v57  ;;  %v3406_v3 = vld [vmem:[%s13717_s3 + $0x148] sm:$0xff]  ;;  %v7169_v5 = vpack.c.bf16 %v3387_v61, %v3383_v60  ;;  %v3392_v6 = vld [vmem:[%s13717_s3 + $0xd8] sm:$0xff] }
 0xf44   :  { %v3401_v0 = vld [vmem:[%s13717_s3 + $0x120] sm:$0xff]  ;;  %v3396_v7 = vld [vmem:[%s13717_s3 + $0xf8] sm:$0xff]  ;;  %v3410_v8 = vld [vmem:[%s13717_s3 + $0x168] sm:$0xff] }
 0xf45   :  { %7168 = vmatprep.subr.bf16.mxu1 %v7167_v1  ;;  %v7171_v9 = vpack.c.bf16 %v3396_v7, %v3392_v6  ;;  %v3391_v10 = vld [vmem:[%s13717_s3 + $0xd0] sm:$0xff]  ;;  %v7145_v12 = vpack.c.bf16 %v3401_v0, %v3397_v63  ;;  %v3400_v13 = vld [vmem:[%s13717_s3 + $0x118] sm:$0xff]  ;;  %v7147_v15 = vpack.c.bf16 %v3410_v8, %v3406_v3  ;;  %v3405_v16 = vld [vmem:[%s13717_s3 + $0x140] sm:$0xff] }
 0xf46   :  { %7138 = vmatpush1.bf16.msra.mxu0 %v7137_v46  ;;  %v3395_v11 = vld [vmem:[%s13717_s3 + $0xf0] sm:$0xff]  ;;  %v3404_v14 = vld [vmem:[%s13717_s3 + $0x138] sm:$0xff]  ;;  %v3409_v17 = vld [vmem:[%s13717_s3 + $0x160] sm:$0xff] }
 0xf47   :  { %7140 = vmatprep.subr.bf16.mxu0 %v7139_v50  ;;  %7170 = vmatpush1.bf16.msra.mxu1 %v7169_v5  ;;  %v3414_v18 = vld [vmem:[%s13717_s3 + $0x188] sm:$0xff]  ;;  %v7173_v19 = vpack.c.bf16 %v3395_v11, %v3391_v10  ;;  %v7175_v21 = vpack.c.bf16 %v3404_v14, %v3400_v13  ;;  %v3399_v22 = vld [vmem:[%s13717_s3 + $0x110] sm:$0xff]  ;;  %v3408_v24 = vld [vmem:[%s13717_s3 + $0x158] sm:$0xff]  ;;  %v7149_v26 = vpack.c.bf16 %v3409_v17, %v3405_v16 }
 0xf48   :  { %v3418_v20 = vld [vmem:[%s13717_s3 + $0x1a8] sm:$0xff]  ;;  %7172 = vmatprep.subr.bf16.mxu1 %v7171_v9  ;;  %v3403_v23 = vld [vmem:[%s13717_s3 + $0x130] sm:$0xff]  ;;  %v3412_v25 = vld [vmem:[%s13717_s3 + $0x178] sm:$0xff] }
 0xf49   :  { %v7151_v27 = vpack.c.bf16 %v3418_v20, %v3414_v18  ;;  %v3413_v28 = vld [vmem:[%s13717_s3 + $0x180] sm:$0xff]  ;;  %v3422_v30 = vld [vmem:[%s13717_s3 + $0x1c8] sm:$0xff]  ;;  %v7177_v31 = vpack.c.bf16 %v3403_v23, %v3399_v22  ;;  %v7179_v33 = vpack.c.bf16 %v3412_v25, %v3408_v24  ;;  %v3407_v34 = vld [vmem:[%s13717_s3 + $0x150] sm:$0xff] }
 0xf4a   :  { %7142 = vmatpush1.bf16.msra.mxu0 %v7141_v62  ;;  %v3417_v29 = vld [vmem:[%s13717_s3 + $0x1a0] sm:$0xff]  ;;  %v3426_v32 = vld [vmem:[%s13717_s3 + $0x1e8] sm:$0xff]  ;;  %v3411_v35 = vld [vmem:[%s13717_s3 + $0x170] sm:$0xff] }
 0xf4b   :  { %7144 = vmatprep.subr.bf16.mxu0 %v7143_v2  ;;  %7174 = vmatpush1.bf16.msra.mxu1 %v7173_v19  ;;  %v3416_v36 = vld [vmem:[%s13717_s3 + $0x198] sm:$0xff]  ;;  %v7153_v38 = vpack.c.bf16 %v3417_v29, %v3413_v28  ;;  %v7155_v39 = vpack.c.bf16 %v3426_v32, %v3422_v30  ;;  %v3421_v40 = vld [vmem:[%s13717_s3 + $0x1c0] sm:$0xff]  ;;  %v7181_v42 = vpack.c.bf16 %v3411_v35, %v3407_v34  ;;  %v3415_v44 = vld [vmem:[%s13717_s3 + $0x190] sm:$0xff] }
 0xf4c   :  { %7176 = vmatprep.subr.bf16.mxu1 %v7175_v21  ;;  %v3420_v37 = vld [vmem:[%s13717_s3 + $0x1b8] sm:$0xff]  ;;  %v3425_v41 = vld [vmem:[%s13717_s3 + $0x1e0] sm:$0xff]  ;;  %v3419_v45 = vld [vmem:[%s13717_s3 + $0x1b0] sm:$0xff] }
 0xf4d   :  { %v7183_v43 = vpack.c.bf16 %v3420_v37, %v3416_v36  ;;  %v3424_v46 = vld [vmem:[%s13717_s3 + $0x1d8] sm:$0xff]  ;;  %v7157_v48 = vpack.c.bf16 %v3425_v41, %v3421_v40  ;;  %v7185_v49 = vpack.c.bf16 %v3419_v45, %v3415_v44  ;;  %v3423_v51 = vld [vmem:[%s13717_s3 + $0x1d0] sm:$0xff]  ;;  %v3359_v53 = vld [vmem:[%s13719_s5] sm:$0xff] }
 0xf4e   :  { %7146 = vmatpush1.bf16.msra.mxu0 %v7145_v12  ;;  %v3428_v47 = vld [vmem:[%s13717_s3 + $0x1f8] sm:$0xff]  ;;  %v3427_v52 = vld [vmem:[%s13717_s3 + $0x1f0] sm:$0xff]  ;;  %v3361_v55 = vld [vmem:[%s13716_s2 + $0x1a0] sm:$0xff] }
 0xf4f   :  { %7148 = vmatprep.subr.bf16.mxu0 %v7147_v15  ;;  %7178 = vmatpush1.bf16.msra.mxu1 %v7177_v31  ;;  %v7187_v50 = vpack.c.bf16 %v3428_v47, %v3424_v46  ;;  %v7189_v54 = vpack.c.bf16 %v3427_v52, %v3423_v51  ;;  %v3362_v56 = vld [vmem:[%s13716_s2 + $0x1a8] sm:$0xff]  ;;  %v3364_v63 = vld [vmem:[%s13716_s2 + $0x1b8] sm:$0xff]  ;;  %v3363_v3 = vld [vmem:[%s13716_s2 + $0x1b0] sm:$0xff] }
 0xf50   :  { %7180 = vmatprep.subr.bf16.mxu1 %v7179_v33  ;;  %v3360_v13 = vld [vmem:[%s13720_s6] sm:$0xff] }
 0xf52   :  { %7150 = vmatpush1.bf16.msra.mxu0 %v7149_v26 }
 0xf53   :  { %7152 = vmatprep.subr.bf16.mxu0 %v7151_v27  ;;  %7182 = vmatpush1.bf16.msra.mxu1 %v7181_v42 }
 0xf54   :  { %7184 = vmatprep.subr.bf16.mxu1 %v7183_v43 }
 0xf56   :  { %7154 = vmatpush1.bf16.msra.mxu0 %v7153_v38 }
 0xf57   :  { %7156 = vmatprep.subr.bf16.mxu0 %v7155_v39  ;;  %7186 = vmatpush1.bf16.msra.mxu1 %v7185_v49 }
 0xf58   :  { %7188 = vmatprep.subr.bf16.mxu1 %v7187_v50 }
 0xf5a   :  { %7158 = vmatpush1.bf16.msra.mxu0 %v7157_v48 }
 0xf5b   :  { %7190 = vmatpush1.bf16.msra.mxu1 %v7189_v54 }
 0xf5d   :  { %3494 = vmatmul.mubr.f32.vlgmr.msra.gmra.mrb[0].mxu0 %v3359_v53 }
 0xf5e   :  { %3565 = vmatmul.mubr.f32.vlgmr.msra.gmra.mrb[0].mxu1 %v3359_v53 }
0x1030   :  { %v3495_v57 = vpop.f32.mrb[0].mxu0 }
0x1031   :  { %v3571_v58 = vadd.f32 %v3495_v57, %v3361_v55  ;;  %v3497_v59 = vpop.f32.mrb[1].mxu0  ;;  %v3566_v0 = vpop.f32.mrb[0].mxu1 }
0x1032   :  { %v3572_v60 = vadd.f32 %v3497_v59, %v3362_v56  ;;  %v3568_v1 = vpop.f32.mrb[1].mxu1  ;;  %v3573_v6 = vadd.f32 %v3566_v0, %v3363_v3 }
0x1033   :  { %v6231_v61 = vmul.f32 -1.442695, %v3571_v58  ;;  %v3574_v2 = vadd.f32 %v3568_v1, %v3364_v63 }
0x1034   :  { %v6232_v62 = vmul.f32 -1.442695, %v3572_v60 }
0x1035   :  { %8068 = vpow2.f32 %v6231_v61  ;;  %v6233_v5 = vmul.f32 -1.442695, %v3574_v2 }
0x1036   :  { %8070 = vpow2.f32 %v6232_v62 }
0x1037   :  { %8072 = vpow2.f32 %v6233_v5 }
0x1038   :  { %8074 = vtanh.f32 %v3573_v6 }
0x103f   :  { %v8069_v7 = vpop.eup %8068 }
0x1040   :  { %v8071_v8 = vpop.eup %8070  ;;  %v3578_v9 = vadd.f32 1.0, %v8069_v7 }
0x1041   :  { %v3584_v10 = vadd.f32 1.0, %v8071_v8  ;;  %v8073_v11 = vpop.eup %8072 }
0x1042   :  { %8076 = vrcp.f32 %v3578_v9  ;;  %v8075_v12 = vpop.eup %8074  ;;  %v3591_v15 = vadd.f32 1.0, %v8073_v11 }
0x1043   :  { %8078 = vrcp.f32 %v3584_v10 }
0x1044   :  { %8080 = vrcp.f32 %v3591_v15 }
0x104c   :  { %v8077_v14 = vpop.eup %8076 }
0x104d   :  { %v8079_v16 = vpop.eup %8078  ;;  %v3595_v17 = vmul.f32 %v8077_v14, %v8075_v12 }
0x104e   :  { %v3594_v18 = vmul.f32 %v8079_v16, %v3360_v13  ;;  %v8081_v21 = vpop.eup %8080 }
0x1050   :  { %v3596_v19 = vadd.f32 %v3595_v17, %v3594_v18 }
0x1052   :  { %8082 = vtanh.f32 %v3596_v19  ;;  %v3603_v20 = vsel %vm6234_vm13, %v3596_v19, %v3360_v13 }
0x1053   :  { %3604 = vst [vmem:[%s13720_s6] sm:$0xff] %v3603_v20 }
0x105c   :  { %v8083_v22 = vpop.eup %8082 }
0x105d   :  { %v3598_v23 = vmul.f32 %v8083_v22, %v8081_v21 }
0x105f   :  { %v3601_v24 = vsel %vm6234_vm13, %v3598_v23, %v3359_v53  ;;  %v3605_v25 = vsel %vm6234_vm13, %v3598_v23, 0.0 }
0x1060   :  { %3602 = vst [vmem:[%s13719_s5] sm:$0xff] %v3601_v24  ;;  %3606 = vst [vmem:[%s13718_s4 + $0x68] sm:$0xff] %v3605_v25 }
0x1061 PF:  { %p6236_p6 = scmp.le.s32.totalorder %s8324_s26, 14 }
0x1062   :  { %v3619_v26 = vld [vmem:[%s13717_s3 + $0x8] sm:$0xff] (!%p6236_p6)  ;;  %v3618_v28 = vld [vmem:[%s13717_s3] sm:$0xff] (!%p6236_p6)  ;;  %v8276_v33 = vmov (!%p6236_p6), 0.0   ;;  %v3621_v45 = vld [vmem:[%s13717_s3 + $0x18] sm:$0xff] (!%p6236_p6)  ;;  %vm6240_vm14 = vcmp.gt.s32.totalorder (!%p6236_p6), %v8408_v4, 14 }
0x1063   :  { %3611 = sbr.rel (%p6236_p6) target bundleno = 4490 (0x118a), region = 81  ;;  %v3623_v27 = vld [vmem:[%s13717_s3 + $0x28] sm:$0xff] (!%p6236_p6)  ;;  %v3622_v30 = vld [vmem:[%s13717_s3 + $0x20] sm:$0xff] (!%p6236_p6)  ;;  %3746 = vmatprep.mubr.f32.mxu0 (!%p6236_p6), %v8276_v33  ;;  %3817 = vmatprep.mubr.f32.mxu1 (!%p6236_p6), %v8276_v33  ;;  %v3625_v46 = vld [vmem:[%s13717_s3 + $0x38] sm:$0xff] (!%p6236_p6) }
0x1064   :  { %v7191_v29 = vpack.c.bf16 (!%p6236_p6), %v3623_v27, %v3619_v26  ;;  %v3627_v31 = vld [vmem:[%s13717_s3 + $0x48] sm:$0xff] (!%p6236_p6)  ;;  %v7193_v34 = vpack.c.bf16 (!%p6236_p6), %v3622_v30, %v3618_v28  ;;  %v3626_v36 = vld [vmem:[%s13717_s3 + $0x40] sm:$0xff] (!%p6236_p6)  ;;  %v7223_v48 = vpack.c.bf16 (!%p6236_p6), %v3625_v46, %v3621_v45  ;;  %v3620_v49 = vld [vmem:[%s13717_s3 + $0x10] sm:$0xff] (!%p6236_p6) }
0x1065   :  { %v3631_v32 = vld [vmem:[%s13717_s3 + $0x68] sm:$0xff] (!%p6236_p6)  ;;  %v3630_v37 = vld [vmem:[%s13717_s3 + $0x60] sm:$0xff] (!%p6236_p6)  ;;  %v3624_v50 = vld [vmem:[%s13717_s3 + $0x30] sm:$0xff] (!%p6236_p6) }
0x1066   :  { %v7195_v35 = vpack.c.bf16 (!%p6236_p6), %v3631_v32, %v3627_v31  ;;  %v3635_v38 = vld [vmem:[%s13717_s3 + $0x88] sm:$0xff] (!%p6236_p6)  ;;  %7192 = vmatprep.subr.bf16.mxu0 (!%p6236_p6), %v7191_v29  ;;  %v7197_v40 = vpack.c.bf16 (!%p6236_p6), %v3630_v37, %v3626_v36  ;;  %v3634_v41 = vld [vmem:[%s13717_s3 + $0x80] sm:$0xff] (!%p6236_p6)  ;;  %v7225_v51 = vpack.c.bf16 (!%p6236_p6), %v3624_v50, %v3620_v49  ;;  %7224 = vmatprep.subr.bf16.mxu1 (!%p6236_p6), %v7223_v48  ;;  %v3629_v53 = vld [vmem:[%s13717_s3 + $0x58] sm:$0xff] (!%p6236_p6) }
0x1067   :  { %v3639_v39 = vld [vmem:[%s13717_s3 + $0xa8] sm:$0xff] (!%p6236_p6)  ;;  %7194 = vmatpush1.bf16.msra.mxu0 (!%p6236_p6), %v7193_v34  ;;  %v3638_v42 = vld [vmem:[%s13717_s3 + $0xa0] sm:$0xff] (!%p6236_p6)  ;;  %v3633_v54 = vld [vmem:[%s13717_s3 + $0x78] sm:$0xff] (!%p6236_p6) }
0x1068   :  { %7196 = vmatprep.subr.bf16.mxu0 (!%p6236_p6), %v7195_v35  ;;  %v7199_v43 = vpack.c.bf16 (!%p6236_p6), %v3639_v39, %v3635_v38  ;;  %v3643_v44 = vld [vmem:[%s13717_s3 + $0xc8] sm:$0xff] (!%p6236_p6)  ;;  %v7201_v52 = vpack.c.bf16 (!%p6236_p6), %v3638_v42, %v3634_v41  ;;  %v3628_v55 = vld [vmem:[%s13717_s3 + $0x50] sm:$0xff] (!%p6236_p6)  ;;  %v3642_v57 = vld [vmem:[%s13717_s3 + $0xc0] sm:$0xff] (!%p6236_p6)  ;;  %7226 = vmatpush1.bf16.msra.mxu1 (!%p6236_p6), %v7225_v51  ;;  %v7227_v59 = vpack.c.bf16 (!%p6236_p6), %v3633_v54, %v3629_v53 }
0x1069   :  { %v3647_v47 = vld [vmem:[%s13717_s3 + $0xe8] sm:$0xff] (!%p6236_p6)  ;;  %v3646_v58 = vld [vmem:[%s13717_s3 + $0xe0] sm:$0xff] (!%p6236_p6)  ;;  %v3632_v60 = vld [vmem:[%s13717_s3 + $0x70] sm:$0xff] (!%p6236_p6) }
0x106a   :  { %v7203_v56 = vpack.c.bf16 %v3647_v47, %v3643_v44  ;;  %v3651_v61 = vld [vmem:[%s13717_s3 + $0x108] sm:$0xff]  ;;  %v7229_v63 = vpack.c.bf16 %v3632_v60, %v3628_v55  ;;  %v3637_v0 = vld [vmem:[%s13717_s3 + $0x98] sm:$0xff]  ;;  %7228 = vmatprep.subr.bf16.mxu1 %v7227_v59  ;;  %v3636_v2 = vld [vmem:[%s13717_s3 + $0x90] sm:$0xff]  ;;  %v7205_v5 = vpack.c.bf16 %v3646_v58, %v3642_v57 }
0x106b   :  { %7198 = vmatpush1.bf16.msra.mxu0 %v7197_v40  ;;  %v3655_v62 = vld [vmem:[%s13717_s3 + $0x128] sm:$0xff]  ;;  %v3641_v1 = vld [vmem:[%s13717_s3 + $0xb8] sm:$0xff]  ;;  %v3640_v3 = vld [vmem:[%s13717_s3 + $0xb0] sm:$0xff] }
0x106c   :  { %7200 = vmatprep.subr.bf16.mxu0 %v7199_v43  ;;  %v3650_v6 = vld [vmem:[%s13717_s3 + $0x100] sm:$0xff]  ;;  %v7231_v8 = vpack.c.bf16 %v3641_v1, %v3637_v0  ;;  %v7207_v9 = vpack.c.bf16 %v3655_v62, %v3651_v61  ;;  %7230 = vmatpush1.bf16.msra.mxu1 %v7229_v63  ;;  %v3659_v10 = vld [vmem:[%s13717_s3 + $0x148] sm:$0xff]  ;;  %v7233_v11 = vpack.c.bf16 %v3640_v3, %v3636_v2  ;;  %v3645_v12 = vld [vmem:[%s13717_s3 + $0xd8] sm:$0xff] }
0x106d   :  { %v3654_v7 = vld [vmem:[%s13717_s3 + $0x120] sm:$0xff]  ;;  %v3649_v13 = vld [vmem:[%s13717_s3 + $0xf8] sm:$0xff]  ;;  %v3663_v14 = vld [vmem:[%s13717_s3 + $0x168] sm:$0xff] }
0x106e   :  { %7232 = vmatprep.subr.bf16.mxu1 %v7231_v8  ;;  %v7235_v15 = vpack.c.bf16 %v3649_v13, %v3645_v12  ;;  %v3644_v16 = vld [vmem:[%s13717_s3 + $0xd0] sm:$0xff]  ;;  %v7209_v18 = vpack.c.bf16 %v3654_v7, %v3650_v6  ;;  %v3653_v19 = vld [vmem:[%s13717_s3 + $0x118] sm:$0xff]  ;;  %v7211_v21 = vpack.c.bf16 %v3663_v14, %v3659_v10  ;;  %v3658_v22 = vld [vmem:[%s13717_s3 + $0x140] sm:$0xff] }
0x106f   :  { %7202 = vmatpush1.bf16.msra.mxu0 %v7201_v52  ;;  %v3648_v17 = vld [vmem:[%s13717_s3 + $0xf0] sm:$0xff]  ;;  %v3657_v20 = vld [vmem:[%s13717_s3 + $0x138] sm:$0xff]  ;;  %v3662_v23 = vld [vmem:[%s13717_s3 + $0x160] sm:$0xff] }
0x1070   :  { %7204 = vmatprep.subr.bf16.mxu0 %v7203_v56  ;;  %7234 = vmatpush1.bf16.msra.mxu1 %v7233_v11  ;;  %v3667_v24 = vld [vmem:[%s13717_s3 + $0x188] sm:$0xff]  ;;  %v7237_v25 = vpack.c.bf16 %v3648_v17, %v3644_v16  ;;  %v7239_v27 = vpack.c.bf16 %v3657_v20, %v3653_v19  ;;  %v3652_v28 = vld [vmem:[%s13717_s3 + $0x110] sm:$0xff]  ;;  %v3661_v30 = vld [vmem:[%s13717_s3 + $0x158] sm:$0xff]  ;;  %v7213_v32 = vpack.c.bf16 %v3662_v23, %v3658_v22 }
0x1071   :  { %v3671_v26 = vld [vmem:[%s13717_s3 + $0x1a8] sm:$0xff]  ;;  %7236 = vmatprep.subr.bf16.mxu1 %v7235_v15  ;;  %v3656_v29 = vld [vmem:[%s13717_s3 + $0x130] sm:$0xff]  ;;  %v3665_v31 = vld [vmem:[%s13717_s3 + $0x178] sm:$0xff] }
0x1072   :  { %v7215_v33 = vpack.c.bf16 %v3671_v26, %v3667_v24  ;;  %v3666_v34 = vld [vmem:[%s13717_s3 + $0x180] sm:$0xff]  ;;  %v3675_v36 = vld [vmem:[%s13717_s3 + $0x1c8] sm:$0xff]  ;;  %v7241_v37 = vpack.c.bf16 %v3656_v29, %v3652_v28  ;;  %v7243_v39 = vpack.c.bf16 %v3665_v31, %v3661_v30  ;;  %v3660_v40 = vld [vmem:[%s13717_s3 + $0x150] sm:$0xff] }
0x1073   :  { %7206 = vmatpush1.bf16.msra.mxu0 %v7205_v5  ;;  %v3670_v35 = vld [vmem:[%s13717_s3 + $0x1a0] sm:$0xff]  ;;  %v3679_v38 = vld [vmem:[%s13717_s3 + $0x1e8] sm:$0xff]  ;;  %v3664_v41 = vld [vmem:[%s13717_s3 + $0x170] sm:$0xff] }
0x1074   :  { %7208 = vmatprep.subr.bf16.mxu0 %v7207_v9  ;;  %7238 = vmatpush1.bf16.msra.mxu1 %v7237_v25  ;;  %v3669_v42 = vld [vmem:[%s13717_s3 + $0x198] sm:$0xff]  ;;  %v7217_v44 = vpack.c.bf16 %v3670_v35, %v3666_v34  ;;  %v7219_v45 = vpack.c.bf16 %v3679_v38, %v3675_v36  ;;  %v3674_v46 = vld [vmem:[%s13717_s3 + $0x1c0] sm:$0xff]  ;;  %v7245_v48 = vpack.c.bf16 %v3664_v41, %v3660_v40  ;;  %v3668_v50 = vld [vmem:[%s13717_s3 + $0x190] sm:$0xff] }
0x1075   :  { %7240 = vmatprep.subr.bf16.mxu1 %v7239_v27  ;;  %v3673_v43 = vld [vmem:[%s13717_s3 + $0x1b8] sm:$0xff]  ;;  %v3678_v47 = vld [vmem:[%s13717_s3 + $0x1e0] sm:$0xff]  ;;  %v3672_v51 = vld [vmem:[%s13717_s3 + $0x1b0] sm:$0xff] }
0x1076   :  { %v7247_v49 = vpack.c.bf16 %v3673_v43, %v3669_v42  ;;  %v3677_v52 = vld [vmem:[%s13717_s3 + $0x1d8] sm:$0xff]  ;;  %v7221_v54 = vpack.c.bf16 %v3678_v47, %v3674_v46  ;;  %v7249_v55 = vpack.c.bf16 %v3672_v51, %v3668_v50  ;;  %v3676_v57 = vld [vmem:[%s13717_s3 + $0x1d0] sm:$0xff]  ;;  %v3612_v59 = vld [vmem:[%s13719_s5] sm:$0xff] }
0x1077   :  { %7210 = vmatpush1.bf16.msra.mxu0 %v7209_v18  ;;  %v3681_v53 = vld [vmem:[%s13717_s3 + $0x1f8] sm:$0xff]  ;;  %v3680_v58 = vld [vmem:[%s13717_s3 + $0x1f0] sm:$0xff]  ;;  %v3614_v61 = vld [vmem:[%s13716_s2 + $0x1c0] sm:$0xff] }
0x1078   :  { %7212 = vmatprep.subr.bf16.mxu0 %v7211_v21  ;;  %7242 = vmatpush1.bf16.msra.mxu1 %v7241_v37  ;;  %v7251_v56 = vpack.c.bf16 %v3681_v53, %v3677_v52  ;;  %v7253_v60 = vpack.c.bf16 %v3680_v58, %v3676_v57  ;;  %v3615_v62 = vld [vmem:[%s13716_s2 + $0x1c8] sm:$0xff]  ;;  %v3617_v6 = vld [vmem:[%s13716_s2 + $0x1d8] sm:$0xff]  ;;  %v3616_v10 = vld [vmem:[%s13716_s2 + $0x1d0] sm:$0xff] }
0x1079   :  { %7244 = vmatprep.subr.bf16.mxu1 %v7243_v39  ;;  %v3613_v19 = vld [vmem:[%s13720_s6] sm:$0xff] }
0x107b   :  { %7214 = vmatpush1.bf16.msra.mxu0 %v7213_v32 }
0x107c   :  { %7216 = vmatprep.subr.bf16.mxu0 %v7215_v33  ;;  %7246 = vmatpush1.bf16.msra.mxu1 %v7245_v48 }
0x107d   :  { %7248 = vmatprep.subr.bf16.mxu1 %v7247_v49 }
0x107f   :  { %7218 = vmatpush1.bf16.msra.mxu0 %v7217_v44 }
0x1080   :  { %7220 = vmatprep.subr.bf16.mxu0 %v7219_v45  ;;  %7250 = vmatpush1.bf16.msra.mxu1 %v7249_v55 }
0x1081   :  { %7252 = vmatprep.subr.bf16.mxu1 %v7251_v56 }
0x1083   :  { %7222 = vmatpush1.bf16.msra.mxu0 %v7221_v54 }
0x1084   :  { %7254 = vmatpush1.bf16.msra.mxu1 %v7253_v60 }
0x1086   :  { %3747 = vmatmul.mubr.f32.vlgmr.msra.gmra.mrb[0].mxu0 %v3612_v59 }
0x1087   :  { %3818 = vmatmul.mubr.f32.vlgmr.msra.gmra.mrb[0].mxu1 %v3612_v59 }
0x1159   :  { %v3748_v63 = vpop.f32.mrb[0].mxu0 }
0x115a   :  { %v3824_v0 = vadd.f32 %v3748_v63, %v3614_v61  ;;  %v3750_v1 = vpop.f32.mrb[1].mxu0  ;;  %v3819_v7 = vpop.f32.mrb[0].mxu1 }
0x115b   :  { %v3825_v2 = vadd.f32 %v3750_v1, %v3615_v62  ;;  %v3821_v8 = vpop.f32.mrb[1].mxu1  ;;  %v3826_v12 = vadd.f32 %v3819_v7, %v3616_v10 }
0x115c   :  { %v6237_v3 = vmul.f32 -1.442695, %v3824_v0  ;;  %v3827_v9 = vadd.f32 %v3821_v8, %v3617_v6 }
0x115d   :  { %v6238_v5 = vmul.f32 -1.442695, %v3825_v2 }
0x115e   :  { %8084 = vpow2.f32 %v6237_v3  ;;  %v6239_v11 = vmul.f32 -1.442695, %v3827_v9 }
0x115f   :  { %8086 = vpow2.f32 %v6238_v5 }
0x1160   :  { %8088 = vpow2.f32 %v6239_v11 }
0x1161   :  { %8090 = vtanh.f32 %v3826_v12 }
0x1168   :  { %v8085_v13 = vpop.eup %8084 }
0x1169   :  { %v8087_v14 = vpop.eup %8086  ;;  %v3831_v15 = vadd.f32 1.0, %v8085_v13 }
0x116a   :  { %v3837_v16 = vadd.f32 1.0, %v8087_v14  ;;  %v8089_v17 = vpop.eup %8088 }
0x116b   :  { %8092 = vrcp.f32 %v3831_v15  ;;  %v8091_v18 = vpop.eup %8090  ;;  %v3844_v21 = vadd.f32 1.0, %v8089_v17 }
0x116c   :  { %8094 = vrcp.f32 %v3837_v16 }
0x116d   :  { %8096 = vrcp.f32 %v3844_v21 }
0x1175   :  { %v8093_v20 = vpop.eup %8092 }
0x1176   :  { %v8095_v22 = vpop.eup %8094  ;;  %v3848_v23 = vmul.f32 %v8093_v20, %v8091_v18 }
0x1177   :  { %v3847_v24 = vmul.f32 %v8095_v22, %v3613_v19  ;;  %v8097_v27 = vpop.eup %8096 }
0x1179   :  { %v3849_v25 = vadd.f32 %v3848_v23, %v3847_v24 }
0x117b   :  { %8098 = vtanh.f32 %v3849_v25  ;;  %v3856_v26 = vsel %vm6240_vm14, %v3849_v25, %v3613_v19 }
0x117c   :  { %3857 = vst [vmem:[%s13720_s6] sm:$0xff] %v3856_v26 }
0x1185   :  { %v8099_v28 = vpop.eup %8098 }
0x1186   :  { %v3851_v29 = vmul.f32 %v8099_v28, %v8097_v27 }
0x1188   :  { %v3854_v30 = vsel %vm6240_vm14, %v3851_v29, %v3612_v59  ;;  %v3858_v31 = vsel %vm6240_vm14, %v3851_v29, 0.0 }
0x1189   :  { %3855 = vst [vmem:[%s13719_s5] sm:$0xff] %v3854_v30  ;;  %3859 = vst [vmem:[%s13718_s4 + $0x70] sm:$0xff] %v3858_v31 }
0x118a PF:  { %p6242_p7 = scmp.le.s32.totalorder %s8324_s26, 15 }
0x118b   :  { %v3872_v32 = vld [vmem:[%s13717_s3 + $0x8] sm:$0xff] (!%p6242_p7)  ;;  %v3871_v34 = vld [vmem:[%s13717_s3] sm:$0xff] (!%p6242_p7)  ;;  %v8277_v39 = vmov (!%p6242_p7), 0.0   ;;  %v3874_v51 = vld [vmem:[%s13717_s3 + $0x18] sm:$0xff] (!%p6242_p7)  ;;  %vm6246_vm15 = vcmp.gt.s32.totalorder (!%p6242_p7), %v8408_v4, 15 }
0x118c   :  { %3864 = sbr.rel (%p6242_p7) target bundleno = 4787 (0x12b3), region = 85  ;;  %v3876_v33 = vld [vmem:[%s13717_s3 + $0x28] sm:$0xff] (!%p6242_p7)  ;;  %v3875_v36 = vld [vmem:[%s13717_s3 + $0x20] sm:$0xff] (!%p6242_p7)  ;;  %3999 = vmatprep.mubr.f32.mxu0 (!%p6242_p7), %v8277_v39  ;;  %4070 = vmatprep.mubr.f32.mxu1 (!%p6242_p7), %v8277_v39  ;;  %v3878_v52 = vld [vmem:[%s13717_s3 + $0x38] sm:$0xff] (!%p6242_p7) }
0x118d   :  { %v7255_v35 = vpack.c.bf16 (!%p6242_p7), %v3876_v33, %v3872_v32  ;;  %v3880_v37 = vld [vmem:[%s13717_s3 + $0x48] sm:$0xff] (!%p6242_p7)  ;;  %v7257_v40 = vpack.c.bf16 (!%p6242_p7), %v3875_v36, %v3871_v34  ;;  %v3879_v42 = vld [vmem:[%s13717_s3 + $0x40] sm:$0xff] (!%p6242_p7)  ;;  %v7287_v54 = vpack.c.bf16 (!%p6242_p7), %v3878_v52, %v3874_v51  ;;  %v3873_v55 = vld [vmem:[%s13717_s3 + $0x10] sm:$0xff] (!%p6242_p7) }
0x118e   :  { %v3884_v38 = vld [vmem:[%s13717_s3 + $0x68] sm:$0xff] (!%p6242_p7)  ;;  %v3883_v43 = vld [vmem:[%s13717_s3 + $0x60] sm:$0xff] (!%p6242_p7)  ;;  %v3877_v56 = vld [vmem:[%s13717_s3 + $0x30] sm:$0xff] (!%p6242_p7) }
0x118f   :  { %v7259_v41 = vpack.c.bf16 (!%p6242_p7), %v3884_v38, %v3880_v37  ;;  %v3888_v44 = vld [vmem:[%s13717_s3 + $0x88] sm:$0xff] (!%p6242_p7)  ;;  %7256 = vmatprep.subr.bf16.mxu0 (!%p6242_p7), %v7255_v35  ;;  %v7261_v46 = vpack.c.bf16 (!%p6242_p7), %v3883_v43, %v3879_v42  ;;  %v3887_v47 = vld [vmem:[%s13717_s3 + $0x80] sm:$0xff] (!%p6242_p7)  ;;  %v7289_v57 = vpack.c.bf16 (!%p6242_p7), %v3877_v56, %v3873_v55  ;;  %7288 = vmatprep.subr.bf16.mxu1 (!%p6242_p7), %v7287_v54  ;;  %v3882_v59 = vld [vmem:[%s13717_s3 + $0x58] sm:$0xff] (!%p6242_p7) }
0x1190   :  { %v3892_v45 = vld [vmem:[%s13717_s3 + $0xa8] sm:$0xff] (!%p6242_p7)  ;;  %7258 = vmatpush1.bf16.msra.mxu0 (!%p6242_p7), %v7257_v40  ;;  %v3891_v48 = vld [vmem:[%s13717_s3 + $0xa0] sm:$0xff] (!%p6242_p7)  ;;  %v3886_v60 = vld [vmem:[%s13717_s3 + $0x78] sm:$0xff] (!%p6242_p7) }
0x1191   :  { %7260 = vmatprep.subr.bf16.mxu0 (!%p6242_p7), %v7259_v41  ;;  %v7263_v49 = vpack.c.bf16 (!%p6242_p7), %v3892_v45, %v3888_v44  ;;  %v3896_v50 = vld [vmem:[%s13717_s3 + $0xc8] sm:$0xff] (!%p6242_p7)  ;;  %v7265_v58 = vpack.c.bf16 (!%p6242_p7), %v3891_v48, %v3887_v47  ;;  %v3881_v61 = vld [vmem:[%s13717_s3 + $0x50] sm:$0xff] (!%p6242_p7)  ;;  %v3895_v63 = vld [vmem:[%s13717_s3 + $0xc0] sm:$0xff] (!%p6242_p7)  ;;  %7290 = vmatpush1.bf16.msra.mxu1 (!%p6242_p7), %v7289_v57  ;;  %v7291_v1 = vpack.c.bf16 (!%p6242_p7), %v3886_v60, %v3882_v59 }
0x1192   :  { %v3900_v53 = vld [vmem:[%s13717_s3 + $0xe8] sm:$0xff] (!%p6242_p7)  ;;  %v3899_v0 = vld [vmem:[%s13717_s3 + $0xe0] sm:$0xff] (!%p6242_p7)  ;;  %v3885_v2 = vld [vmem:[%s13717_s3 + $0x70] sm:$0xff] (!%p6242_p7) }
0x1193   :  { %v7267_v62 = vpack.c.bf16 %v3900_v53, %v3896_v50  ;;  %v3904_v3 = vld [vmem:[%s13717_s3 + $0x108] sm:$0xff]  ;;  %v7293_v6 = vpack.c.bf16 %v3885_v2, %v3881_v61  ;;  %v3890_v7 = vld [vmem:[%s13717_s3 + $0x98] sm:$0xff]  ;;  %7292 = vmatprep.subr.bf16.mxu1 %v7291_v1  ;;  %v3889_v9 = vld [vmem:[%s13717_s3 + $0x90] sm:$0xff]  ;;  %v7269_v11 = vpack.c.bf16 %v3899_v0, %v3895_v63 }
0x1194   :  { %7262 = vmatpush1.bf16.msra.mxu0 %v7261_v46  ;;  %v3908_v5 = vld [vmem:[%s13717_s3 + $0x128] sm:$0xff]  ;;  %v3894_v8 = vld [vmem:[%s13717_s3 + $0xb8] sm:$0xff]  ;;  %v3893_v10 = vld [vmem:[%s13717_s3 + $0xb0] sm:$0xff] }
0x1195   :  { %7264 = vmatprep.subr.bf16.mxu0 %v7263_v49  ;;  %v3903_v12 = vld [vmem:[%s13717_s3 + $0x100] sm:$0xff]  ;;  %v7295_v14 = vpack.c.bf16 %v3894_v8, %v3890_v7  ;;  %v7271_v15 = vpack.c.bf16 %v3908_v5, %v3904_v3  ;;  %7294 = vmatpush1.bf16.msra.mxu1 %v7293_v6  ;;  %v3912_v16 = vld [vmem:[%s13717_s3 + $0x148] sm:$0xff]  ;;  %v7297_v17 = vpack.c.bf16 %v3893_v10, %v3889_v9  ;;  %v3898_v18 = vld [vmem:[%s13717_s3 + $0xd8] sm:$0xff] }
0x1196   :  { %v3907_v13 = vld [vmem:[%s13717_s3 + $0x120] sm:$0xff]  ;;  %v3902_v19 = vld [vmem:[%s13717_s3 + $0xf8] sm:$0xff]  ;;  %v3916_v20 = vld [vmem:[%s13717_s3 + $0x168] sm:$0xff] }
0x1197   :  { %7296 = vmatprep.subr.bf16.mxu1 %v7295_v14  ;;  %v7299_v21 = vpack.c.bf16 %v3902_v19, %v3898_v18  ;;  %v3897_v22 = vld [vmem:[%s13717_s3 + $0xd0] sm:$0xff]  ;;  %v7273_v24 = vpack.c.bf16 %v3907_v13, %v3903_v12  ;;  %v3906_v25 = vld [vmem:[%s13717_s3 + $0x118] sm:$0xff]  ;;  %v7275_v27 = vpack.c.bf16 %v3916_v20, %v3912_v16  ;;  %v3911_v28 = vld [vmem:[%s13717_s3 + $0x140] sm:$0xff] }
0x1198   :  { %7266 = vmatpush1.bf16.msra.mxu0 %v7265_v58  ;;  %v3901_v23 = vld [vmem:[%s13717_s3 + $0xf0] sm:$0xff]  ;;  %v3910_v26 = vld [vmem:[%s13717_s3 + $0x138] sm:$0xff]  ;;  %v3915_v29 = vld [vmem:[%s13717_s3 + $0x160] sm:$0xff] }
0x1199   :  { %7268 = vmatprep.subr.bf16.mxu0 %v7267_v62  ;;  %7298 = vmatpush1.bf16.msra.mxu1 %v7297_v17  ;;  %v3920_v30 = vld [vmem:[%s13717_s3 + $0x188] sm:$0xff]  ;;  %v7301_v31 = vpack.c.bf16 %v3901_v23, %v3897_v22  ;;  %v7303_v33 = vpack.c.bf16 %v3910_v26, %v3906_v25  ;;  %v3905_v34 = vld [vmem:[%s13717_s3 + $0x110] sm:$0xff]  ;;  %v3914_v36 = vld [vmem:[%s13717_s3 + $0x158] sm:$0xff]  ;;  %v7277_v38 = vpack.c.bf16 %v3915_v29, %v3911_v28 }
0x119a   :  { %v3924_v32 = vld [vmem:[%s13717_s3 + $0x1a8] sm:$0xff]  ;;  %7300 = vmatprep.subr.bf16.mxu1 %v7299_v21  ;;  %v3909_v35 = vld [vmem:[%s13717_s3 + $0x130] sm:$0xff]  ;;  %v3918_v37 = vld [vmem:[%s13717_s3 + $0x178] sm:$0xff] }
0x119b   :  { %v7279_v39 = vpack.c.bf16 %v3924_v32, %v3920_v30  ;;  %v3919_v40 = vld [vmem:[%s13717_s3 + $0x180] sm:$0xff]  ;;  %v3928_v42 = vld [vmem:[%s13717_s3 + $0x1c8] sm:$0xff]  ;;  %v7305_v43 = vpack.c.bf16 %v3909_v35, %v3905_v34  ;;  %v7307_v45 = vpack.c.bf16 %v3918_v37, %v3914_v36  ;;  %v3913_v46 = vld [vmem:[%s13717_s3 + $0x150] sm:$0xff] }
0x119c   :  { %7270 = vmatpush1.bf16.msra.mxu0 %v7269_v11  ;;  %v3923_v41 = vld [vmem:[%s13717_s3 + $0x1a0] sm:$0xff]  ;;  %v3932_v44 = vld [vmem:[%s13717_s3 + $0x1e8] sm:$0xff]  ;;  %v3917_v47 = vld [vmem:[%s13717_s3 + $0x170] sm:$0xff] }
0x119d   :  { %7272 = vmatprep.subr.bf16.mxu0 %v7271_v15  ;;  %7302 = vmatpush1.bf16.msra.mxu1 %v7301_v31  ;;  %v3922_v48 = vld [vmem:[%s13717_s3 + $0x198] sm:$0xff]  ;;  %v7281_v50 = vpack.c.bf16 %v3923_v41, %v3919_v40  ;;  %v7283_v51 = vpack.c.bf16 %v3932_v44, %v3928_v42  ;;  %v3927_v52 = vld [vmem:[%s13717_s3 + $0x1c0] sm:$0xff]  ;;  %v7309_v54 = vpack.c.bf16 %v3917_v47, %v3913_v46  ;;  %v3921_v56 = vld [vmem:[%s13717_s3 + $0x190] sm:$0xff] }
0x119e   :  { %7304 = vmatprep.subr.bf16.mxu1 %v7303_v33  ;;  %v3926_v49 = vld [vmem:[%s13717_s3 + $0x1b8] sm:$0xff]  ;;  %v3931_v53 = vld [vmem:[%s13717_s3 + $0x1e0] sm:$0xff]  ;;  %v3925_v57 = vld [vmem:[%s13717_s3 + $0x1b0] sm:$0xff] }
0x119f   :  { %v7311_v55 = vpack.c.bf16 %v3926_v49, %v3922_v48  ;;  %v3930_v58 = vld [vmem:[%s13717_s3 + $0x1d8] sm:$0xff]  ;;  %v7285_v60 = vpack.c.bf16 %v3931_v53, %v3927_v52  ;;  %v7313_v61 = vpack.c.bf16 %v3925_v57, %v3921_v56  ;;  %v3929_v63 = vld [vmem:[%s13717_s3 + $0x1d0] sm:$0xff]  ;;  %v3865_v1 = vld [vmem:[%s13719_s5] sm:$0xff] }
0x11a0   :  { %7274 = vmatpush1.bf16.msra.mxu0 %v7273_v24  ;;  %v3934_v59 = vld [vmem:[%s13717_s3 + $0x1f8] sm:$0xff]  ;;  %v3933_v0 = vld [vmem:[%s13717_s3 + $0x1f0] sm:$0xff]  ;;  %v3867_v3 = vld [vmem:[%s13716_s2 + $0x1e0] sm:$0xff] }
0x11a1   :  { %7276 = vmatprep.subr.bf16.mxu0 %v7275_v27  ;;  %7306 = vmatpush1.bf16.msra.mxu1 %v7305_v43  ;;  %v7315_v62 = vpack.c.bf16 %v3934_v59, %v3930_v58  ;;  %v7317_v2 = vpack.c.bf16 %v3933_v0, %v3929_v63  ;;  %v3868_v5 = vld [vmem:[%s13716_s2 + $0x1e8] sm:$0xff]  ;;  %v3870_v12 = vld [vmem:[%s13716_s2 + $0x1f8] sm:$0xff]  ;;  %v3869_v16 = vld [vmem:[%s13716_s2 + $0x1f0] sm:$0xff] }
0x11a2   :  { %7308 = vmatprep.subr.bf16.mxu1 %v7307_v45  ;;  %v3866_v25 = vld [vmem:[%s13720_s6] sm:$0xff] }
0x11a4   :  { %7278 = vmatpush1.bf16.msra.mxu0 %v7277_v38 }
0x11a5   :  { %7280 = vmatprep.subr.bf16.mxu0 %v7279_v39  ;;  %7310 = vmatpush1.bf16.msra.mxu1 %v7309_v54 }
0x11a6   :  { %7312 = vmatprep.subr.bf16.mxu1 %v7311_v55 }
0x11a8   :  { %7282 = vmatpush1.bf16.msra.mxu0 %v7281_v50 }
0x11a9   :  { %7284 = vmatprep.subr.bf16.mxu0 %v7283_v51  ;;  %7314 = vmatpush1.bf16.msra.mxu1 %v7313_v61 }
0x11aa   :  { %7316 = vmatprep.subr.bf16.mxu1 %v7315_v62 }
0x11ac   :  { %7286 = vmatpush1.bf16.msra.mxu0 %v7285_v60 }
0x11ad   :  { %7318 = vmatpush1.bf16.msra.mxu1 %v7317_v2 }
0x11af   :  { %4000 = vmatmul.mubr.f32.vlgmr.msra.gmra.mrb[0].mxu0 %v3865_v1 }
0x11b0   :  { %4071 = vmatmul.mubr.f32.vlgmr.msra.gmra.mrb[0].mxu1 %v3865_v1 }
0x1282   :  { %v4001_v6 = vpop.f32.mrb[0].mxu0 }
0x1283   :  { %v4077_v7 = vadd.f32 %v4001_v6, %v3867_v3  ;;  %v4003_v8 = vpop.f32.mrb[1].mxu0  ;;  %v4072_v13 = vpop.f32.mrb[0].mxu1 }
0x1284   :  { %v4078_v9 = vadd.f32 %v4003_v8, %v3868_v5  ;;  %v4074_v14 = vpop.f32.mrb[1].mxu1  ;;  %v4079_v18 = vadd.f32 %v4072_v13, %v3869_v16 }
0x1285   :  { %v6243_v10 = vmul.f32 -1.442695, %v4077_v7  ;;  %v4080_v15 = vadd.f32 %v4074_v14, %v3870_v12 }
0x1286   :  { %v6244_v11 = vmul.f32 -1.442695, %v4078_v9 }
0x1287   :  { %8100 = vpow2.f32 %v6243_v10  ;;  %v6245_v17 = vmul.f32 -1.442695, %v4080_v15 }
0x1288   :  { %8102 = vpow2.f32 %v6244_v11 }
0x1289   :  { %8104 = vpow2.f32 %v6245_v17 }
0x128a   :  { %8106 = vtanh.f32 %v4079_v18 }
0x1291   :  { %v8101_v19 = vpop.eup %8100 }
0x1292   :  { %v8103_v20 = vpop.eup %8102  ;;  %v4084_v21 = vadd.f32 1.0, %v8101_v19 }
0x1293   :  { %v4090_v22 = vadd.f32 1.0, %v8103_v20  ;;  %v8105_v23 = vpop.eup %8104 }
0x1294   :  { %8108 = vrcp.f32 %v4084_v21  ;;  %v8107_v24 = vpop.eup %8106  ;;  %v4097_v27 = vadd.f32 1.0, %v8105_v23 }
0x1295   :  { %8110 = vrcp.f32 %v4090_v22 }
0x1296   :  { %8112 = vrcp.f32 %v4097_v27 }
0x129e   :  { %v8109_v26 = vpop.eup %8108 }
0x129f   :  { %v8111_v28 = vpop.eup %8110  ;;  %v4101_v29 = vmul.f32 %v8109_v26, %v8107_v24 }
0x12a0   :  { %v4100_v30 = vmul.f32 %v8111_v28, %v3866_v25  ;;  %v8113_v33 = vpop.eup %8112 }
0x12a2   :  { %v4102_v31 = vadd.f32 %v4101_v29, %v4100_v30 }
0x12a4   :  { %8114 = vtanh.f32 %v4102_v31  ;;  %v4109_v32 = vsel %vm6246_vm15, %v4102_v31, %v3866_v25 }
0x12a5   :  { %4110 = vst [vmem:[%s13720_s6] sm:$0xff] %v4109_v32 }
0x12ae   :  { %v8115_v34 = vpop.eup %8114 }
0x12af   :  { %v4104_v35 = vmul.f32 %v8115_v34, %v8113_v33 }
0x12b1   :  { %v4107_v36 = vsel %vm6246_vm15, %v4104_v35, %v3865_v1  ;;  %v4111_v37 = vsel %vm6246_vm15, %v4104_v35, 0.0 }
0x12b2   :  { %4108 = vst [vmem:[%s13719_s5] sm:$0xff] %v4107_v36  ;;  %4112 = vst [vmem:[%s13718_s4 + $0x78] sm:$0xff] %v4111_v37 }
0x12b3 PF:  { %p6248_p8 = scmp.le.s32.totalorder %s8324_s26, 16 }
0x12b4   :  { %v4125_v38 = vld [vmem:[%s13717_s3 + $0x8] sm:$0xff] (!%p6248_p8)  ;;  %v4124_v40 = vld [vmem:[%s13717_s3] sm:$0xff] (!%p6248_p8)  ;;  %v8278_v45 = vmov (!%p6248_p8), 0.0   ;;  %v4127_v57 = vld [vmem:[%s13717_s3 + $0x18] sm:$0xff] (!%p6248_p8)  ;;  %vm6252_vm0 = vcmp.gt.s32.totalorder (!%p6248_p8), %v8408_v4, 16 }
0x12b5   :  { %4117 = sbr.rel (%p6248_p8) target bundleno = 5084 (0x13dc), region = 89  ;;  %v4129_v39 = vld [vmem:[%s13717_s3 + $0x28] sm:$0xff] (!%p6248_p8)  ;;  %v4128_v42 = vld [vmem:[%s13717_s3 + $0x20] sm:$0xff] (!%p6248_p8)  ;;  %4252 = vmatprep.mubr.f32.mxu0 (!%p6248_p8), %v8278_v45  ;;  %4323 = vmatprep.mubr.f32.mxu1 (!%p6248_p8), %v8278_v45  ;;  %v4131_v58 = vld [vmem:[%s13717_s3 + $0x38] sm:$0xff] (!%p6248_p8) }
0x12b6   :  { %v7319_v41 = vpack.c.bf16 (!%p6248_p8), %v4129_v39, %v4125_v38  ;;  %v4133_v43 = vld [vmem:[%s13717_s3 + $0x48] sm:$0xff] (!%p6248_p8)  ;;  %v7321_v46 = vpack.c.bf16 (!%p6248_p8), %v4128_v42, %v4124_v40  ;;  %v4132_v48 = vld [vmem:[%s13717_s3 + $0x40] sm:$0xff] (!%p6248_p8)  ;;  %v7351_v60 = vpack.c.bf16 (!%p6248_p8), %v4131_v58, %v4127_v57  ;;  %v4126_v61 = vld [vmem:[%s13717_s3 + $0x10] sm:$0xff] (!%p6248_p8) }
0x12b7   :  { %v4137_v44 = vld [vmem:[%s13717_s3 + $0x68] sm:$0xff] (!%p6248_p8)  ;;  %v4136_v49 = vld [vmem:[%s13717_s3 + $0x60] sm:$0xff] (!%p6248_p8)  ;;  %v4130_v62 = vld [vmem:[%s13717_s3 + $0x30] sm:$0xff] (!%p6248_p8) }
0x12b8   :  { %v7323_v47 = vpack.c.bf16 (!%p6248_p8), %v4137_v44, %v4133_v43  ;;  %v4141_v50 = vld [vmem:[%s13717_s3 + $0x88] sm:$0xff] (!%p6248_p8)  ;;  %7320 = vmatprep.subr.bf16.mxu0 (!%p6248_p8), %v7319_v41  ;;  %v7325_v52 = vpack.c.bf16 (!%p6248_p8), %v4136_v49, %v4132_v48  ;;  %v4140_v53 = vld [vmem:[%s13717_s3 + $0x80] sm:$0xff] (!%p6248_p8)  ;;  %v7353_v63 = vpack.c.bf16 (!%p6248_p8), %v4130_v62, %v4126_v61  ;;  %7352 = vmatprep.subr.bf16.mxu1 (!%p6248_p8), %v7351_v60  ;;  %v4135_v1 = vld [vmem:[%s13717_s3 + $0x58] sm:$0xff] (!%p6248_p8) }
0x12b9   :  { %v4145_v51 = vld [vmem:[%s13717_s3 + $0xa8] sm:$0xff] (!%p6248_p8)  ;;  %7322 = vmatpush1.bf16.msra.mxu0 (!%p6248_p8), %v7321_v46  ;;  %v4144_v54 = vld [vmem:[%s13717_s3 + $0xa0] sm:$0xff] (!%p6248_p8)  ;;  %v4139_v2 = vld [vmem:[%s13717_s3 + $0x78] sm:$0xff] (!%p6248_p8) }
0x12ba   :  { %7324 = vmatprep.subr.bf16.mxu0 (!%p6248_p8), %v7323_v47  ;;  %v7327_v55 = vpack.c.bf16 (!%p6248_p8), %v4145_v51, %v4141_v50  ;;  %v4149_v56 = vld [vmem:[%s13717_s3 + $0xc8] sm:$0xff] (!%p6248_p8)  ;;  %v7329_v0 = vpack.c.bf16 (!%p6248_p8), %v4144_v54, %v4140_v53  ;;  %v4134_v3 = vld [vmem:[%s13717_s3 + $0x50] sm:$0xff] (!%p6248_p8)  ;;  %v4148_v6 = vld [vmem:[%s13717_s3 + $0xc0] sm:$0xff] (!%p6248_p8)  ;;  %7354 = vmatpush1.bf16.msra.mxu1 (!%p6248_p8), %v7353_v63  ;;  %v7355_v8 = vpack.c.bf16 (!%p6248_p8), %v4139_v2, %v4135_v1 }
0x12bb   :  { %v4153_v59 = vld [vmem:[%s13717_s3 + $0xe8] sm:$0xff] (!%p6248_p8)  ;;  %v4152_v7 = vld [vmem:[%s13717_s3 + $0xe0] sm:$0xff] (!%p6248_p8)  ;;  %v4138_v9 = vld [vmem:[%s13717_s3 + $0x70] sm:$0xff] (!%p6248_p8) }
0x12bc   :  { %v7331_v5 = vpack.c.bf16 %v4153_v59, %v4149_v56  ;;  %v4157_v10 = vld [vmem:[%s13717_s3 + $0x108] sm:$0xff]  ;;  %v7357_v12 = vpack.c.bf16 %v4138_v9, %v4134_v3  ;;  %v4143_v13 = vld [vmem:[%s13717_s3 + $0x98] sm:$0xff]  ;;  %7356 = vmatprep.subr.bf16.mxu1 %v7355_v8  ;;  %v4142_v15 = vld [vmem:[%s13717_s3 + $0x90] sm:$0xff]  ;;  %v7333_v17 = vpack.c.bf16 %v4152_v7, %v4148_v6 }
0x12bd   :  { %7326 = vmatpush1.bf16.msra.mxu0 %v7325_v52  ;;  %v4161_v11 = vld [vmem:[%s13717_s3 + $0x128] sm:$0xff]  ;;  %v4147_v14 = vld [vmem:[%s13717_s3 + $0xb8] sm:$0xff]  ;;  %v4146_v16 = vld [vmem:[%s13717_s3 + $0xb0] sm:$0xff] }
0x12be   :  { %7328 = vmatprep.subr.bf16.mxu0 %v7327_v55  ;;  %v4156_v18 = vld [vmem:[%s13717_s3 + $0x100] sm:$0xff]  ;;  %v7359_v20 = vpack.c.bf16 %v4147_v14, %v4143_v13  ;;  %v7335_v21 = vpack.c.bf16 %v4161_v11, %v4157_v10  ;;  %7358 = vmatpush1.bf16.msra.mxu1 %v7357_v12  ;;  %v4165_v22 = vld [vmem:[%s13717_s3 + $0x148] sm:$0xff]  ;;  %v7361_v23 = vpack.c.bf16 %v4146_v16, %v4142_v15  ;;  %v4151_v24 = vld [vmem:[%s13717_s3 + $0xd8] sm:$0xff] }
0x12bf   :  { %v4160_v19 = vld [vmem:[%s13717_s3 + $0x120] sm:$0xff]  ;;  %v4155_v25 = vld [vmem:[%s13717_s3 + $0xf8] sm:$0xff]  ;;  %v4169_v26 = vld [vmem:[%s13717_s3 + $0x168] sm:$0xff] }
0x12c0   :  { %7360 = vmatprep.subr.bf16.mxu1 %v7359_v20  ;;  %v7363_v27 = vpack.c.bf16 %v4155_v25, %v4151_v24  ;;  %v4150_v28 = vld [vmem:[%s13717_s3 + $0xd0] sm:$0xff]  ;;  %v7337_v30 = vpack.c.bf16 %v4160_v19, %v4156_v18  ;;  %v4159_v31 = vld [vmem:[%s13717_s3 + $0x118] sm:$0xff]  ;;  %v7339_v33 = vpack.c.bf16 %v4169_v26, %v4165_v22  ;;  %v4164_v34 = vld [vmem:[%s13717_s3 + $0x140] sm:$0xff] }
0x12c1   :  { %7330 = vmatpush1.bf16.msra.mxu0 %v7329_v0  ;;  %v4154_v29 = vld [vmem:[%s13717_s3 + $0xf0] sm:$0xff]  ;;  %v4163_v32 = vld [vmem:[%s13717_s3 + $0x138] sm:$0xff]  ;;  %v4168_v35 = vld [vmem:[%s13717_s3 + $0x160] sm:$0xff] }
0x12c2   :  { %7332 = vmatprep.subr.bf16.mxu0 %v7331_v5  ;;  %7362 = vmatpush1.bf16.msra.mxu1 %v7361_v23  ;;  %v4173_v36 = vld [vmem:[%s13717_s3 + $0x188] sm:$0xff]  ;;  %v7365_v37 = vpack.c.bf16 %v4154_v29, %v4150_v28  ;;  %v7367_v39 = vpack.c.bf16 %v4163_v32, %v4159_v31  ;;  %v4158_v40 = vld [vmem:[%s13717_s3 + $0x110] sm:$0xff]  ;;  %v4167_v42 = vld [vmem:[%s13717_s3 + $0x158] sm:$0xff]  ;;  %v7341_v44 = vpack.c.bf16 %v4168_v35, %v4164_v34 }
0x12c3   :  { %v4177_v38 = vld [vmem:[%s13717_s3 + $0x1a8] sm:$0xff]  ;;  %7364 = vmatprep.subr.bf16.mxu1 %v7363_v27  ;;  %v4162_v41 = vld [vmem:[%s13717_s3 + $0x130] sm:$0xff]  ;;  %v4171_v43 = vld [vmem:[%s13717_s3 + $0x178] sm:$0xff] }
0x12c4   :  { %v7343_v45 = vpack.c.bf16 %v4177_v38, %v4173_v36  ;;  %v4172_v46 = vld [vmem:[%s13717_s3 + $0x180] sm:$0xff]  ;;  %v4181_v48 = vld [vmem:[%s13717_s3 + $0x1c8] sm:$0xff]  ;;  %v7369_v49 = vpack.c.bf16 %v4162_v41, %v4158_v40  ;;  %v7371_v51 = vpack.c.bf16 %v4171_v43, %v4167_v42  ;;  %v4166_v52 = vld [vmem:[%s13717_s3 + $0x150] sm:$0xff] }
0x12c5   :  { %7334 = vmatpush1.bf16.msra.mxu0 %v7333_v17  ;;  %v4176_v47 = vld [vmem:[%s13717_s3 + $0x1a0] sm:$0xff]  ;;  %v4185_v50 = vld [vmem:[%s13717_s3 + $0x1e8] sm:$0xff]  ;;  %v4170_v53 = vld [vmem:[%s13717_s3 + $0x170] sm:$0xff] }
0x12c6   :  { %7336 = vmatprep.subr.bf16.mxu0 %v7335_v21  ;;  %7366 = vmatpush1.bf16.msra.mxu1 %v7365_v37  ;;  %v4175_v54 = vld [vmem:[%s13717_s3 + $0x198] sm:$0xff]  ;;  %v7345_v56 = vpack.c.bf16 %v4176_v47, %v4172_v46  ;;  %v7347_v57 = vpack.c.bf16 %v4185_v50, %v4181_v48  ;;  %v4180_v58 = vld [vmem:[%s13717_s3 + $0x1c0] sm:$0xff]  ;;  %v7373_v60 = vpack.c.bf16 %v4170_v53, %v4166_v52  ;;  %v4174_v62 = vld [vmem:[%s13717_s3 + $0x190] sm:$0xff] }
0x12c7   :  { %7368 = vmatprep.subr.bf16.mxu1 %v7367_v39  ;;  %v4179_v55 = vld [vmem:[%s13717_s3 + $0x1b8] sm:$0xff]  ;;  %v4184_v59 = vld [vmem:[%s13717_s3 + $0x1e0] sm:$0xff]  ;;  %v4178_v63 = vld [vmem:[%s13717_s3 + $0x1b0] sm:$0xff] }
0x12c8   :  { %v7375_v61 = vpack.c.bf16 %v4179_v55, %v4175_v54  ;;  %v4183_v0 = vld [vmem:[%s13717_s3 + $0x1d8] sm:$0xff]  ;;  %v7349_v2 = vpack.c.bf16 %v4184_v59, %v4180_v58  ;;  %v7377_v3 = vpack.c.bf16 %v4178_v63, %v4174_v62  ;;  %v4182_v6 = vld [vmem:[%s13717_s3 + $0x1d0] sm:$0xff]  ;;  %v4118_v8 = vld [vmem:[%s13719_s5] sm:$0xff] }
0x12c9   :  { %7338 = vmatpush1.bf16.msra.mxu0 %v7337_v30  ;;  %v4187_v1 = vld [vmem:[%s13717_s3 + $0x1f8] sm:$0xff]  ;;  %v4186_v7 = vld [vmem:[%s13717_s3 + $0x1f0] sm:$0xff]  ;;  %v4120_v10 = vld [vmem:[%s13716_s2 + $0x200] sm:$0xff] }
0x12ca   :  { %7340 = vmatprep.subr.bf16.mxu0 %v7339_v33  ;;  %7370 = vmatpush1.bf16.msra.mxu1 %v7369_v49  ;;  %v7379_v5 = vpack.c.bf16 %v4187_v1, %v4183_v0  ;;  %v7381_v9 = vpack.c.bf16 %v4186_v7, %v4182_v6  ;;  %v4121_v11 = vld [vmem:[%s13716_s2 + $0x208] sm:$0xff]  ;;  %v4123_v18 = vld [vmem:[%s13716_s2 + $0x218] sm:$0xff]  ;;  %v4122_v22 = vld [vmem:[%s13716_s2 + $0x210] sm:$0xff] }
0x12cb   :  { %7372 = vmatprep.subr.bf16.mxu1 %v7371_v51  ;;  %v4119_v31 = vld [vmem:[%s13720_s6] sm:$0xff] }
0x12cd   :  { %7342 = vmatpush1.bf16.msra.mxu0 %v7341_v44 }
0x12ce   :  { %7344 = vmatprep.subr.bf16.mxu0 %v7343_v45  ;;  %7374 = vmatpush1.bf16.msra.mxu1 %v7373_v60 }
0x12cf   :  { %7376 = vmatprep.subr.bf16.mxu1 %v7375_v61 }
0x12d1   :  { %7346 = vmatpush1.bf16.msra.mxu0 %v7345_v56 }
0x12d2   :  { %7348 = vmatprep.subr.bf16.mxu0 %v7347_v57  ;;  %7378 = vmatpush1.bf16.msra.mxu1 %v7377_v3 }
0x12d3   :  { %7380 = vmatprep.subr.bf16.mxu1 %v7379_v5 }
0x12d5   :  { %7350 = vmatpush1.bf16.msra.mxu0 %v7349_v2 }
0x12d6   :  { %7382 = vmatpush1.bf16.msra.mxu1 %v7381_v9 }
0x12d8   :  { %4253 = vmatmul.mubr.f32.vlgmr.msra.gmra.mrb[0].mxu0 %v4118_v8 }
0x12d9   :  { %4324 = vmatmul.mubr.f32.vlgmr.msra.gmra.mrb[0].mxu1 %v4118_v8 }
0x13ab   :  { %v4254_v12 = vpop.f32.mrb[0].mxu0 }
0x13ac   :  { %v4330_v13 = vadd.f32 %v4254_v12, %v4120_v10  ;;  %v4256_v14 = vpop.f32.mrb[1].mxu0  ;;  %v4325_v19 = vpop.f32.mrb[0].mxu1 }
0x13ad   :  { %v4331_v15 = vadd.f32 %v4256_v14, %v4121_v11  ;;  %v4327_v20 = vpop.f32.mrb[1].mxu1  ;;  %v4332_v24 = vadd.f32 %v4325_v19, %v4122_v22 }
0x13ae   :  { %v6249_v16 = vmul.f32 -1.442695, %v4330_v13  ;;  %v4333_v21 = vadd.f32 %v4327_v20, %v4123_v18 }
0x13af   :  { %v6250_v17 = vmul.f32 -1.442695, %v4331_v15 }
0x13b0   :  { %8116 = vpow2.f32 %v6249_v16  ;;  %v6251_v23 = vmul.f32 -1.442695, %v4333_v21 }
0x13b1   :  { %8118 = vpow2.f32 %v6250_v17 }
0x13b2   :  { %8120 = vpow2.f32 %v6251_v23 }
0x13b3   :  { %8122 = vtanh.f32 %v4332_v24 }
0x13ba   :  { %v8117_v25 = vpop.eup %8116 }
0x13bb   :  { %v8119_v26 = vpop.eup %8118  ;;  %v4337_v27 = vadd.f32 1.0, %v8117_v25 }
0x13bc   :  { %v4343_v28 = vadd.f32 1.0, %v8119_v26  ;;  %v8121_v29 = vpop.eup %8120 }
0x13bd   :  { %8124 = vrcp.f32 %v4337_v27  ;;  %v8123_v30 = vpop.eup %8122  ;;  %v4350_v33 = vadd.f32 1.0, %v8121_v29 }
0x13be   :  { %8126 = vrcp.f32 %v4343_v28 }
0x13bf   :  { %8128 = vrcp.f32 %v4350_v33 }
0x13c7   :  { %v8125_v32 = vpop.eup %8124 }
0x13c8   :  { %v8127_v34 = vpop.eup %8126  ;;  %v4354_v35 = vmul.f32 %v8125_v32, %v8123_v30 }
0x13c9   :  { %v4353_v36 = vmul.f32 %v8127_v34, %v4119_v31  ;;  %v8129_v39 = vpop.eup %8128 }
0x13cb   :  { %v4355_v37 = vadd.f32 %v4354_v35, %v4353_v36 }
0x13cd   :  { %8130 = vtanh.f32 %v4355_v37  ;;  %v4362_v38 = vsel %vm6252_vm0, %v4355_v37, %v4119_v31 }
0x13ce   :  { %4363 = vst [vmem:[%s13720_s6] sm:$0xff] %v4362_v38 }
0x13d7   :  { %v8131_v40 = vpop.eup %8130 }
0x13d8   :  { %v4357_v41 = vmul.f32 %v8131_v40, %v8129_v39 }
0x13da   :  { %v4360_v42 = vsel %vm6252_vm0, %v4357_v41, %v4118_v8  ;;  %v4364_v43 = vsel %vm6252_vm0, %v4357_v41, 0.0 }
0x13db   :  { %4361 = vst [vmem:[%s13719_s5] sm:$0xff] %v4360_v42  ;;  %4365 = vst [vmem:[%s13718_s4 + $0x80] sm:$0xff] %v4364_v43 }
0x13dc PF:  { %p6254_p9 = scmp.le.s32.totalorder %s8324_s26, 17 }
0x13dd   :  { %v4378_v44 = vld [vmem:[%s13717_s3 + $0x8] sm:$0xff] (!%p6254_p9)  ;;  %v4377_v46 = vld [vmem:[%s13717_s3] sm:$0xff] (!%p6254_p9)  ;;  %v8279_v51 = vmov (!%p6254_p9), 0.0   ;;  %v4380_v63 = vld [vmem:[%s13717_s3 + $0x18] sm:$0xff] (!%p6254_p9)  ;;  %vm6258_vm1 = vcmp.gt.s32.totalorder (!%p6254_p9), %v8408_v4, 17 }
0x13de   :  { %4370 = sbr.rel (%p6254_p9) target bundleno = 5381 (0x1505), region = 93  ;;  %v4382_v45 = vld [vmem:[%s13717_s3 + $0x28] sm:$0xff] (!%p6254_p9)  ;;  %v4381_v48 = vld [vmem:[%s13717_s3 + $0x20] sm:$0xff] (!%p6254_p9)  ;;  %4505 = vmatprep.mubr.f32.mxu0 (!%p6254_p9), %v8279_v51  ;;  %4576 = vmatprep.mubr.f32.mxu1 (!%p6254_p9), %v8279_v51  ;;  %v4384_v0 = vld [vmem:[%s13717_s3 + $0x38] sm:$0xff] (!%p6254_p9) }
0x13df   :  { %v7383_v47 = vpack.c.bf16 (!%p6254_p9), %v4382_v45, %v4378_v44  ;;  %v4386_v49 = vld [vmem:[%s13717_s3 + $0x48] sm:$0xff] (!%p6254_p9)  ;;  %v7385_v52 = vpack.c.bf16 (!%p6254_p9), %v4381_v48, %v4377_v46  ;;  %v4385_v54 = vld [vmem:[%s13717_s3 + $0x40] sm:$0xff] (!%p6254_p9)  ;;  %v7415_v2 = vpack.c.bf16 (!%p6254_p9), %v4384_v0, %v4380_v63  ;;  %v4379_v3 = vld [vmem:[%s13717_s3 + $0x10] sm:$0xff] (!%p6254_p9) }
0x13e0   :  { %v4390_v50 = vld [vmem:[%s13717_s3 + $0x68] sm:$0xff] (!%p6254_p9)  ;;  %v4389_v55 = vld [vmem:[%s13717_s3 + $0x60] sm:$0xff] (!%p6254_p9)  ;;  %v4383_v5 = vld [vmem:[%s13717_s3 + $0x30] sm:$0xff] (!%p6254_p9) }
0x13e1   :  { %v7387_v53 = vpack.c.bf16 (!%p6254_p9), %v4390_v50, %v4386_v49  ;;  %v4394_v56 = vld [vmem:[%s13717_s3 + $0x88] sm:$0xff] (!%p6254_p9)  ;;  %7384 = vmatprep.subr.bf16.mxu0 (!%p6254_p9), %v7383_v47  ;;  %v7389_v58 = vpack.c.bf16 (!%p6254_p9), %v4389_v55, %v4385_v54  ;;  %v4393_v59 = vld [vmem:[%s13717_s3 + $0x80] sm:$0xff] (!%p6254_p9)  ;;  %v7417_v6 = vpack.c.bf16 (!%p6254_p9), %v4383_v5, %v4379_v3  ;;  %7416 = vmatprep.subr.bf16.mxu1 (!%p6254_p9), %v7415_v2  ;;  %v4388_v8 = vld [vmem:[%s13717_s3 + $0x58] sm:$0xff] (!%p6254_p9) }
0x13e2   :  { %v4398_v57 = vld [vmem:[%s13717_s3 + $0xa8] sm:$0xff] (!%p6254_p9)  ;;  %7386 = vmatpush1.bf16.msra.mxu0 (!%p6254_p9), %v7385_v52  ;;  %v4397_v60 = vld [vmem:[%s13717_s3 + $0xa0] sm:$0xff] (!%p6254_p9)  ;;  %v4392_v9 = vld [vmem:[%s13717_s3 + $0x78] sm:$0xff] (!%p6254_p9) }
0x13e3   :  { %7388 = vmatprep.subr.bf16.mxu0 (!%p6254_p9), %v7387_v53  ;;  %v7391_v61 = vpack.c.bf16 (!%p6254_p9), %v4398_v57, %v4394_v56  ;;  %v4402_v62 = vld [vmem:[%s13717_s3 + $0xc8] sm:$0xff] (!%p6254_p9)  ;;  %v7393_v7 = vpack.c.bf16 (!%p6254_p9), %v4397_v60, %v4393_v59  ;;  %v4387_v10 = vld [vmem:[%s13717_s3 + $0x50] sm:$0xff] (!%p6254_p9)  ;;  %v4401_v12 = vld [vmem:[%s13717_s3 + $0xc0] sm:$0xff] (!%p6254_p9)  ;;  %7418 = vmatpush1.bf16.msra.mxu1 (!%p6254_p9), %v7417_v6  ;;  %v7419_v14 = vpack.c.bf16 (!%p6254_p9), %v4392_v9, %v4388_v8 }
0x13e4   :  { %v4406_v1 = vld [vmem:[%s13717_s3 + $0xe8] sm:$0xff] (!%p6254_p9)  ;;  %v4405_v13 = vld [vmem:[%s13717_s3 + $0xe0] sm:$0xff] (!%p6254_p9)  ;;  %v4391_v15 = vld [vmem:[%s13717_s3 + $0x70] sm:$0xff] (!%p6254_p9) }
0x13e5   :  { %v7395_v11 = vpack.c.bf16 %v4406_v1, %v4402_v62  ;;  %v4410_v16 = vld [vmem:[%s13717_s3 + $0x108] sm:$0xff]  ;;  %v7421_v18 = vpack.c.bf16 %v4391_v15, %v4387_v10  ;;  %v4396_v19 = vld [vmem:[%s13717_s3 + $0x98] sm:$0xff]  ;;  %7420 = vmatprep.subr.bf16.mxu1 %v7419_v14  ;;  %v4395_v21 = vld [vmem:[%s13717_s3 + $0x90] sm:$0xff]  ;;  %v7397_v23 = vpack.c.bf16 %v4405_v13, %v4401_v12 }
0x13e6   :  { %7390 = vmatpush1.bf16.msra.mxu0 %v7389_v58  ;;  %v4414_v17 = vld [vmem:[%s13717_s3 + $0x128] sm:$0xff]  ;;  %v4400_v20 = vld [vmem:[%s13717_s3 + $0xb8] sm:$0xff]  ;;  %v4399_v22 = vld [vmem:[%s13717_s3 + $0xb0] sm:$0xff] }
0x13e7   :  { %7392 = vmatprep.subr.bf16.mxu0 %v7391_v61  ;;  %v4409_v24 = vld [vmem:[%s13717_s3 + $0x100] sm:$0xff]  ;;  %v7423_v26 = vpack.c.bf16 %v4400_v20, %v4396_v19  ;;  %v7399_v27 = vpack.c.bf16 %v4414_v17, %v4410_v16  ;;  %7422 = vmatpush1.bf16.msra.mxu1 %v7421_v18  ;;  %v4418_v28 = vld [vmem:[%s13717_s3 + $0x148] sm:$0xff]  ;;  %v7425_v29 = vpack.c.bf16 %v4399_v22, %v4395_v21  ;;  %v4404_v30 = vld [vmem:[%s13717_s3 + $0xd8] sm:$0xff] }
0x13e8   :  { %v4413_v25 = vld [vmem:[%s13717_s3 + $0x120] sm:$0xff]  ;;  %v4408_v31 = vld [vmem:[%s13717_s3 + $0xf8] sm:$0xff]  ;;  %v4422_v32 = vld [vmem:[%s13717_s3 + $0x168] sm:$0xff] }
0x13e9   :  { %7424 = vmatprep.subr.bf16.mxu1 %v7423_v26  ;;  %v7427_v33 = vpack.c.bf16 %v4408_v31, %v4404_v30  ;;  %v4403_v34 = vld [vmem:[%s13717_s3 + $0xd0] sm:$0xff]  ;;  %v7401_v36 = vpack.c.bf16 %v4413_v25, %v4409_v24  ;;  %v4412_v37 = vld [vmem:[%s13717_s3 + $0x118] sm:$0xff]  ;;  %v7403_v39 = vpack.c.bf16 %v4422_v32, %v4418_v28  ;;  %v4417_v40 = vld [vmem:[%s13717_s3 + $0x140] sm:$0xff] }
0x13ea   :  { %7394 = vmatpush1.bf16.msra.mxu0 %v7393_v7  ;;  %v4407_v35 = vld [vmem:[%s13717_s3 + $0xf0] sm:$0xff]  ;;  %v4416_v38 = vld [vmem:[%s13717_s3 + $0x138] sm:$0xff]  ;;  %v4421_v41 = vld [vmem:[%s13717_s3 + $0x160] sm:$0xff] }
0x13eb   :  { %7396 = vmatprep.subr.bf16.mxu0 %v7395_v11  ;;  %7426 = vmatpush1.bf16.msra.mxu1 %v7425_v29  ;;  %v4426_v42 = vld [vmem:[%s13717_s3 + $0x188] sm:$0xff]  ;;  %v7429_v43 = vpack.c.bf16 %v4407_v35, %v4403_v34  ;;  %v7431_v45 = vpack.c.bf16 %v4416_v38, %v4412_v37  ;;  %v4411_v46 = vld [vmem:[%s13717_s3 + $0x110] sm:$0xff]  ;;  %v4420_v48 = vld [vmem:[%s13717_s3 + $0x158] sm:$0xff]  ;;  %v7405_v50 = vpack.c.bf16 %v4421_v41, %v4417_v40 }
0x13ec   :  { %v4430_v44 = vld [vmem:[%s13717_s3 + $0x1a8] sm:$0xff]  ;;  %7428 = vmatprep.subr.bf16.mxu1 %v7427_v33  ;;  %v4415_v47 = vld [vmem:[%s13717_s3 + $0x130] sm:$0xff]  ;;  %v4424_v49 = vld [vmem:[%s13717_s3 + $0x178] sm:$0xff] }
0x13ed   :  { %v7407_v51 = vpack.c.bf16 %v4430_v44, %v4426_v42  ;;  %v4425_v52 = vld [vmem:[%s13717_s3 + $0x180] sm:$0xff]  ;;  %v4434_v54 = vld [vmem:[%s13717_s3 + $0x1c8] sm:$0xff]  ;;  %v7433_v55 = vpack.c.bf16 %v4415_v47, %v4411_v46  ;;  %v7435_v57 = vpack.c.bf16 %v4424_v49, %v4420_v48  ;;  %v4419_v58 = vld [vmem:[%s13717_s3 + $0x150] sm:$0xff] }
0x13ee   :  { %7398 = vmatpush1.bf16.msra.mxu0 %v7397_v23  ;;  %v4429_v53 = vld [vmem:[%s13717_s3 + $0x1a0] sm:$0xff]  ;;  %v4438_v56 = vld [vmem:[%s13717_s3 + $0x1e8] sm:$0xff]  ;;  %v4423_v59 = vld [vmem:[%s13717_s3 + $0x170] sm:$0xff] }
0x13ef   :  { %7400 = vmatprep.subr.bf16.mxu0 %v7399_v27  ;;  %7430 = vmatpush1.bf16.msra.mxu1 %v7429_v43  ;;  %v4428_v60 = vld [vmem:[%s13717_s3 + $0x198] sm:$0xff]  ;;  %v7409_v62 = vpack.c.bf16 %v4429_v53, %v4425_v52  ;;  %v7411_v63 = vpack.c.bf16 %v4438_v56, %v4434_v54  ;;  %v4433_v0 = vld [vmem:[%s13717_s3 + $0x1c0] sm:$0xff]  ;;  %v7437_v2 = vpack.c.bf16 %v4423_v59, %v4419_v58  ;;  %v4427_v5 = vld [vmem:[%s13717_s3 + $0x190] sm:$0xff] }
0x13f0   :  { %7432 = vmatprep.subr.bf16.mxu1 %v7431_v45  ;;  %v4432_v61 = vld [vmem:[%s13717_s3 + $0x1b8] sm:$0xff]  ;;  %v4437_v1 = vld [vmem:[%s13717_s3 + $0x1e0] sm:$0xff]  ;;  %v4431_v6 = vld [vmem:[%s13717_s3 + $0x1b0] sm:$0xff] }
0x13f1   :  { %v7439_v3 = vpack.c.bf16 %v4432_v61, %v4428_v60  ;;  %v4436_v7 = vld [vmem:[%s13717_s3 + $0x1d8] sm:$0xff]  ;;  %v7413_v9 = vpack.c.bf16 %v4437_v1, %v4433_v0  ;;  %v7441_v10 = vpack.c.bf16 %v4431_v6, %v4427_v5  ;;  %v4435_v12 = vld [vmem:[%s13717_s3 + $0x1d0] sm:$0xff]  ;;  %v4371_v14 = vld [vmem:[%s13719_s5] sm:$0xff] }
0x13f2   :  { %7402 = vmatpush1.bf16.msra.mxu0 %v7401_v36  ;;  %v4440_v8 = vld [vmem:[%s13717_s3 + $0x1f8] sm:$0xff]  ;;  %v4439_v13 = vld [vmem:[%s13717_s3 + $0x1f0] sm:$0xff]  ;;  %v4373_v16 = vld [vmem:[%s13716_s2 + $0x220] sm:$0xff] }
0x13f3   :  { %7404 = vmatprep.subr.bf16.mxu0 %v7403_v39  ;;  %7434 = vmatpush1.bf16.msra.mxu1 %v7433_v55  ;;  %v7443_v11 = vpack.c.bf16 %v4440_v8, %v4436_v7  ;;  %v7445_v15 = vpack.c.bf16 %v4439_v13, %v4435_v12  ;;  %v4374_v17 = vld [vmem:[%s13716_s2 + $0x228] sm:$0xff]  ;;  %v4376_v24 = vld [vmem:[%s13716_s2 + $0x238] sm:$0xff]  ;;  %v4375_v28 = vld [vmem:[%s13716_s2 + $0x230] sm:$0xff] }
0x13f4   :  { %7436 = vmatprep.subr.bf16.mxu1 %v7435_v57  ;;  %v4372_v37 = vld [vmem:[%s13720_s6] sm:$0xff] }
0x13f6   :  { %7406 = vmatpush1.bf16.msra.mxu0 %v7405_v50 }
0x13f7   :  { %7408 = vmatprep.subr.bf16.mxu0 %v7407_v51  ;;  %7438 = vmatpush1.bf16.msra.mxu1 %v7437_v2 }
0x13f8   :  { %7440 = vmatprep.subr.bf16.mxu1 %v7439_v3 }
0x13fa   :  { %7410 = vmatpush1.bf16.msra.mxu0 %v7409_v62 }
0x13fb   :  { %7412 = vmatprep.subr.bf16.mxu0 %v7411_v63  ;;  %7442 = vmatpush1.bf16.msra.mxu1 %v7441_v10 }
0x13fc   :  { %7444 = vmatprep.subr.bf16.mxu1 %v7443_v11 }
0x13fe   :  { %7414 = vmatpush1.bf16.msra.mxu0 %v7413_v9 }
0x13ff   :  { %7446 = vmatpush1.bf16.msra.mxu1 %v7445_v15 }
0x1401   :  { %4506 = vmatmul.mubr.f32.vlgmr.msra.gmra.mrb[0].mxu0 %v4371_v14 }
0x1402   :  { %4577 = vmatmul.mubr.f32.vlgmr.msra.gmra.mrb[0].mxu1 %v4371_v14 }
0x14d4   :  { %v4507_v18 = vpop.f32.mrb[0].mxu0 }
0x14d5   :  { %v4583_v19 = vadd.f32 %v4507_v18, %v4373_v16  ;;  %v4509_v20 = vpop.f32.mrb[1].mxu0  ;;  %v4578_v25 = vpop.f32.mrb[0].mxu1 }
0x14d6   :  { %v4584_v21 = vadd.f32 %v4509_v20, %v4374_v17  ;;  %v4580_v26 = vpop.f32.mrb[1].mxu1  ;;  %v4585_v30 = vadd.f32 %v4578_v25, %v4375_v28 }
0x14d7   :  { %v6255_v22 = vmul.f32 -1.442695, %v4583_v19  ;;  %v4586_v27 = vadd.f32 %v4580_v26, %v4376_v24 }
0x14d8   :  { %v6256_v23 = vmul.f32 -1.442695, %v4584_v21 }
0x14d9   :  { %8132 = vpow2.f32 %v6255_v22  ;;  %v6257_v29 = vmul.f32 -1.442695, %v4586_v27 }
0x14da   :  { %8134 = vpow2.f32 %v6256_v23 }
0x14db   :  { %8136 = vpow2.f32 %v6257_v29 }
0x14dc   :  { %8138 = vtanh.f32 %v4585_v30 }
0x14e3   :  { %v8133_v31 = vpop.eup %8132 }
0x14e4   :  { %v8135_v32 = vpop.eup %8134  ;;  %v4590_v33 = vadd.f32 1.0, %v8133_v31 }
0x14e5   :  { %v4596_v34 = vadd.f32 1.0, %v8135_v32  ;;  %v8137_v35 = vpop.eup %8136 }
0x14e6   :  { %8140 = vrcp.f32 %v4590_v33  ;;  %v8139_v36 = vpop.eup %8138  ;;  %v4603_v39 = vadd.f32 1.0, %v8137_v35 }
0x14e7   :  { %8142 = vrcp.f32 %v4596_v34 }
0x14e8   :  { %8144 = vrcp.f32 %v4603_v39 }
0x14f0   :  { %v8141_v38 = vpop.eup %8140 }
0x14f1   :  { %v8143_v40 = vpop.eup %8142  ;;  %v4607_v41 = vmul.f32 %v8141_v38, %v8139_v36 }
0x14f2   :  { %v4606_v42 = vmul.f32 %v8143_v40, %v4372_v37  ;;  %v8145_v45 = vpop.eup %8144 }
0x14f4   :  { %v4608_v43 = vadd.f32 %v4607_v41, %v4606_v42 }
0x14f6   :  { %8146 = vtanh.f32 %v4608_v43  ;;  %v4615_v44 = vsel %vm6258_vm1, %v4608_v43, %v4372_v37 }
0x14f7   :  { %4616 = vst [vmem:[%s13720_s6] sm:$0xff] %v4615_v44 }
0x1500   :  { %v8147_v46 = vpop.eup %8146 }
0x1501   :  { %v4610_v47 = vmul.f32 %v8147_v46, %v8145_v45 }
0x1503   :  { %v4613_v48 = vsel %vm6258_vm1, %v4610_v47, %v4371_v14  ;;  %v4617_v49 = vsel %vm6258_vm1, %v4610_v47, 0.0 }
0x1504   :  { %4614 = vst [vmem:[%s13719_s5] sm:$0xff] %v4613_v48  ;;  %4618 = vst [vmem:[%s13718_s4 + $0x88] sm:$0xff] %v4617_v49 }
0x1505 PF:  { %p6260_p10 = scmp.le.s32.totalorder %s8324_s26, 18 }
0x1506   :  { %v4631_v50 = vld [vmem:[%s13717_s3 + $0x8] sm:$0xff] (!%p6260_p10)  ;;  %v4630_v52 = vld [vmem:[%s13717_s3] sm:$0xff] (!%p6260_p10)  ;;  %v8280_v57 = vmov (!%p6260_p10), 0.0   ;;  %v4633_v6 = vld [vmem:[%s13717_s3 + $0x18] sm:$0xff] (!%p6260_p10)  ;;  %vm6264_vm2 = vcmp.gt.s32.totalorder (!%p6260_p10), %v8408_v4, 18 }
0x1507   :  { %4623 = sbr.rel (%p6260_p10) target bundleno = 5678 (0x162e), region = 97  ;;  %v4635_v51 = vld [vmem:[%s13717_s3 + $0x28] sm:$0xff] (!%p6260_p10)  ;;  %v4634_v54 = vld [vmem:[%s13717_s3 + $0x20] sm:$0xff] (!%p6260_p10)  ;;  %4758 = vmatprep.mubr.f32.mxu0 (!%p6260_p10), %v8280_v57  ;;  %4829 = vmatprep.mubr.f32.mxu1 (!%p6260_p10), %v8280_v57  ;;  %v4637_v7 = vld [vmem:[%s13717_s3 + $0x38] sm:$0xff] (!%p6260_p10) }
0x1508   :  { %v7447_v53 = vpack.c.bf16 (!%p6260_p10), %v4635_v51, %v4631_v50  ;;  %v4639_v55 = vld [vmem:[%s13717_s3 + $0x48] sm:$0xff] (!%p6260_p10)  ;;  %v7449_v58 = vpack.c.bf16 (!%p6260_p10), %v4634_v54, %v4630_v52  ;;  %v4638_v60 = vld [vmem:[%s13717_s3 + $0x40] sm:$0xff] (!%p6260_p10)  ;;  %v7479_v9 = vpack.c.bf16 (!%p6260_p10), %v4637_v7, %v4633_v6  ;;  %v4632_v10 = vld [vmem:[%s13717_s3 + $0x10] sm:$0xff] (!%p6260_p10) }
0x1509   :  { %v4643_v56 = vld [vmem:[%s13717_s3 + $0x68] sm:$0xff] (!%p6260_p10)  ;;  %v4642_v61 = vld [vmem:[%s13717_s3 + $0x60] sm:$0xff] (!%p6260_p10)  ;;  %v4636_v11 = vld [vmem:[%s13717_s3 + $0x30] sm:$0xff] (!%p6260_p10) }
0x150a   :  { %v7451_v59 = vpack.c.bf16 (!%p6260_p10), %v4643_v56, %v4639_v55  ;;  %v4647_v62 = vld [vmem:[%s13717_s3 + $0x88] sm:$0xff] (!%p6260_p10)  ;;  %7448 = vmatprep.subr.bf16.mxu0 (!%p6260_p10), %v7447_v53  ;;  %v7453_v0 = vpack.c.bf16 (!%p6260_p10), %v4642_v61, %v4638_v60  ;;  %v4646_v1 = vld [vmem:[%s13717_s3 + $0x80] sm:$0xff] (!%p6260_p10)  ;;  %v7481_v12 = vpack.c.bf16 (!%p6260_p10), %v4636_v11, %v4632_v10  ;;  %7480 = vmatprep.subr.bf16.mxu1 (!%p6260_p10), %v7479_v9  ;;  %v4641_v14 = vld [vmem:[%s13717_s3 + $0x58] sm:$0xff] (!%p6260_p10) }
0x150b   :  { %v4651_v63 = vld [vmem:[%s13717_s3 + $0xa8] sm:$0xff] (!%p6260_p10)  ;;  %7450 = vmatpush1.bf16.msra.mxu0 (!%p6260_p10), %v7449_v58  ;;  %v4650_v2 = vld [vmem:[%s13717_s3 + $0xa0] sm:$0xff] (!%p6260_p10)  ;;  %v4645_v15 = vld [vmem:[%s13717_s3 + $0x78] sm:$0xff] (!%p6260_p10) }
0x150c   :  { %7452 = vmatprep.subr.bf16.mxu0 (!%p6260_p10), %v7451_v59  ;;  %v7455_v3 = vpack.c.bf16 (!%p6260_p10), %v4651_v63, %v4647_v62  ;;  %v4655_v5 = vld [vmem:[%s13717_s3 + $0xc8] sm:$0xff] (!%p6260_p10)  ;;  %v7457_v13 = vpack.c.bf16 (!%p6260_p10), %v4650_v2, %v4646_v1  ;;  %v4640_v16 = vld [vmem:[%s13717_s3 + $0x50] sm:$0xff] (!%p6260_p10)  ;;  %v4654_v18 = vld [vmem:[%s13717_s3 + $0xc0] sm:$0xff] (!%p6260_p10)  ;;  %7482 = vmatpush1.bf16.msra.mxu1 (!%p6260_p10), %v7481_v12  ;;  %v7483_v20 = vpack.c.bf16 (!%p6260_p10), %v4645_v15, %v4641_v14 }
0x150d   :  { %v4659_v8 = vld [vmem:[%s13717_s3 + $0xe8] sm:$0xff] (!%p6260_p10)  ;;  %v4658_v19 = vld [vmem:[%s13717_s3 + $0xe0] sm:$0xff] (!%p6260_p10)  ;;  %v4644_v21 = vld [vmem:[%s13717_s3 + $0x70] sm:$0xff] (!%p6260_p10) }
0x150e   :  { %v7459_v17 = vpack.c.bf16 %v4659_v8, %v4655_v5  ;;  %v4663_v22 = vld [vmem:[%s13717_s3 + $0x108] sm:$0xff]  ;;  %v7485_v24 = vpack.c.bf16 %v4644_v21, %v4640_v16  ;;  %v4649_v25 = vld [vmem:[%s13717_s3 + $0x98] sm:$0xff]  ;;  %7484 = vmatprep.subr.bf16.mxu1 %v7483_v20  ;;  %v4648_v27 = vld [vmem:[%s13717_s3 + $0x90] sm:$0xff]  ;;  %v7461_v29 = vpack.c.bf16 %v4658_v19, %v4654_v18 }
0x150f   :  { %7454 = vmatpush1.bf16.msra.mxu0 %v7453_v0  ;;  %v4667_v23 = vld [vmem:[%s13717_s3 + $0x128] sm:$0xff]  ;;  %v4653_v26 = vld [vmem:[%s13717_s3 + $0xb8] sm:$0xff]  ;;  %v4652_v28 = vld [vmem:[%s13717_s3 + $0xb0] sm:$0xff] }
0x1510   :  { %7456 = vmatprep.subr.bf16.mxu0 %v7455_v3  ;;  %v4662_v30 = vld [vmem:[%s13717_s3 + $0x100] sm:$0xff]  ;;  %v7487_v32 = vpack.c.bf16 %v4653_v26, %v4649_v25  ;;  %v7463_v33 = vpack.c.bf16 %v4667_v23, %v4663_v22  ;;  %7486 = vmatpush1.bf16.msra.mxu1 %v7485_v24  ;;  %v4671_v34 = vld [vmem:[%s13717_s3 + $0x148] sm:$0xff]  ;;  %v7489_v35 = vpack.c.bf16 %v4652_v28, %v4648_v27  ;;  %v4657_v36 = vld [vmem:[%s13717_s3 + $0xd8] sm:$0xff] }
0x1511   :  { %v4666_v31 = vld [vmem:[%s13717_s3 + $0x120] sm:$0xff]  ;;  %v4661_v37 = vld [vmem:[%s13717_s3 + $0xf8] sm:$0xff]  ;;  %v4675_v38 = vld [vmem:[%s13717_s3 + $0x168] sm:$0xff] }
0x1512   :  { %7488 = vmatprep.subr.bf16.mxu1 %v7487_v32  ;;  %v7491_v39 = vpack.c.bf16 %v4661_v37, %v4657_v36  ;;  %v4656_v40 = vld [vmem:[%s13717_s3 + $0xd0] sm:$0xff]  ;;  %v7465_v42 = vpack.c.bf16 %v4666_v31, %v4662_v30  ;;  %v4665_v43 = vld [vmem:[%s13717_s3 + $0x118] sm:$0xff]  ;;  %v7467_v45 = vpack.c.bf16 %v4675_v38, %v4671_v34  ;;  %v4670_v46 = vld [vmem:[%s13717_s3 + $0x140] sm:$0xff] }
0x1513   :  { %7458 = vmatpush1.bf16.msra.mxu0 %v7457_v13  ;;  %v4660_v41 = vld [vmem:[%s13717_s3 + $0xf0] sm:$0xff]  ;;  %v4669_v44 = vld [vmem:[%s13717_s3 + $0x138] sm:$0xff]  ;;  %v4674_v47 = vld [vmem:[%s13717_s3 + $0x160] sm:$0xff] }
0x1514   :  { %7460 = vmatprep.subr.bf16.mxu0 %v7459_v17  ;;  %7490 = vmatpush1.bf16.msra.mxu1 %v7489_v35  ;;  %v4679_v48 = vld [vmem:[%s13717_s3 + $0x188] sm:$0xff]  ;;  %v7493_v49 = vpack.c.bf16 %v4660_v41, %v4656_v40  ;;  %v7495_v51 = vpack.c.bf16 %v4669_v44, %v4665_v43  ;;  %v4664_v52 = vld [vmem:[%s13717_s3 + $0x110] sm:$0xff]  ;;  %v4673_v54 = vld [vmem:[%s13717_s3 + $0x158] sm:$0xff]  ;;  %v7469_v56 = vpack.c.bf16 %v4674_v47, %v4670_v46 }
0x1515   :  { %v4683_v50 = vld [vmem:[%s13717_s3 + $0x1a8] sm:$0xff]  ;;  %7492 = vmatprep.subr.bf16.mxu1 %v7491_v39  ;;  %v4668_v53 = vld [vmem:[%s13717_s3 + $0x130] sm:$0xff]  ;;  %v4677_v55 = vld [vmem:[%s13717_s3 + $0x178] sm:$0xff] }
0x1516   :  { %v7471_v57 = vpack.c.bf16 %v4683_v50, %v4679_v48  ;;  %v4678_v58 = vld [vmem:[%s13717_s3 + $0x180] sm:$0xff]  ;;  %v4687_v60 = vld [vmem:[%s13717_s3 + $0x1c8] sm:$0xff]  ;;  %v7497_v61 = vpack.c.bf16 %v4668_v53, %v4664_v52  ;;  %v7499_v63 = vpack.c.bf16 %v4677_v55, %v4673_v54  ;;  %v4672_v0 = vld [vmem:[%s13717_s3 + $0x150] sm:$0xff] }
0x1517   :  { %7462 = vmatpush1.bf16.msra.mxu0 %v7461_v29  ;;  %v4682_v59 = vld [vmem:[%s13717_s3 + $0x1a0] sm:$0xff]  ;;  %v4691_v62 = vld [vmem:[%s13717_s3 + $0x1e8] sm:$0xff]  ;;  %v4676_v1 = vld [vmem:[%s13717_s3 + $0x170] sm:$0xff] }
0x1518   :  { %7464 = vmatprep.subr.bf16.mxu0 %v7463_v33  ;;  %7494 = vmatpush1.bf16.msra.mxu1 %v7493_v49  ;;  %v4681_v2 = vld [vmem:[%s13717_s3 + $0x198] sm:$0xff]  ;;  %v7473_v5 = vpack.c.bf16 %v4682_v59, %v4678_v58  ;;  %v7475_v6 = vpack.c.bf16 %v4691_v62, %v4687_v60  ;;  %v4686_v7 = vld [vmem:[%s13717_s3 + $0x1c0] sm:$0xff]  ;;  %v7501_v9 = vpack.c.bf16 %v4676_v1, %v4672_v0  ;;  %v4680_v11 = vld [vmem:[%s13717_s3 + $0x190] sm:$0xff] }
0x1519   :  { %7496 = vmatprep.subr.bf16.mxu1 %v7495_v51  ;;  %v4685_v3 = vld [vmem:[%s13717_s3 + $0x1b8] sm:$0xff]  ;;  %v4690_v8 = vld [vmem:[%s13717_s3 + $0x1e0] sm:$0xff]  ;;  %v4684_v12 = vld [vmem:[%s13717_s3 + $0x1b0] sm:$0xff] }
0x151a   :  { %v7503_v10 = vpack.c.bf16 %v4685_v3, %v4681_v2  ;;  %v4689_v13 = vld [vmem:[%s13717_s3 + $0x1d8] sm:$0xff]  ;;  %v7477_v15 = vpack.c.bf16 %v4690_v8, %v4686_v7  ;;  %v7505_v16 = vpack.c.bf16 %v4684_v12, %v4680_v11  ;;  %v4688_v18 = vld [vmem:[%s13717_s3 + $0x1d0] sm:$0xff]  ;;  %v4624_v20 = vld [vmem:[%s13719_s5] sm:$0xff] }
0x151b   :  { %7466 = vmatpush1.bf16.msra.mxu0 %v7465_v42  ;;  %v4693_v14 = vld [vmem:[%s13717_s3 + $0x1f8] sm:$0xff]  ;;  %v4692_v19 = vld [vmem:[%s13717_s3 + $0x1f0] sm:$0xff]  ;;  %v4626_v22 = vld [vmem:[%s13716_s2 + $0x240] sm:$0xff] }
0x151c   :  { %7468 = vmatprep.subr.bf16.mxu0 %v7467_v45  ;;  %7498 = vmatpush1.bf16.msra.mxu1 %v7497_v61  ;;  %v7507_v17 = vpack.c.bf16 %v4693_v14, %v4689_v13  ;;  %v7509_v21 = vpack.c.bf16 %v4692_v19, %v4688_v18  ;;  %v4627_v23 = vld [vmem:[%s13716_s2 + $0x248] sm:$0xff]  ;;  %v4629_v30 = vld [vmem:[%s13716_s2 + $0x258] sm:$0xff]  ;;  %v4628_v34 = vld [vmem:[%s13716_s2 + $0x250] sm:$0xff] }
0x151d   :  { %7500 = vmatprep.subr.bf16.mxu1 %v7499_v63  ;;  %v4625_v43 = vld [vmem:[%s13720_s6] sm:$0xff] }
0x151f   :  { %7470 = vmatpush1.bf16.msra.mxu0 %v7469_v56 }
0x1520   :  { %7472 = vmatprep.subr.bf16.mxu0 %v7471_v57  ;;  %7502 = vmatpush1.bf16.msra.mxu1 %v7501_v9 }
0x1521   :  { %7504 = vmatprep.subr.bf16.mxu1 %v7503_v10 }
0x1523   :  { %7474 = vmatpush1.bf16.msra.mxu0 %v7473_v5 }
0x1524   :  { %7476 = vmatprep.subr.bf16.mxu0 %v7475_v6  ;;  %7506 = vmatpush1.bf16.msra.mxu1 %v7505_v16 }
0x1525   :  { %7508 = vmatprep.subr.bf16.mxu1 %v7507_v17 }
0x1527   :  { %7478 = vmatpush1.bf16.msra.mxu0 %v7477_v15 }
0x1528   :  { %7510 = vmatpush1.bf16.msra.mxu1 %v7509_v21 }
0x152a   :  { %4759 = vmatmul.mubr.f32.vlgmr.msra.gmra.mrb[0].mxu0 %v4624_v20 }
0x152b   :  { %4830 = vmatmul.mubr.f32.vlgmr.msra.gmra.mrb[0].mxu1 %v4624_v20 }
0x15fd   :  { %v4760_v24 = vpop.f32.mrb[0].mxu0 }
0x15fe   :  { %v4836_v25 = vadd.f32 %v4760_v24, %v4626_v22  ;;  %v4762_v26 = vpop.f32.mrb[1].mxu0  ;;  %v4831_v31 = vpop.f32.mrb[0].mxu1 }
0x15ff   :  { %v4837_v27 = vadd.f32 %v4762_v26, %v4627_v23  ;;  %v4833_v32 = vpop.f32.mrb[1].mxu1  ;;  %v4838_v36 = vadd.f32 %v4831_v31, %v4628_v34 }
0x1600   :  { %v6261_v28 = vmul.f32 -1.442695, %v4836_v25  ;;  %v4839_v33 = vadd.f32 %v4833_v32, %v4629_v30 }
0x1601   :  { %v6262_v29 = vmul.f32 -1.442695, %v4837_v27 }
0x1602   :  { %8148 = vpow2.f32 %v6261_v28  ;;  %v6263_v35 = vmul.f32 -1.442695, %v4839_v33 }
0x1603   :  { %8150 = vpow2.f32 %v6262_v29 }
0x1604   :  { %8152 = vpow2.f32 %v6263_v35 }
0x1605   :  { %8154 = vtanh.f32 %v4838_v36 }
0x160c   :  { %v8149_v37 = vpop.eup %8148 }
0x160d   :  { %v8151_v38 = vpop.eup %8150  ;;  %v4843_v39 = vadd.f32 1.0, %v8149_v37 }
0x160e   :  { %v4849_v40 = vadd.f32 1.0, %v8151_v38  ;;  %v8153_v41 = vpop.eup %8152 }
0x160f   :  { %8156 = vrcp.f32 %v4843_v39  ;;  %v8155_v42 = vpop.eup %8154  ;;  %v4856_v45 = vadd.f32 1.0, %v8153_v41 }
0x1610   :  { %8158 = vrcp.f32 %v4849_v40 }
0x1611   :  { %8160 = vrcp.f32 %v4856_v45 }
0x1619   :  { %v8157_v44 = vpop.eup %8156 }
0x161a   :  { %v8159_v46 = vpop.eup %8158  ;;  %v4860_v47 = vmul.f32 %v8157_v44, %v8155_v42 }
0x161b   :  { %v4859_v48 = vmul.f32 %v8159_v46, %v4625_v43  ;;  %v8161_v51 = vpop.eup %8160 }
0x161d   :  { %v4861_v49 = vadd.f32 %v4860_v47, %v4859_v48 }
0x161f   :  { %8162 = vtanh.f32 %v4861_v49  ;;  %v4868_v50 = vsel %vm6264_vm2, %v4861_v49, %v4625_v43 }
0x1620   :  { %4869 = vst [vmem:[%s13720_s6] sm:$0xff] %v4868_v50 }
0x1629   :  { %v8163_v52 = vpop.eup %8162 }
0x162a   :  { %v4863_v53 = vmul.f32 %v8163_v52, %v8161_v51 }
0x162c   :  { %v4866_v54 = vsel %vm6264_vm2, %v4863_v53, %v4624_v20  ;;  %v4870_v55 = vsel %vm6264_vm2, %v4863_v53, 0.0 }
0x162d   :  { %4867 = vst [vmem:[%s13719_s5] sm:$0xff] %v4866_v54  ;;  %4871 = vst [vmem:[%s13718_s4 + $0x90] sm:$0xff] %v4870_v55 }
0x162e PF:  { %p6266_p11 = scmp.le.s32.totalorder %s8324_s26, 19 }
0x162f   :  { %v4884_v56 = vld [vmem:[%s13717_s3 + $0x8] sm:$0xff] (!%p6266_p11)  ;;  %v4883_v58 = vld [vmem:[%s13717_s3] sm:$0xff] (!%p6266_p11)  ;;  %v8281_v63 = vmov (!%p6266_p11), 0.0   ;;  %v4886_v12 = vld [vmem:[%s13717_s3 + $0x18] sm:$0xff] (!%p6266_p11)  ;;  %vm6270_vm3 = vcmp.gt.s32.totalorder (!%p6266_p11), %v8408_v4, 19 }
0x1630   :  { %4876 = sbr.rel (%p6266_p11) target bundleno = 5975 (0x1757), region = 101  ;;  %v4888_v57 = vld [vmem:[%s13717_s3 + $0x28] sm:$0xff] (!%p6266_p11)  ;;  %v4887_v60 = vld [vmem:[%s13717_s3 + $0x20] sm:$0xff] (!%p6266_p11)  ;;  %5011 = vmatprep.mubr.f32.mxu0 (!%p6266_p11), %v8281_v63  ;;  %5082 = vmatprep.mubr.f32.mxu1 (!%p6266_p11), %v8281_v63  ;;  %v4890_v13 = vld [vmem:[%s13717_s3 + $0x38] sm:$0xff] (!%p6266_p11) }
0x1631   :  { %v7511_v59 = vpack.c.bf16 (!%p6266_p11), %v4888_v57, %v4884_v56  ;;  %v4892_v61 = vld [vmem:[%s13717_s3 + $0x48] sm:$0xff] (!%p6266_p11)  ;;  %v7513_v0 = vpack.c.bf16 (!%p6266_p11), %v4887_v60, %v4883_v58  ;;  %v4891_v2 = vld [vmem:[%s13717_s3 + $0x40] sm:$0xff] (!%p6266_p11)  ;;  %v7543_v15 = vpack.c.bf16 (!%p6266_p11), %v4890_v13, %v4886_v12  ;;  %v4885_v16 = vld [vmem:[%s13717_s3 + $0x10] sm:$0xff] (!%p6266_p11) }
0x1632   :  { %v4896_v62 = vld [vmem:[%s13717_s3 + $0x68] sm:$0xff] (!%p6266_p11)  ;;  %v4895_v3 = vld [vmem:[%s13717_s3 + $0x60] sm:$0xff] (!%p6266_p11)  ;;  %v4889_v17 = vld [vmem:[%s13717_s3 + $0x30] sm:$0xff] (!%p6266_p11) }
0x1633   :  { %v7515_v1 = vpack.c.bf16 (!%p6266_p11), %v4896_v62, %v4892_v61  ;;  %v4900_v5 = vld [vmem:[%s13717_s3 + $0x88] sm:$0xff] (!%p6266_p11)  ;;  %7512 = vmatprep.subr.bf16.mxu0 (!%p6266_p11), %v7511_v59  ;;  %v7517_v7 = vpack.c.bf16 (!%p6266_p11), %v4895_v3, %v4891_v2  ;;  %v4899_v8 = vld [vmem:[%s13717_s3 + $0x80] sm:$0xff] (!%p6266_p11)  ;;  %v7545_v18 = vpack.c.bf16 (!%p6266_p11), %v4889_v17, %v4885_v16  ;;  %7544 = vmatprep.subr.bf16.mxu1 (!%p6266_p11), %v7543_v15  ;;  %v4894_v20 = vld [vmem:[%s13717_s3 + $0x58] sm:$0xff] (!%p6266_p11) }
0x1634   :  { %v4904_v6 = vld [vmem:[%s13717_s3 + $0xa8] sm:$0xff] (!%p6266_p11)  ;;  %7514 = vmatpush1.bf16.msra.mxu0 (!%p6266_p11), %v7513_v0  ;;  %v4903_v9 = vld [vmem:[%s13717_s3 + $0xa0] sm:$0xff] (!%p6266_p11)  ;;  %v4898_v21 = vld [vmem:[%s13717_s3 + $0x78] sm:$0xff] (!%p6266_p11) }
0x1635   :  { %7516 = vmatprep.subr.bf16.mxu0 (!%p6266_p11), %v7515_v1  ;;  %v7519_v10 = vpack.c.bf16 (!%p6266_p11), %v4904_v6, %v4900_v5  ;;  %v4908_v11 = vld [vmem:[%s13717_s3 + $0xc8] sm:$0xff] (!%p6266_p11)  ;;  %v7521_v19 = vpack.c.bf16 (!%p6266_p11), %v4903_v9, %v4899_v8  ;;  %v4893_v22 = vld [vmem:[%s13717_s3 + $0x50] sm:$0xff] (!%p6266_p11)  ;;  %v4907_v24 = vld [vmem:[%s13717_s3 + $0xc0] sm:$0xff] (!%p6266_p11)  ;;  %7546 = vmatpush1.bf16.msra.mxu1 (!%p6266_p11), %v7545_v18  ;;  %v7547_v26 = vpack.c.bf16 (!%p6266_p11), %v4898_v21, %v4894_v20 }
0x1636   :  { %v4912_v14 = vld [vmem:[%s13717_s3 + $0xe8] sm:$0xff] (!%p6266_p11)  ;;  %v4911_v25 = vld [vmem:[%s13717_s3 + $0xe0] sm:$0xff] (!%p6266_p11)  ;;  %v4897_v27 = vld [vmem:[%s13717_s3 + $0x70] sm:$0xff] (!%p6266_p11) }
0x1637   :  { %v7523_v23 = vpack.c.bf16 %v4912_v14, %v4908_v11  ;;  %v4916_v28 = vld [vmem:[%s13717_s3 + $0x108] sm:$0xff]  ;;  %v7549_v30 = vpack.c.bf16 %v4897_v27, %v4893_v22  ;;  %v4902_v31 = vld [vmem:[%s13717_s3 + $0x98] sm:$0xff]  ;;  %7548 = vmatprep.subr.bf16.mxu1 %v7547_v26  ;;  %v4901_v33 = vld [vmem:[%s13717_s3 + $0x90] sm:$0xff]  ;;  %v7525_v35 = vpack.c.bf16 %v4911_v25, %v4907_v24 }
0x1638   :  { %7518 = vmatpush1.bf16.msra.mxu0 %v7517_v7  ;;  %v4920_v29 = vld [vmem:[%s13717_s3 + $0x128] sm:$0xff]  ;;  %v4906_v32 = vld [vmem:[%s13717_s3 + $0xb8] sm:$0xff]  ;;  %v4905_v34 = vld [vmem:[%s13717_s3 + $0xb0] sm:$0xff] }
0x1639   :  { %7520 = vmatprep.subr.bf16.mxu0 %v7519_v10  ;;  %v4915_v36 = vld [vmem:[%s13717_s3 + $0x100] sm:$0xff]  ;;  %v7551_v38 = vpack.c.bf16 %v4906_v32, %v4902_v31  ;;  %v7527_v39 = vpack.c.bf16 %v4920_v29, %v4916_v28  ;;  %7550 = vmatpush1.bf16.msra.mxu1 %v7549_v30  ;;  %v4924_v40 = vld [vmem:[%s13717_s3 + $0x148] sm:$0xff]  ;;  %v7553_v41 = vpack.c.bf16 %v4905_v34, %v4901_v33  ;;  %v4910_v42 = vld [vmem:[%s13717_s3 + $0xd8] sm:$0xff] }
0x163a   :  { %v4919_v37 = vld [vmem:[%s13717_s3 + $0x120] sm:$0xff]  ;;  %v4914_v43 = vld [vmem:[%s13717_s3 + $0xf8] sm:$0xff]  ;;  %v4928_v44 = vld [vmem:[%s13717_s3 + $0x168] sm:$0xff] }
0x163b   :  { %7552 = vmatprep.subr.bf16.mxu1 %v7551_v38  ;;  %v7555_v45 = vpack.c.bf16 %v4914_v43, %v4910_v42  ;;  %v4909_v46 = vld [vmem:[%s13717_s3 + $0xd0] sm:$0xff]  ;;  %v7529_v48 = vpack.c.bf16 %v4919_v37, %v4915_v36  ;;  %v4918_v49 = vld [vmem:[%s13717_s3 + $0x118] sm:$0xff]  ;;  %v7531_v51 = vpack.c.bf16 %v4928_v44, %v4924_v40  ;;  %v4923_v52 = vld [vmem:[%s13717_s3 + $0x140] sm:$0xff] }
0x163c   :  { %7522 = vmatpush1.bf16.msra.mxu0 %v7521_v19  ;;  %v4913_v47 = vld [vmem:[%s13717_s3 + $0xf0] sm:$0xff]  ;;  %v4922_v50 = vld [vmem:[%s13717_s3 + $0x138] sm:$0xff]  ;;  %v4927_v53 = vld [vmem:[%s13717_s3 + $0x160] sm:$0xff] }
0x163d   :  { %7524 = vmatprep.subr.bf16.mxu0 %v7523_v23  ;;  %7554 = vmatpush1.bf16.msra.mxu1 %v7553_v41  ;;  %v4932_v54 = vld [vmem:[%s13717_s3 + $0x188] sm:$0xff]  ;;  %v7557_v55 = vpack.c.bf16 %v4913_v47, %v4909_v46  ;;  %v7559_v57 = vpack.c.bf16 %v4922_v50, %v4918_v49  ;;  %v4917_v58 = vld [vmem:[%s13717_s3 + $0x110] sm:$0xff]  ;;  %v4926_v60 = vld [vmem:[%s13717_s3 + $0x158] sm:$0xff]  ;;  %v7533_v62 = vpack.c.bf16 %v4927_v53, %v4923_v52 }
0x163e   :  { %v4936_v56 = vld [vmem:[%s13717_s3 + $0x1a8] sm:$0xff]  ;;  %7556 = vmatprep.subr.bf16.mxu1 %v7555_v45  ;;  %v4921_v59 = vld [vmem:[%s13717_s3 + $0x130] sm:$0xff]  ;;  %v4930_v61 = vld [vmem:[%s13717_s3 + $0x178] sm:$0xff] }
0x163f   :  { %v7535_v63 = vpack.c.bf16 %v4936_v56, %v4932_v54  ;;  %v4931_v0 = vld [vmem:[%s13717_s3 + $0x180] sm:$0xff]  ;;  %v4940_v2 = vld [vmem:[%s13717_s3 + $0x1c8] sm:$0xff]  ;;  %v7561_v3 = vpack.c.bf16 %v4921_v59, %v4917_v58  ;;  %v7563_v6 = vpack.c.bf16 %v4930_v61, %v4926_v60  ;;  %v4925_v7 = vld [vmem:[%s13717_s3 + $0x150] sm:$0xff] }
0x1640   :  { %7526 = vmatpush1.bf16.msra.mxu0 %v7525_v35  ;;  %v4935_v1 = vld [vmem:[%s13717_s3 + $0x1a0] sm:$0xff]  ;;  %v4944_v5 = vld [vmem:[%s13717_s3 + $0x1e8] sm:$0xff]  ;;  %v4929_v8 = vld [vmem:[%s13717_s3 + $0x170] sm:$0xff] }
0x1641   :  { %7528 = vmatprep.subr.bf16.mxu0 %v7527_v39  ;;  %7558 = vmatpush1.bf16.msra.mxu1 %v7557_v55  ;;  %v4934_v9 = vld [vmem:[%s13717_s3 + $0x198] sm:$0xff]  ;;  %v7537_v11 = vpack.c.bf16 %v4935_v1, %v4931_v0  ;;  %v7539_v12 = vpack.c.bf16 %v4944_v5, %v4940_v2  ;;  %v4939_v13 = vld [vmem:[%s13717_s3 + $0x1c0] sm:$0xff]  ;;  %v7565_v15 = vpack.c.bf16 %v4929_v8, %v4925_v7  ;;  %v4933_v17 = vld [vmem:[%s13717_s3 + $0x190] sm:$0xff] }
0x1642   :  { %7560 = vmatprep.subr.bf16.mxu1 %v7559_v57  ;;  %v4938_v10 = vld [vmem:[%s13717_s3 + $0x1b8] sm:$0xff]  ;;  %v4943_v14 = vld [vmem:[%s13717_s3 + $0x1e0] sm:$0xff]  ;;  %v4937_v18 = vld [vmem:[%s13717_s3 + $0x1b0] sm:$0xff] }
0x1643   :  { %v7567_v16 = vpack.c.bf16 %v4938_v10, %v4934_v9  ;;  %v4942_v19 = vld [vmem:[%s13717_s3 + $0x1d8] sm:$0xff]  ;;  %v7541_v21 = vpack.c.bf16 %v4943_v14, %v4939_v13  ;;  %v7569_v22 = vpack.c.bf16 %v4937_v18, %v4933_v17  ;;  %v4941_v24 = vld [vmem:[%s13717_s3 + $0x1d0] sm:$0xff]  ;;  %v4877_v26 = vld [vmem:[%s13719_s5] sm:$0xff] }
0x1644   :  { %7530 = vmatpush1.bf16.msra.mxu0 %v7529_v48  ;;  %v4946_v20 = vld [vmem:[%s13717_s3 + $0x1f8] sm:$0xff]  ;;  %v4945_v25 = vld [vmem:[%s13717_s3 + $0x1f0] sm:$0xff]  ;;  %v4879_v28 = vld [vmem:[%s13716_s2 + $0x260] sm:$0xff] }
0x1645   :  { %7532 = vmatprep.subr.bf16.mxu0 %v7531_v51  ;;  %7562 = vmatpush1.bf16.msra.mxu1 %v7561_v3  ;;  %v7571_v23 = vpack.c.bf16 %v4946_v20, %v4942_v19  ;;  %v7573_v27 = vpack.c.bf16 %v4945_v25, %v4941_v24  ;;  %v4880_v29 = vld [vmem:[%s13716_s2 + $0x268] sm:$0xff]  ;;  %v4882_v36 = vld [vmem:[%s13716_s2 + $0x278] sm:$0xff]  ;;  %v4881_v40 = vld [vmem:[%s13716_s2 + $0x270] sm:$0xff] }
0x1646   :  { %7564 = vmatprep.subr.bf16.mxu1 %v7563_v6  ;;  %v4878_v49 = vld [vmem:[%s13720_s6] sm:$0xff] }
0x1648   :  { %7534 = vmatpush1.bf16.msra.mxu0 %v7533_v62 }
0x1649   :  { %7536 = vmatprep.subr.bf16.mxu0 %v7535_v63  ;;  %7566 = vmatpush1.bf16.msra.mxu1 %v7565_v15 }
0x164a   :  { %7568 = vmatprep.subr.bf16.mxu1 %v7567_v16 }
0x164c   :  { %7538 = vmatpush1.bf16.msra.mxu0 %v7537_v11 }
0x164d   :  { %7540 = vmatprep.subr.bf16.mxu0 %v7539_v12  ;;  %7570 = vmatpush1.bf16.msra.mxu1 %v7569_v22 }
0x164e   :  { %7572 = vmatprep.subr.bf16.mxu1 %v7571_v23 }
0x1650   :  { %7542 = vmatpush1.bf16.msra.mxu0 %v7541_v21 }
0x1651   :  { %7574 = vmatpush1.bf16.msra.mxu1 %v7573_v27 }
0x1653   :  { %5012 = vmatmul.mubr.f32.vlgmr.msra.gmra.mrb[0].mxu0 %v4877_v26 }
0x1654   :  { %5083 = vmatmul.mubr.f32.vlgmr.msra.gmra.mrb[0].mxu1 %v4877_v26 }
0x1726   :  { %v5013_v30 = vpop.f32.mrb[0].mxu0 }
0x1727   :  { %v5089_v31 = vadd.f32 %v5013_v30, %v4879_v28  ;;  %v5015_v32 = vpop.f32.mrb[1].mxu0  ;;  %v5084_v37 = vpop.f32.mrb[0].mxu1 }
0x1728   :  { %v5090_v33 = vadd.f32 %v5015_v32, %v4880_v29  ;;  %v5086_v38 = vpop.f32.mrb[1].mxu1  ;;  %v5091_v42 = vadd.f32 %v5084_v37, %v4881_v40 }
0x1729   :  { %v6267_v34 = vmul.f32 -1.442695, %v5089_v31  ;;  %v5092_v39 = vadd.f32 %v5086_v38, %v4882_v36 }
0x172a   :  { %v6268_v35 = vmul.f32 -1.442695, %v5090_v33 }
0x172b   :  { %8164 = vpow2.f32 %v6267_v34  ;;  %v6269_v41 = vmul.f32 -1.442695, %v5092_v39 }
0x172c   :  { %8166 = vpow2.f32 %v6268_v35 }
0x172d   :  { %8168 = vpow2.f32 %v6269_v41 }
0x172e   :  { %8170 = vtanh.f32 %v5091_v42 }
0x1735   :  { %v8165_v43 = vpop.eup %8164 }
0x1736   :  { %v8167_v44 = vpop.eup %8166  ;;  %v5096_v45 = vadd.f32 1.0, %v8165_v43 }
0x1737   :  { %v5102_v46 = vadd.f32 1.0, %v8167_v44  ;;  %v8169_v47 = vpop.eup %8168 }
0x1738   :  { %8172 = vrcp.f32 %v5096_v45  ;;  %v8171_v48 = vpop.eup %8170  ;;  %v5109_v51 = vadd.f32 1.0, %v8169_v47 }
0x1739   :  { %8174 = vrcp.f32 %v5102_v46 }
0x173a   :  { %8176 = vrcp.f32 %v5109_v51 }
0x1742   :  { %v8173_v50 = vpop.eup %8172 }
0x1743   :  { %v8175_v52 = vpop.eup %8174  ;;  %v5113_v53 = vmul.f32 %v8173_v50, %v8171_v48 }
0x1744   :  { %v5112_v54 = vmul.f32 %v8175_v52, %v4878_v49  ;;  %v8177_v57 = vpop.eup %8176 }
0x1746   :  { %v5114_v55 = vadd.f32 %v5113_v53, %v5112_v54 }
0x1748   :  { %8178 = vtanh.f32 %v5114_v55  ;;  %v5121_v56 = vsel %vm6270_vm3, %v5114_v55, %v4878_v49 }
0x1749   :  { %5122 = vst [vmem:[%s13720_s6] sm:$0xff] %v5121_v56 }
0x1752   :  { %v8179_v58 = vpop.eup %8178 }
0x1753   :  { %v5116_v59 = vmul.f32 %v8179_v58, %v8177_v57 }
0x1755   :  { %v5119_v60 = vsel %vm6270_vm3, %v5116_v59, %v4877_v26  ;;  %v5123_v61 = vsel %vm6270_vm3, %v5116_v59, 0.0 }
0x1756   :  { %5120 = vst [vmem:[%s13719_s5] sm:$0xff] %v5119_v60  ;;  %5124 = vst [vmem:[%s13718_s4 + $0x98] sm:$0xff] %v5123_v61 }
0x1757 PF:  { %p6272_p12 = scmp.le.s32.totalorder %s8324_s26, 20 }
0x1758   :  { %v5137_v62 = vld [vmem:[%s13717_s3 + $0x8] sm:$0xff] (!%p6272_p12)  ;;  %v5136_v0 = vld [vmem:[%s13717_s3] sm:$0xff] (!%p6272_p12)  ;;  %v8282_v6 = vmov (!%p6272_p12), 0.0   ;;  %v5139_v18 = vld [vmem:[%s13717_s3 + $0x18] sm:$0xff] (!%p6272_p12)  ;;  %vm6276_vm4 = vcmp.gt.s32.totalorder (!%p6272_p12), %v8408_v4, 20 }
0x1759   :  { %5129 = sbr.rel (%p6272_p12) target bundleno = 6272 (0x1880), region = 105  ;;  %v5141_v63 = vld [vmem:[%s13717_s3 + $0x28] sm:$0xff] (!%p6272_p12)  ;;  %v5140_v2 = vld [vmem:[%s13717_s3 + $0x20] sm:$0xff] (!%p6272_p12)  ;;  %5264 = vmatprep.mubr.f32.mxu0 (!%p6272_p12), %v8282_v6  ;;  %5335 = vmatprep.mubr.f32.mxu1 (!%p6272_p12), %v8282_v6  ;;  %v5143_v19 = vld [vmem:[%s13717_s3 + $0x38] sm:$0xff] (!%p6272_p12) }
0x175a   :  { %v7575_v1 = vpack.c.bf16 (!%p6272_p12), %v5141_v63, %v5137_v62  ;;  %v5145_v3 = vld [vmem:[%s13717_s3 + $0x48] sm:$0xff] (!%p6272_p12)  ;;  %v7577_v7 = vpack.c.bf16 (!%p6272_p12), %v5140_v2, %v5136_v0  ;;  %v5144_v9 = vld [vmem:[%s13717_s3 + $0x40] sm:$0xff] (!%p6272_p12)  ;;  %v7607_v21 = vpack.c.bf16 (!%p6272_p12), %v5143_v19, %v5139_v18  ;;  %v5138_v22 = vld [vmem:[%s13717_s3 + $0x10] sm:$0xff] (!%p6272_p12) }
0x175b   :  { %v5149_v5 = vld [vmem:[%s13717_s3 + $0x68] sm:$0xff] (!%p6272_p12)  ;;  %v5148_v10 = vld [vmem:[%s13717_s3 + $0x60] sm:$0xff] (!%p6272_p12)  ;;  %v5142_v23 = vld [vmem:[%s13717_s3 + $0x30] sm:$0xff] (!%p6272_p12) }
0x175c   :  { %v7579_v8 = vpack.c.bf16 (!%p6272_p12), %v5149_v5, %v5145_v3  ;;  %v5153_v11 = vld [vmem:[%s13717_s3 + $0x88] sm:$0xff] (!%p6272_p12)  ;;  %7576 = vmatprep.subr.bf16.mxu0 (!%p6272_p12), %v7575_v1  ;;  %v7581_v13 = vpack.c.bf16 (!%p6272_p12), %v5148_v10, %v5144_v9  ;;  %v5152_v14 = vld [vmem:[%s13717_s3 + $0x80] sm:$0xff] (!%p6272_p12)  ;;  %v7609_v24 = vpack.c.bf16 (!%p6272_p12), %v5142_v23, %v5138_v22  ;;  %7608 = vmatprep.subr.bf16.mxu1 (!%p6272_p12), %v7607_v21  ;;  %v5147_v26 = vld [vmem:[%s13717_s3 + $0x58] sm:$0xff] (!%p6272_p12) }
0x175d   :  { %v5157_v12 = vld [vmem:[%s13717_s3 + $0xa8] sm:$0xff] (!%p6272_p12)  ;;  %7578 = vmatpush1.bf16.msra.mxu0 (!%p6272_p12), %v7577_v7  ;;  %v5156_v15 = vld [vmem:[%s13717_s3 + $0xa0] sm:$0xff] (!%p6272_p12)  ;;  %v5151_v27 = vld [vmem:[%s13717_s3 + $0x78] sm:$0xff] (!%p6272_p12) }
0x175e   :  { %7580 = vmatprep.subr.bf16.mxu0 (!%p6272_p12), %v7579_v8  ;;  %v7583_v16 = vpack.c.bf16 (!%p6272_p12), %v5157_v12, %v5153_v11  ;;  %v5161_v17 = vld [vmem:[%s13717_s3 + $0xc8] sm:$0xff] (!%p6272_p12)  ;;  %v7585_v25 = vpack.c.bf16 (!%p6272_p12), %v5156_v15, %v5152_v14  ;;  %v5146_v28 = vld [vmem:[%s13717_s3 + $0x50] sm:$0xff] (!%p6272_p12)  ;;  %v5160_v30 = vld [vmem:[%s13717_s3 + $0xc0] sm:$0xff] (!%p6272_p12)  ;;  %7610 = vmatpush1.bf16.msra.mxu1 (!%p6272_p12), %v7609_v24  ;;  %v7611_v32 = vpack.c.bf16 (!%p6272_p12), %v5151_v27, %v5147_v26 }
0x175f   :  { %v5165_v20 = vld [vmem:[%s13717_s3 + $0xe8] sm:$0xff] (!%p6272_p12)  ;;  %v5164_v31 = vld [vmem:[%s13717_s3 + $0xe0] sm:$0xff] (!%p6272_p12)  ;;  %v5150_v33 = vld [vmem:[%s13717_s3 + $0x70] sm:$0xff] (!%p6272_p12) }
0x1760   :  { %v7587_v29 = vpack.c.bf16 %v5165_v20, %v5161_v17  ;;  %v5169_v34 = vld [vmem:[%s13717_s3 + $0x108] sm:$0xff]  ;;  %v7613_v36 = vpack.c.bf16 %v5150_v33, %v5146_v28  ;;  %v5155_v37 = vld [vmem:[%s13717_s3 + $0x98] sm:$0xff]  ;;  %7612 = vmatprep.subr.bf16.mxu1 %v7611_v32  ;;  %v5154_v39 = vld [vmem:[%s13717_s3 + $0x90] sm:$0xff]  ;;  %v7589_v41 = vpack.c.bf16 %v5164_v31, %v5160_v30 }
0x1761   :  { %7582 = vmatpush1.bf16.msra.mxu0 %v7581_v13  ;;  %v5173_v35 = vld [vmem:[%s13717_s3 + $0x128] sm:$0xff]  ;;  %v5159_v38 = vld [vmem:[%s13717_s3 + $0xb8] sm:$0xff]  ;;  %v5158_v40 = vld [vmem:[%s13717_s3 + $0xb0] sm:$0xff] }
0x1762   :  { %7584 = vmatprep.subr.bf16.mxu0 %v7583_v16  ;;  %v5168_v42 = vld [vmem:[%s13717_s3 + $0x100] sm:$0xff]  ;;  %v7615_v44 = vpack.c.bf16 %v5159_v38, %v5155_v37  ;;  %v7591_v45 = vpack.c.bf16 %v5173_v35, %v5169_v34  ;;  %7614 = vmatpush1.bf16.msra.mxu1 %v7613_v36  ;;  %v5177_v46 = vld [vmem:[%s13717_s3 + $0x148] sm:$0xff]  ;;  %v7617_v47 = vpack.c.bf16 %v5158_v40, %v5154_v39  ;;  %v5163_v48 = vld [vmem:[%s13717_s3 + $0xd8] sm:$0xff] }
0x1763   :  { %v5172_v43 = vld [vmem:[%s13717_s3 + $0x120] sm:$0xff]  ;;  %v5167_v49 = vld [vmem:[%s13717_s3 + $0xf8] sm:$0xff]  ;;  %v5181_v50 = vld [vmem:[%s13717_s3 + $0x168] sm:$0xff] }
0x1764   :  { %7616 = vmatprep.subr.bf16.mxu1 %v7615_v44  ;;  %v7619_v51 = vpack.c.bf16 %v5167_v49, %v5163_v48  ;;  %v5162_v52 = vld [vmem:[%s13717_s3 + $0xd0] sm:$0xff]  ;;  %v7593_v54 = vpack.c.bf16 %v5172_v43, %v5168_v42  ;;  %v5171_v55 = vld [vmem:[%s13717_s3 + $0x118] sm:$0xff]  ;;  %v7595_v57 = vpack.c.bf16 %v5181_v50, %v5177_v46  ;;  %v5176_v58 = vld [vmem:[%s13717_s3 + $0x140] sm:$0xff] }
0x1765   :  { %7586 = vmatpush1.bf16.msra.mxu0 %v7585_v25  ;;  %v5166_v53 = vld [vmem:[%s13717_s3 + $0xf0] sm:$0xff]  ;;  %v5175_v56 = vld [vmem:[%s13717_s3 + $0x138] sm:$0xff]  ;;  %v5180_v59 = vld [vmem:[%s13717_s3 + $0x160] sm:$0xff] }
0x1766   :  { %7588 = vmatprep.subr.bf16.mxu0 %v7587_v29  ;;  %7618 = vmatpush1.bf16.msra.mxu1 %v7617_v47  ;;  %v5185_v60 = vld [vmem:[%s13717_s3 + $0x188] sm:$0xff]  ;;  %v7621_v61 = vpack.c.bf16 %v5166_v53, %v5162_v52  ;;  %v7623_v63 = vpack.c.bf16 %v5175_v56, %v5171_v55  ;;  %v5170_v0 = vld [vmem:[%s13717_s3 + $0x110] sm:$0xff]  ;;  %v5179_v2 = vld [vmem:[%s13717_s3 + $0x158] sm:$0xff]  ;;  %v7597_v5 = vpack.c.bf16 %v5180_v59, %v5176_v58 }
0x1767   :  { %v5189_v62 = vld [vmem:[%s13717_s3 + $0x1a8] sm:$0xff]  ;;  %7620 = vmatprep.subr.bf16.mxu1 %v7619_v51  ;;  %v5174_v1 = vld [vmem:[%s13717_s3 + $0x130] sm:$0xff]  ;;  %v5183_v3 = vld [vmem:[%s13717_s3 + $0x178] sm:$0xff] }
0x1768   :  { %v7599_v6 = vpack.c.bf16 %v5189_v62, %v5185_v60  ;;  %v5184_v7 = vld [vmem:[%s13717_s3 + $0x180] sm:$0xff]  ;;  %v5193_v9 = vld [vmem:[%s13717_s3 + $0x1c8] sm:$0xff]  ;;  %v7625_v10 = vpack.c.bf16 %v5174_v1, %v5170_v0  ;;  %v7627_v12 = vpack.c.bf16 %v5183_v3, %v5179_v2  ;;  %v5178_v13 = vld [vmem:[%s13717_s3 + $0x150] sm:$0xff] }
0x1769   :  { %7590 = vmatpush1.bf16.msra.mxu0 %v7589_v41  ;;  %v5188_v8 = vld [vmem:[%s13717_s3 + $0x1a0] sm:$0xff]  ;;  %v5197_v11 = vld [vmem:[%s13717_s3 + $0x1e8] sm:$0xff]  ;;  %v5182_v14 = vld [vmem:[%s13717_s3 + $0x170] sm:$0xff] }
0x176a   :  { %7592 = vmatprep.subr.bf16.mxu0 %v7591_v45  ;;  %7622 = vmatpush1.bf16.msra.mxu1 %v7621_v61  ;;  %v5187_v15 = vld [vmem:[%s13717_s3 + $0x198] sm:$0xff]  ;;  %v7601_v17 = vpack.c.bf16 %v5188_v8, %v5184_v7  ;;  %v7603_v18 = vpack.c.bf16 %v5197_v11, %v5193_v9  ;;  %v5192_v19 = vld [vmem:[%s13717_s3 + $0x1c0] sm:$0xff]  ;;  %v7629_v21 = vpack.c.bf16 %v5182_v14, %v5178_v13  ;;  %v5186_v23 = vld [vmem:[%s13717_s3 + $0x190] sm:$0xff] }
0x176b   :  { %7624 = vmatprep.subr.bf16.mxu1 %v7623_v63  ;;  %v5191_v16 = vld [vmem:[%s13717_s3 + $0x1b8] sm:$0xff]  ;;  %v5196_v20 = vld [vmem:[%s13717_s3 + $0x1e0] sm:$0xff]  ;;  %v5190_v24 = vld [vmem:[%s13717_s3 + $0x1b0] sm:$0xff] }
0x176c   :  { %v7631_v22 = vpack.c.bf16 %v5191_v16, %v5187_v15  ;;  %v5195_v25 = vld [vmem:[%s13717_s3 + $0x1d8] sm:$0xff]  ;;  %v7605_v27 = vpack.c.bf16 %v5196_v20, %v5192_v19  ;;  %v7633_v28 = vpack.c.bf16 %v5190_v24, %v5186_v23  ;;  %v5194_v30 = vld [vmem:[%s13717_s3 + $0x1d0] sm:$0xff]  ;;  %v5130_v32 = vld [vmem:[%s13719_s5] sm:$0xff] }
0x176d   :  { %7594 = vmatpush1.bf16.msra.mxu0 %v7593_v54  ;;  %v5199_v26 = vld [vmem:[%s13717_s3 + $0x1f8] sm:$0xff]  ;;  %v5198_v31 = vld [vmem:[%s13717_s3 + $0x1f0] sm:$0xff]  ;;  %v5132_v34 = vld [vmem:[%s13716_s2 + $0x280] sm:$0xff] }
0x176e   :  { %7596 = vmatprep.subr.bf16.mxu0 %v7595_v57  ;;  %7626 = vmatpush1.bf16.msra.mxu1 %v7625_v10  ;;  %v7635_v29 = vpack.c.bf16 %v5199_v26, %v5195_v25  ;;  %v7637_v33 = vpack.c.bf16 %v5198_v31, %v5194_v30  ;;  %v5133_v35 = vld [vmem:[%s13716_s2 + $0x288] sm:$0xff]  ;;  %v5135_v42 = vld [vmem:[%s13716_s2 + $0x298] sm:$0xff]  ;;  %v5134_v46 = vld [vmem:[%s13716_s2 + $0x290] sm:$0xff] }
0x176f   :  { %7628 = vmatprep.subr.bf16.mxu1 %v7627_v12  ;;  %v5131_v55 = vld [vmem:[%s13720_s6] sm:$0xff] }
0x1771   :  { %7598 = vmatpush1.bf16.msra.mxu0 %v7597_v5 }
0x1772   :  { %7600 = vmatprep.subr.bf16.mxu0 %v7599_v6  ;;  %7630 = vmatpush1.bf16.msra.mxu1 %v7629_v21 }
0x1773   :  { %7632 = vmatprep.subr.bf16.mxu1 %v7631_v22 }
0x1775   :  { %7602 = vmatpush1.bf16.msra.mxu0 %v7601_v17 }
0x1776   :  { %7604 = vmatprep.subr.bf16.mxu0 %v7603_v18  ;;  %7634 = vmatpush1.bf16.msra.mxu1 %v7633_v28 }
0x1777   :  { %7636 = vmatprep.subr.bf16.mxu1 %v7635_v29 }
0x1779   :  { %7606 = vmatpush1.bf16.msra.mxu0 %v7605_v27 }
0x177a   :  { %7638 = vmatpush1.bf16.msra.mxu1 %v7637_v33 }
0x177c   :  { %5265 = vmatmul.mubr.f32.vlgmr.msra.gmra.mrb[0].mxu0 %v5130_v32 }
0x177d   :  { %5336 = vmatmul.mubr.f32.vlgmr.msra.gmra.mrb[0].mxu1 %v5130_v32 }
0x184f   :  { %v5266_v36 = vpop.f32.mrb[0].mxu0 }
0x1850   :  { %v5342_v37 = vadd.f32 %v5266_v36, %v5132_v34  ;;  %v5268_v38 = vpop.f32.mrb[1].mxu0  ;;  %v5337_v43 = vpop.f32.mrb[0].mxu1 }
0x1851   :  { %v5343_v39 = vadd.f32 %v5268_v38, %v5133_v35  ;;  %v5339_v44 = vpop.f32.mrb[1].mxu1  ;;  %v5344_v48 = vadd.f32 %v5337_v43, %v5134_v46 }
0x1852   :  { %v6273_v40 = vmul.f32 -1.442695, %v5342_v37  ;;  %v5345_v45 = vadd.f32 %v5339_v44, %v5135_v42 }
0x1853   :  { %v6274_v41 = vmul.f32 -1.442695, %v5343_v39 }
0x1854   :  { %8180 = vpow2.f32 %v6273_v40  ;;  %v6275_v47 = vmul.f32 -1.442695, %v5345_v45 }
0x1855   :  { %8182 = vpow2.f32 %v6274_v41 }
0x1856   :  { %8184 = vpow2.f32 %v6275_v47 }
0x1857   :  { %8186 = vtanh.f32 %v5344_v48 }
0x185e   :  { %v8181_v49 = vpop.eup %8180 }
0x185f   :  { %v8183_v50 = vpop.eup %8182  ;;  %v5349_v51 = vadd.f32 1.0, %v8181_v49 }
0x1860   :  { %v5355_v52 = vadd.f32 1.0, %v8183_v50  ;;  %v8185_v53 = vpop.eup %8184 }
0x1861   :  { %8188 = vrcp.f32 %v5349_v51  ;;  %v8187_v54 = vpop.eup %8186  ;;  %v5362_v57 = vadd.f32 1.0, %v8185_v53 }
0x1862   :  { %8190 = vrcp.f32 %v5355_v52 }
0x1863   :  { %8192 = vrcp.f32 %v5362_v57 }
0x186b   :  { %v8189_v56 = vpop.eup %8188 }
0x186c   :  { %v8191_v58 = vpop.eup %8190  ;;  %v5366_v59 = vmul.f32 %v8189_v56, %v8187_v54 }
0x186d   :  { %v5365_v60 = vmul.f32 %v8191_v58, %v5131_v55  ;;  %v8193_v63 = vpop.eup %8192 }
0x186f   :  { %v5367_v61 = vadd.f32 %v5366_v59, %v5365_v60 }
0x1871   :  { %8194 = vtanh.f32 %v5367_v61  ;;  %v5374_v62 = vsel %vm6276_vm4, %v5367_v61, %v5131_v55 }
0x1872   :  { %5375 = vst [vmem:[%s13720_s6] sm:$0xff] %v5374_v62 }
0x187b   :  { %v8195_v0 = vpop.eup %8194 }
0x187c   :  { %v5369_v1 = vmul.f32 %v8195_v0, %v8193_v63 }
0x187e   :  { %v5372_v2 = vsel %vm6276_vm4, %v5369_v1, %v5130_v32  ;;  %v5376_v3 = vsel %vm6276_vm4, %v5369_v1, 0.0 }
0x187f   :  { %5373 = vst [vmem:[%s13719_s5] sm:$0xff] %v5372_v2  ;;  %5377 = vst [vmem:[%s13718_s4 + $0xa0] sm:$0xff] %v5376_v3 }
0x1880 PF:  { %p6278_p13 = scmp.le.s32.totalorder %s8324_s26, 21 }
0x1881   :  { %v5390_v5 = vld [vmem:[%s13717_s3 + $0x8] sm:$0xff] (!%p6278_p13)  ;;  %v5389_v7 = vld [vmem:[%s13717_s3] sm:$0xff] (!%p6278_p13)  ;;  %v8283_v12 = vmov (!%p6278_p13), 0.0   ;;  %v5392_v24 = vld [vmem:[%s13717_s3 + $0x18] sm:$0xff] (!%p6278_p13)  ;;  %vm6282_vm5 = vcmp.gt.s32.totalorder (!%p6278_p13), %v8408_v4, 21 }
0x1882   :  { %5382 = sbr.rel (%p6278_p13) target bundleno = 6569 (0x19a9), region = 109  ;;  %v5394_v6 = vld [vmem:[%s13717_s3 + $0x28] sm:$0xff] (!%p6278_p13)  ;;  %v5393_v9 = vld [vmem:[%s13717_s3 + $0x20] sm:$0xff] (!%p6278_p13)  ;;  %5517 = vmatprep.mubr.f32.mxu0 (!%p6278_p13), %v8283_v12  ;;  %5588 = vmatprep.mubr.f32.mxu1 (!%p6278_p13), %v8283_v12  ;;  %v5396_v25 = vld [vmem:[%s13717_s3 + $0x38] sm:$0xff] (!%p6278_p13) }
0x1883   :  { %v7639_v8 = vpack.c.bf16 (!%p6278_p13), %v5394_v6, %v5390_v5  ;;  %v5398_v10 = vld [vmem:[%s13717_s3 + $0x48] sm:$0xff] (!%p6278_p13)  ;;  %v7641_v13 = vpack.c.bf16 (!%p6278_p13), %v5393_v9, %v5389_v7  ;;  %v5397_v15 = vld [vmem:[%s13717_s3 + $0x40] sm:$0xff] (!%p6278_p13)  ;;  %v7671_v27 = vpack.c.bf16 (!%p6278_p13), %v5396_v25, %v5392_v24  ;;  %v5391_v28 = vld [vmem:[%s13717_s3 + $0x10] sm:$0xff] (!%p6278_p13) }
0x1884   :  { %v5402_v11 = vld [vmem:[%s13717_s3 + $0x68] sm:$0xff] (!%p6278_p13)  ;;  %v5401_v16 = vld [vmem:[%s13717_s3 + $0x60] sm:$0xff] (!%p6278_p13)  ;;  %v5395_v29 = vld [vmem:[%s13717_s3 + $0x30] sm:$0xff] (!%p6278_p13) }
0x1885   :  { %v7643_v14 = vpack.c.bf16 (!%p6278_p13), %v5402_v11, %v5398_v10  ;;  %v5406_v17 = vld [vmem:[%s13717_s3 + $0x88] sm:$0xff] (!%p6278_p13)  ;;  %7640 = vmatprep.subr.bf16.mxu0 (!%p6278_p13), %v7639_v8  ;;  %v7645_v19 = vpack.c.bf16 (!%p6278_p13), %v5401_v16, %v5397_v15  ;;  %v5405_v20 = vld [vmem:[%s13717_s3 + $0x80] sm:$0xff] (!%p6278_p13)  ;;  %v7673_v30 = vpack.c.bf16 (!%p6278_p13), %v5395_v29, %v5391_v28  ;;  %7672 = vmatprep.subr.bf16.mxu1 (!%p6278_p13), %v7671_v27  ;;  %v5400_v32 = vld [vmem:[%s13717_s3 + $0x58] sm:$0xff] (!%p6278_p13) }
0x1886   :  { %v5410_v18 = vld [vmem:[%s13717_s3 + $0xa8] sm:$0xff] (!%p6278_p13)  ;;  %7642 = vmatpush1.bf16.msra.mxu0 (!%p6278_p13), %v7641_v13  ;;  %v5409_v21 = vld [vmem:[%s13717_s3 + $0xa0] sm:$0xff] (!%p6278_p13)  ;;  %v5404_v33 = vld [vmem:[%s13717_s3 + $0x78] sm:$0xff] (!%p6278_p13) }
0x1887   :  { %7644 = vmatprep.subr.bf16.mxu0 (!%p6278_p13), %v7643_v14  ;;  %v7647_v22 = vpack.c.bf16 (!%p6278_p13), %v5410_v18, %v5406_v17  ;;  %v5414_v23 = vld [vmem:[%s13717_s3 + $0xc8] sm:$0xff] (!%p6278_p13)  ;;  %v7649_v31 = vpack.c.bf16 (!%p6278_p13), %v5409_v21, %v5405_v20  ;;  %v5399_v34 = vld [vmem:[%s13717_s3 + $0x50] sm:$0xff] (!%p6278_p13)  ;;  %v5413_v36 = vld [vmem:[%s13717_s3 + $0xc0] sm:$0xff] (!%p6278_p13)  ;;  %7674 = vmatpush1.bf16.msra.mxu1 (!%p6278_p13), %v7673_v30  ;;  %v7675_v38 = vpack.c.bf16 (!%p6278_p13), %v5404_v33, %v5400_v32 }
0x1888   :  { %v5418_v26 = vld [vmem:[%s13717_s3 + $0xe8] sm:$0xff] (!%p6278_p13)  ;;  %v5417_v37 = vld [vmem:[%s13717_s3 + $0xe0] sm:$0xff] (!%p6278_p13)  ;;  %v5403_v39 = vld [vmem:[%s13717_s3 + $0x70] sm:$0xff] (!%p6278_p13) }
0x1889   :  { %v7651_v35 = vpack.c.bf16 %v5418_v26, %v5414_v23  ;;  %v5422_v40 = vld [vmem:[%s13717_s3 + $0x108] sm:$0xff]  ;;  %v7677_v42 = vpack.c.bf16 %v5403_v39, %v5399_v34  ;;  %v5408_v43 = vld [vmem:[%s13717_s3 + $0x98] sm:$0xff]  ;;  %7676 = vmatprep.subr.bf16.mxu1 %v7675_v38  ;;  %v5407_v45 = vld [vmem:[%s13717_s3 + $0x90] sm:$0xff]  ;;  %v7653_v47 = vpack.c.bf16 %v5417_v37, %v5413_v36 }
0x188a   :  { %7646 = vmatpush1.bf16.msra.mxu0 %v7645_v19  ;;  %v5426_v41 = vld [vmem:[%s13717_s3 + $0x128] sm:$0xff]  ;;  %v5412_v44 = vld [vmem:[%s13717_s3 + $0xb8] sm:$0xff]  ;;  %v5411_v46 = vld [vmem:[%s13717_s3 + $0xb0] sm:$0xff] }
0x188b   :  { %7648 = vmatprep.subr.bf16.mxu0 %v7647_v22  ;;  %v5421_v48 = vld [vmem:[%s13717_s3 + $0x100] sm:$0xff]  ;;  %v7679_v50 = vpack.c.bf16 %v5412_v44, %v5408_v43  ;;  %v7655_v51 = vpack.c.bf16 %v5426_v41, %v5422_v40  ;;  %7678 = vmatpush1.bf16.msra.mxu1 %v7677_v42  ;;  %v5430_v52 = vld [vmem:[%s13717_s3 + $0x148] sm:$0xff]  ;;  %v7681_v53 = vpack.c.bf16 %v5411_v46, %v5407_v45  ;;  %v5416_v54 = vld [vmem:[%s13717_s3 + $0xd8] sm:$0xff] }
0x188c   :  { %v5425_v49 = vld [vmem:[%s13717_s3 + $0x120] sm:$0xff]  ;;  %v5420_v55 = vld [vmem:[%s13717_s3 + $0xf8] sm:$0xff]  ;;  %v5434_v56 = vld [vmem:[%s13717_s3 + $0x168] sm:$0xff] }
0x188d   :  { %7680 = vmatprep.subr.bf16.mxu1 %v7679_v50  ;;  %v7683_v57 = vpack.c.bf16 %v5420_v55, %v5416_v54  ;;  %v5415_v58 = vld [vmem:[%s13717_s3 + $0xd0] sm:$0xff]  ;;  %v7657_v60 = vpack.c.bf16 %v5425_v49, %v5421_v48  ;;  %v5424_v61 = vld [vmem:[%s13717_s3 + $0x118] sm:$0xff]  ;;  %v7659_v63 = vpack.c.bf16 %v5434_v56, %v5430_v52  ;;  %v5429_v0 = vld [vmem:[%s13717_s3 + $0x140] sm:$0xff] }
0x188e   :  { %7650 = vmatpush1.bf16.msra.mxu0 %v7649_v31  ;;  %v5419_v59 = vld [vmem:[%s13717_s3 + $0xf0] sm:$0xff]  ;;  %v5428_v62 = vld [vmem:[%s13717_s3 + $0x138] sm:$0xff]  ;;  %v5433_v1 = vld [vmem:[%s13717_s3 + $0x160] sm:$0xff] }
0x188f   :  { %7652 = vmatprep.subr.bf16.mxu0 %v7651_v35  ;;  %7682 = vmatpush1.bf16.msra.mxu1 %v7681_v53  ;;  %v5438_v2 = vld [vmem:[%s13717_s3 + $0x188] sm:$0xff]  ;;  %v7685_v3 = vpack.c.bf16 %v5419_v59, %v5415_v58  ;;  %v7687_v6 = vpack.c.bf16 %v5428_v62, %v5424_v61  ;;  %v5423_v7 = vld [vmem:[%s13717_s3 + $0x110] sm:$0xff]  ;;  %v5432_v9 = vld [vmem:[%s13717_s3 + $0x158] sm:$0xff]  ;;  %v7661_v11 = vpack.c.bf16 %v5433_v1, %v5429_v0 }
0x1890   :  { %v5442_v5 = vld [vmem:[%s13717_s3 + $0x1a8] sm:$0xff]  ;;  %7684 = vmatprep.subr.bf16.mxu1 %v7683_v57  ;;  %v5427_v8 = vld [vmem:[%s13717_s3 + $0x130] sm:$0xff]  ;;  %v5436_v10 = vld [vmem:[%s13717_s3 + $0x178] sm:$0xff] }
0x1891   :  { %v7663_v12 = vpack.c.bf16 %v5442_v5, %v5438_v2  ;;  %v5437_v13 = vld [vmem:[%s13717_s3 + $0x180] sm:$0xff]  ;;  %v5446_v15 = vld [vmem:[%s13717_s3 + $0x1c8] sm:$0xff]  ;;  %v7689_v16 = vpack.c.bf16 %v5427_v8, %v5423_v7  ;;  %v7691_v18 = vpack.c.bf16 %v5436_v10, %v5432_v9  ;;  %v5431_v19 = vld [vmem:[%s13717_s3 + $0x150] sm:$0xff] }
0x1892   :  { %7654 = vmatpush1.bf16.msra.mxu0 %v7653_v47  ;;  %v5441_v14 = vld [vmem:[%s13717_s3 + $0x1a0] sm:$0xff]  ;;  %v5450_v17 = vld [vmem:[%s13717_s3 + $0x1e8] sm:$0xff]  ;;  %v5435_v20 = vld [vmem:[%s13717_s3 + $0x170] sm:$0xff] }
0x1893   :  { %7656 = vmatprep.subr.bf16.mxu0 %v7655_v51  ;;  %7686 = vmatpush1.bf16.msra.mxu1 %v7685_v3  ;;  %v5440_v21 = vld [vmem:[%s13717_s3 + $0x198] sm:$0xff]  ;;  %v7665_v23 = vpack.c.bf16 %v5441_v14, %v5437_v13  ;;  %v7667_v24 = vpack.c.bf16 %v5450_v17, %v5446_v15  ;;  %v5445_v25 = vld [vmem:[%s13717_s3 + $0x1c0] sm:$0xff]  ;;  %v7693_v27 = vpack.c.bf16 %v5435_v20, %v5431_v19  ;;  %v5439_v29 = vld [vmem:[%s13717_s3 + $0x190] sm:$0xff] }
0x1894   :  { %7688 = vmatprep.subr.bf16.mxu1 %v7687_v6  ;;  %v5444_v22 = vld [vmem:[%s13717_s3 + $0x1b8] sm:$0xff]  ;;  %v5449_v26 = vld [vmem:[%s13717_s3 + $0x1e0] sm:$0xff]  ;;  %v5443_v30 = vld [vmem:[%s13717_s3 + $0x1b0] sm:$0xff] }
0x1895   :  { %v7695_v28 = vpack.c.bf16 %v5444_v22, %v5440_v21  ;;  %v5448_v31 = vld [vmem:[%s13717_s3 + $0x1d8] sm:$0xff]  ;;  %v7669_v33 = vpack.c.bf16 %v5449_v26, %v5445_v25  ;;  %v7697_v34 = vpack.c.bf16 %v5443_v30, %v5439_v29  ;;  %v5447_v36 = vld [vmem:[%s13717_s3 + $0x1d0] sm:$0xff]  ;;  %v5383_v38 = vld [vmem:[%s13719_s5] sm:$0xff] }
0x1896   :  { %7658 = vmatpush1.bf16.msra.mxu0 %v7657_v60  ;;  %v5452_v32 = vld [vmem:[%s13717_s3 + $0x1f8] sm:$0xff]  ;;  %v5451_v37 = vld [vmem:[%s13717_s3 + $0x1f0] sm:$0xff]  ;;  %v5385_v40 = vld [vmem:[%s13716_s2 + $0x2a0] sm:$0xff] }
0x1897   :  { %7660 = vmatprep.subr.bf16.mxu0 %v7659_v63  ;;  %7690 = vmatpush1.bf16.msra.mxu1 %v7689_v16  ;;  %v7699_v35 = vpack.c.bf16 %v5452_v32, %v5448_v31  ;;  %v7701_v39 = vpack.c.bf16 %v5451_v37, %v5447_v36  ;;  %v5386_v41 = vld [vmem:[%s13716_s2 + $0x2a8] sm:$0xff]  ;;  %v5388_v48 = vld [vmem:[%s13716_s2 + $0x2b8] sm:$0xff]  ;;  %v5387_v52 = vld [vmem:[%s13716_s2 + $0x2b0] sm:$0xff] }
0x1898   :  { %7692 = vmatprep.subr.bf16.mxu1 %v7691_v18  ;;  %v5384_v61 = vld [vmem:[%s13720_s6] sm:$0xff] }
0x189a   :  { %7662 = vmatpush1.bf16.msra.mxu0 %v7661_v11 }
0x189b   :  { %7664 = vmatprep.subr.bf16.mxu0 %v7663_v12  ;;  %7694 = vmatpush1.bf16.msra.mxu1 %v7693_v27 }
0x189c   :  { %7696 = vmatprep.subr.bf16.mxu1 %v7695_v28 }
0x189e   :  { %7666 = vmatpush1.bf16.msra.mxu0 %v7665_v23 }
0x189f   :  { %7668 = vmatprep.subr.bf16.mxu0 %v7667_v24  ;;  %7698 = vmatpush1.bf16.msra.mxu1 %v7697_v34 }
0x18a0   :  { %7700 = vmatprep.subr.bf16.mxu1 %v7699_v35 }
0x18a2   :  { %7670 = vmatpush1.bf16.msra.mxu0 %v7669_v33 }
0x18a3   :  { %7702 = vmatpush1.bf16.msra.mxu1 %v7701_v39 }
0x18a5   :  { %5518 = vmatmul.mubr.f32.vlgmr.msra.gmra.mrb[0].mxu0 %v5383_v38 }
0x18a6   :  { %5589 = vmatmul.mubr.f32.vlgmr.msra.gmra.mrb[0].mxu1 %v5383_v38 }
0x1978   :  { %v5519_v42 = vpop.f32.mrb[0].mxu0 }
0x1979   :  { %v5595_v43 = vadd.f32 %v5519_v42, %v5385_v40  ;;  %v5521_v44 = vpop.f32.mrb[1].mxu0  ;;  %v5590_v49 = vpop.f32.mrb[0].mxu1 }
0x197a   :  { %v5596_v45 = vadd.f32 %v5521_v44, %v5386_v41  ;;  %v5592_v50 = vpop.f32.mrb[1].mxu1  ;;  %v5597_v54 = vadd.f32 %v5590_v49, %v5387_v52 }
0x197b   :  { %v6279_v46 = vmul.f32 -1.442695, %v5595_v43  ;;  %v5598_v51 = vadd.f32 %v5592_v50, %v5388_v48 }
0x197c   :  { %v6280_v47 = vmul.f32 -1.442695, %v5596_v45 }
0x197d   :  { %8196 = vpow2.f32 %v6279_v46  ;;  %v6281_v53 = vmul.f32 -1.442695, %v5598_v51 }
0x197e   :  { %8198 = vpow2.f32 %v6280_v47 }
0x197f   :  { %8200 = vpow2.f32 %v6281_v53 }
0x1980   :  { %8202 = vtanh.f32 %v5597_v54 }
0x1987   :  { %v8197_v55 = vpop.eup %8196 }
0x1988   :  { %v8199_v56 = vpop.eup %8198  ;;  %v5602_v57 = vadd.f32 1.0, %v8197_v55 }
0x1989   :  { %v5608_v58 = vadd.f32 1.0, %v8199_v56  ;;  %v8201_v59 = vpop.eup %8200 }
0x198a   :  { %8204 = vrcp.f32 %v5602_v57  ;;  %v8203_v60 = vpop.eup %8202  ;;  %v5615_v63 = vadd.f32 1.0, %v8201_v59 }
0x198b   :  { %8206 = vrcp.f32 %v5608_v58 }
0x198c   :  { %8208 = vrcp.f32 %v5615_v63 }
0x1994   :  { %v8205_v62 = vpop.eup %8204 }
0x1995   :  { %v8207_v0 = vpop.eup %8206  ;;  %v5619_v1 = vmul.f32 %v8205_v62, %v8203_v60 }
0x1996   :  { %v5618_v2 = vmul.f32 %v8207_v0, %v5384_v61  ;;  %v8209_v6 = vpop.eup %8208 }
0x1998   :  { %v5620_v3 = vadd.f32 %v5619_v1, %v5618_v2 }
0x199a   :  { %8210 = vtanh.f32 %v5620_v3  ;;  %v5627_v5 = vsel %vm6282_vm5, %v5620_v3, %v5384_v61 }
0x199b   :  { %5628 = vst [vmem:[%s13720_s6] sm:$0xff] %v5627_v5 }
0x19a4   :  { %v8211_v7 = vpop.eup %8210 }
0x19a5   :  { %v5622_v8 = vmul.f32 %v8211_v7, %v8209_v6 }
0x19a7   :  { %v5625_v9 = vsel %vm6282_vm5, %v5622_v8, %v5383_v38  ;;  %v5629_v10 = vsel %vm6282_vm5, %v5622_v8, 0.0 }
0x19a8   :  { %5626 = vst [vmem:[%s13719_s5] sm:$0xff] %v5625_v9  ;;  %5630 = vst [vmem:[%s13718_s4 + $0xa8] sm:$0xff] %v5629_v10 }
0x19a9 PF:  { %p6284_p0 = scmp.le.s32.totalorder %s8324_s26, 22 }
0x19aa   :  { %v5643_v11 = vld [vmem:[%s13717_s3 + $0x8] sm:$0xff] (!%p6284_p0)  ;;  %v5642_v13 = vld [vmem:[%s13717_s3] sm:$0xff] (!%p6284_p0)  ;;  %v8284_v18 = vmov (!%p6284_p0), 0.0   ;;  %v5645_v30 = vld [vmem:[%s13717_s3 + $0x18] sm:$0xff] (!%p6284_p0)  ;;  %vm6288_vm6 = vcmp.gt.s32.totalorder (!%p6284_p0), %v8408_v4, 22 }
0x19ab   :  { %5635 = sbr.rel (%p6284_p0) target bundleno = 6866 (0x1ad2), region = 113  ;;  %v5647_v12 = vld [vmem:[%s13717_s3 + $0x28] sm:$0xff] (!%p6284_p0)  ;;  %v5646_v15 = vld [vmem:[%s13717_s3 + $0x20] sm:$0xff] (!%p6284_p0)  ;;  %5770 = vmatprep.mubr.f32.mxu0 (!%p6284_p0), %v8284_v18  ;;  %5841 = vmatprep.mubr.f32.mxu1 (!%p6284_p0), %v8284_v18  ;;  %v5649_v31 = vld [vmem:[%s13717_s3 + $0x38] sm:$0xff] (!%p6284_p0) }
0x19ac   :  { %v7703_v14 = vpack.c.bf16 (!%p6284_p0), %v5647_v12, %v5643_v11  ;;  %v5651_v16 = vld [vmem:[%s13717_s3 + $0x48] sm:$0xff] (!%p6284_p0)  ;;  %v7705_v19 = vpack.c.bf16 (!%p6284_p0), %v5646_v15, %v5642_v13  ;;  %v5650_v21 = vld [vmem:[%s13717_s3 + $0x40] sm:$0xff] (!%p6284_p0)  ;;  %v7735_v33 = vpack.c.bf16 (!%p6284_p0), %v5649_v31, %v5645_v30  ;;  %v5644_v34 = vld [vmem:[%s13717_s3 + $0x10] sm:$0xff] (!%p6284_p0) }
0x19ad   :  { %v5655_v17 = vld [vmem:[%s13717_s3 + $0x68] sm:$0xff] (!%p6284_p0)  ;;  %v5654_v22 = vld [vmem:[%s13717_s3 + $0x60] sm:$0xff] (!%p6284_p0)  ;;  %v5648_v35 = vld [vmem:[%s13717_s3 + $0x30] sm:$0xff] (!%p6284_p0) }
0x19ae   :  { %v7707_v20 = vpack.c.bf16 (!%p6284_p0), %v5655_v17, %v5651_v16  ;;  %v5659_v23 = vld [vmem:[%s13717_s3 + $0x88] sm:$0xff] (!%p6284_p0)  ;;  %7704 = vmatprep.subr.bf16.mxu0 (!%p6284_p0), %v7703_v14  ;;  %v7709_v25 = vpack.c.bf16 (!%p6284_p0), %v5654_v22, %v5650_v21  ;;  %v5658_v26 = vld [vmem:[%s13717_s3 + $0x80] sm:$0xff] (!%p6284_p0)  ;;  %v7737_v36 = vpack.c.bf16 (!%p6284_p0), %v5648_v35, %v5644_v34  ;;  %7736 = vmatprep.subr.bf16.mxu1 (!%p6284_p0), %v7735_v33  ;;  %v5653_v38 = vld [vmem:[%s13717_s3 + $0x58] sm:$0xff] (!%p6284_p0) }
0x19af   :  { %v5663_v24 = vld [vmem:[%s13717_s3 + $0xa8] sm:$0xff] (!%p6284_p0)  ;;  %7706 = vmatpush1.bf16.msra.mxu0 (!%p6284_p0), %v7705_v19  ;;  %v5662_v27 = vld [vmem:[%s13717_s3 + $0xa0] sm:$0xff] (!%p6284_p0)  ;;  %v5657_v39 = vld [vmem:[%s13717_s3 + $0x78] sm:$0xff] (!%p6284_p0) }
0x19b0   :  { %7708 = vmatprep.subr.bf16.mxu0 (!%p6284_p0), %v7707_v20  ;;  %v7711_v28 = vpack.c.bf16 (!%p6284_p0), %v5663_v24, %v5659_v23  ;;  %v5667_v29 = vld [vmem:[%s13717_s3 + $0xc8] sm:$0xff] (!%p6284_p0)  ;;  %v7713_v37 = vpack.c.bf16 (!%p6284_p0), %v5662_v27, %v5658_v26  ;;  %v5652_v40 = vld [vmem:[%s13717_s3 + $0x50] sm:$0xff] (!%p6284_p0)  ;;  %v5666_v42 = vld [vmem:[%s13717_s3 + $0xc0] sm:$0xff] (!%p6284_p0)  ;;  %7738 = vmatpush1.bf16.msra.mxu1 (!%p6284_p0), %v7737_v36  ;;  %v7739_v44 = vpack.c.bf16 (!%p6284_p0), %v5657_v39, %v5653_v38 }
0x19b1   :  { %v5671_v32 = vld [vmem:[%s13717_s3 + $0xe8] sm:$0xff] (!%p6284_p0)  ;;  %v5670_v43 = vld [vmem:[%s13717_s3 + $0xe0] sm:$0xff] (!%p6284_p0)  ;;  %v5656_v45 = vld [vmem:[%s13717_s3 + $0x70] sm:$0xff] (!%p6284_p0) }
0x19b2   :  { %v7715_v41 = vpack.c.bf16 %v5671_v32, %v5667_v29  ;;  %v5675_v46 = vld [vmem:[%s13717_s3 + $0x108] sm:$0xff]  ;;  %v7741_v48 = vpack.c.bf16 %v5656_v45, %v5652_v40  ;;  %v5661_v49 = vld [vmem:[%s13717_s3 + $0x98] sm:$0xff]  ;;  %7740 = vmatprep.subr.bf16.mxu1 %v7739_v44  ;;  %v5660_v51 = vld [vmem:[%s13717_s3 + $0x90] sm:$0xff]  ;;  %v7717_v53 = vpack.c.bf16 %v5670_v43, %v5666_v42 }
0x19b3   :  { %7710 = vmatpush1.bf16.msra.mxu0 %v7709_v25  ;;  %v5679_v47 = vld [vmem:[%s13717_s3 + $0x128] sm:$0xff]  ;;  %v5665_v50 = vld [vmem:[%s13717_s3 + $0xb8] sm:$0xff]  ;;  %v5664_v52 = vld [vmem:[%s13717_s3 + $0xb0] sm:$0xff] }
0x19b4   :  { %7712 = vmatprep.subr.bf16.mxu0 %v7711_v28  ;;  %v5674_v54 = vld [vmem:[%s13717_s3 + $0x100] sm:$0xff]  ;;  %v7743_v56 = vpack.c.bf16 %v5665_v50, %v5661_v49  ;;  %v7719_v57 = vpack.c.bf16 %v5679_v47, %v5675_v46  ;;  %7742 = vmatpush1.bf16.msra.mxu1 %v7741_v48  ;;  %v5683_v58 = vld [vmem:[%s13717_s3 + $0x148] sm:$0xff]  ;;  %v7745_v59 = vpack.c.bf16 %v5664_v52, %v5660_v51  ;;  %v5669_v60 = vld [vmem:[%s13717_s3 + $0xd8] sm:$0xff] }
0x19b5   :  { %v5678_v55 = vld [vmem:[%s13717_s3 + $0x120] sm:$0xff]  ;;  %v5673_v61 = vld [vmem:[%s13717_s3 + $0xf8] sm:$0xff]  ;;  %v5687_v62 = vld [vmem:[%s13717_s3 + $0x168] sm:$0xff] }
0x19b6   :  { %7744 = vmatprep.subr.bf16.mxu1 %v7743_v56  ;;  %v7747_v63 = vpack.c.bf16 %v5673_v61, %v5669_v60  ;;  %v5668_v0 = vld [vmem:[%s13717_s3 + $0xd0] sm:$0xff]  ;;  %v7721_v2 = vpack.c.bf16 %v5678_v55, %v5674_v54  ;;  %v5677_v3 = vld [vmem:[%s13717_s3 + $0x118] sm:$0xff]  ;;  %v7723_v6 = vpack.c.bf16 %v5687_v62, %v5683_v58  ;;  %v5682_v7 = vld [vmem:[%s13717_s3 + $0x140] sm:$0xff] }
0x19b7   :  { %7714 = vmatpush1.bf16.msra.mxu0 %v7713_v37  ;;  %v5672_v1 = vld [vmem:[%s13717_s3 + $0xf0] sm:$0xff]  ;;  %v5681_v5 = vld [vmem:[%s13717_s3 + $0x138] sm:$0xff]  ;;  %v5686_v8 = vld [vmem:[%s13717_s3 + $0x160] sm:$0xff] }
0x19b8   :  { %7716 = vmatprep.subr.bf16.mxu0 %v7715_v41  ;;  %7746 = vmatpush1.bf16.msra.mxu1 %v7745_v59  ;;  %v5691_v9 = vld [vmem:[%s13717_s3 + $0x188] sm:$0xff]  ;;  %v7749_v10 = vpack.c.bf16 %v5672_v1, %v5668_v0  ;;  %v7751_v12 = vpack.c.bf16 %v5681_v5, %v5677_v3  ;;  %v5676_v13 = vld [vmem:[%s13717_s3 + $0x110] sm:$0xff]  ;;  %v5685_v15 = vld [vmem:[%s13717_s3 + $0x158] sm:$0xff]  ;;  %v7725_v17 = vpack.c.bf16 %v5686_v8, %v5682_v7 }
0x19b9   :  { %v5695_v11 = vld [vmem:[%s13717_s3 + $0x1a8] sm:$0xff]  ;;  %7748 = vmatprep.subr.bf16.mxu1 %v7747_v63  ;;  %v5680_v14 = vld [vmem:[%s13717_s3 + $0x130] sm:$0xff]  ;;  %v5689_v16 = vld [vmem:[%s13717_s3 + $0x178] sm:$0xff] }
0x19ba   :  { %v7727_v18 = vpack.c.bf16 %v5695_v11, %v5691_v9  ;;  %v5690_v19 = vld [vmem:[%s13717_s3 + $0x180] sm:$0xff]  ;;  %v5699_v21 = vld [vmem:[%s13717_s3 + $0x1c8] sm:$0xff]  ;;  %v7753_v22 = vpack.c.bf16 %v5680_v14, %v5676_v13  ;;  %v7755_v24 = vpack.c.bf16 %v5689_v16, %v5685_v15  ;;  %v5684_v25 = vld [vmem:[%s13717_s3 + $0x150] sm:$0xff] }
0x19bb   :  { %7718 = vmatpush1.bf16.msra.mxu0 %v7717_v53  ;;  %v5694_v20 = vld [vmem:[%s13717_s3 + $0x1a0] sm:$0xff]  ;;  %v5703_v23 = vld [vmem:[%s13717_s3 + $0x1e8] sm:$0xff]  ;;  %v5688_v26 = vld [vmem:[%s13717_s3 + $0x170] sm:$0xff] }
0x19bc   :  { %7720 = vmatprep.subr.bf16.mxu0 %v7719_v57  ;;  %7750 = vmatpush1.bf16.msra.mxu1 %v7749_v10  ;;  %v5693_v27 = vld [vmem:[%s13717_s3 + $0x198] sm:$0xff]  ;;  %v7729_v29 = vpack.c.bf16 %v5694_v20, %v5690_v19  ;;  %v7731_v30 = vpack.c.bf16 %v5703_v23, %v5699_v21  ;;  %v5698_v31 = vld [vmem:[%s13717_s3 + $0x1c0] sm:$0xff]  ;;  %v7757_v33 = vpack.c.bf16 %v5688_v26, %v5684_v25  ;;  %v5692_v35 = vld [vmem:[%s13717_s3 + $0x190] sm:$0xff] }
0x19bd   :  { %7752 = vmatprep.subr.bf16.mxu1 %v7751_v12  ;;  %v5697_v28 = vld [vmem:[%s13717_s3 + $0x1b8] sm:$0xff]  ;;  %v5702_v32 = vld [vmem:[%s13717_s3 + $0x1e0] sm:$0xff]  ;;  %v5696_v36 = vld [vmem:[%s13717_s3 + $0x1b0] sm:$0xff] }
0x19be   :  { %v7759_v34 = vpack.c.bf16 %v5697_v28, %v5693_v27  ;;  %v5701_v37 = vld [vmem:[%s13717_s3 + $0x1d8] sm:$0xff]  ;;  %v7733_v39 = vpack.c.bf16 %v5702_v32, %v5698_v31  ;;  %v7761_v40 = vpack.c.bf16 %v5696_v36, %v5692_v35  ;;  %v5700_v42 = vld [vmem:[%s13717_s3 + $0x1d0] sm:$0xff]  ;;  %v5636_v44 = vld [vmem:[%s13719_s5] sm:$0xff] }
0x19bf   :  { %7722 = vmatpush1.bf16.msra.mxu0 %v7721_v2  ;;  %v5705_v38 = vld [vmem:[%s13717_s3 + $0x1f8] sm:$0xff]  ;;  %v5704_v43 = vld [vmem:[%s13717_s3 + $0x1f0] sm:$0xff]  ;;  %v5638_v46 = vld [vmem:[%s13716_s2 + $0x2c0] sm:$0xff] }
0x19c0   :  { %7724 = vmatprep.subr.bf16.mxu0 %v7723_v6  ;;  %7754 = vmatpush1.bf16.msra.mxu1 %v7753_v22  ;;  %v7763_v41 = vpack.c.bf16 %v5705_v38, %v5701_v37  ;;  %v7765_v45 = vpack.c.bf16 %v5704_v43, %v5700_v42  ;;  %v5639_v47 = vld [vmem:[%s13716_s2 + $0x2c8] sm:$0xff]  ;;  %v5641_v54 = vld [vmem:[%s13716_s2 + $0x2d8] sm:$0xff]  ;;  %v5640_v58 = vld [vmem:[%s13716_s2 + $0x2d0] sm:$0xff] }
0x19c1   :  { %7756 = vmatprep.subr.bf16.mxu1 %v7755_v24  ;;  %v5637_v3 = vld [vmem:[%s13720_s6] sm:$0xff] }
0x19c3   :  { %7726 = vmatpush1.bf16.msra.mxu0 %v7725_v17 }
0x19c4   :  { %7728 = vmatprep.subr.bf16.mxu0 %v7727_v18  ;;  %7758 = vmatpush1.bf16.msra.mxu1 %v7757_v33 }
0x19c5   :  { %7760 = vmatprep.subr.bf16.mxu1 %v7759_v34 }
0x19c7   :  { %7730 = vmatpush1.bf16.msra.mxu0 %v7729_v29 }
0x19c8   :  { %7732 = vmatprep.subr.bf16.mxu0 %v7731_v30  ;;  %7762 = vmatpush1.bf16.msra.mxu1 %v7761_v40 }
0x19c9   :  { %7764 = vmatprep.subr.bf16.mxu1 %v7763_v41 }
0x19cb   :  { %7734 = vmatpush1.bf16.msra.mxu0 %v7733_v39 }
0x19cc   :  { %7766 = vmatpush1.bf16.msra.mxu1 %v7765_v45 }
0x19ce   :  { %5771 = vmatmul.mubr.f32.vlgmr.msra.gmra.mrb[0].mxu0 %v5636_v44 }
0x19cf   :  { %5842 = vmatmul.mubr.f32.vlgmr.msra.gmra.mrb[0].mxu1 %v5636_v44 }
0x1aa1   :  { %v5772_v48 = vpop.f32.mrb[0].mxu0 }
0x1aa2   :  { %v5848_v49 = vadd.f32 %v5772_v48, %v5638_v46  ;;  %v5774_v50 = vpop.f32.mrb[1].mxu0  ;;  %v5843_v55 = vpop.f32.mrb[0].mxu1 }
0x1aa3   :  { %v5849_v51 = vadd.f32 %v5774_v50, %v5639_v47  ;;  %v5845_v56 = vpop.f32.mrb[1].mxu1  ;;  %v5850_v60 = vadd.f32 %v5843_v55, %v5640_v58 }
0x1aa4   :  { %v6285_v52 = vmul.f32 -1.442695, %v5848_v49  ;;  %v5851_v57 = vadd.f32 %v5845_v56, %v5641_v54 }
0x1aa5   :  { %v6286_v53 = vmul.f32 -1.442695, %v5849_v51 }
0x1aa6   :  { %8212 = vpow2.f32 %v6285_v52  ;;  %v6287_v59 = vmul.f32 -1.442695, %v5851_v57 }
0x1aa7   :  { %8214 = vpow2.f32 %v6286_v53 }
0x1aa8   :  { %8216 = vpow2.f32 %v6287_v59 }
0x1aa9   :  { %8218 = vtanh.f32 %v5850_v60 }
0x1ab0   :  { %v8213_v61 = vpop.eup %8212 }
0x1ab1   :  { %v8215_v62 = vpop.eup %8214  ;;  %v5855_v63 = vadd.f32 1.0, %v8213_v61 }
0x1ab2   :  { %v5861_v0 = vadd.f32 1.0, %v8215_v62  ;;  %v8217_v1 = vpop.eup %8216 }
0x1ab3   :  { %8220 = vrcp.f32 %v5855_v63  ;;  %v8219_v2 = vpop.eup %8218  ;;  %v5868_v6 = vadd.f32 1.0, %v8217_v1 }
0x1ab4   :  { %8222 = vrcp.f32 %v5861_v0 }
0x1ab5   :  { %8224 = vrcp.f32 %v5868_v6 }
0x1abd   :  { %v8221_v5 = vpop.eup %8220 }
0x1abe   :  { %v8223_v7 = vpop.eup %8222  ;;  %v5872_v8 = vmul.f32 %v8221_v5, %v8219_v2 }
0x1abf   :  { %v5871_v9 = vmul.f32 %v8223_v7, %v5637_v3  ;;  %v8225_v12 = vpop.eup %8224 }
0x1ac1   :  { %v5873_v10 = vadd.f32 %v5872_v8, %v5871_v9 }
0x1ac3   :  { %8226 = vtanh.f32 %v5873_v10  ;;  %v5880_v11 = vsel %vm6288_vm6, %v5873_v10, %v5637_v3 }
0x1ac4   :  { %5881 = vst [vmem:[%s13720_s6] sm:$0xff] %v5880_v11 }
0x1acd   :  { %v8227_v13 = vpop.eup %8226 }
0x1ace   :  { %v5875_v14 = vmul.f32 %v8227_v13, %v8225_v12 }
0x1ad0   :  { %v5878_v15 = vsel %vm6288_vm6, %v5875_v14, %v5636_v44  ;;  %v5882_v16 = vsel %vm6288_vm6, %v5875_v14, 0.0 }
0x1ad1   :  { %5879 = vst [vmem:[%s13719_s5] sm:$0xff] %v5878_v15  ;;  %5883 = vst [vmem:[%s13718_s4 + $0xb0] sm:$0xff] %v5882_v16 }
0x1ad2 PF:  { %p6290_p1 = scmp.le.s32.totalorder %s8324_s26, 23 }
0x1ad3   :  { %v5896_v17 = vld [vmem:[%s13717_s3 + $0x8] sm:$0xff] (!%p6290_p1)  ;;  %v5895_v19 = vld [vmem:[%s13717_s3] sm:$0xff] (!%p6290_p1)  ;;  %v8285_v24 = vmov (!%p6290_p1), 0.0   ;;  %v5898_v36 = vld [vmem:[%s13717_s3 + $0x18] sm:$0xff] (!%p6290_p1)  ;;  %vm6294_vm7 = vcmp.gt.s32.totalorder (!%p6290_p1), %v8408_v4, 23 }
0x1ad4   :  { %5888 = sbr.rel (%p6290_p1) target bundleno = 7163 (0x1bfb), region = 117  ;;  %v5900_v18 = vld [vmem:[%s13717_s3 + $0x28] sm:$0xff] (!%p6290_p1)  ;;  %v5899_v21 = vld [vmem:[%s13717_s3 + $0x20] sm:$0xff] (!%p6290_p1)  ;;  %6023 = vmatprep.mubr.f32.mxu0 (!%p6290_p1), %v8285_v24  ;;  %6094 = vmatprep.mubr.f32.mxu1 (!%p6290_p1), %v8285_v24  ;;  %v5902_v37 = vld [vmem:[%s13717_s3 + $0x38] sm:$0xff] (!%p6290_p1) }
0x1ad5   :  { %v7767_v20 = vpack.c.bf16 (!%p6290_p1), %v5900_v18, %v5896_v17  ;;  %v5904_v22 = vld [vmem:[%s13717_s3 + $0x48] sm:$0xff] (!%p6290_p1)  ;;  %v7769_v25 = vpack.c.bf16 (!%p6290_p1), %v5899_v21, %v5895_v19  ;;  %v5903_v27 = vld [vmem:[%s13717_s3 + $0x40] sm:$0xff] (!%p6290_p1)  ;;  %v7799_v39 = vpack.c.bf16 (!%p6290_p1), %v5902_v37, %v5898_v36  ;;  %v5897_v40 = vld [vmem:[%s13717_s3 + $0x10] sm:$0xff] (!%p6290_p1) }
0x1ad6   :  { %v5908_v23 = vld [vmem:[%s13717_s3 + $0x68] sm:$0xff] (!%p6290_p1)  ;;  %v5907_v28 = vld [vmem:[%s13717_s3 + $0x60] sm:$0xff] (!%p6290_p1)  ;;  %v5901_v41 = vld [vmem:[%s13717_s3 + $0x30] sm:$0xff] (!%p6290_p1) }
0x1ad7   :  { %v7771_v26 = vpack.c.bf16 (!%p6290_p1), %v5908_v23, %v5904_v22  ;;  %v5912_v29 = vld [vmem:[%s13717_s3 + $0x88] sm:$0xff] (!%p6290_p1)  ;;  %7768 = vmatprep.subr.bf16.mxu0 (!%p6290_p1), %v7767_v20  ;;  %v7773_v31 = vpack.c.bf16 (!%p6290_p1), %v5907_v28, %v5903_v27  ;;  %v5911_v32 = vld [vmem:[%s13717_s3 + $0x80] sm:$0xff] (!%p6290_p1)  ;;  %v7801_v42 = vpack.c.bf16 (!%p6290_p1), %v5901_v41, %v5897_v40  ;;  %7800 = vmatprep.subr.bf16.mxu1 (!%p6290_p1), %v7799_v39  ;;  %v5906_v44 = vld [vmem:[%s13717_s3 + $0x58] sm:$0xff] (!%p6290_p1) }
0x1ad8   :  { %v5916_v30 = vld [vmem:[%s13717_s3 + $0xa8] sm:$0xff] (!%p6290_p1)  ;;  %7770 = vmatpush1.bf16.msra.mxu0 (!%p6290_p1), %v7769_v25  ;;  %v5915_v33 = vld [vmem:[%s13717_s3 + $0xa0] sm:$0xff] (!%p6290_p1)  ;;  %v5910_v45 = vld [vmem:[%s13717_s3 + $0x78] sm:$0xff] (!%p6290_p1) }
0x1ad9   :  { %7772 = vmatprep.subr.bf16.mxu0 (!%p6290_p1), %v7771_v26  ;;  %v7775_v34 = vpack.c.bf16 (!%p6290_p1), %v5916_v30, %v5912_v29  ;;  %v5920_v35 = vld [vmem:[%s13717_s3 + $0xc8] sm:$0xff] (!%p6290_p1)  ;;  %v7777_v43 = vpack.c.bf16 (!%p6290_p1), %v5915_v33, %v5911_v32  ;;  %v5905_v46 = vld [vmem:[%s13717_s3 + $0x50] sm:$0xff] (!%p6290_p1)  ;;  %v5919_v48 = vld [vmem:[%s13717_s3 + $0xc0] sm:$0xff] (!%p6290_p1)  ;;  %7802 = vmatpush1.bf16.msra.mxu1 (!%p6290_p1), %v7801_v42  ;;  %v7803_v50 = vpack.c.bf16 (!%p6290_p1), %v5910_v45, %v5906_v44 }
0x1ada   :  { %v5924_v38 = vld [vmem:[%s13717_s3 + $0xe8] sm:$0xff] (!%p6290_p1)  ;;  %v5923_v49 = vld [vmem:[%s13717_s3 + $0xe0] sm:$0xff] (!%p6290_p1)  ;;  %v5909_v51 = vld [vmem:[%s13717_s3 + $0x70] sm:$0xff] (!%p6290_p1) }
0x1adb   :  { %v7779_v47 = vpack.c.bf16 %v5924_v38, %v5920_v35  ;;  %v5928_v52 = vld [vmem:[%s13717_s3 + $0x108] sm:$0xff]  ;;  %v7805_v54 = vpack.c.bf16 %v5909_v51, %v5905_v46  ;;  %v5914_v55 = vld [vmem:[%s13717_s3 + $0x98] sm:$0xff]  ;;  %7804 = vmatprep.subr.bf16.mxu1 %v7803_v50  ;;  %v5913_v57 = vld [vmem:[%s13717_s3 + $0x90] sm:$0xff]  ;;  %v7781_v59 = vpack.c.bf16 %v5923_v49, %v5919_v48 }
0x1adc   :  { %7774 = vmatpush1.bf16.msra.mxu0 %v7773_v31  ;;  %v5932_v53 = vld [vmem:[%s13717_s3 + $0x128] sm:$0xff]  ;;  %v5918_v56 = vld [vmem:[%s13717_s3 + $0xb8] sm:$0xff]  ;;  %v5917_v58 = vld [vmem:[%s13717_s3 + $0xb0] sm:$0xff] }
0x1add   :  { %7776 = vmatprep.subr.bf16.mxu0 %v7775_v34  ;;  %v5927_v60 = vld [vmem:[%s13717_s3 + $0x100] sm:$0xff]  ;;  %v7807_v62 = vpack.c.bf16 %v5918_v56, %v5914_v55  ;;  %v7783_v63 = vpack.c.bf16 %v5932_v53, %v5928_v52  ;;  %7806 = vmatpush1.bf16.msra.mxu1 %v7805_v54  ;;  %v5936_v0 = vld [vmem:[%s13717_s3 + $0x148] sm:$0xff]  ;;  %v7809_v1 = vpack.c.bf16 %v5917_v58, %v5913_v57  ;;  %v5922_v2 = vld [vmem:[%s13717_s3 + $0xd8] sm:$0xff] }
0x1ade   :  { %v5931_v61 = vld [vmem:[%s13717_s3 + $0x120] sm:$0xff]  ;;  %v5926_v3 = vld [vmem:[%s13717_s3 + $0xf8] sm:$0xff]  ;;  %v5940_v5 = vld [vmem:[%s13717_s3 + $0x168] sm:$0xff] }
0x1adf   :  { %7808 = vmatprep.subr.bf16.mxu1 %v7807_v62  ;;  %v7811_v6 = vpack.c.bf16 %v5926_v3, %v5922_v2  ;;  %v5921_v7 = vld [vmem:[%s13717_s3 + $0xd0] sm:$0xff]  ;;  %v7785_v9 = vpack.c.bf16 %v5931_v61, %v5927_v60  ;;  %v5930_v10 = vld [vmem:[%s13717_s3 + $0x118] sm:$0xff]  ;;  %v7787_v12 = vpack.c.bf16 %v5940_v5, %v5936_v0  ;;  %v5935_v13 = vld [vmem:[%s13717_s3 + $0x140] sm:$0xff] }
0x1ae0   :  { %7778 = vmatpush1.bf16.msra.mxu0 %v7777_v43  ;;  %v5925_v8 = vld [vmem:[%s13717_s3 + $0xf0] sm:$0xff]  ;;  %v5934_v11 = vld [vmem:[%s13717_s3 + $0x138] sm:$0xff]  ;;  %v5939_v14 = vld [vmem:[%s13717_s3 + $0x160] sm:$0xff] }
0x1ae1   :  { %7780 = vmatprep.subr.bf16.mxu0 %v7779_v47  ;;  %7810 = vmatpush1.bf16.msra.mxu1 %v7809_v1  ;;  %v5944_v15 = vld [vmem:[%s13717_s3 + $0x188] sm:$0xff]  ;;  %v7813_v16 = vpack.c.bf16 %v5925_v8, %v5921_v7  ;;  %v7815_v18 = vpack.c.bf16 %v5934_v11, %v5930_v10  ;;  %v5929_v19 = vld [vmem:[%s13717_s3 + $0x110] sm:$0xff]  ;;  %v5938_v21 = vld [vmem:[%s13717_s3 + $0x158] sm:$0xff]  ;;  %v7789_v23 = vpack.c.bf16 %v5939_v14, %v5935_v13 }
0x1ae2   :  { %v5948_v17 = vld [vmem:[%s13717_s3 + $0x1a8] sm:$0xff]  ;;  %7812 = vmatprep.subr.bf16.mxu1 %v7811_v6  ;;  %v5933_v20 = vld [vmem:[%s13717_s3 + $0x130] sm:$0xff]  ;;  %v5942_v22 = vld [vmem:[%s13717_s3 + $0x178] sm:$0xff] }
0x1ae3   :  { %v7791_v24 = vpack.c.bf16 %v5948_v17, %v5944_v15  ;;  %v5943_v25 = vld [vmem:[%s13717_s3 + $0x180] sm:$0xff]  ;;  %v5952_v27 = vld [vmem:[%s13717_s3 + $0x1c8] sm:$0xff]  ;;  %v7817_v28 = vpack.c.bf16 %v5933_v20, %v5929_v19  ;;  %v7819_v30 = vpack.c.bf16 %v5942_v22, %v5938_v21  ;;  %v5937_v31 = vld [vmem:[%s13717_s3 + $0x150] sm:$0xff] }
0x1ae4   :  { %7782 = vmatpush1.bf16.msra.mxu0 %v7781_v59  ;;  %v5947_v26 = vld [vmem:[%s13717_s3 + $0x1a0] sm:$0xff]  ;;  %v5956_v29 = vld [vmem:[%s13717_s3 + $0x1e8] sm:$0xff]  ;;  %v5941_v32 = vld [vmem:[%s13717_s3 + $0x170] sm:$0xff] }
0x1ae5   :  { %7784 = vmatprep.subr.bf16.mxu0 %v7783_v63  ;;  %7814 = vmatpush1.bf16.msra.mxu1 %v7813_v16  ;;  %v5946_v33 = vld [vmem:[%s13717_s3 + $0x198] sm:$0xff]  ;;  %v7793_v35 = vpack.c.bf16 %v5947_v26, %v5943_v25  ;;  %v7795_v36 = vpack.c.bf16 %v5956_v29, %v5952_v27  ;;  %v5951_v37 = vld [vmem:[%s13717_s3 + $0x1c0] sm:$0xff]  ;;  %v7821_v39 = vpack.c.bf16 %v5941_v32, %v5937_v31  ;;  %v5945_v41 = vld [vmem:[%s13717_s3 + $0x190] sm:$0xff] }
0x1ae6   :  { %7816 = vmatprep.subr.bf16.mxu1 %v7815_v18  ;;  %v5950_v34 = vld [vmem:[%s13717_s3 + $0x1b8] sm:$0xff]  ;;  %v5955_v38 = vld [vmem:[%s13717_s3 + $0x1e0] sm:$0xff]  ;;  %v5949_v42 = vld [vmem:[%s13717_s3 + $0x1b0] sm:$0xff] }
0x1ae7   :  { %v7823_v40 = vpack.c.bf16 %v5950_v34, %v5946_v33  ;;  %v5954_v43 = vld [vmem:[%s13717_s3 + $0x1d8] sm:$0xff]  ;;  %v7797_v45 = vpack.c.bf16 %v5955_v38, %v5951_v37  ;;  %v7825_v46 = vpack.c.bf16 %v5949_v42, %v5945_v41  ;;  %v5953_v48 = vld [vmem:[%s13717_s3 + $0x1d0] sm:$0xff]  ;;  %v5889_v50 = vld [vmem:[%s13719_s5] sm:$0xff] }
0x1ae8   :  { %7786 = vmatpush1.bf16.msra.mxu0 %v7785_v9  ;;  %v5958_v44 = vld [vmem:[%s13717_s3 + $0x1f8] sm:$0xff]  ;;  %v5957_v49 = vld [vmem:[%s13717_s3 + $0x1f0] sm:$0xff]  ;;  %v5891_v52 = vld [vmem:[%s13716_s2 + $0x2e0] sm:$0xff] }
0x1ae9   :  { %7788 = vmatprep.subr.bf16.mxu0 %v7787_v12  ;;  %7818 = vmatpush1.bf16.msra.mxu1 %v7817_v28  ;;  %v7827_v47 = vpack.c.bf16 %v5958_v44, %v5954_v43  ;;  %v7829_v51 = vpack.c.bf16 %v5957_v49, %v5953_v48  ;;  %v5892_v53 = vld [vmem:[%s13716_s2 + $0x2e8] sm:$0xff]  ;;  %v5894_v60 = vld [vmem:[%s13716_s2 + $0x2f8] sm:$0xff]  ;;  %v5893_v0 = vld [vmem:[%s13716_s2 + $0x2f0] sm:$0xff] }
0x1aea   :  { %7820 = vmatprep.subr.bf16.mxu1 %v7819_v30  ;;  %v5890_v10 = vld [vmem:[%s13720_s6] sm:$0xff] }
0x1aec   :  { %7790 = vmatpush1.bf16.msra.mxu0 %v7789_v23 }
0x1aed   :  { %7792 = vmatprep.subr.bf16.mxu0 %v7791_v24  ;;  %7822 = vmatpush1.bf16.msra.mxu1 %v7821_v39 }
0x1aee   :  { %7824 = vmatprep.subr.bf16.mxu1 %v7823_v40 }
0x1af0   :  { %7794 = vmatpush1.bf16.msra.mxu0 %v7793_v35 }
0x1af1   :  { %7796 = vmatprep.subr.bf16.mxu0 %v7795_v36  ;;  %7826 = vmatpush1.bf16.msra.mxu1 %v7825_v46 }
0x1af2   :  { %7828 = vmatprep.subr.bf16.mxu1 %v7827_v47 }
0x1af4   :  { %7798 = vmatpush1.bf16.msra.mxu0 %v7797_v45 }
0x1af5   :  { %7830 = vmatpush1.bf16.msra.mxu1 %v7829_v51 }
0x1af7   :  { %6024 = vmatmul.mubr.f32.vlgmr.msra.gmra.mrb[0].mxu0 %v5889_v50 }
0x1af8   :  { %6095 = vmatmul.mubr.f32.vlgmr.msra.gmra.mrb[0].mxu1 %v5889_v50 }
0x1bca   :  { %v6025_v54 = vpop.f32.mrb[0].mxu0 }
0x1bcb   :  { %v6101_v55 = vadd.f32 %v6025_v54, %v5891_v52  ;;  %v6027_v56 = vpop.f32.mrb[1].mxu0  ;;  %v6096_v61 = vpop.f32.mrb[0].mxu1 }
0x1bcc   :  { %v6102_v57 = vadd.f32 %v6027_v56, %v5892_v53  ;;  %v6098_v62 = vpop.f32.mrb[1].mxu1  ;;  %v6103_v2 = vadd.f32 %v6096_v61, %v5893_v0 }
0x1bcd   :  { %v6291_v58 = vmul.f32 -1.442695, %v6101_v55  ;;  %v6104_v63 = vadd.f32 %v6098_v62, %v5894_v60 }
0x1bce   :  { %v6292_v59 = vmul.f32 -1.442695, %v6102_v57 }
0x1bcf   :  { %8228 = vpow2.f32 %v6291_v58  ;;  %v6293_v1 = vmul.f32 -1.442695, %v6104_v63 }
0x1bd0   :  { %8230 = vpow2.f32 %v6292_v59 }
0x1bd1   :  { %8232 = vpow2.f32 %v6293_v1 }
0x1bd2   :  { %8234 = vtanh.f32 %v6103_v2 }
0x1bd9   :  { %v8229_v3 = vpop.eup %8228 }
0x1bda   :  { %v8231_v5 = vpop.eup %8230  ;;  %v6108_v6 = vadd.f32 1.0, %v8229_v3 }
0x1bdb   :  { %v6114_v7 = vadd.f32 1.0, %v8231_v5  ;;  %v8233_v8 = vpop.eup %8232 }
0x1bdc   :  { %8236 = vrcp.f32 %v6108_v6  ;;  %v8235_v9 = vpop.eup %8234  ;;  %v6121_v12 = vadd.f32 1.0, %v8233_v8 }
0x1bdd   :  { %8238 = vrcp.f32 %v6114_v7 }
0x1bde   :  { %8240 = vrcp.f32 %v6121_v12 }
0x1be6   :  { %v8237_v11 = vpop.eup %8236 }
0x1be7   :  { %v8239_v13 = vpop.eup %8238  ;;  %v6125_v14 = vmul.f32 %v8237_v11, %v8235_v9 }
0x1be8   :  { %v6124_v15 = vmul.f32 %v8239_v13, %v5890_v10  ;;  %v8241_v18 = vpop.eup %8240 }
0x1bea   :  { %v6126_v16 = vadd.f32 %v6125_v14, %v6124_v15 }
0x1bec   :  { %8242 = vtanh.f32 %v6126_v16  ;;  %v6133_v17 = vsel %vm6294_vm7, %v6126_v16, %v5890_v10 }
0x1bed   :  { %6134 = vst [vmem:[%s13720_s6] sm:$0xff] %v6133_v17 }
0x1bf6   :  { %v8243_v19 = vpop.eup %8242 }
0x1bf7   :  { %v6128_v20 = vmul.f32 %v8243_v19, %v8241_v18 }
0x1bf9   :  { %v6131_v21 = vsel %vm6294_vm7, %v6128_v20, %v5889_v50  ;;  %v6135_v22 = vsel %vm6294_vm7, %v6128_v20, 0.0 }
0x1bfa   :  { %6132 = vst [vmem:[%s13719_s5] sm:$0xff] %v6131_v21  ;;  %6136 = vst [vmem:[%s13718_s4 + $0xb8] sm:$0xff] %v6135_v22 }
0x1bfb PF:  {}

</bundles_post_ra>
